<compile_context>
chip_gen: v6e
topology: v6e:2x2x1
jax: 0.10.0
libtpu: 0.0.40
codegen_flags: <defaults>
</compile_context>

<pallas_src>
import jax
import jax.numpy as jnp
from jax.experimental import pallas as pl
from jax.experimental.pallas import tpu as pltpu


def _round_up(x, m):
    return ((x + m - 1) // m) * m


def _vmem_limit_bytes(t_tile, b_blk, H, stream_bytes):
    """Budget VMEM from actual tile sizes (assume worst-case double buffering)."""
    est = 2 * t_tile * b_blk * H * stream_bytes        # embedding tile (bf16), x2 buffers
    est += 2 * 2 * H * 4 * H * 4                       # resident W_ih + W_hh (f32)
    est += 2 * 4 * H * 4 + 2 * b_blk * 4               # bias + lengths
    est += 2 * b_blk * H * 4                           # output block, x2 buffers
    est += 2 * b_blk * H * 4                           # h / c scratch
    limit = int(est * 1.5) + (8 << 20)
    # Cap below v7x's 64 MiB physical VMEM; v5e/v6e (128 MiB) never need more here.
    return int(min(max(limit, 16 << 20), 56 << 20))


def _lstm_recurrence_kernel(len_ref, emb_ref, wih_ref, whh_ref, b_ref,
                            hid_ref, h_sc, c_sc):
    """One grid step == t_tile timesteps of the recurrence for one batch block."""
    tb = pl.program_id(1)
    t_tile = emb_ref.shape[0]
    b_blk, H = h_sc.shape

    @pl.when(tb == 0)
    def _():
        h_sc[...] = jnp.zeros_like(h_sc)
        c_sc[...] = jnp.zeros_like(c_sc)

    lens = len_ref[...]                                 # (b_blk, 1) int32
    w_ih = wih_ref[...]                                 # (H, 4H) f32, resident
    w_hh = whh_ref[...]                                 # (H, 4H) f32, resident
    bias = jnp.broadcast_to(b_ref[...], (b_blk, 4 * H))  # hoisted broadcast (f32)
    t_base = tb * t_tile

    def step(tt, carry):
        h, c = carry
        # Fused input projection: stream bf16 embeddings, cast, f32 MXU dot.
        x_t = emb_ref[tt].astype(jnp.float32)           # (b_blk, H)
        gates = (jnp.dot(x_t, w_ih, preferred_element_type=jnp.float32)
                 + jnp.dot(h, w_hh, preferred_element_type=jnp.float32)
                 + bias)
        # sigmoid(x) == 0.5*tanh(0.5*x) + 0.5 : keeps transcendentals on EUP,
        # replaces the divide with a cheap VPU fma.
        i_g = 0.5 * jnp.tanh(0.5 * gates[:, 0 * H:1 * H]) + 0.5
        f_g = 0.5 * jnp.tanh(0.5 * gates[:, 1 * H:2 * H]) + 0.5
        g_g = jnp.tanh(gates[:, 2 * H:3 * H])
        o_g = 0.5 * jnp.tanh(0.5 * gates[:, 3 * H:4 * H]) + 0.5
        c_new = f_g * c + i_g * g_g
        h_new = o_g * jnp.tanh(c_new)
        # packed-sequence semantics: freeze (h, c) once t >= length[b].
        mask = (t_base + tt) < lens                     # (b_blk, 1) -> broadcasts over H
        return jnp.where(mask, h_new, h), jnp.where(mask, c_new, c)

    h, c = jax.lax.fori_loop(0, t_tile, step, (h_sc[...], c_sc[...]),
                             unroll=True)
    h_sc[...] = h
    c_sc[...] = c

    @pl.when(tb == pl.num_programs(1) - 1)
    def _():
        hid_ref[...] = h_sc[...]


def lstm_forward(ids, lengths, params, *, t_tile=16, batch_block=None,
                 stream_dtype=jnp.bfloat16):
    """ids: int32 [B, T]; lengths: int32 [B]. Returns (prediction [B, O], hidden [B, H])."""
    emb_w = params["embedding"]   # (V, H), row 0 zero (padding_idx=0)
    w_ih = params["w_ih"]         # (H, 4H)  pre-transposed, gate order i,f,g,o
    w_hh = params["w_hh"]         # (H, 4H)
    b = params["b"]               # (1, 4H)  == b_ih + b_hh
    w_fc = params["w_fc"]         # (H, O)
    b_fc = params["b_fc"]         # (1, O)

    B, T = ids.shape
    H = emb_w.shape[1]

    t_tile = max(1, min(int(t_tile), T))

    # vreg-friendly padding: batch -> multiple of 8 sublanes (128 when large),
    # time -> multiple of t_tile. Padded rows get length 0 (state stays 0).
    if batch_block is None:
        # TODO(synk): on v7x, pass batch_block=round_up(b_pad // 2, 8) for B >= 16
        # so the "parallel" batch axis actually feeds both TensorCores.
        if B <= 128:
            b_pad = _round_up(B, 8)
            b_blk = b_pad
        else:
            b_pad = _round_up(B, 128)
            b_blk = 128
    else:
        b_blk = _round_up(int(batch_block), 8)
        b_pad = _round_up(B, b_blk)
    t_pad = _round_up(T, t_tile)

    ids_p = jnp.pad(ids.astype(jnp.int32), ((0, b_pad - B), (0, t_pad - T)))
    len_p = jnp.pad(jnp.asarray(lengths, jnp.int32), (0, b_pad - B))
    len_p = len_p.reshape(b_pad, 1)

    # Embedding gather (+ eval-mode dropout == identity), emitted directly in
    # time-major layout by transposing the tiny id matrix (no big-tensor
    # transpose), streamed to the kernel in bf16 (storage only; dots are f32).
    embedded_tm = jnp.take(emb_w.astype(stream_dtype), ids_p.T, axis=0)  # (Tp, Bp, H)

    grid = (b_pad // b_blk, t_pad // t_tile)
    vmem_limit = _vmem_limit_bytes(t_tile, b_blk, H, jnp.dtype(stream_dtype).itemsize)

    grid_spec = pltpu.PrefetchScalarGridSpec(
        num_scalar_prefetch=0,
        grid=grid,
        in_specs=[
            pl.BlockSpec((b_blk, 1), lambda bb, tb: (bb, 0)),                # lengths
            pl.BlockSpec((t_tile, b_blk, H), lambda bb, tb: (tb, bb, 0)),    # bf16 embeddings
            pl.BlockSpec((H, 4 * H), lambda bb, tb: (0, 0)),                 # W_ih^T (resident)
            pl.BlockSpec((H, 4 * H), lambda bb, tb: (0, 0)),                 # W_hh^T (resident)
            pl.BlockSpec((1, 4 * H), lambda bb, tb: (0, 0)),                 # bias (resident)
        ],
        out_specs=pl.BlockSpec((b_blk, H), lambda bb, tb: (bb, 0)),          # hidden[-1]
        scratch_shapes=[
            pltpu.VMEM((b_blk, H), jnp.float32),   # h state
            pltpu.VMEM((b_blk, H), jnp.float32),   # c state
        ],
    )

    hidden_p = pl.pallas_call(
        _lstm_recurrence_kernel,
        out_shape=jax.ShapeDtypeStruct((b_pad, H), jnp.float32),
        grid_spec=grid_spec,
        compiler_params=pltpu.CompilerParams(
            # batch axis can be megacore-sharded (v7x); time axis is the recurrence.
            dimension_semantics=("parallel", "arbitrary"),
            vmem_limit_bytes=vmem_limit,
        ),
    )(len_p, embedded_tm, w_ih.astype(jnp.float32), w_hh.astype(jnp.float32),
      b.astype(jnp.float32))

    hidden = hidden_p[:B]
    # fc applied once, outside the recurrence kernel (eval dropout == identity).
    prediction = jnp.dot(hidden, w_fc, preferred_element_type=jnp.float32) + b_fc
    return prediction, hidden


def lstm_reference(ids, lengths, params, stream_dtype=jnp.bfloat16):
    """Pure-JAX reference (same bf16 embedding storage, f32 math)."""
    emb_w = params["embedding"]
    w_ih, w_hh, b = params["w_ih"], params["w_hh"], params["b"]
    w_fc, b_fc = params["w_fc"], params["b_fc"]
    B, T = ids.shape
    H = emb_w.shape[1]
    emb = jnp.take(emb_w.astype(stream_dtype), ids, axis=0).astype(jnp.float32)

    def step(carry, inp):
        h, c = carry
        x_t, t = inp
        gates = x_t @ w_ih + h @ w_hh + b
        i = jax.nn.sigmoid(gates[:, 0 * H:1 * H])
        f = jax.nn.sigmoid(gates[:, 1 * H:2 * H])
        g = jnp.tanh(gates[:, 2 * H:3 * H])
        o = jax.nn.sigmoid(gates[:, 3 * H:4 * H])
        c_new = f * c + i * g
        h_new = o * jnp.tanh(c_new)
        mask = (t < lengths)[:, None]
        return (jnp.where(mask, h_new, h), jnp.where(mask, c_new, c)), None

    init = (jnp.zeros((B, H), jnp.float32), jnp.zeros((B, H), jnp.float32))
    (h, _), _ = jax.lax.scan(step, init, (jnp.swapaxes(emb, 0, 1), jnp.arange(T)))
    return h @ w_fc + b_fc, h


def make_params(key, vocab_size, hidden_dim, output_dim):
    ks = jax.random.split(key, 7)
    scale = 1.0 / jnp.sqrt(hidden_dim)
    emb = jax.random.normal(ks[0], (vocab_size, hidden_dim), jnp.float32) * 0.1
    emb = emb.at[0].set(0.0)  # padding_idx=0
    w_ih = jax.random.uniform(ks[1], (hidden_dim, 4 * hidden_dim), jnp.float32,
                              -scale, scale)
    w_hh = jax.random.uniform(ks[2], (hidden_dim, 4 * hidden_dim), jnp.float32,
                              -scale, scale)
    b_ih = jax.random.uniform(ks[3], (1, 4 * hidden_dim), jnp.float32, -scale, scale)
    b_hh = jax.random.uniform(ks[4], (1, 4 * hidden_dim), jnp.float32, -scale, scale)
    w_fc = jax.random.uniform(ks[5], (hidden_dim, output_dim), jnp.float32,
                              -scale, scale)
    b_fc = jax.random.uniform(ks[6], (1, output_dim), jnp.float32, -scale, scale)
    return {
        "embedding": emb,
        "w_ih": w_ih,
        "w_hh": w_hh,
        "b": b_ih + b_hh,
        "w_fc": w_fc,
        "b_fc": b_fc,
    }


if __name__ == "__main__":
    # H multiple of 128 so gate slices are lane-aligned.
    VOCAB, HIDDEN, OUTPUT = 50, 128, 8
    B, T = 4, 16

    key = jax.random.PRNGKey(0)
    k_param, k_ids = jax.random.split(key)

    params = make_params(k_param, VOCAB, HIDDEN, OUTPUT)

    lengths = jnp.array([16, 11, 7, 3], dtype=jnp.int32)
    ids = jax.random.randint(k_ids, (B, T), 1, VOCAB, dtype=jnp.int32)
    # zero-pad past each sequence's length (padding token id = 0)
    pos = jnp.arange(T)[None, :]
    ids = jnp.where(pos < lengths[:, None], ids, 0)

    fwd = jax.jit(lstm_forward)
    prediction, hidden = fwd(ids, lengths, params)
    jax.block_until_ready((prediction, hidden))

    assert prediction.shape == (B, OUTPUT)
    assert hidden.shape == (B, HIDDEN)

    # correctness vs. pure-JAX packed-LSTM reference
    pred_ref, hid_ref = lstm_reference(ids, lengths, params)
    assert jnp.allclose(hidden, hid_ref, atol=2e-2, rtol=2e-2), \
        float(jnp.max(jnp.abs(hidden - hid_ref)))
    assert jnp.allclose(prediction, pred_ref, atol=2e-2, rtol=2e-2), \
        float(jnp.max(jnp.abs(prediction - pred_ref)))

    print("KERNEL_OK")
</pallas_src>

<mosaic_0001>
module attributes {stable_mosaic.version = 11 : i64} {
  func.func @_lstm_recurrence_kernel(%arg0: i32, %arg1: i32, %arg2: memref<8x1xi32, #tpu.memory_space<vmem>>, %arg3: memref<16x8x128xbf16, #tpu.memory_space<vmem>>, %arg4: memref<128x512xf32, #tpu.memory_space<vmem>>, %arg5: memref<128x512xf32, #tpu.memory_space<vmem>>, %arg6: memref<1x512xf32, #tpu.memory_space<vmem>>, %arg7: memref<8x128xf32, #tpu.memory_space<vmem>>, %arg8: memref<8x128xf32, #tpu.memory_space<vmem>>, %arg9: memref<8x128xf32, #tpu.memory_space<vmem>>) attributes {dimension_semantics = [#tpu.dimension_semantics<parallel>, #tpu.dimension_semantics<arbitrary>], iteration_bounds = array<i64: 1, 1>, scalar_prefetch = 0 : i64, scratch_operands = 2 : i64, tpu.core_type = #tpu.core_type<tc>, window_params = [{transform_indices = @transform_0, window_bounds = array<i64: 8, 1>}, {transform_indices = @transform_1, window_bounds = array<i64: 16, 8, 128>}, {pipeline_mode = #tpu.pipeline_mode<synchronous>, transform_indices = @transform_2, window_bounds = array<i64: 128, 512>}, {pipeline_mode = #tpu.pipeline_mode<synchronous>, transform_indices = @transform_3, window_bounds = array<i64: 128, 512>}, {pipeline_mode = #tpu.pipeline_mode<synchronous>, transform_indices = @transform_4, window_bounds = array<i64: 1, 512>}, {transform_indices = @transform_5, window_bounds = array<i64: 8, 128>}]} {
    %c0_i32 = arith.constant 0 : i32
    %0 = arith.cmpi eq, %arg1, %c0_i32 : i32
    %1 = arith.extui %0 : i1 to i32
    %c0_i32_0 = arith.constant 0 : i32
    %2 = arith.cmpi ne, %1, %c0_i32_0 : i32
    scf.if %2 {
      %cst_227 = arith.constant 0.000000e+00 : f32
      %785 = vector.broadcast %cst_227 : f32 to vector<8x128xf32>
      %c0_228 = arith.constant 0 : index
      %c0_229 = arith.constant 0 : index
      %786 = vector.load %arg8[%c0_228, %c0_229] : memref<8x128xf32, #tpu.memory_space<vmem>>, vector<8x128xf32>
      tpu.vector_store %arg8[%c0_228, %c0_229], %785 {strides = array<i32>} : memref<8x128xf32, #tpu.memory_space<vmem>>, vector<8x128xf32>,
      %cst_230 = arith.constant 0.000000e+00 : f32
      %787 = vector.broadcast %cst_230 : f32 to vector<8x128xf32>
      %c0_231 = arith.constant 0 : index
      %c0_232 = arith.constant 0 : index
      %788 = vector.load %arg9[%c0_231, %c0_232] : memref<8x128xf32, #tpu.memory_space<vmem>>, vector<8x128xf32>
      tpu.vector_store %arg9[%c0_231, %c0_232], %787 {strides = array<i32>} : memref<8x128xf32, #tpu.memory_space<vmem>>, vector<8x128xf32>,
    } else {
    }
    %c0 = arith.constant 0 : index
    %c0_1 = arith.constant 0 : index
    %3 = vector.load %arg2[%c0, %c0_1] : memref<8x1xi32, #tpu.memory_space<vmem>>, vector<8x1xi32>
    %c0_2 = arith.constant 0 : index
    %c0_3 = arith.constant 0 : index
    %4 = vector.load %arg4[%c0_2, %c0_3] : memref<128x512xf32, #tpu.memory_space<vmem>>, vector<128x512xf32>
    %c0_4 = arith.constant 0 : index
    %c0_5 = arith.constant 0 : index
    %5 = vector.load %arg5[%c0_4, %c0_5] : memref<128x512xf32, #tpu.memory_space<vmem>>, vector<128x512xf32>
    %c0_6 = arith.constant 0 : index
    %c0_7 = arith.constant 0 : index
    %6 = vector.load %arg6[%c0_6, %c0_7] : memref<1x512xf32, #tpu.memory_space<vmem>>, vector<1x512xf32>
    %7 = vector.shape_cast %6 : vector<1x512xf32> to vector<1x512xf32>
    %8 = vector.broadcast %7 : vector<1x512xf32> to vector<8x512xf32>
    %c16_i32 = arith.constant 16 : i32
    %9 = arith.muli %arg1, %c16_i32 : i32
    %c0_8 = arith.constant 0 : index
    %c0_9 = arith.constant 0 : index
    %10 = vector.load %arg8[%c0_8, %c0_9] : memref<8x128xf32, #tpu.memory_space<vmem>>, vector<8x128xf32>
    %c0_10 = arith.constant 0 : index
    %c0_11 = arith.constant 0 : index
    %11 = vector.load %arg9[%c0_10, %c0_11] : memref<8x128xf32, #tpu.memory_space<vmem>>, vector<8x128xf32>
    %c0_i32_12 = arith.constant 0 : i32
    %12 = arith.index_cast %c0_i32_12 : i32 to index
    %c0_13 = arith.constant 0 : index
    %c0_14 = arith.constant 0 : index
    %13 = vector.load %arg3[%12, %c0_13, %c0_14] : memref<16x8x128xbf16, #tpu.memory_space<vmem>>, vector<1x8x128xbf16>
    %14 = vector.shape_cast %13 : vector<1x8x128xbf16> to vector<8x128xbf16>
    %15 = arith.extf %14 : vector<8x128xbf16> to vector<8x128xf32>
    %cst = arith.constant dense<0.000000e+00> : vector<8x512xf32>
    %16 = tpu.matmul %15, %4, %cst {dimension_numbers = #tpu.dot_dimension_numbers<[1], [0], [0], [1], [0, 0, 1, 1], [], []>} : vector<8x128xf32>, vector<128x512xf32>, vector<8x512xf32> -> vector<8x512xf32>
    %cst_15 = arith.constant dense<0.000000e+00> : vector<8x512xf32>
    %17 = tpu.matmul %10, %5, %cst_15 {dimension_numbers = #tpu.dot_dimension_numbers<[1], [0], [0], [1], [0, 0, 1, 1], [], []>} : vector<8x128xf32>, vector<128x512xf32>, vector<8x512xf32> -> vector<8x512xf32>
    %18 = arith.addf %16, %17 : vector<8x512xf32>
    %19 = arith.addf %18, %8 : vector<8x512xf32>
    %20 = vector.extract_strided_slice %19 {offsets = [0, 0], sizes = [8, 128], strides = [1, 1]} : vector<8x512xf32> to vector<8x128xf32>
    %cst_16 = arith.constant 5.000000e-01 : f32
    %21 = vector.broadcast %cst_16 : f32 to vector<8x128xf32>
    %22 = arith.mulf %21, %20 : vector<8x128xf32>
    %23 = math.tanh %22 : vector<8x128xf32>
    %cst_17 = arith.constant 5.000000e-01 : f32
    %24 = vector.broadcast %cst_17 : f32 to vector<8x128xf32>
    %25 = arith.mulf %24, %23 : vector<8x128xf32>
    %cst_18 = arith.constant 5.000000e-01 : f32
    %26 = vector.broadcast %cst_18 : f32 to vector<8x128xf32>
    %27 = arith.addf %25, %26 : vector<8x128xf32>
    %28 = vector.extract_strided_slice %19 {offsets = [0, 128], sizes = [8, 128], strides = [1, 1]} : vector<8x512xf32> to vector<8x128xf32>
    %cst_19 = arith.constant 5.000000e-01 : f32
    %29 = vector.broadcast %cst_19 : f32 to vector<8x128xf32>
    %30 = arith.mulf %29, %28 : vector<8x128xf32>
    %31 = math.tanh %30 : vector<8x128xf32>
    %cst_20 = arith.constant 5.000000e-01 : f32
    %32 = vector.broadcast %cst_20 : f32 to vector<8x128xf32>
    %33 = arith.mulf %32, %31 : vector<8x128xf32>
    %cst_21 = arith.constant 5.000000e-01 : f32
    %34 = vector.broadcast %cst_21 : f32 to vector<8x128xf32>
    %35 = arith.addf %33, %34 : vector<8x128xf32>
    %36 = vector.extract_strided_slice %19 {offsets = [0, 256], sizes = [8, 128], strides = [1, 1]} : vector<8x512xf32> to vector<8x128xf32>
    %37 = math.tanh %36 : vector<8x128xf32>
    %38 = vector.extract_strided_slice %19 {offsets = [0, 384], sizes = [8, 128], strides = [1, 1]} : vector<8x512xf32> to vector<8x128xf32>
    %cst_22 = arith.constant 5.000000e-01 : f32
    %39 = vector.broadcast %cst_22 : f32 to vector<8x128xf32>
    %40 = arith.mulf %39, %38 : vector<8x128xf32>
    %41 = math.tanh %40 : vector<8x128xf32>
    %cst_23 = arith.constant 5.000000e-01 : f32
    %42 = vector.broadcast %cst_23 : f32 to vector<8x128xf32>
    %43 = arith.mulf %42, %41 : vector<8x128xf32>
    %cst_24 = arith.constant 5.000000e-01 : f32
    %44 = vector.broadcast %cst_24 : f32 to vector<8x128xf32>
    %45 = arith.addf %43, %44 : vector<8x128xf32>
    %46 = arith.mulf %35, %11 : vector<8x128xf32>
    %47 = arith.mulf %27, %37 : vector<8x128xf32>
    %48 = arith.addf %46, %47 : vector<8x128xf32>
    %49 = math.tanh %48 : vector<8x128xf32>
    %50 = arith.mulf %45, %49 : vector<8x128xf32>
    %51 = arith.addi %9, %c0_i32_12 : i32
    %52 = vector.broadcast %51 : i32 to vector<8x1xi32>
    %53 = arith.cmpi slt, %52, %3 : vector<8x1xi32>
    %54 = vector.shape_cast %53 : vector<8x1xi1> to vector<8x1xi1>
    %55 = vector.broadcast %54 : vector<8x1xi1> to vector<8x128xi1>
    %56 = arith.select %55, %50, %10 : vector<8x128xi1>, vector<8x128xf32>
    %57 = vector.shape_cast %53 : vector<8x1xi1> to vector<8x1xi1>
    %58 = vector.broadcast %57 : vector<8x1xi1> to vector<8x128xi1>
    %59 = arith.select %58, %48, %11 : vector<8x128xi1>, vector<8x128xf32>
    %c1_i32 = arith.constant 1 : i32
    %60 = arith.index_cast %c1_i32 : i32 to index
    %c0_25 = arith.constant 0 : index
    %c0_26 = arith.constant 0 : index
    %61 = vector.load %arg3[%60, %c0_25, %c0_26] : memref<16x8x128xbf16, #tpu.memory_space<vmem>>, vector<1x8x128xbf16>
    %62 = vector.shape_cast %61 : vector<1x8x128xbf16> to vector<8x128xbf16>
    %63 = arith.extf %62 : vector<8x128xbf16> to vector<8x128xf32>
    %cst_27 = arith.constant dense<0.000000e+00> : vector<8x512xf32>
    %64 = tpu.matmul %63, %4, %cst_27 {dimension_numbers = #tpu.dot_dimension_numbers<[1], [0], [0], [1], [0, 0, 1, 1], [], []>} : vector<8x128xf32>, vector<128x512xf32>, vector<8x512xf32> -> vector<8x512xf32>
    %cst_28 = arith.constant dense<0.000000e+00> : vector<8x512xf32>
    %65 = tpu.matmul %56, %5, %cst_28 {dimension_numbers = #tpu.dot_dimension_numbers<[1], [0], [0], [1], [0, 0, 1, 1], [], []>} : vector<8x128xf32>, vector<128x512xf32>, vector<8x512xf32> -> vector<8x512xf32>
    %66 = arith.addf %64, %65 : vector<8x512xf32>
    %67 = arith.addf %66, %8 : vector<8x512xf32>
    %68 = vector.extract_strided_slice %67 {offsets = [0, 0], sizes = [8, 128], strides = [1, 1]} : vector<8x512xf32> to vector<8x128xf32>
    %cst_29 = arith.constant 5.000000e-01 : f32
    %69 = vector.broadcast %cst_29 : f32 to vector<8x128xf32>
    %70 = arith.mulf %69, %68 : vector<8x128xf32>
    %71 = math.tanh %70 : vector<8x128xf32>
    %cst_30 = arith.constant 5.000000e-01 : f32
    %72 = vector.broadcast %cst_30 : f32 to vector<8x128xf32>
    %73 = arith.mulf %72, %71 : vector<8x128xf32>
    %cst_31 = arith.constant 5.000000e-01 : f32
    %74 = vector.broadcast %cst_31 : f32 to vector<8x128xf32>
    %75 = arith.addf %73, %74 : vector<8x128xf32>
    %76 = vector.extract_strided_slice %67 {offsets = [0, 128], sizes = [8, 128], strides = [1, 1]} : vector<8x512xf32> to vector<8x128xf32>
    %cst_32 = arith.constant 5.000000e-01 : f32
    %77 = vector.broadcast %cst_32 : f32 to vector<8x128xf32>
    %78 = arith.mulf %77, %76 : vector<8x128xf32>
    %79 = math.tanh %78 : vector<8x128xf32>
    %cst_33 = arith.constant 5.000000e-01 : f32
    %80 = vector.broadcast %cst_33 : f32 to vector<8x128xf32>
    %81 = arith.mulf %80, %79 : vector<8x128xf32>
    %cst_34 = arith.constant 5.000000e-01 : f32
    %82 = vector.broadcast %cst_34 : f32 to vector<8x128xf32>
    %83 = arith.addf %81, %82 : vector<8x128xf32>
    %84 = vector.extract_strided_slice %67 {offsets = [0, 256], sizes = [8, 128], strides = [1, 1]} : vector<8x512xf32> to vector<8x128xf32>
    %85 = math.tanh %84 : vector<8x128xf32>
    %86 = vector.extract_strided_slice %67 {offsets = [0, 384], sizes = [8, 128], strides = [1, 1]} : vector<8x512xf32> to vector<8x128xf32>
    %cst_35 = arith.constant 5.000000e-01 : f32
    %87 = vector.broadcast %cst_35 : f32 to vector<8x128xf32>
    %88 = arith.mulf %87, %86 : vector<8x128xf32>
    %89 = math.tanh %88 : vector<8x128xf32>
    %cst_36 = arith.constant 5.000000e-01 : f32
    %90 = vector.broadcast %cst_36 : f32 to vector<8x128xf32>
    %91 = arith.mulf %90, %89 : vector<8x128xf32>
    %cst_37 = arith.constant 5.000000e-01 : f32
    %92 = vector.broadcast %cst_37 : f32 to vector<8x128xf32>
    %93 = arith.addf %91, %92 : vector<8x128xf32>
    %94 = arith.mulf %83, %59 : vector<8x128xf32>
    %95 = arith.mulf %75, %85 : vector<8x128xf32>
    %96 = arith.addf %94, %95 : vector<8x128xf32>
    %97 = math.tanh %96 : vector<8x128xf32>
    %98 = arith.mulf %93, %97 : vector<8x128xf32>
    %99 = arith.addi %9, %c1_i32 : i32
    %100 = vector.broadcast %99 : i32 to vector<8x1xi32>
    %101 = arith.cmpi slt, %100, %3 : vector<8x1xi32>
    %102 = vector.shape_cast %101 : vector<8x1xi1> to vector<8x1xi1>
    %103 = vector.broadcast %102 : vector<8x1xi1> to vector<8x128xi1>
    %104 = arith.select %103, %98, %56 : vector<8x128xi1>, vector<8x128xf32>
    %105 = vector.shape_cast %101 : vector<8x1xi1> to vector<8x1xi1>
    %106 = vector.broadcast %105 : vector<8x1xi1> to vector<8x128xi1>
    %107 = arith.select %106, %96, %59 : vector<8x128xi1>, vector<8x128xf32>
    %c2_i32 = arith.constant 2 : i32
    %108 = arith.index_cast %c2_i32 : i32 to index
    %c0_38 = arith.constant 0 : index
    %c0_39 = arith.constant 0 : index
    %109 = vector.load %arg3[%108, %c0_38, %c0_39] : memref<16x8x128xbf16, #tpu.memory_space<vmem>>, vector<1x8x128xbf16>
    %110 = vector.shape_cast %109 : vector<1x8x128xbf16> to vector<8x128xbf16>
    %111 = arith.extf %110 : vector<8x128xbf16> to vector<8x128xf32>
    %cst_40 = arith.constant dense<0.000000e+00> : vector<8x512xf32>
    %112 = tpu.matmul %111, %4, %cst_40 {dimension_numbers = #tpu.dot_dimension_numbers<[1], [0], [0], [1], [0, 0, 1, 1], [], []>} : vector<8x128xf32>, vector<128x512xf32>, vector<8x512xf32> -> vector<8x512xf32>
    %cst_41 = arith.constant dense<0.000000e+00> : vector<8x512xf32>
    %113 = tpu.matmul %104, %5, %cst_41 {dimension_numbers = #tpu.dot_dimension_numbers<[1], [0], [0], [1], [0, 0, 1, 1], [], []>} : vector<8x128xf32>, vector<128x512xf32>, vector<8x512xf32> -> vector<8x512xf32>
    %114 = arith.addf %112, %113 : vector<8x512xf32>
    %115 = arith.addf %114, %8 : vector<8x512xf32>
    %116 = vector.extract_strided_slice %115 {offsets = [0, 0], sizes = [8, 128], strides = [1, 1]} : vector<8x512xf32> to vector<8x128xf32>
    %cst_42 = arith.constant 5.000000e-01 : f32
    %117 = vector.broadcast %cst_42 : f32 to vector<8x128xf32>
    %118 = arith.mulf %117, %116 : vector<8x128xf32>
    %119 = math.tanh %118 : vector<8x128xf32>
    %cst_43 = arith.constant 5.000000e-01 : f32
    %120 = vector.broadcast %cst_43 : f32 to vector<8x128xf32>
    %121 = arith.mulf %120, %119 : vector<8x128xf32>
    %cst_44 = arith.constant 5.000000e-01 : f32
    %122 = vector.broadcast %cst_44 : f32 to vector<8x128xf32>
    %123 = arith.addf %121, %122 : vector<8x128xf32>
    %124 = vector.extract_strided_slice %115 {offsets = [0, 128], sizes = [8, 128], strides = [1, 1]} : vector<8x512xf32> to vector<8x128xf32>
    %cst_45 = arith.constant 5.000000e-01 : f32
    %125 = vector.broadcast %cst_45 : f32 to vector<8x128xf32>
    %126 = arith.mulf %125, %124 : vector<8x128xf32>
    %127 = math.tanh %126 : vector<8x128xf32>
    %cst_46 = arith.constant 5.000000e-01 : f32
    %128 = vector.broadcast %cst_46 : f32 to vector<8x128xf32>
    %129 = arith.mulf %128, %127 : vector<8x128xf32>
    %cst_47 = arith.constant 5.000000e-01 : f32
    %130 = vector.broadcast %cst_47 : f32 to vector<8x128xf32>
    %131 = arith.addf %129, %130 : vector<8x128xf32>
    %132 = vector.extract_strided_slice %115 {offsets = [0, 256], sizes = [8, 128], strides = [1, 1]} : vector<8x512xf32> to vector<8x128xf32>
    %133 = math.tanh %132 : vector<8x128xf32>
    %134 = vector.extract_strided_slice %115 {offsets = [0, 384], sizes = [8, 128], strides = [1, 1]} : vector<8x512xf32> to vector<8x128xf32>
    %cst_48 = arith.constant 5.000000e-01 : f32
    %135 = vector.broadcast %cst_48 : f32 to vector<8x128xf32>
    %136 = arith.mulf %135, %134 : vector<8x128xf32>
    %137 = math.tanh %136 : vector<8x128xf32>
    %cst_49 = arith.constant 5.000000e-01 : f32
    %138 = vector.broadcast %cst_49 : f32 to vector<8x128xf32>
    %139 = arith.mulf %138, %137 : vector<8x128xf32>
    %cst_50 = arith.constant 5.000000e-01 : f32
    %140 = vector.broadcast %cst_50 : f32 to vector<8x128xf32>
    %141 = arith.addf %139, %140 : vector<8x128xf32>
    %142 = arith.mulf %131, %107 : vector<8x128xf32>
    %143 = arith.mulf %123, %133 : vector<8x128xf32>
    %144 = arith.addf %142, %143 : vector<8x128xf32>
    %145 = math.tanh %144 : vector<8x128xf32>
    %146 = arith.mulf %141, %145 : vector<8x128xf32>
    %147 = arith.addi %9, %c2_i32 : i32
    %148 = vector.broadcast %147 : i32 to vector<8x1xi32>
    %149 = arith.cmpi slt, %148, %3 : vector<8x1xi32>
    %150 = vector.shape_cast %149 : vector<8x1xi1> to vector<8x1xi1>
    %151 = vector.broadcast %150 : vector<8x1xi1> to vector<8x128xi1>
    %152 = arith.select %151, %146, %104 : vector<8x128xi1>, vector<8x128xf32>
    %153 = vector.shape_cast %149 : vector<8x1xi1> to vector<8x1xi1>
    %154 = vector.broadcast %153 : vector<8x1xi1> to vector<8x128xi1>
    %155 = arith.select %154, %144, %107 : vector<8x128xi1>, vector<8x128xf32>
    %c3_i32 = arith.constant 3 : i32
    %156 = arith.index_cast %c3_i32 : i32 to index
    %c0_51 = arith.constant 0 : index
    %c0_52 = arith.constant 0 : index
    %157 = vector.load %arg3[%156, %c0_51, %c0_52] : memref<16x8x128xbf16, #tpu.memory_space<vmem>>, vector<1x8x128xbf16>
    %158 = vector.shape_cast %157 : vector<1x8x128xbf16> to vector<8x128xbf16>
    %159 = arith.extf %158 : vector<8x128xbf16> to vector<8x128xf32>
    %cst_53 = arith.constant dense<0.000000e+00> : vector<8x512xf32>
    %160 = tpu.matmul %159, %4, %cst_53 {dimension_numbers = #tpu.dot_dimension_numbers<[1], [0], [0], [1], [0, 0, 1, 1], [], []>} : vector<8x128xf32>, vector<128x512xf32>, vector<8x512xf32> -> vector<8x512xf32>
    %cst_54 = arith.constant dense<0.000000e+00> : vector<8x512xf32>
    %161 = tpu.matmul %152, %5, %cst_54 {dimension_numbers = #tpu.dot_dimension_numbers<[1], [0], [0], [1], [0, 0, 1, 1], [], []>} : vector<8x128xf32>, vector<128x512xf32>, vector<8x512xf32> -> vector<8x512xf32>
    %162 = arith.addf %160, %161 : vector<8x512xf32>
    %163 = arith.addf %162, %8 : vector<8x512xf32>
    %164 = vector.extract_strided_slice %163 {offsets = [0, 0], sizes = [8, 128], strides = [1, 1]} : vector<8x512xf32> to vector<8x128xf32>
    %cst_55 = arith.constant 5.000000e-01 : f32
    %165 = vector.broadcast %cst_55 : f32 to vector<8x128xf32>
    %166 = arith.mulf %165, %164 : vector<8x128xf32>
    %167 = math.tanh %166 : vector<8x128xf32>
    %cst_56 = arith.constant 5.000000e-01 : f32
    %168 = vector.broadcast %cst_56 : f32 to vector<8x128xf32>
    %169 = arith.mulf %168, %167 : vector<8x128xf32>
    %cst_57 = arith.constant 5.000000e-01 : f32
    %170 = vector.broadcast %cst_57 : f32 to vector<8x128xf32>
    %171 = arith.addf %169, %170 : vector<8x128xf32>
    %172 = vector.extract_strided_slice %163 {offsets = [0, 128], sizes = [8, 128], strides = [1, 1]} : vector<8x512xf32> to vector<8x128xf32>
    %cst_58 = arith.constant 5.000000e-01 : f32
    %173 = vector.broadcast %cst_58 : f32 to vector<8x128xf32>
    %174 = arith.mulf %173, %172 : vector<8x128xf32>
    %175 = math.tanh %174 : vector<8x128xf32>
    %cst_59 = arith.constant 5.000000e-01 : f32
    %176 = vector.broadcast %cst_59 : f32 to vector<8x128xf32>
    %177 = arith.mulf %176, %175 : vector<8x128xf32>
    %cst_60 = arith.constant 5.000000e-01 : f32
    %178 = vector.broadcast %cst_60 : f32 to vector<8x128xf32>
    %179 = arith.addf %177, %178 : vector<8x128xf32>
    %180 = vector.extract_strided_slice %163 {offsets = [0, 256], sizes = [8, 128], strides = [1, 1]} : vector<8x512xf32> to vector<8x128xf32>
    %181 = math.tanh %180 : vector<8x128xf32>
    %182 = vector.extract_strided_slice %163 {offsets = [0, 384], sizes = [8, 128], strides = [1, 1]} : vector<8x512xf32> to vector<8x128xf32>
    %cst_61 = arith.constant 5.000000e-01 : f32
    %183 = vector.broadcast %cst_61 : f32 to vector<8x128xf32>
    %184 = arith.mulf %183, %182 : vector<8x128xf32>
    %185 = math.tanh %184 : vector<8x128xf32>
    %cst_62 = arith.constant 5.000000e-01 : f32
    %186 = vector.broadcast %cst_62 : f32 to vector<8x128xf32>
    %187 = arith.mulf %186, %185 : vector<8x128xf32>
    %cst_63 = arith.constant 5.000000e-01 : f32
    %188 = vector.broadcast %cst_63 : f32 to vector<8x128xf32>
    %189 = arith.addf %187, %188 : vector<8x128xf32>
    %190 = arith.mulf %179, %155 : vector<8x128xf32>
    %191 = arith.mulf %171, %181 : vector<8x128xf32>
    %192 = arith.addf %190, %191 : vector<8x128xf32>
    %193 = math.tanh %192 : vector<8x128xf32>
    %194 = arith.mulf %189, %193 : vector<8x128xf32>
    %195 = arith.addi %9, %c3_i32 : i32
    %196 = vector.broadcast %195 : i32 to vector<8x1xi32>
    %197 = arith.cmpi slt, %196, %3 : vector<8x1xi32>
    %198 = vector.shape_cast %197 : vector<8x1xi1> to vector<8x1xi1>
    %199 = vector.broadcast %198 : vector<8x1xi1> to vector<8x128xi1>
    %200 = arith.select %199, %194, %152 : vector<8x128xi1>, vector<8x128xf32>
    %201 = vector.shape_cast %197 : vector<8x1xi1> to vector<8x1xi1>
    %202 = vector.broadcast %201 : vector<8x1xi1> to vector<8x128xi1>
    %203 = arith.select %202, %192, %155 : vector<8x128xi1>, vector<8x128xf32>
    %c4_i32 = arith.constant 4 : i32
    %204 = arith.index_cast %c4_i32 : i32 to index
    %c0_64 = arith.constant 0 : index
    %c0_65 = arith.constant 0 : index
    %205 = vector.load %arg3[%204, %c0_64, %c0_65] : memref<16x8x128xbf16, #tpu.memory_space<vmem>>, vector<1x8x128xbf16>
    %206 = vector.shape_cast %205 : vector<1x8x128xbf16> to vector<8x128xbf16>
    %207 = arith.extf %206 : vector<8x128xbf16> to vector<8x128xf32>
    %cst_66 = arith.constant dense<0.000000e+00> : vector<8x512xf32>
    %208 = tpu.matmul %207, %4, %cst_66 {dimension_numbers = #tpu.dot_dimension_numbers<[1], [0], [0], [1], [0, 0, 1, 1], [], []>} : vector<8x128xf32>, vector<128x512xf32>, vector<8x512xf32> -> vector<8x512xf32>
    %cst_67 = arith.constant dense<0.000000e+00> : vector<8x512xf32>
    %209 = tpu.matmul %200, %5, %cst_67 {dimension_numbers = #tpu.dot_dimension_numbers<[1], [0], [0], [1], [0, 0, 1, 1], [], []>} : vector<8x128xf32>, vector<128x512xf32>, vector<8x512xf32> -> vector<8x512xf32>
    %210 = arith.addf %208, %209 : vector<8x512xf32>
    %211 = arith.addf %210, %8 : vector<8x512xf32>
    %212 = vector.extract_strided_slice %211 {offsets = [0, 0], sizes = [8, 128], strides = [1, 1]} : vector<8x512xf32> to vector<8x128xf32>
    %cst_68 = arith.constant 5.000000e-01 : f32
    %213 = vector.broadcast %cst_68 : f32 to vector<8x128xf32>
    %214 = arith.mulf %213, %212 : vector<8x128xf32>
    %215 = math.tanh %214 : vector<8x128xf32>
    %cst_69 = arith.constant 5.000000e-01 : f32
    %216 = vector.broadcast %cst_69 : f32 to vector<8x128xf32>
    %217 = arith.mulf %216, %215 : vector<8x128xf32>
    %cst_70 = arith.constant 5.000000e-01 : f32
    %218 = vector.broadcast %cst_70 : f32 to vector<8x128xf32>
    %219 = arith.addf %217, %218 : vector<8x128xf32>
    %220 = vector.extract_strided_slice %211 {offsets = [0, 128], sizes = [8, 128], strides = [1, 1]} : vector<8x512xf32> to vector<8x128xf32>
    %cst_71 = arith.constant 5.000000e-01 : f32
    %221 = vector.broadcast %cst_71 : f32 to vector<8x128xf32>
    %222 = arith.mulf %221, %220 : vector<8x128xf32>
    %223 = math.tanh %222 : vector<8x128xf32>
    %cst_72 = arith.constant 5.000000e-01 : f32
    %224 = vector.broadcast %cst_72 : f32 to vector<8x128xf32>
    %225 = arith.mulf %224, %223 : vector<8x128xf32>
    %cst_73 = arith.constant 5.000000e-01 : f32
    %226 = vector.broadcast %cst_73 : f32 to vector<8x128xf32>
    %227 = arith.addf %225, %226 : vector<8x128xf32>
    %228 = vector.extract_strided_slice %211 {offsets = [0, 256], sizes = [8, 128], strides = [1, 1]} : vector<8x512xf32> to vector<8x128xf32>
    %229 = math.tanh %228 : vector<8x128xf32>
    %230 = vector.extract_strided_slice %211 {offsets = [0, 384], sizes = [8, 128], strides = [1, 1]} : vector<8x512xf32> to vector<8x128xf32>
    %cst_74 = arith.constant 5.000000e-01 : f32
    %231 = vector.broadcast %cst_74 : f32 to vector<8x128xf32>
    %232 = arith.mulf %231, %230 : vector<8x128xf32>
    %233 = math.tanh %232 : vector<8x128xf32>
    %cst_75 = arith.constant 5.000000e-01 : f32
    %234 = vector.broadcast %cst_75 : f32 to vector<8x128xf32>
    %235 = arith.mulf %234, %233 : vector<8x128xf32>
    %cst_76 = arith.constant 5.000000e-01 : f32
    %236 = vector.broadcast %cst_76 : f32 to vector<8x128xf32>
    %237 = arith.addf %235, %236 : vector<8x128xf32>
    %238 = arith.mulf %227, %203 : vector<8x128xf32>
    %239 = arith.mulf %219, %229 : vector<8x128xf32>
    %240 = arith.addf %238, %239 : vector<8x128xf32>
    %241 = math.tanh %240 : vector<8x128xf32>
    %242 = arith.mulf %237, %241 : vector<8x128xf32>
    %243 = arith.addi %9, %c4_i32 : i32
    %244 = vector.broadcast %243 : i32 to vector<8x1xi32>
    %245 = arith.cmpi slt, %244, %3 : vector<8x1xi32>
    %246 = vector.shape_cast %245 : vector<8x1xi1> to vector<8x1xi1>
    %247 = vector.broadcast %246 : vector<8x1xi1> to vector<8x128xi1>
    %248 = arith.select %247, %242, %200 : vector<8x128xi1>, vector<8x128xf32>
    %249 = vector.shape_cast %245 : vector<8x1xi1> to vector<8x1xi1>
    %250 = vector.broadcast %249 : vector<8x1xi1> to vector<8x128xi1>
    %251 = arith.select %250, %240, %203 : vector<8x128xi1>, vector<8x128xf32>
    %c5_i32 = arith.constant 5 : i32
    %252 = arith.index_cast %c5_i32 : i32 to index
    %c0_77 = arith.constant 0 : index
    %c0_78 = arith.constant 0 : index
    %253 = vector.load %arg3[%252, %c0_77, %c0_78] : memref<16x8x128xbf16, #tpu.memory_space<vmem>>, vector<1x8x128xbf16>
    %254 = vector.shape_cast %253 : vector<1x8x128xbf16> to vector<8x128xbf16>
    %255 = arith.extf %254 : vector<8x128xbf16> to vector<8x128xf32>
    %cst_79 = arith.constant dense<0.000000e+00> : vector<8x512xf32>
    %256 = tpu.matmul %255, %4, %cst_79 {dimension_numbers = #tpu.dot_dimension_numbers<[1], [0], [0], [1], [0, 0, 1, 1], [], []>} : vector<8x128xf32>, vector<128x512xf32>, vector<8x512xf32> -> vector<8x512xf32>
    %cst_80 = arith.constant dense<0.000000e+00> : vector<8x512xf32>
    %257 = tpu.matmul %248, %5, %cst_80 {dimension_numbers = #tpu.dot_dimension_numbers<[1], [0], [0], [1], [0, 0, 1, 1], [], []>} : vector<8x128xf32>, vector<128x512xf32>, vector<8x512xf32> -> vector<8x512xf32>
    %258 = arith.addf %256, %257 : vector<8x512xf32>
    %259 = arith.addf %258, %8 : vector<8x512xf32>
    %260 = vector.extract_strided_slice %259 {offsets = [0, 0], sizes = [8, 128], strides = [1, 1]} : vector<8x512xf32> to vector<8x128xf32>
    %cst_81 = arith.constant 5.000000e-01 : f32
    %261 = vector.broadcast %cst_81 : f32 to vector<8x128xf32>
    %262 = arith.mulf %261, %260 : vector<8x128xf32>
    %263 = math.tanh %262 : vector<8x128xf32>
    %cst_82 = arith.constant 5.000000e-01 : f32
    %264 = vector.broadcast %cst_82 : f32 to vector<8x128xf32>
    %265 = arith.mulf %264, %263 : vector<8x128xf32>
    %cst_83 = arith.constant 5.000000e-01 : f32
    %266 = vector.broadcast %cst_83 : f32 to vector<8x128xf32>
    %267 = arith.addf %265, %266 : vector<8x128xf32>
    %268 = vector.extract_strided_slice %259 {offsets = [0, 128], sizes = [8, 128], strides = [1, 1]} : vector<8x512xf32> to vector<8x128xf32>
    %cst_84 = arith.constant 5.000000e-01 : f32
    %269 = vector.broadcast %cst_84 : f32 to vector<8x128xf32>
    %270 = arith.mulf %269, %268 : vector<8x128xf32>
    %271 = math.tanh %270 : vector<8x128xf32>
    %cst_85 = arith.constant 5.000000e-01 : f32
    %272 = vector.broadcast %cst_85 : f32 to vector<8x128xf32>
    %273 = arith.mulf %272, %271 : vector<8x128xf32>
    %cst_86 = arith.constant 5.000000e-01 : f32
    %274 = vector.broadcast %cst_86 : f32 to vector<8x128xf32>
    %275 = arith.addf %273, %274 : vector<8x128xf32>
    %276 = vector.extract_strided_slice %259 {offsets = [0, 256], sizes = [8, 128], strides = [1, 1]} : vector<8x512xf32> to vector<8x128xf32>
    %277 = math.tanh %276 : vector<8x128xf32>
    %278 = vector.extract_strided_slice %259 {offsets = [0, 384], sizes = [8, 128], strides = [1, 1]} : vector<8x512xf32> to vector<8x128xf32>
    %cst_87 = arith.constant 5.000000e-01 : f32
    %279 = vector.broadcast %cst_87 : f32 to vector<8x128xf32>
    %280 = arith.mulf %279, %278 : vector<8x128xf32>
    %281 = math.tanh %280 : vector<8x128xf32>
    %cst_88 = arith.constant 5.000000e-01 : f32
    %282 = vector.broadcast %cst_88 : f32 to vector<8x128xf32>
    %283 = arith.mulf %282, %281 : vector<8x128xf32>
    %cst_89 = arith.constant 5.000000e-01 : f32
    %284 = vector.broadcast %cst_89 : f32 to vector<8x128xf32>
    %285 = arith.addf %283, %284 : vector<8x128xf32>
    %286 = arith.mulf %275, %251 : vector<8x128xf32>
    %287 = arith.mulf %267, %277 : vector<8x128xf32>
    %288 = arith.addf %286, %287 : vector<8x128xf32>
    %289 = math.tanh %288 : vector<8x128xf32>
    %290 = arith.mulf %285, %289 : vector<8x128xf32>
    %291 = arith.addi %9, %c5_i32 : i32
    %292 = vector.broadcast %291 : i32 to vector<8x1xi32>
    %293 = arith.cmpi slt, %292, %3 : vector<8x1xi32>
    %294 = vector.shape_cast %293 : vector<8x1xi1> to vector<8x1xi1>
    %295 = vector.broadcast %294 : vector<8x1xi1> to vector<8x128xi1>
    %296 = arith.select %295, %290, %248 : vector<8x128xi1>, vector<8x128xf32>
    %297 = vector.shape_cast %293 : vector<8x1xi1> to vector<8x1xi1>
    %298 = vector.broadcast %297 : vector<8x1xi1> to vector<8x128xi1>
    %299 = arith.select %298, %288, %251 : vector<8x128xi1>, vector<8x128xf32>
    %c6_i32 = arith.constant 6 : i32
    %300 = arith.index_cast %c6_i32 : i32 to index
    %c0_90 = arith.constant 0 : index
    %c0_91 = arith.constant 0 : index
    %301 = vector.load %arg3[%300, %c0_90, %c0_91] : memref<16x8x128xbf16, #tpu.memory_space<vmem>>, vector<1x8x128xbf16>
    %302 = vector.shape_cast %301 : vector<1x8x128xbf16> to vector<8x128xbf16>
    %303 = arith.extf %302 : vector<8x128xbf16> to vector<8x128xf32>
    %cst_92 = arith.constant dense<0.000000e+00> : vector<8x512xf32>
    %304 = tpu.matmul %303, %4, %cst_92 {dimension_numbers = #tpu.dot_dimension_numbers<[1], [0], [0], [1], [0, 0, 1, 1], [], []>} : vector<8x128xf32>, vector<128x512xf32>, vector<8x512xf32> -> vector<8x512xf32>
    %cst_93 = arith.constant dense<0.000000e+00> : vector<8x512xf32>
    %305 = tpu.matmul %296, %5, %cst_93 {dimension_numbers = #tpu.dot_dimension_numbers<[1], [0], [0], [1], [0, 0, 1, 1], [], []>} : vector<8x128xf32>, vector<128x512xf32>, vector<8x512xf32> -> vector<8x512xf32>
    %306 = arith.addf %304, %305 : vector<8x512xf32>
    %307 = arith.addf %306, %8 : vector<8x512xf32>
    %308 = vector.extract_strided_slice %307 {offsets = [0, 0], sizes = [8, 128], strides = [1, 1]} : vector<8x512xf32> to vector<8x128xf32>
    %cst_94 = arith.constant 5.000000e-01 : f32
    %309 = vector.broadcast %cst_94 : f32 to vector<8x128xf32>
    %310 = arith.mulf %309, %308 : vector<8x128xf32>
    %311 = math.tanh %310 : vector<8x128xf32>
    %cst_95 = arith.constant 5.000000e-01 : f32
    %312 = vector.broadcast %cst_95 : f32 to vector<8x128xf32>
    %313 = arith.mulf %312, %311 : vector<8x128xf32>
    %cst_96 = arith.constant 5.000000e-01 : f32
    %314 = vector.broadcast %cst_96 : f32 to vector<8x128xf32>
    %315 = arith.addf %313, %314 : vector<8x128xf32>
    %316 = vector.extract_strided_slice %307 {offsets = [0, 128], sizes = [8, 128], strides = [1, 1]} : vector<8x512xf32> to vector<8x128xf32>
    %cst_97 = arith.constant 5.000000e-01 : f32
    %317 = vector.broadcast %cst_97 : f32 to vector<8x128xf32>
    %318 = arith.mulf %317, %316 : vector<8x128xf32>
    %319 = math.tanh %318 : vector<8x128xf32>
    %cst_98 = arith.constant 5.000000e-01 : f32
    %320 = vector.broadcast %cst_98 : f32 to vector<8x128xf32>
    %321 = arith.mulf %320, %319 : vector<8x128xf32>
    %cst_99 = arith.constant 5.000000e-01 : f32
    %322 = vector.broadcast %cst_99 : f32 to vector<8x128xf32>
    %323 = arith.addf %321, %322 : vector<8x128xf32>
    %324 = vector.extract_strided_slice %307 {offsets = [0, 256], sizes = [8, 128], strides = [1, 1]} : vector<8x512xf32> to vector<8x128xf32>
    %325 = math.tanh %324 : vector<8x128xf32>
    %326 = vector.extract_strided_slice %307 {offsets = [0, 384], sizes = [8, 128], strides = [1, 1]} : vector<8x512xf32> to vector<8x128xf32>
    %cst_100 = arith.constant 5.000000e-01 : f32
    %327 = vector.broadcast %cst_100 : f32 to vector<8x128xf32>
    %328 = arith.mulf %327, %326 : vector<8x128xf32>
    %329 = math.tanh %328 : vector<8x128xf32>
    %cst_101 = arith.constant 5.000000e-01 : f32
    %330 = vector.broadcast %cst_101 : f32 to vector<8x128xf32>
    %331 = arith.mulf %330, %329 : vector<8x128xf32>
    %cst_102 = arith.constant 5.000000e-01 : f32
    %332 = vector.broadcast %cst_102 : f32 to vector<8x128xf32>
    %333 = arith.addf %331, %332 : vector<8x128xf32>
    %334 = arith.mulf %323, %299 : vector<8x128xf32>
    %335 = arith.mulf %315, %325 : vector<8x128xf32>
    %336 = arith.addf %334, %335 : vector<8x128xf32>
    %337 = math.tanh %336 : vector<8x128xf32>
    %338 = arith.mulf %333, %337 : vector<8x128xf32>
    %339 = arith.addi %9, %c6_i32 : i32
    %340 = vector.broadcast %339 : i32 to vector<8x1xi32>
    %341 = arith.cmpi slt, %340, %3 : vector<8x1xi32>
    %342 = vector.shape_cast %341 : vector<8x1xi1> to vector<8x1xi1>
    %343 = vector.broadcast %342 : vector<8x1xi1> to vector<8x128xi1>
    %344 = arith.select %343, %338, %296 : vector<8x128xi1>, vector<8x128xf32>
    %345 = vector.shape_cast %341 : vector<8x1xi1> to vector<8x1xi1>
    %346 = vector.broadcast %345 : vector<8x1xi1> to vector<8x128xi1>
    %347 = arith.select %346, %336, %299 : vector<8x128xi1>, vector<8x128xf32>
    %c7_i32 = arith.constant 7 : i32
    %348 = arith.index_cast %c7_i32 : i32 to index
    %c0_103 = arith.constant 0 : index
    %c0_104 = arith.constant 0 : index
    %349 = vector.load %arg3[%348, %c0_103, %c0_104] : memref<16x8x128xbf16, #tpu.memory_space<vmem>>, vector<1x8x128xbf16>
    %350 = vector.shape_cast %349 : vector<1x8x128xbf16> to vector<8x128xbf16>
    %351 = arith.extf %350 : vector<8x128xbf16> to vector<8x128xf32>
    %cst_105 = arith.constant dense<0.000000e+00> : vector<8x512xf32>
    %352 = tpu.matmul %351, %4, %cst_105 {dimension_numbers = #tpu.dot_dimension_numbers<[1], [0], [0], [1], [0, 0, 1, 1], [], []>} : vector<8x128xf32>, vector<128x512xf32>, vector<8x512xf32> -> vector<8x512xf32>
    %cst_106 = arith.constant dense<0.000000e+00> : vector<8x512xf32>
    %353 = tpu.matmul %344, %5, %cst_106 {dimension_numbers = #tpu.dot_dimension_numbers<[1], [0], [0], [1], [0, 0, 1, 1], [], []>} : vector<8x128xf32>, vector<128x512xf32>, vector<8x512xf32> -> vector<8x512xf32>
    %354 = arith.addf %352, %353 : vector<8x512xf32>
    %355 = arith.addf %354, %8 : vector<8x512xf32>
    %356 = vector.extract_strided_slice %355 {offsets = [0, 0], sizes = [8, 128], strides = [1, 1]} : vector<8x512xf32> to vector<8x128xf32>
    %cst_107 = arith.constant 5.000000e-01 : f32
    %357 = vector.broadcast %cst_107 : f32 to vector<8x128xf32>
    %358 = arith.mulf %357, %356 : vector<8x128xf32>
    %359 = math.tanh %358 : vector<8x128xf32>
    %cst_108 = arith.constant 5.000000e-01 : f32
    %360 = vector.broadcast %cst_108 : f32 to vector<8x128xf32>
    %361 = arith.mulf %360, %359 : vector<8x128xf32>
    %cst_109 = arith.constant 5.000000e-01 : f32
    %362 = vector.broadcast %cst_109 : f32 to vector<8x128xf32>
    %363 = arith.addf %361, %362 : vector<8x128xf32>
    %364 = vector.extract_strided_slice %355 {offsets = [0, 128], sizes = [8, 128], strides = [1, 1]} : vector<8x512xf32> to vector<8x128xf32>
    %cst_110 = arith.constant 5.000000e-01 : f32
    %365 = vector.broadcast %cst_110 : f32 to vector<8x128xf32>
    %366 = arith.mulf %365, %364 : vector<8x128xf32>
    %367 = math.tanh %366 : vector<8x128xf32>
    %cst_111 = arith.constant 5.000000e-01 : f32
    %368 = vector.broadcast %cst_111 : f32 to vector<8x128xf32>
    %369 = arith.mulf %368, %367 : vector<8x128xf32>
    %cst_112 = arith.constant 5.000000e-01 : f32
    %370 = vector.broadcast %cst_112 : f32 to vector<8x128xf32>
    %371 = arith.addf %369, %370 : vector<8x128xf32>
    %372 = vector.extract_strided_slice %355 {offsets = [0, 256], sizes = [8, 128], strides = [1, 1]} : vector<8x512xf32> to vector<8x128xf32>
    %373 = math.tanh %372 : vector<8x128xf32>
    %374 = vector.extract_strided_slice %355 {offsets = [0, 384], sizes = [8, 128], strides = [1, 1]} : vector<8x512xf32> to vector<8x128xf32>
    %cst_113 = arith.constant 5.000000e-01 : f32
    %375 = vector.broadcast %cst_113 : f32 to vector<8x128xf32>
    %376 = arith.mulf %375, %374 : vector<8x128xf32>
    %377 = math.tanh %376 : vector<8x128xf32>
    %cst_114 = arith.constant 5.000000e-01 : f32
    %378 = vector.broadcast %cst_114 : f32 to vector<8x128xf32>
    %379 = arith.mulf %378, %377 : vector<8x128xf32>
    %cst_115 = arith.constant 5.000000e-01 : f32
    %380 = vector.broadcast %cst_115 : f32 to vector<8x128xf32>
    %381 = arith.addf %379, %380 : vector<8x128xf32>
    %382 = arith.mulf %371, %347 : vector<8x128xf32>
    %383 = arith.mulf %363, %373 : vector<8x128xf32>
    %384 = arith.addf %382, %383 : vector<8x128xf32>
    %385 = math.tanh %384 : vector<8x128xf32>
    %386 = arith.mulf %381, %385 : vector<8x128xf32>
    %387 = arith.addi %9, %c7_i32 : i32
    %388 = vector.broadcast %387 : i32 to vector<8x1xi32>
    %389 = arith.cmpi slt, %388, %3 : vector<8x1xi32>
    %390 = vector.shape_cast %389 : vector<8x1xi1> to vector<8x1xi1>
    %391 = vector.broadcast %390 : vector<8x1xi1> to vector<8x128xi1>
    %392 = arith.select %391, %386, %344 : vector<8x128xi1>, vector<8x128xf32>
    %393 = vector.shape_cast %389 : vector<8x1xi1> to vector<8x1xi1>
    %394 = vector.broadcast %393 : vector<8x1xi1> to vector<8x128xi1>
    %395 = arith.select %394, %384, %347 : vector<8x128xi1>, vector<8x128xf32>
    %c8_i32 = arith.constant 8 : i32
    %396 = arith.index_cast %c8_i32 : i32 to index
    %c0_116 = arith.constant 0 : index
    %c0_117 = arith.constant 0 : index
    %397 = vector.load %arg3[%396, %c0_116, %c0_117] : memref<16x8x128xbf16, #tpu.memory_space<vmem>>, vector<1x8x128xbf16>
    %398 = vector.shape_cast %397 : vector<1x8x128xbf16> to vector<8x128xbf16>
    %399 = arith.extf %398 : vector<8x128xbf16> to vector<8x128xf32>
    %cst_118 = arith.constant dense<0.000000e+00> : vector<8x512xf32>
    %400 = tpu.matmul %399, %4, %cst_118 {dimension_numbers = #tpu.dot_dimension_numbers<[1], [0], [0], [1], [0, 0, 1, 1], [], []>} : vector<8x128xf32>, vector<128x512xf32>, vector<8x512xf32> -> vector<8x512xf32>
    %cst_119 = arith.constant dense<0.000000e+00> : vector<8x512xf32>
    %401 = tpu.matmul %392, %5, %cst_119 {dimension_numbers = #tpu.dot_dimension_numbers<[1], [0], [0], [1], [0, 0, 1, 1], [], []>} : vector<8x128xf32>, vector<128x512xf32>, vector<8x512xf32> -> vector<8x512xf32>
    %402 = arith.addf %400, %401 : vector<8x512xf32>
    %403 = arith.addf %402, %8 : vector<8x512xf32>
    %404 = vector.extract_strided_slice %403 {offsets = [0, 0], sizes = [8, 128], strides = [1, 1]} : vector<8x512xf32> to vector<8x128xf32>
    %cst_120 = arith.constant 5.000000e-01 : f32
    %405 = vector.broadcast %cst_120 : f32 to vector<8x128xf32>
    %406 = arith.mulf %405, %404 : vector<8x128xf32>
    %407 = math.tanh %406 : vector<8x128xf32>
    %cst_121 = arith.constant 5.000000e-01 : f32
    %408 = vector.broadcast %cst_121 : f32 to vector<8x128xf32>
    %409 = arith.mulf %408, %407 : vector<8x128xf32>
    %cst_122 = arith.constant 5.000000e-01 : f32
    %410 = vector.broadcast %cst_122 : f32 to vector<8x128xf32>
    %411 = arith.addf %409, %410 : vector<8x128xf32>
    %412 = vector.extract_strided_slice %403 {offsets = [0, 128], sizes = [8, 128], strides = [1, 1]} : vector<8x512xf32> to vector<8x128xf32>
    %cst_123 = arith.constant 5.000000e-01 : f32
    %413 = vector.broadcast %cst_123 : f32 to vector<8x128xf32>
    %414 = arith.mulf %413, %412 : vector<8x128xf32>
    %415 = math.tanh %414 : vector<8x128xf32>
    %cst_124 = arith.constant 5.000000e-01 : f32
    %416 = vector.broadcast %cst_124 : f32 to vector<8x128xf32>
    %417 = arith.mulf %416, %415 : vector<8x128xf32>
    %cst_125 = arith.constant 5.000000e-01 : f32
    %418 = vector.broadcast %cst_125 : f32 to vector<8x128xf32>
    %419 = arith.addf %417, %418 : vector<8x128xf32>
    %420 = vector.extract_strided_slice %403 {offsets = [0, 256], sizes = [8, 128], strides = [1, 1]} : vector<8x512xf32> to vector<8x128xf32>
    %421 = math.tanh %420 : vector<8x128xf32>
    %422 = vector.extract_strided_slice %403 {offsets = [0, 384], sizes = [8, 128], strides = [1, 1]} : vector<8x512xf32> to vector<8x128xf32>
    %cst_126 = arith.constant 5.000000e-01 : f32
    %423 = vector.broadcast %cst_126 : f32 to vector<8x128xf32>
    %424 = arith.mulf %423, %422 : vector<8x128xf32>
    %425 = math.tanh %424 : vector<8x128xf32>
    %cst_127 = arith.constant 5.000000e-01 : f32
    %426 = vector.broadcast %cst_127 : f32 to vector<8x128xf32>
    %427 = arith.mulf %426, %425 : vector<8x128xf32>
    %cst_128 = arith.constant 5.000000e-01 : f32
    %428 = vector.broadcast %cst_128 : f32 to vector<8x128xf32>
    %429 = arith.addf %427, %428 : vector<8x128xf32>
    %430 = arith.mulf %419, %395 : vector<8x128xf32>
    %431 = arith.mulf %411, %421 : vector<8x128xf32>
    %432 = arith.addf %430, %431 : vector<8x128xf32>
    %433 = math.tanh %432 : vector<8x128xf32>
    %434 = arith.mulf %429, %433 : vector<8x128xf32>
    %435 = arith.addi %9, %c8_i32 : i32
    %436 = vector.broadcast %435 : i32 to vector<8x1xi32>
    %437 = arith.cmpi slt, %436, %3 : vector<8x1xi32>
    %438 = vector.shape_cast %437 : vector<8x1xi1> to vector<8x1xi1>
    %439 = vector.broadcast %438 : vector<8x1xi1> to vector<8x128xi1>
    %440 = arith.select %439, %434, %392 : vector<8x128xi1>, vector<8x128xf32>
    %441 = vector.shape_cast %437 : vector<8x1xi1> to vector<8x1xi1>
    %442 = vector.broadcast %441 : vector<8x1xi1> to vector<8x128xi1>
    %443 = arith.select %442, %432, %395 : vector<8x128xi1>, vector<8x128xf32>
    %c9_i32 = arith.constant 9 : i32
    %444 = arith.index_cast %c9_i32 : i32 to index
    %c0_129 = arith.constant 0 : index
    %c0_130 = arith.constant 0 : index
    %445 = vector.load %arg3[%444, %c0_129, %c0_130] : memref<16x8x128xbf16, #tpu.memory_space<vmem>>, vector<1x8x128xbf16>
    %446 = vector.shape_cast %445 : vector<1x8x128xbf16> to vector<8x128xbf16>
    %447 = arith.extf %446 : vector<8x128xbf16> to vector<8x128xf32>
    %cst_131 = arith.constant dense<0.000000e+00> : vector<8x512xf32>
    %448 = tpu.matmul %447, %4, %cst_131 {dimension_numbers = #tpu.dot_dimension_numbers<[1], [0], [0], [1], [0, 0, 1, 1], [], []>} : vector<8x128xf32>, vector<128x512xf32>, vector<8x512xf32> -> vector<8x512xf32>
    %cst_132 = arith.constant dense<0.000000e+00> : vector<8x512xf32>
    %449 = tpu.matmul %440, %5, %cst_132 {dimension_numbers = #tpu.dot_dimension_numbers<[1], [0], [0], [1], [0, 0, 1, 1], [], []>} : vector<8x128xf32>, vector<128x512xf32>, vector<8x512xf32> -> vector<8x512xf32>
    %450 = arith.addf %448, %449 : vector<8x512xf32>
    %451 = arith.addf %450, %8 : vector<8x512xf32>
    %452 = vector.extract_strided_slice %451 {offsets = [0, 0], sizes = [8, 128], strides = [1, 1]} : vector<8x512xf32> to vector<8x128xf32>
    %cst_133 = arith.constant 5.000000e-01 : f32
    %453 = vector.broadcast %cst_133 : f32 to vector<8x128xf32>
    %454 = arith.mulf %453, %452 : vector<8x128xf32>
    %455 = math.tanh %454 : vector<8x128xf32>
    %cst_134 = arith.constant 5.000000e-01 : f32
    %456 = vector.broadcast %cst_134 : f32 to vector<8x128xf32>
    %457 = arith.mulf %456, %455 : vector<8x128xf32>
    %cst_135 = arith.constant 5.000000e-01 : f32
    %458 = vector.broadcast %cst_135 : f32 to vector<8x128xf32>
    %459 = arith.addf %457, %458 : vector<8x128xf32>
    %460 = vector.extract_strided_slice %451 {offsets = [0, 128], sizes = [8, 128], strides = [1, 1]} : vector<8x512xf32> to vector<8x128xf32>
    %cst_136 = arith.constant 5.000000e-01 : f32
    %461 = vector.broadcast %cst_136 : f32 to vector<8x128xf32>
    %462 = arith.mulf %461, %460 : vector<8x128xf32>
    %463 = math.tanh %462 : vector<8x128xf32>
    %cst_137 = arith.constant 5.000000e-01 : f32
    %464 = vector.broadcast %cst_137 : f32 to vector<8x128xf32>
    %465 = arith.mulf %464, %463 : vector<8x128xf32>
    %cst_138 = arith.constant 5.000000e-01 : f32
    %466 = vector.broadcast %cst_138 : f32 to vector<8x128xf32>
    %467 = arith.addf %465, %466 : vector<8x128xf32>
    %468 = vector.extract_strided_slice %451 {offsets = [0, 256], sizes = [8, 128], strides = [1, 1]} : vector<8x512xf32> to vector<8x128xf32>
    %469 = math.tanh %468 : vector<8x128xf32>
    %470 = vector.extract_strided_slice %451 {offsets = [0, 384], sizes = [8, 128], strides = [1, 1]} : vector<8x512xf32> to vector<8x128xf32>
    %cst_139 = arith.constant 5.000000e-01 : f32
    %471 = vector.broadcast %cst_139 : f32 to vector<8x128xf32>
    %472 = arith.mulf %471, %470 : vector<8x128xf32>
    %473 = math.tanh %472 : vector<8x128xf32>
    %cst_140 = arith.constant 5.000000e-01 : f32
    %474 = vector.broadcast %cst_140 : f32 to vector<8x128xf32>
    %475 = arith.mulf %474, %473 : vector<8x128xf32>
    %cst_141 = arith.constant 5.000000e-01 : f32
    %476 = vector.broadcast %cst_141 : f32 to vector<8x128xf32>
    %477 = arith.addf %475, %476 : vector<8x128xf32>
    %478 = arith.mulf %467, %443 : vector<8x128xf32>
    %479 = arith.mulf %459, %469 : vector<8x128xf32>
    %480 = arith.addf %478, %479 : vector<8x128xf32>
    %481 = math.tanh %480 : vector<8x128xf32>
    %482 = arith.mulf %477, %481 : vector<8x128xf32>
    %483 = arith.addi %9, %c9_i32 : i32
    %484 = vector.broadcast %483 : i32 to vector<8x1xi32>
    %485 = arith.cmpi slt, %484, %3 : vector<8x1xi32>
    %486 = vector.shape_cast %485 : vector<8x1xi1> to vector<8x1xi1>
    %487 = vector.broadcast %486 : vector<8x1xi1> to vector<8x128xi1>
    %488 = arith.select %487, %482, %440 : vector<8x128xi1>, vector<8x128xf32>
    %489 = vector.shape_cast %485 : vector<8x1xi1> to vector<8x1xi1>
    %490 = vector.broadcast %489 : vector<8x1xi1> to vector<8x128xi1>
    %491 = arith.select %490, %480, %443 : vector<8x128xi1>, vector<8x128xf32>
    %c10_i32 = arith.constant 10 : i32
    %492 = arith.index_cast %c10_i32 : i32 to index
    %c0_142 = arith.constant 0 : index
    %c0_143 = arith.constant 0 : index
    %493 = vector.load %arg3[%492, %c0_142, %c0_143] : memref<16x8x128xbf16, #tpu.memory_space<vmem>>, vector<1x8x128xbf16>
    %494 = vector.shape_cast %493 : vector<1x8x128xbf16> to vector<8x128xbf16>
    %495 = arith.extf %494 : vector<8x128xbf16> to vector<8x128xf32>
    %cst_144 = arith.constant dense<0.000000e+00> : vector<8x512xf32>
    %496 = tpu.matmul %495, %4, %cst_144 {dimension_numbers = #tpu.dot_dimension_numbers<[1], [0], [0], [1], [0, 0, 1, 1], [], []>} : vector<8x128xf32>, vector<128x512xf32>, vector<8x512xf32> -> vector<8x512xf32>
    %cst_145 = arith.constant dense<0.000000e+00> : vector<8x512xf32>
    %497 = tpu.matmul %488, %5, %cst_145 {dimension_numbers = #tpu.dot_dimension_numbers<[1], [0], [0], [1], [0, 0, 1, 1], [], []>} : vector<8x128xf32>, vector<128x512xf32>, vector<8x512xf32> -> vector<8x512xf32>
    %498 = arith.addf %496, %497 : vector<8x512xf32>
    %499 = arith.addf %498, %8 : vector<8x512xf32>
    %500 = vector.extract_strided_slice %499 {offsets = [0, 0], sizes = [8, 128], strides = [1, 1]} : vector<8x512xf32> to vector<8x128xf32>
    %cst_146 = arith.constant 5.000000e-01 : f32
    %501 = vector.broadcast %cst_146 : f32 to vector<8x128xf32>
    %502 = arith.mulf %501, %500 : vector<8x128xf32>
    %503 = math.tanh %502 : vector<8x128xf32>
    %cst_147 = arith.constant 5.000000e-01 : f32
    %504 = vector.broadcast %cst_147 : f32 to vector<8x128xf32>
    %505 = arith.mulf %504, %503 : vector<8x128xf32>
    %cst_148 = arith.constant 5.000000e-01 : f32
    %506 = vector.broadcast %cst_148 : f32 to vector<8x128xf32>
    %507 = arith.addf %505, %506 : vector<8x128xf32>
    %508 = vector.extract_strided_slice %499 {offsets = [0, 128], sizes = [8, 128], strides = [1, 1]} : vector<8x512xf32> to vector<8x128xf32>
    %cst_149 = arith.constant 5.000000e-01 : f32
    %509 = vector.broadcast %cst_149 : f32 to vector<8x128xf32>
    %510 = arith.mulf %509, %508 : vector<8x128xf32>
    %511 = math.tanh %510 : vector<8x128xf32>
    %cst_150 = arith.constant 5.000000e-01 : f32
    %512 = vector.broadcast %cst_150 : f32 to vector<8x128xf32>
    %513 = arith.mulf %512, %511 : vector<8x128xf32>
    %cst_151 = arith.constant 5.000000e-01 : f32
    %514 = vector.broadcast %cst_151 : f32 to vector<8x128xf32>
    %515 = arith.addf %513, %514 : vector<8x128xf32>
    %516 = vector.extract_strided_slice %499 {offsets = [0, 256], sizes = [8, 128], strides = [1, 1]} : vector<8x512xf32> to vector<8x128xf32>
    %517 = math.tanh %516 : vector<8x128xf32>
    %518 = vector.extract_strided_slice %499 {offsets = [0, 384], sizes = [8, 128], strides = [1, 1]} : vector<8x512xf32> to vector<8x128xf32>
    %cst_152 = arith.constant 5.000000e-01 : f32
    %519 = vector.broadcast %cst_152 : f32 to vector<8x128xf32>
    %520 = arith.mulf %519, %518 : vector<8x128xf32>
    %521 = math.tanh %520 : vector<8x128xf32>
    %cst_153 = arith.constant 5.000000e-01 : f32
    %522 = vector.broadcast %cst_153 : f32 to vector<8x128xf32>
    %523 = arith.mulf %522, %521 : vector<8x128xf32>
    %cst_154 = arith.constant 5.000000e-01 : f32
    %524 = vector.broadcast %cst_154 : f32 to vector<8x128xf32>
    %525 = arith.addf %523, %524 : vector<8x128xf32>
    %526 = arith.mulf %515, %491 : vector<8x128xf32>
    %527 = arith.mulf %507, %517 : vector<8x128xf32>
    %528 = arith.addf %526, %527 : vector<8x128xf32>
    %529 = math.tanh %528 : vector<8x128xf32>
    %530 = arith.mulf %525, %529 : vector<8x128xf32>
    %531 = arith.addi %9, %c10_i32 : i32
    %532 = vector.broadcast %531 : i32 to vector<8x1xi32>
    %533 = arith.cmpi slt, %532, %3 : vector<8x1xi32>
    %534 = vector.shape_cast %533 : vector<8x1xi1> to vector<8x1xi1>
    %535 = vector.broadcast %534 : vector<8x1xi1> to vector<8x128xi1>
    %536 = arith.select %535, %530, %488 : vector<8x128xi1>, vector<8x128xf32>
    %537 = vector.shape_cast %533 : vector<8x1xi1> to vector<8x1xi1>
    %538 = vector.broadcast %537 : vector<8x1xi1> to vector<8x128xi1>
    %539 = arith.select %538, %528, %491 : vector<8x128xi1>, vector<8x128xf32>
    %c11_i32 = arith.constant 11 : i32
    %540 = arith.index_cast %c11_i32 : i32 to index
    %c0_155 = arith.constant 0 : index
    %c0_156 = arith.constant 0 : index
    %541 = vector.load %arg3[%540, %c0_155, %c0_156] : memref<16x8x128xbf16, #tpu.memory_space<vmem>>, vector<1x8x128xbf16>
    %542 = vector.shape_cast %541 : vector<1x8x128xbf16> to vector<8x128xbf16>
    %543 = arith.extf %542 : vector<8x128xbf16> to vector<8x128xf32>
    %cst_157 = arith.constant dense<0.000000e+00> : vector<8x512xf32>
    %544 = tpu.matmul %543, %4, %cst_157 {dimension_numbers = #tpu.dot_dimension_numbers<[1], [0], [0], [1], [0, 0, 1, 1], [], []>} : vector<8x128xf32>, vector<128x512xf32>, vector<8x512xf32> -> vector<8x512xf32>
    %cst_158 = arith.constant dense<0.000000e+00> : vector<8x512xf32>
    %545 = tpu.matmul %536, %5, %cst_158 {dimension_numbers = #tpu.dot_dimension_numbers<[1], [0], [0], [1], [0, 0, 1, 1], [], []>} : vector<8x128xf32>, vector<128x512xf32>, vector<8x512xf32> -> vector<8x512xf32>
    %546 = arith.addf %544, %545 : vector<8x512xf32>
    %547 = arith.addf %546, %8 : vector<8x512xf32>
    %548 = vector.extract_strided_slice %547 {offsets = [0, 0], sizes = [8, 128], strides = [1, 1]} : vector<8x512xf32> to vector<8x128xf32>
    %cst_159 = arith.constant 5.000000e-01 : f32
    %549 = vector.broadcast %cst_159 : f32 to vector<8x128xf32>
    %550 = arith.mulf %549, %548 : vector<8x128xf32>
    %551 = math.tanh %550 : vector<8x128xf32>
    %cst_160 = arith.constant 5.000000e-01 : f32
    %552 = vector.broadcast %cst_160 : f32 to vector<8x128xf32>
    %553 = arith.mulf %552, %551 : vector<8x128xf32>
    %cst_161 = arith.constant 5.000000e-01 : f32
    %554 = vector.broadcast %cst_161 : f32 to vector<8x128xf32>
    %555 = arith.addf %553, %554 : vector<8x128xf32>
    %556 = vector.extract_strided_slice %547 {offsets = [0, 128], sizes = [8, 128], strides = [1, 1]} : vector<8x512xf32> to vector<8x128xf32>
    %cst_162 = arith.constant 5.000000e-01 : f32
    %557 = vector.broadcast %cst_162 : f32 to vector<8x128xf32>
    %558 = arith.mulf %557, %556 : vector<8x128xf32>
    %559 = math.tanh %558 : vector<8x128xf32>
    %cst_163 = arith.constant 5.000000e-01 : f32
    %560 = vector.broadcast %cst_163 : f32 to vector<8x128xf32>
    %561 = arith.mulf %560, %559 : vector<8x128xf32>
    %cst_164 = arith.constant 5.000000e-01 : f32
    %562 = vector.broadcast %cst_164 : f32 to vector<8x128xf32>
    %563 = arith.addf %561, %562 : vector<8x128xf32>
    %564 = vector.extract_strided_slice %547 {offsets = [0, 256], sizes = [8, 128], strides = [1, 1]} : vector<8x512xf32> to vector<8x128xf32>
    %565 = math.tanh %564 : vector<8x128xf32>
    %566 = vector.extract_strided_slice %547 {offsets = [0, 384], sizes = [8, 128], strides = [1, 1]} : vector<8x512xf32> to vector<8x128xf32>
    %cst_165 = arith.constant 5.000000e-01 : f32
    %567 = vector.broadcast %cst_165 : f32 to vector<8x128xf32>
    %568 = arith.mulf %567, %566 : vector<8x128xf32>
    %569 = math.tanh %568 : vector<8x128xf32>
    %cst_166 = arith.constant 5.000000e-01 : f32
    %570 = vector.broadcast %cst_166 : f32 to vector<8x128xf32>
    %571 = arith.mulf %570, %569 : vector<8x128xf32>
    %cst_167 = arith.constant 5.000000e-01 : f32
    %572 = vector.broadcast %cst_167 : f32 to vector<8x128xf32>
    %573 = arith.addf %571, %572 : vector<8x128xf32>
    %574 = arith.mulf %563, %539 : vector<8x128xf32>
    %575 = arith.mulf %555, %565 : vector<8x128xf32>
    %576 = arith.addf %574, %575 : vector<8x128xf32>
    %577 = math.tanh %576 : vector<8x128xf32>
    %578 = arith.mulf %573, %577 : vector<8x128xf32>
    %579 = arith.addi %9, %c11_i32 : i32
    %580 = vector.broadcast %579 : i32 to vector<8x1xi32>
    %581 = arith.cmpi slt, %580, %3 : vector<8x1xi32>
    %582 = vector.shape_cast %581 : vector<8x1xi1> to vector<8x1xi1>
    %583 = vector.broadcast %582 : vector<8x1xi1> to vector<8x128xi1>
    %584 = arith.select %583, %578, %536 : vector<8x128xi1>, vector<8x128xf32>
    %585 = vector.shape_cast %581 : vector<8x1xi1> to vector<8x1xi1>
    %586 = vector.broadcast %585 : vector<8x1xi1> to vector<8x128xi1>
    %587 = arith.select %586, %576, %539 : vector<8x128xi1>, vector<8x128xf32>
    %c12_i32 = arith.constant 12 : i32
    %588 = arith.index_cast %c12_i32 : i32 to index
    %c0_168 = arith.constant 0 : index
    %c0_169 = arith.constant 0 : index
    %589 = vector.load %arg3[%588, %c0_168, %c0_169] : memref<16x8x128xbf16, #tpu.memory_space<vmem>>, vector<1x8x128xbf16>
    %590 = vector.shape_cast %589 : vector<1x8x128xbf16> to vector<8x128xbf16>
    %591 = arith.extf %590 : vector<8x128xbf16> to vector<8x128xf32>
    %cst_170 = arith.constant dense<0.000000e+00> : vector<8x512xf32>
    %592 = tpu.matmul %591, %4, %cst_170 {dimension_numbers = #tpu.dot_dimension_numbers<[1], [0], [0], [1], [0, 0, 1, 1], [], []>} : vector<8x128xf32>, vector<128x512xf32>, vector<8x512xf32> -> vector<8x512xf32>
    %cst_171 = arith.constant dense<0.000000e+00> : vector<8x512xf32>
    %593 = tpu.matmul %584, %5, %cst_171 {dimension_numbers = #tpu.dot_dimension_numbers<[1], [0], [0], [1], [0, 0, 1, 1], [], []>} : vector<8x128xf32>, vector<128x512xf32>, vector<8x512xf32> -> vector<8x512xf32>
    %594 = arith.addf %592, %593 : vector<8x512xf32>
    %595 = arith.addf %594, %8 : vector<8x512xf32>
    %596 = vector.extract_strided_slice %595 {offsets = [0, 0], sizes = [8, 128], strides = [1, 1]} : vector<8x512xf32> to vector<8x128xf32>
    %cst_172 = arith.constant 5.000000e-01 : f32
    %597 = vector.broadcast %cst_172 : f32 to vector<8x128xf32>
    %598 = arith.mulf %597, %596 : vector<8x128xf32>
    %599 = math.tanh %598 : vector<8x128xf32>
    %cst_173 = arith.constant 5.000000e-01 : f32
    %600 = vector.broadcast %cst_173 : f32 to vector<8x128xf32>
    %601 = arith.mulf %600, %599 : vector<8x128xf32>
    %cst_174 = arith.constant 5.000000e-01 : f32
    %602 = vector.broadcast %cst_174 : f32 to vector<8x128xf32>
    %603 = arith.addf %601, %602 : vector<8x128xf32>
    %604 = vector.extract_strided_slice %595 {offsets = [0, 128], sizes = [8, 128], strides = [1, 1]} : vector<8x512xf32> to vector<8x128xf32>
    %cst_175 = arith.constant 5.000000e-01 : f32
    %605 = vector.broadcast %cst_175 : f32 to vector<8x128xf32>
    %606 = arith.mulf %605, %604 : vector<8x128xf32>
    %607 = math.tanh %606 : vector<8x128xf32>
    %cst_176 = arith.constant 5.000000e-01 : f32
    %608 = vector.broadcast %cst_176 : f32 to vector<8x128xf32>
    %609 = arith.mulf %608, %607 : vector<8x128xf32>
    %cst_177 = arith.constant 5.000000e-01 : f32
    %610 = vector.broadcast %cst_177 : f32 to vector<8x128xf32>
    %611 = arith.addf %609, %610 : vector<8x128xf32>
    %612 = vector.extract_strided_slice %595 {offsets = [0, 256], sizes = [8, 128], strides = [1, 1]} : vector<8x512xf32> to vector<8x128xf32>
    %613 = math.tanh %612 : vector<8x128xf32>
    %614 = vector.extract_strided_slice %595 {offsets = [0, 384], sizes = [8, 128], strides = [1, 1]} : vector<8x512xf32> to vector<8x128xf32>
    %cst_178 = arith.constant 5.000000e-01 : f32
    %615 = vector.broadcast %cst_178 : f32 to vector<8x128xf32>
    %616 = arith.mulf %615, %614 : vector<8x128xf32>
    %617 = math.tanh %616 : vector<8x128xf32>
    %cst_179 = arith.constant 5.000000e-01 : f32
    %618 = vector.broadcast %cst_179 : f32 to vector<8x128xf32>
    %619 = arith.mulf %618, %617 : vector<8x128xf32>
    %cst_180 = arith.constant 5.000000e-01 : f32
    %620 = vector.broadcast %cst_180 : f32 to vector<8x128xf32>
    %621 = arith.addf %619, %620 : vector<8x128xf32>
    %622 = arith.mulf %611, %587 : vector<8x128xf32>
    %623 = arith.mulf %603, %613 : vector<8x128xf32>
    %624 = arith.addf %622, %623 : vector<8x128xf32>
    %625 = math.tanh %624 : vector<8x128xf32>
    %626 = arith.mulf %621, %625 : vector<8x128xf32>
    %627 = arith.addi %9, %c12_i32 : i32
    %628 = vector.broadcast %627 : i32 to vector<8x1xi32>
    %629 = arith.cmpi slt, %628, %3 : vector<8x1xi32>
    %630 = vector.shape_cast %629 : vector<8x1xi1> to vector<8x1xi1>
    %631 = vector.broadcast %630 : vector<8x1xi1> to vector<8x128xi1>
    %632 = arith.select %631, %626, %584 : vector<8x128xi1>, vector<8x128xf32>
    %633 = vector.shape_cast %629 : vector<8x1xi1> to vector<8x1xi1>
    %634 = vector.broadcast %633 : vector<8x1xi1> to vector<8x128xi1>
    %635 = arith.select %634, %624, %587 : vector<8x128xi1>, vector<8x128xf32>
    %c13_i32 = arith.constant 13 : i32
    %636 = arith.index_cast %c13_i32 : i32 to index
    %c0_181 = arith.constant 0 : index
    %c0_182 = arith.constant 0 : index
    %637 = vector.load %arg3[%636, %c0_181, %c0_182] : memref<16x8x128xbf16, #tpu.memory_space<vmem>>, vector<1x8x128xbf16>
    %638 = vector.shape_cast %637 : vector<1x8x128xbf16> to vector<8x128xbf16>
    %639 = arith.extf %638 : vector<8x128xbf16> to vector<8x128xf32>
    %cst_183 = arith.constant dense<0.000000e+00> : vector<8x512xf32>
    %640 = tpu.matmul %639, %4, %cst_183 {dimension_numbers = #tpu.dot_dimension_numbers<[1], [0], [0], [1], [0, 0, 1, 1], [], []>} : vector<8x128xf32>, vector<128x512xf32>, vector<8x512xf32> -> vector<8x512xf32>
    %cst_184 = arith.constant dense<0.000000e+00> : vector<8x512xf32>
    %641 = tpu.matmul %632, %5, %cst_184 {dimension_numbers = #tpu.dot_dimension_numbers<[1], [0], [0], [1], [0, 0, 1, 1], [], []>} : vector<8x128xf32>, vector<128x512xf32>, vector<8x512xf32> -> vector<8x512xf32>
    %642 = arith.addf %640, %641 : vector<8x512xf32>
    %643 = arith.addf %642, %8 : vector<8x512xf32>
    %644 = vector.extract_strided_slice %643 {offsets = [0, 0], sizes = [8, 128], strides = [1, 1]} : vector<8x512xf32> to vector<8x128xf32>
    %cst_185 = arith.constant 5.000000e-01 : f32
    %645 = vector.broadcast %cst_185 : f32 to vector<8x128xf32>
    %646 = arith.mulf %645, %644 : vector<8x128xf32>
    %647 = math.tanh %646 : vector<8x128xf32>
    %cst_186 = arith.constant 5.000000e-01 : f32
    %648 = vector.broadcast %cst_186 : f32 to vector<8x128xf32>
    %649 = arith.mulf %648, %647 : vector<8x128xf32>
    %cst_187 = arith.constant 5.000000e-01 : f32
    %650 = vector.broadcast %cst_187 : f32 to vector<8x128xf32>
    %651 = arith.addf %649, %650 : vector<8x128xf32>
    %652 = vector.extract_strided_slice %643 {offsets = [0, 128], sizes = [8, 128], strides = [1, 1]} : vector<8x512xf32> to vector<8x128xf32>
    %cst_188 = arith.constant 5.000000e-01 : f32
    %653 = vector.broadcast %cst_188 : f32 to vector<8x128xf32>
    %654 = arith.mulf %653, %652 : vector<8x128xf32>
    %655 = math.tanh %654 : vector<8x128xf32>
    %cst_189 = arith.constant 5.000000e-01 : f32
    %656 = vector.broadcast %cst_189 : f32 to vector<8x128xf32>
    %657 = arith.mulf %656, %655 : vector<8x128xf32>
    %cst_190 = arith.constant 5.000000e-01 : f32
    %658 = vector.broadcast %cst_190 : f32 to vector<8x128xf32>
    %659 = arith.addf %657, %658 : vector<8x128xf32>
    %660 = vector.extract_strided_slice %643 {offsets = [0, 256], sizes = [8, 128], strides = [1, 1]} : vector<8x512xf32> to vector<8x128xf32>
    %661 = math.tanh %660 : vector<8x128xf32>
    %662 = vector.extract_strided_slice %643 {offsets = [0, 384], sizes = [8, 128], strides = [1, 1]} : vector<8x512xf32> to vector<8x128xf32>
    %cst_191 = arith.constant 5.000000e-01 : f32
    %663 = vector.broadcast %cst_191 : f32 to vector<8x128xf32>
    %664 = arith.mulf %663, %662 : vector<8x128xf32>
    %665 = math.tanh %664 : vector<8x128xf32>
    %cst_192 = arith.constant 5.000000e-01 : f32
    %666 = vector.broadcast %cst_192 : f32 to vector<8x128xf32>
    %667 = arith.mulf %666, %665 : vector<8x128xf32>
    %cst_193 = arith.constant 5.000000e-01 : f32
    %668 = vector.broadcast %cst_193 : f32 to vector<8x128xf32>
    %669 = arith.addf %667, %668 : vector<8x128xf32>
    %670 = arith.mulf %659, %635 : vector<8x128xf32>
    %671 = arith.mulf %651, %661 : vector<8x128xf32>
    %672 = arith.addf %670, %671 : vector<8x128xf32>
    %673 = math.tanh %672 : vector<8x128xf32>
    %674 = arith.mulf %669, %673 : vector<8x128xf32>
    %675 = arith.addi %9, %c13_i32 : i32
    %676 = vector.broadcast %675 : i32 to vector<8x1xi32>
    %677 = arith.cmpi slt, %676, %3 : vector<8x1xi32>
    %678 = vector.shape_cast %677 : vector<8x1xi1> to vector<8x1xi1>
    %679 = vector.broadcast %678 : vector<8x1xi1> to vector<8x128xi1>
    %680 = arith.select %679, %674, %632 : vector<8x128xi1>, vector<8x128xf32>
    %681 = vector.shape_cast %677 : vector<8x1xi1> to vector<8x1xi1>
    %682 = vector.broadcast %681 : vector<8x1xi1> to vector<8x128xi1>
    %683 = arith.select %682, %672, %635 : vector<8x128xi1>, vector<8x128xf32>
    %c14_i32 = arith.constant 14 : i32
    %684 = arith.index_cast %c14_i32 : i32 to index
    %c0_194 = arith.constant 0 : index
    %c0_195 = arith.constant 0 : index
    %685 = vector.load %arg3[%684, %c0_194, %c0_195] : memref<16x8x128xbf16, #tpu.memory_space<vmem>>, vector<1x8x128xbf16>
    %686 = vector.shape_cast %685 : vector<1x8x128xbf16> to vector<8x128xbf16>
    %687 = arith.extf %686 : vector<8x128xbf16> to vector<8x128xf32>
    %cst_196 = arith.constant dense<0.000000e+00> : vector<8x512xf32>
    %688 = tpu.matmul %687, %4, %cst_196 {dimension_numbers = #tpu.dot_dimension_numbers<[1], [0], [0], [1], [0, 0, 1, 1], [], []>} : vector<8x128xf32>, vector<128x512xf32>, vector<8x512xf32> -> vector<8x512xf32>
    %cst_197 = arith.constant dense<0.000000e+00> : vector<8x512xf32>
    %689 = tpu.matmul %680, %5, %cst_197 {dimension_numbers = #tpu.dot_dimension_numbers<[1], [0], [0], [1], [0, 0, 1, 1], [], []>} : vector<8x128xf32>, vector<128x512xf32>, vector<8x512xf32> -> vector<8x512xf32>
    %690 = arith.addf %688, %689 : vector<8x512xf32>
    %691 = arith.addf %690, %8 : vector<8x512xf32>
    %692 = vector.extract_strided_slice %691 {offsets = [0, 0], sizes = [8, 128], strides = [1, 1]} : vector<8x512xf32> to vector<8x128xf32>
    %cst_198 = arith.constant 5.000000e-01 : f32
    %693 = vector.broadcast %cst_198 : f32 to vector<8x128xf32>
    %694 = arith.mulf %693, %692 : vector<8x128xf32>
    %695 = math.tanh %694 : vector<8x128xf32>
    %cst_199 = arith.constant 5.000000e-01 : f32
    %696 = vector.broadcast %cst_199 : f32 to vector<8x128xf32>
    %697 = arith.mulf %696, %695 : vector<8x128xf32>
    %cst_200 = arith.constant 5.000000e-01 : f32
    %698 = vector.broadcast %cst_200 : f32 to vector<8x128xf32>
    %699 = arith.addf %697, %698 : vector<8x128xf32>
    %700 = vector.extract_strided_slice %691 {offsets = [0, 128], sizes = [8, 128], strides = [1, 1]} : vector<8x512xf32> to vector<8x128xf32>
    %cst_201 = arith.constant 5.000000e-01 : f32
    %701 = vector.broadcast %cst_201 : f32 to vector<8x128xf32>
    %702 = arith.mulf %701, %700 : vector<8x128xf32>
    %703 = math.tanh %702 : vector<8x128xf32>
    %cst_202 = arith.constant 5.000000e-01 : f32
    %704 = vector.broadcast %cst_202 : f32 to vector<8x128xf32>
    %705 = arith.mulf %704, %703 : vector<8x128xf32>
    %cst_203 = arith.constant 5.000000e-01 : f32
    %706 = vector.broadcast %cst_203 : f32 to vector<8x128xf32>
    %707 = arith.addf %705, %706 : vector<8x128xf32>
    %708 = vector.extract_strided_slice %691 {offsets = [0, 256], sizes = [8, 128], strides = [1, 1]} : vector<8x512xf32> to vector<8x128xf32>
    %709 = math.tanh %708 : vector<8x128xf32>
    %710 = vector.extract_strided_slice %691 {offsets = [0, 384], sizes = [8, 128], strides = [1, 1]} : vector<8x512xf32> to vector<8x128xf32>
    %cst_204 = arith.constant 5.000000e-01 : f32
    %711 = vector.broadcast %cst_204 : f32 to vector<8x128xf32>
    %712 = arith.mulf %711, %710 : vector<8x128xf32>
    %713 = math.tanh %712 : vector<8x128xf32>
    %cst_205 = arith.constant 5.000000e-01 : f32
    %714 = vector.broadcast %cst_205 : f32 to vector<8x128xf32>
    %715 = arith.mulf %714, %713 : vector<8x128xf32>
    %cst_206 = arith.constant 5.000000e-01 : f32
    %716 = vector.broadcast %cst_206 : f32 to vector<8x128xf32>
    %717 = arith.addf %715, %716 : vector<8x128xf32>
    %718 = arith.mulf %707, %683 : vector<8x128xf32>
    %719 = arith.mulf %699, %709 : vector<8x128xf32>
    %720 = arith.addf %718, %719 : vector<8x128xf32>
    %721 = math.tanh %720 : vector<8x128xf32>
    %722 = arith.mulf %717, %721 : vector<8x128xf32>
    %723 = arith.addi %9, %c14_i32 : i32
    %724 = vector.broadcast %723 : i32 to vector<8x1xi32>
    %725 = arith.cmpi slt, %724, %3 : vector<8x1xi32>
    %726 = vector.shape_cast %725 : vector<8x1xi1> to vector<8x1xi1>
    %727 = vector.broadcast %726 : vector<8x1xi1> to vector<8x128xi1>
    %728 = arith.select %727, %722, %680 : vector<8x128xi1>, vector<8x128xf32>
    %729 = vector.shape_cast %725 : vector<8x1xi1> to vector<8x1xi1>
    %730 = vector.broadcast %729 : vector<8x1xi1> to vector<8x128xi1>
    %731 = arith.select %730, %720, %683 : vector<8x128xi1>, vector<8x128xf32>
    %c15_i32 = arith.constant 15 : i32
    %732 = arith.index_cast %c15_i32 : i32 to index
    %c0_207 = arith.constant 0 : index
    %c0_208 = arith.constant 0 : index
    %733 = vector.load %arg3[%732, %c0_207, %c0_208] : memref<16x8x128xbf16, #tpu.memory_space<vmem>>, vector<1x8x128xbf16>
    %734 = vector.shape_cast %733 : vector<1x8x128xbf16> to vector<8x128xbf16>
    %735 = arith.extf %734 : vector<8x128xbf16> to vector<8x128xf32>
    %cst_209 = arith.constant dense<0.000000e+00> : vector<8x512xf32>
    %736 = tpu.matmul %735, %4, %cst_209 {dimension_numbers = #tpu.dot_dimension_numbers<[1], [0], [0], [1], [0, 0, 1, 1], [], []>} : vector<8x128xf32>, vector<128x512xf32>, vector<8x512xf32> -> vector<8x512xf32>
    %cst_210 = arith.constant dense<0.000000e+00> : vector<8x512xf32>
    %737 = tpu.matmul %728, %5, %cst_210 {dimension_numbers = #tpu.dot_dimension_numbers<[1], [0], [0], [1], [0, 0, 1, 1], [], []>} : vector<8x128xf32>, vector<128x512xf32>, vector<8x512xf32> -> vector<8x512xf32>
    %738 = arith.addf %736, %737 : vector<8x512xf32>
    %739 = arith.addf %738, %8 : vector<8x512xf32>
    %740 = vector.extract_strided_slice %739 {offsets = [0, 0], sizes = [8, 128], strides = [1, 1]} : vector<8x512xf32> to vector<8x128xf32>
    %cst_211 = arith.constant 5.000000e-01 : f32
    %741 = vector.broadcast %cst_211 : f32 to vector<8x128xf32>
    %742 = arith.mulf %741, %740 : vector<8x128xf32>
    %743 = math.tanh %742 : vector<8x128xf32>
    %cst_212 = arith.constant 5.000000e-01 : f32
    %744 = vector.broadcast %cst_212 : f32 to vector<8x128xf32>
    %745 = arith.mulf %744, %743 : vector<8x128xf32>
    %cst_213 = arith.constant 5.000000e-01 : f32
    %746 = vector.broadcast %cst_213 : f32 to vector<8x128xf32>
    %747 = arith.addf %745, %746 : vector<8x128xf32>
    %748 = vector.extract_strided_slice %739 {offsets = [0, 128], sizes = [8, 128], strides = [1, 1]} : vector<8x512xf32> to vector<8x128xf32>
    %cst_214 = arith.constant 5.000000e-01 : f32
    %749 = vector.broadcast %cst_214 : f32 to vector<8x128xf32>
    %750 = arith.mulf %749, %748 : vector<8x128xf32>
    %751 = math.tanh %750 : vector<8x128xf32>
    %cst_215 = arith.constant 5.000000e-01 : f32
    %752 = vector.broadcast %cst_215 : f32 to vector<8x128xf32>
    %753 = arith.mulf %752, %751 : vector<8x128xf32>
    %cst_216 = arith.constant 5.000000e-01 : f32
    %754 = vector.broadcast %cst_216 : f32 to vector<8x128xf32>
    %755 = arith.addf %753, %754 : vector<8x128xf32>
    %756 = vector.extract_strided_slice %739 {offsets = [0, 256], sizes = [8, 128], strides = [1, 1]} : vector<8x512xf32> to vector<8x128xf32>
    %757 = math.tanh %756 : vector<8x128xf32>
    %758 = vector.extract_strided_slice %739 {offsets = [0, 384], sizes = [8, 128], strides = [1, 1]} : vector<8x512xf32> to vector<8x128xf32>
    %cst_217 = arith.constant 5.000000e-01 : f32
    %759 = vector.broadcast %cst_217 : f32 to vector<8x128xf32>
    %760 = arith.mulf %759, %758 : vector<8x128xf32>
    %761 = math.tanh %760 : vector<8x128xf32>
    %cst_218 = arith.constant 5.000000e-01 : f32
    %762 = vector.broadcast %cst_218 : f32 to vector<8x128xf32>
    %763 = arith.mulf %762, %761 : vector<8x128xf32>
    %cst_219 = arith.constant 5.000000e-01 : f32
    %764 = vector.broadcast %cst_219 : f32 to vector<8x128xf32>
    %765 = arith.addf %763, %764 : vector<8x128xf32>
    %766 = arith.mulf %755, %731 : vector<8x128xf32>
    %767 = arith.mulf %747, %757 : vector<8x128xf32>
    %768 = arith.addf %766, %767 : vector<8x128xf32>
    %769 = math.tanh %768 : vector<8x128xf32>
    %770 = arith.mulf %765, %769 : vector<8x128xf32>
    %771 = arith.addi %9, %c15_i32 : i32
    %772 = vector.broadcast %771 : i32 to vector<8x1xi32>
    %773 = arith.cmpi slt, %772, %3 : vector<8x1xi32>
    %774 = vector.shape_cast %773 : vector<8x1xi1> to vector<8x1xi1>
    %775 = vector.broadcast %774 : vector<8x1xi1> to vector<8x128xi1>
    %776 = arith.select %775, %770, %728 : vector<8x128xi1>, vector<8x128xf32>
    %777 = vector.shape_cast %773 : vector<8x1xi1> to vector<8x1xi1>
    %778 = vector.broadcast %777 : vector<8x1xi1> to vector<8x128xi1>
    %779 = arith.select %778, %768, %731 : vector<8x128xi1>, vector<8x128xf32>
    %c16_i32_220 = arith.constant 16 : i32
    %c0_221 = arith.constant 0 : index
    %c0_222 = arith.constant 0 : index
    %780 = vector.load %arg8[%c0_221, %c0_222] : memref<8x128xf32, #tpu.memory_space<vmem>>, vector<8x128xf32>
    tpu.vector_store %arg8[%c0_221, %c0_222], %776 {strides = array<i32>} : memref<8x128xf32, #tpu.memory_space<vmem>>, vector<8x128xf32>,
    %c0_223 = arith.constant 0 : index
    %c0_224 = arith.constant 0 : index
    %781 = vector.load %arg9[%c0_223, %c0_224] : memref<8x128xf32, #tpu.memory_space<vmem>>, vector<8x128xf32>
    tpu.vector_store %arg9[%c0_223, %c0_224], %779 {strides = array<i32>} : memref<8x128xf32, #tpu.memory_space<vmem>>, vector<8x128xf32>,
    %c0_i32_225 = arith.constant 0 : i32
    %782 = arith.cmpi eq, %arg1, %c0_i32_225 : i32
    %783 = arith.extui %782 : i1 to i32
    %c0_i32_226 = arith.constant 0 : i32
    %784 = arith.cmpi ne, %783, %c0_i32_226 : i32
    scf.if %784 {
      %c0_227 = arith.constant 0 : index
      %c0_228 = arith.constant 0 : index
      %785 = vector.load %arg8[%c0_227, %c0_228] : memref<8x128xf32, #tpu.memory_space<vmem>>, vector<8x128xf32>
      %c0_229 = arith.constant 0 : index
      %c0_230 = arith.constant 0 : index
      %786 = vector.load %arg7[%c0_229, %c0_230] : memref<8x128xf32, #tpu.memory_space<vmem>>, vector<8x128xf32>
      tpu.vector_store %arg7[%c0_229, %c0_230], %785 {strides = array<i32>} : memref<8x128xf32, #tpu.memory_space<vmem>>, vector<8x128xf32>,
    } else {
    }
    return
  }
  func.func @transform_0(%arg0: i32, %arg1: i32) -> (i32, i32) {
    %c0_i32 = arith.constant 0 : i32
    %c0_i32_0 = arith.constant 0 : i32
    return %arg0, %c0_i32 : i32, i32
  }
  func.func @transform_1(%arg0: i32, %arg1: i32) -> (i32, i32, i32) {
    %c0_i32 = arith.constant 0 : i32
    %c0_i32_0 = arith.constant 0 : i32
    return %arg1, %arg0, %c0_i32 : i32, i32, i32
  }
  func.func @transform_2(%arg0: i32, %arg1: i32) -> (i32, i32) {
    %c0_i32 = arith.constant 0 : i32
    %c0_i32_0 = arith.constant 0 : i32
    %c0_i32_1 = arith.constant 0 : i32
    return %c0_i32, %c0_i32_0 : i32, i32
  }
  func.func @transform_3(%arg0: i32, %arg1: i32) -> (i32, i32) {
    %c0_i32 = arith.constant 0 : i32
    %c0_i32_0 = arith.constant 0 : i32
    %c0_i32_1 = arith.constant 0 : i32
    return %c0_i32, %c0_i32_0 : i32, i32
  }
  func.func @transform_4(%arg0: i32, %arg1: i32) -> (i32, i32) {
    %c0_i32 = arith.constant 0 : i32
    %c0_i32_0 = arith.constant 0 : i32
    %c0_i32_1 = arith.constant 0 : i32
    return %c0_i32, %c0_i32_0 : i32, i32
  }
  func.func @transform_5(%arg0: i32, %arg1: i32) -> (i32, i32) {
    %c0_i32 = arith.constant 0 : i32
    %c0_i32_0 = arith.constant 0 : i32
    return %arg0, %c0_i32 : i32, i32
  }
}

</mosaic_0001>

<bundles_post_ra>
// kernel: lstm_forward.1
= control target key start
LH: loop header
LB: loop body
LE: loop exit
PB: predicated region body
PF: predicated region fallthrough
CT: control target
= control target key end

     0   :  { %10 = vsyncpa [#allocation5], 0  ;;  %s6170_s18 = smov [#allocation4]   ;;  %s10931_s0 = inlined_call_operand.vmem [shape: s32[8,1], index: 0, kind: input, shape index: {}]   ;;  %s10932_s1 = inlined_call_operand.vmem [shape: bf16[16,8,128], index: 1, kind: input, shape index: {}]   ;;  %s10933_s2 = inlined_call_operand.vmem [shape: f32[128,512], index: 2, kind: input, shape index: {}]   ;;  %s10934_s3 = inlined_call_operand.hbm [shape: f32[128,512], index: 3, kind: input, shape index: {}]   ;;  %s10935_s4 = inlined_call_operand.vmem [shape: f32[1,512], index: 4, kind: input, shape index: {}]   ;;  %s10936_s5 = inlined_call_operand.vmem [shape: f32[8,128], index: 5, kind: output, shape index: {}]  }
   0x1   :  { %s22_s19 = sshll.u32 %s6170_s18, 4  ;;  %s23_s19 = int_to_ptr.vmem [resolvable:$true] %s22_s19 }
   0x2   :  { %s6156_s20 = scalar_lea.vmem %s23_s19, 8192  ;;  %p6161_p1 = scmp.lt.s32.totalorder %s23_s19, %s23_s19 }
   0x3   :  { %p6157_p0 = scmp.ne.s32.totalorder %s23_s19, %s6156_s20  ;;  %p6162_p2 = scmp.lt.s32.totalorder %s6156_s20, %s6156_s20 }
   0x5   :  { %p6163_p3 = por %p6162_p2, %p6161_p1 }
   0x7   :  { %p6164_p4 = pnand %p6163_p3, %p6157_p0 }
   0x9   :  { %6167 = shalt.err (!%p6164_p4)
}
   0xa   :  { %s6171_s21 = smov 512   ;;  %s6172_s22 = smov 32  }
   0xb   :  { %28 = dma.hbm_to_vmem [thread:$0]  %s10934_s3, 8192, %s23_s19, [#allocation5], %s6171_s21, %s6171_s21, %s6172_s22  }
   0xc   :  { %6168 = dma.done.wait [#allocation5], 8192  }
   0xd   :  { %6169 = vsyncadd [#allocation5], 4294959104  ;;  %v10939_v0 = vmov 0.0   ;;  %v10937_v1 = vmov 0   ;;  %v6212_v2 = vld [vmem:[#allocation4 + $0x1e8] sm:$0xff]  ;;  %v6214_v3 = vld [vmem:[#allocation4 + $0x1f8] sm:$0xff] }
   0xe   :  { %260 = vmatprep.mubr.f32.mxu0 %v10939_v0  ;;  %331 = vmatprep.mubr.f32.mxu1 %v10939_v0  ;;  %v6216_v4 = vld [vmem:[#allocation4 + $0x1e0] sm:$0xff]  ;;  %v6220_v5 = vld [vmem:[#allocation4 + $0x1f0] sm:$0xff]  ;;  %v6222_v6 = vld [vmem:[#allocation4 + $0x1c8] sm:$0xff] }
   0xf   :  { %5346 = vset.pattern.permute.xlu0 %v10937_v1  ;;  %5347 = vset.pattern.permute.xlu1 %v10937_v1  ;;  %v6224_v7 = vld [vmem:[#allocation4 + $0x1d8] sm:$0xff]  ;;  %v6228_v8 = vld [vmem:[#allocation4 + $0x1c0] sm:$0xff]  ;;  %v6230_v9 = vld [vmem:[#allocation4 + $0x1d0] sm:$0xff] }
  0x10   :  { %196 = vmatprep.subr.mxu0 %v6212_v2  ;;  %267 = vmatprep.subr.mxu1 %v6214_v3  ;;  %v6232_v10 = vld [vmem:[#allocation4 + $0x1a8] sm:$0xff]  ;;  %v6236_v11 = vld [vmem:[#allocation4 + $0x1b8] sm:$0xff]  ;;  %v6238_v12 = vld [vmem:[#allocation4 + $0x1a0] sm:$0xff] }
  0x11   :  { %197 = vmatpush1.msra.mxu0 %v6216_v4  ;;  %268 = vmatpush1.msra.mxu1 %v6220_v5  ;;  %v6240_v13 = vld [vmem:[#allocation4 + $0x1b0] sm:$0xff]  ;;  %v6244_v14 = vld [vmem:[#allocation4 + $0x188] sm:$0xff]  ;;  %v6246_v15 = vld [vmem:[#allocation4 + $0x198] sm:$0xff] }
  0x12   :  { %198 = vmatprep.subr.mxu0 %v6222_v6  ;;  %269 = vmatprep.subr.mxu1 %v6224_v7  ;;  %v6250_v16 = vld [vmem:[#allocation4 + $0x180] sm:$0xff]  ;;  %v6252_v17 = vld [vmem:[#allocation4 + $0x190] sm:$0xff]  ;;  %v6256_v18 = vld [vmem:[#allocation4 + $0x168] sm:$0xff] }
  0x13   :  { %199 = vmatpush1.msra.mxu0 %v6228_v8  ;;  %270 = vmatpush1.msra.mxu1 %v6230_v9  ;;  %v6258_v19 = vld [vmem:[#allocation4 + $0x178] sm:$0xff]  ;;  %v6262_v20 = vld [vmem:[#allocation4 + $0x160] sm:$0xff]  ;;  %v6264_v21 = vld [vmem:[#allocation4 + $0x170] sm:$0xff] }
  0x14   :  { %200 = vmatprep.subr.mxu0 %v6232_v10  ;;  %271 = vmatprep.subr.mxu1 %v6236_v11  ;;  %v6268_v22 = vld [vmem:[#allocation4 + $0x148] sm:$0xff]  ;;  %v6270_v23 = vld [vmem:[#allocation4 + $0x158] sm:$0xff]  ;;  %v6274_v24 = vld [vmem:[#allocation4 + $0x140] sm:$0xff] }
  0x15   :  { %201 = vmatpush1.msra.mxu0 %v6238_v12  ;;  %272 = vmatpush1.msra.mxu1 %v6240_v13  ;;  %v6276_v25 = vld [vmem:[#allocation4 + $0x150] sm:$0xff]  ;;  %v6280_v26 = vld [vmem:[#allocation4 + $0x128] sm:$0xff]  ;;  %v6282_v27 = vld [vmem:[#allocation4 + $0x138] sm:$0xff] }
  0x16   :  { %202 = vmatprep.subr.mxu0 %v6244_v14  ;;  %273 = vmatprep.subr.mxu1 %v6246_v15  ;;  %v6286_v28 = vld [vmem:[#allocation4 + $0x120] sm:$0xff]  ;;  %v6288_v29 = vld [vmem:[#allocation4 + $0x130] sm:$0xff]  ;;  %v6292_v30 = vld [vmem:[#allocation4 + $0x108] sm:$0xff] }
  0x17   :  { %203 = vmatpush1.msra.mxu0 %v6250_v16  ;;  %274 = vmatpush1.msra.mxu1 %v6252_v17  ;;  %v6294_v31 = vld [vmem:[#allocation4 + $0x118] sm:$0xff]  ;;  %v6298_v32 = vld [vmem:[#allocation4 + $0x100] sm:$0xff]  ;;  %v6300_v33 = vld [vmem:[#allocation4 + $0x110] sm:$0xff] }
  0x18   :  { %204 = vmatprep.subr.mxu0 %v6256_v18  ;;  %275 = vmatprep.subr.mxu1 %v6258_v19  ;;  %v6304_v34 = vld [vmem:[#allocation4 + $0xe8] sm:$0xff]  ;;  %v6306_v35 = vld [vmem:[#allocation4 + $0xf8] sm:$0xff]  ;;  %v6310_v36 = vld [vmem:[#allocation4 + $0xe0] sm:$0xff] }
  0x19   :  { %205 = vmatpush1.msra.mxu0 %v6262_v20  ;;  %276 = vmatpush1.msra.mxu1 %v6264_v21  ;;  %11766 = vst [vmem:[#allocation7_spill] sm:$0xff] %v6310_v36  ;;  %v6312_v37 = vld [vmem:[#allocation4 + $0xf0] sm:$0xff]  ;;  %v6316_v38 = vld [vmem:[#allocation4 + $0xc8] sm:$0xff]  ;;  %v6318_v39 = vld [vmem:[#allocation4 + $0xd8] sm:$0xff] }
  0x1a   :  { %206 = vmatprep.subr.mxu0 %v6268_v22  ;;  %277 = vmatprep.subr.mxu1 %v6270_v23  ;;  %11767 = vst [vmem:[#allocation8_spill] sm:$0xff] %v6312_v37  ;;  %11768 = vst [vmem:[#allocation9_spill] sm:$0xff] %v6316_v38  ;;  %v6322_v40 = vld [vmem:[#allocation4 + $0xc0] sm:$0xff]  ;;  %v6324_v41 = vld [vmem:[#allocation4 + $0xd0] sm:$0xff] }
  0x1b   :  { %207 = vmatpush1.msra.mxu0 %v6274_v24  ;;  %278 = vmatpush1.msra.mxu1 %v6276_v25  ;;  %11769 = vst [vmem:[#allocation10_spill] sm:$0xff] %v6318_v39  ;;  %11770 = vst [vmem:[#allocation11_spill] sm:$0xff] %v6322_v40  ;;  %v6328_v42 = vld [vmem:[#allocation4 + $0xa8] sm:$0xff]  ;;  %v6330_v43 = vld [vmem:[#allocation4 + $0xb8] sm:$0xff] }
  0x1c   :  { %208 = vmatprep.subr.mxu0 %v6280_v26  ;;  %279 = vmatprep.subr.mxu1 %v6282_v27  ;;  %11771 = vst [vmem:[#allocation12_spill] sm:$0xff] %v6324_v41  ;;  %11772 = vst [vmem:[#allocation13_spill] sm:$0xff] %v6328_v42  ;;  %v6334_v44 = vld [vmem:[#allocation4 + $0xa0] sm:$0xff]  ;;  %v6336_v45 = vld [vmem:[#allocation4 + $0xb0] sm:$0xff] }
  0x1d   :  { %209 = vmatpush1.msra.mxu0 %v6286_v28  ;;  %280 = vmatpush1.msra.mxu1 %v6288_v29  ;;  %11773 = vst [vmem:[#allocation14_spill] sm:$0xff] %v6330_v43  ;;  %11774 = vst [vmem:[#allocation15_spill] sm:$0xff] %v6334_v44  ;;  %v6340_v46 = vld [vmem:[#allocation4 + $0x88] sm:$0xff]  ;;  %v6342_v47 = vld [vmem:[#allocation4 + $0x98] sm:$0xff] }
  0x1e   :  { %210 = vmatprep.subr.mxu0 %v6292_v30  ;;  %281 = vmatprep.subr.mxu1 %v6294_v31  ;;  %11775 = vst [vmem:[#allocation16_spill] sm:$0xff] %v6336_v45  ;;  %11776 = vst [vmem:[#allocation17_spill] sm:$0xff] %v6340_v46  ;;  %v6346_v48 = vld [vmem:[#allocation4 + $0x80] sm:$0xff]  ;;  %v6348_v49 = vld [vmem:[#allocation4 + $0x90] sm:$0xff] }
  0x1f   :  { %211 = vmatpush1.msra.mxu0 %v6298_v32  ;;  %282 = vmatpush1.msra.mxu1 %v6300_v33  ;;  %11777 = vst [vmem:[#allocation18_spill] sm:$0xff] %v6342_v47  ;;  %11778 = vst [vmem:[#allocation19_spill] sm:$0xff] %v6346_v48  ;;  %v6352_v50 = vld [vmem:[#allocation4 + $0x68] sm:$0xff]  ;;  %v6354_v51 = vld [vmem:[#allocation4 + $0x78] sm:$0xff] }
  0x20   :  { %212 = vmatprep.subr.mxu0 %v6304_v34  ;;  %283 = vmatprep.subr.mxu1 %v6306_v35  ;;  %11779 = vst [vmem:[#allocation20_spill] sm:$0xff] %v6348_v49  ;;  %11780 = vst [vmem:[#allocation21_spill] sm:$0xff] %v6352_v50  ;;  %v6358_v52 = vld [vmem:[#allocation4 + $0x60] sm:$0xff]  ;;  %v6360_v53 = vld [vmem:[#allocation4 + $0x70] sm:$0xff] }
  0x21   :  { %213 = vmatpush1.msra.mxu0 %v6310_v36  ;;  %284 = vmatpush1.msra.mxu1 %v6312_v37  ;;  %11781 = vst [vmem:[#allocation22_spill] sm:$0xff] %v6354_v51  ;;  %11782 = vst [vmem:[#allocation23_spill] sm:$0xff] %v6358_v52  ;;  %v6364_v54 = vld [vmem:[#allocation4 + $0x48] sm:$0xff]  ;;  %v6366_v55 = vld [vmem:[#allocation4 + $0x58] sm:$0xff] }
  0x22   :  { %214 = vmatprep.subr.mxu0 %v6316_v38  ;;  %285 = vmatprep.subr.mxu1 %v6318_v39  ;;  %11783 = vst [vmem:[#allocation24_spill] sm:$0xff] %v6360_v53  ;;  %11784 = vst [vmem:[#allocation25_spill] sm:$0xff] %v6364_v54  ;;  %v6370_v56 = vld [vmem:[#allocation4 + $0x40] sm:$0xff]  ;;  %v6372_v57 = vld [vmem:[#allocation4 + $0x50] sm:$0xff] }
  0x23   :  { %215 = vmatpush1.msra.mxu0 %v6322_v40  ;;  %286 = vmatpush1.msra.mxu1 %v6324_v41  ;;  %11785 = vst [vmem:[#allocation26_spill] sm:$0xff] %v6366_v55  ;;  %11786 = vst [vmem:[#allocation27_spill] sm:$0xff] %v6370_v56  ;;  %v6376_v58 = vld [vmem:[#allocation4 + $0x28] sm:$0xff]  ;;  %v6378_v59 = vld [vmem:[#allocation4 + $0x38] sm:$0xff] }
  0x24   :  { %216 = vmatprep.subr.mxu0 %v6328_v42  ;;  %287 = vmatprep.subr.mxu1 %v6330_v43  ;;  %11787 = vst [vmem:[#allocation28_spill] sm:$0xff] %v6372_v57  ;;  %11788 = vst [vmem:[#allocation29_spill] sm:$0xff] %v6376_v58  ;;  %v6382_v60 = vld [vmem:[#allocation4 + $0x20] sm:$0xff]  ;;  %v6384_v61 = vld [vmem:[#allocation4 + $0x30] sm:$0xff] }
  0x25   :  { %217 = vmatpush1.msra.mxu0 %v6334_v44  ;;  %288 = vmatpush1.msra.mxu1 %v6336_v45  ;;  %11789 = vst [vmem:[#allocation30_spill] sm:$0xff] %v6378_v59  ;;  %11790 = vst [vmem:[#allocation31_spill] sm:$0xff] %v6382_v60  ;;  %v6388_v62 = vld [vmem:[#allocation4 + $0x8] sm:$0xff]  ;;  %v6390_v63 = vld [vmem:[#allocation4 + $0x18] sm:$0xff] }
  0x26   :  { %218 = vmatprep.subr.mxu0 %v6340_v46  ;;  %289 = vmatprep.subr.mxu1 %v6342_v47  ;;  %11791 = vst [vmem:[#allocation32_spill] sm:$0xff] %v6384_v61  ;;  %11792 = vst [vmem:[#allocation33_spill] sm:$0xff] %v6388_v62  ;;  %v6394_v1 = vld [vmem:[#allocation4] sm:$0xff]  ;;  %v6396_v0 = vld [vmem:[#allocation4 + $0x10] sm:$0xff] }
  0x27   :  { %219 = vmatpush1.msra.mxu0 %v6346_v48  ;;  %290 = vmatpush1.msra.mxu1 %v6348_v49  ;;  %11793 = vst [vmem:[#allocation34_spill] sm:$0xff] %v6390_v63  ;;  %11794 = vst [vmem:[#allocation35_spill] sm:$0xff] %v6394_v1 }
  0x28   :  { %220 = vmatprep.subr.mxu0 %v6352_v50  ;;  %291 = vmatprep.subr.mxu1 %v6354_v51  ;;  %11795 = vst [vmem:[#allocation36_spill] sm:$0xff] %v6396_v0 }
  0x29   :  { %221 = vmatpush1.msra.mxu0 %v6358_v52  ;;  %292 = vmatpush1.msra.mxu1 %v6360_v53 }
  0x2a   :  { %222 = vmatprep.subr.mxu0 %v6364_v54  ;;  %293 = vmatprep.subr.mxu1 %v6366_v55  ;;  %v6768_v55 = vld [vmem:[%s10932_s1] sm:$0xff]  }
  0x2b   :  { %223 = vmatpush1.msra.mxu0 %v6370_v56  ;;  %294 = vmatpush1.msra.mxu1 %v6372_v57  ;;  %v6403_v57 = vld [vmem:[%s10933_s2 + $0x1e8] sm:$0xff]  ;;  %v6751_v56 = vld [vmem:[%s10931_s0] sm:$0xff] }
  0x2c   :  { %224 = vmatprep.subr.mxu0 %v6376_v58  ;;  %295 = vmatprep.subr.mxu1 %v6378_v59  ;;  %11796 = vst [vmem:[#allocation37_spill] sm:$0xff] %v6403_v57  ;;  %v6410_v59 = vld [vmem:[%s10933_s2 + $0x1f8] sm:$0xff]  ;;  %11855 = vst [vmem:[#allocation95_spill] sm:$0xff] %v6751_v56  ;;  %vm5308_vm0 = vcmp.gt.s32.totalorder %v6751_v56, 0  ;;  %vm5310_vm1 = vcmp.gt.s32.totalorder %v6751_v56, 1  ;;  %vm5316_vm2 = vcmp.gt.s32.totalorder %v6751_v56, 4 }
  0x2d   :  { %225 = vmatpush1.msra.mxu0 %v6382_v60  ;;  %296 = vmatpush1.msra.mxu1 %v6384_v61  ;;  %11797 = vst [vmem:[#allocation38_spill] sm:$0xff] %v6410_v59  ;;  %v6417_v61 = vld [vmem:[%s10933_s2 + $0x1e0] sm:$0xff]  ;;  %v6458_v58 = vld [vmem:[%s10933_s2 + $0x1b8] sm:$0xff]  ;;  %vm5320_vm3 = vcmp.gt.s32.totalorder %v6751_v56, 6  ;;  %vm5324_vm4 = vcmp.gt.s32.totalorder %v6751_v56, 8  ;;  %vm5328_vm5 = vcmp.gt.s32.totalorder %v6751_v56, 10 }
  0x2e   :  { %226 = vmatprep.subr.mxu0 %v6388_v62  ;;  %297 = vmatprep.subr.mxu1 %v6390_v63  ;;  %11798 = vst [vmem:[#allocation39_spill] sm:$0xff] %v6417_v61  ;;  %v6422_v62 = vld [vmem:[%s10933_s2 + $0x1f0] sm:$0xff]  ;;  %v11800_v63 = vmov 0.0   ;;  %v6441_v60 = vld [vmem:[%s10933_s2 + $0x1c0] sm:$0xff]  ;;  %11806 = vst [vmem:[#allocation46_spill] sm:$0xff] %v6458_v58  ;;  %vm5332_vm6 = vcmp.gt.s32.totalorder %v6751_v56, 12 }
  0x2f   :  { %227 = vmatpush1.msra.mxu0 %v6394_v1  ;;  %298 = vmatpush1.msra.mxu1 %v6396_v0  ;;  %11799 = vst [vmem:[#allocation40_spill] sm:$0xff] %v6422_v62  ;;  %v6429_v1 = vld [vmem:[%s10933_s2 + $0x1c8] sm:$0xff]  ;;  %v6434_v0 = vld [vmem:[%s10933_s2 + $0x1d8] sm:$0xff]  ;;  %11803 = vst [vmem:[#allocation43_spill] sm:$0xff] %v6441_v60  ;;  %vm5336_vm7 = vcmp.gt.s32.totalorder %v6751_v56, 14 }
  0x30   :  { %261 = vmatmul.mubr.f32.vlgmr.msra.gmra.mxu0 %v11800_v63  ;;  %338 = vmatprep.subr.mxu0 %v6403_v57  ;;  %11801 = vst [vmem:[#allocation41_spill] sm:$0xff] %v6429_v1  ;;  %11802 = vst [vmem:[#allocation42_spill] sm:$0xff] %v6434_v0  ;;  %v6446_v57 = vld [vmem:[%s10933_s2 + $0x1d0] sm:$0xff]  ;;  %v11861_v56 = vld [vmem:[#allocation28_spill] sm:$0xff] }
  0x31   :  { %409 = vmatprep.subr.mxu1 %v6410_v59  ;;  %332 = vmatmul.mubr.f32.vlgmr.msra.gmra.mxu1 %v11800_v63  ;;  %11804 = vst [vmem:[#allocation44_spill] sm:$0xff] %v6446_v57  ;;  %v6453_v59 = vld [vmem:[%s10933_s2 + $0x1a8] sm:$0xff] }
  0x32   :  { %339 = vmatpush1.msra.mxu0 %v6417_v61  ;;  %410 = vmatpush1.msra.mxu1 %v6422_v62  ;;  %11805 = vst [vmem:[#allocation45_spill] sm:$0xff] %v6453_v59  ;;  %v6465_v61 = vld [vmem:[%s10933_s2 + $0x1a0] sm:$0xff]  ;;  %v6470_v62 = vld [vmem:[%s10933_s2 + $0x1b0] sm:$0xff] }
  0x33   :  { %340 = vmatprep.subr.mxu0 %v6429_v1  ;;  %411 = vmatprep.subr.mxu1 %v6434_v0  ;;  %11807 = vst [vmem:[#allocation47_spill] sm:$0xff] %v6465_v61  ;;  %11808 = vst [vmem:[#allocation48_spill] sm:$0xff] %v6470_v62  ;;  %v6477_v1 = vld [vmem:[%s10933_s2 + $0x188] sm:$0xff]  ;;  %v6482_v0 = vld [vmem:[%s10933_s2 + $0x198] sm:$0xff] }
  0x34   :  { %341 = vmatpush1.msra.mxu0 %v6441_v60  ;;  %412 = vmatpush1.msra.mxu1 %v6446_v57  ;;  %11809 = vst [vmem:[#allocation49_spill] sm:$0xff] %v6477_v1  ;;  %11810 = vst [vmem:[#allocation50_spill] sm:$0xff] %v6482_v0  ;;  %v6489_v60 = vld [vmem:[%s10933_s2 + $0x180] sm:$0xff]  ;;  %v6494_v57 = vld [vmem:[%s10933_s2 + $0x190] sm:$0xff] }
  0x35   :  { %342 = vmatprep.subr.mxu0 %v6453_v59  ;;  %413 = vmatprep.subr.mxu1 %v6458_v58  ;;  %11811 = vst [vmem:[#allocation51_spill] sm:$0xff] %v6489_v60  ;;  %11812 = vst [vmem:[#allocation52_spill] sm:$0xff] %v6494_v57  ;;  %v6501_v59 = vld [vmem:[%s10933_s2 + $0x168] sm:$0xff]  ;;  %v6506_v58 = vld [vmem:[%s10933_s2 + $0x178] sm:$0xff] }
  0x36   :  { %343 = vmatpush1.msra.mxu0 %v6465_v61  ;;  %414 = vmatpush1.msra.mxu1 %v6470_v62  ;;  %11813 = vst [vmem:[#allocation53_spill] sm:$0xff] %v6501_v59  ;;  %11814 = vst [vmem:[#allocation54_spill] sm:$0xff] %v6506_v58  ;;  %v6513_v61 = vld [vmem:[%s10933_s2 + $0x160] sm:$0xff]  ;;  %v6518_v62 = vld [vmem:[%s10933_s2 + $0x170] sm:$0xff] }
  0x37   :  { %344 = vmatprep.subr.mxu0 %v6477_v1  ;;  %415 = vmatprep.subr.mxu1 %v6482_v0  ;;  %11815 = vst [vmem:[#allocation55_spill] sm:$0xff] %v6513_v61  ;;  %11816 = vst [vmem:[#allocation56_spill] sm:$0xff] %v6518_v62  ;;  %v6525_v1 = vld [vmem:[%s10933_s2 + $0x148] sm:$0xff]  ;;  %v6530_v0 = vld [vmem:[%s10933_s2 + $0x158] sm:$0xff] }
  0x38   :  { %345 = vmatpush1.msra.mxu0 %v6489_v60  ;;  %416 = vmatpush1.msra.mxu1 %v6494_v57  ;;  %11817 = vst [vmem:[#allocation57_spill] sm:$0xff] %v6525_v1  ;;  %11818 = vst [vmem:[#allocation58_spill] sm:$0xff] %v6530_v0  ;;  %v6537_v60 = vld [vmem:[%s10933_s2 + $0x140] sm:$0xff]  ;;  %v6542_v57 = vld [vmem:[%s10933_s2 + $0x150] sm:$0xff] }
  0x39   :  { %346 = vmatprep.subr.mxu0 %v6501_v59  ;;  %417 = vmatprep.subr.mxu1 %v6506_v58  ;;  %11819 = vst [vmem:[#allocation59_spill] sm:$0xff] %v6537_v60  ;;  %11820 = vst [vmem:[#allocation60_spill] sm:$0xff] %v6542_v57  ;;  %v6549_v59 = vld [vmem:[%s10933_s2 + $0x128] sm:$0xff]  ;;  %v6554_v58 = vld [vmem:[%s10933_s2 + $0x138] sm:$0xff] }
  0x3a   :  { %347 = vmatpush1.msra.mxu0 %v6513_v61  ;;  %418 = vmatpush1.msra.mxu1 %v6518_v62  ;;  %11821 = vst [vmem:[#allocation61_spill] sm:$0xff] %v6549_v59  ;;  %11822 = vst [vmem:[#allocation62_spill] sm:$0xff] %v6554_v58  ;;  %v6561_v61 = vld [vmem:[%s10933_s2 + $0x120] sm:$0xff]  ;;  %v6566_v62 = vld [vmem:[%s10933_s2 + $0x130] sm:$0xff] }
  0x3b   :  { %348 = vmatprep.subr.mxu0 %v6525_v1  ;;  %419 = vmatprep.subr.mxu1 %v6530_v0  ;;  %11823 = vst [vmem:[#allocation63_spill] sm:$0xff] %v6561_v61  ;;  %11824 = vst [vmem:[#allocation64_spill] sm:$0xff] %v6566_v62  ;;  %v6573_v1 = vld [vmem:[%s10933_s2 + $0x108] sm:$0xff]  ;;  %v6578_v0 = vld [vmem:[%s10933_s2 + $0x118] sm:$0xff] }
  0x3c   :  { %349 = vmatpush1.msra.mxu0 %v6537_v60  ;;  %420 = vmatpush1.msra.mxu1 %v6542_v57  ;;  %11825 = vst [vmem:[#allocation65_spill] sm:$0xff] %v6573_v1  ;;  %11826 = vst [vmem:[#allocation66_spill] sm:$0xff] %v6578_v0  ;;  %v6585_v60 = vld [vmem:[%s10933_s2 + $0x100] sm:$0xff]  ;;  %v6590_v57 = vld [vmem:[%s10933_s2 + $0x110] sm:$0xff] }
  0x3d   :  { %350 = vmatprep.subr.mxu0 %v6549_v59  ;;  %421 = vmatprep.subr.mxu1 %v6554_v58  ;;  %11827 = vst [vmem:[#allocation67_spill] sm:$0xff] %v6585_v60  ;;  %11828 = vst [vmem:[#allocation68_spill] sm:$0xff] %v6590_v57  ;;  %v6597_v59 = vld [vmem:[%s10933_s2 + $0xe8] sm:$0xff]  ;;  %v6602_v58 = vld [vmem:[%s10933_s2 + $0xf8] sm:$0xff] }
  0x3e   :  { %351 = vmatpush1.msra.mxu0 %v6561_v61  ;;  %422 = vmatpush1.msra.mxu1 %v6566_v62  ;;  %11829 = vst [vmem:[#allocation69_spill] sm:$0xff] %v6597_v59  ;;  %11830 = vst [vmem:[#allocation70_spill] sm:$0xff] %v6602_v58  ;;  %v6609_v61 = vld [vmem:[%s10933_s2 + $0xe0] sm:$0xff]  ;;  %v6614_v62 = vld [vmem:[%s10933_s2 + $0xf0] sm:$0xff] }
  0x3f   :  { %352 = vmatprep.subr.mxu0 %v6573_v1  ;;  %423 = vmatprep.subr.mxu1 %v6578_v0  ;;  %11831 = vst [vmem:[#allocation71_spill] sm:$0xff] %v6609_v61  ;;  %11832 = vst [vmem:[#allocation72_spill] sm:$0xff] %v6614_v62  ;;  %v6621_v1 = vld [vmem:[%s10933_s2 + $0xc8] sm:$0xff]  ;;  %v6626_v0 = vld [vmem:[%s10933_s2 + $0xd8] sm:$0xff] }
  0x40   :  { %353 = vmatpush1.msra.mxu0 %v6585_v60  ;;  %424 = vmatpush1.msra.mxu1 %v6590_v57  ;;  %11833 = vst [vmem:[#allocation73_spill] sm:$0xff] %v6621_v1  ;;  %11834 = vst [vmem:[#allocation74_spill] sm:$0xff] %v6626_v0  ;;  %v6633_v60 = vld [vmem:[%s10933_s2 + $0xc0] sm:$0xff]  ;;  %v6638_v57 = vld [vmem:[%s10933_s2 + $0xd0] sm:$0xff] }
  0x41   :  { %354 = vmatprep.subr.mxu0 %v6597_v59  ;;  %425 = vmatprep.subr.mxu1 %v6602_v58  ;;  %11835 = vst [vmem:[#allocation75_spill] sm:$0xff] %v6633_v60  ;;  %11836 = vst [vmem:[#allocation76_spill] sm:$0xff] %v6638_v57  ;;  %v6645_v59 = vld [vmem:[%s10933_s2 + $0xa8] sm:$0xff]  ;;  %v6650_v58 = vld [vmem:[%s10933_s2 + $0xb8] sm:$0xff] }
  0x42   :  { %355 = vmatpush1.msra.mxu0 %v6609_v61  ;;  %426 = vmatpush1.msra.mxu1 %v6614_v62  ;;  %11837 = vst [vmem:[#allocation77_spill] sm:$0xff] %v6645_v59  ;;  %11838 = vst [vmem:[#allocation78_spill] sm:$0xff] %v6650_v58  ;;  %v6657_v61 = vld [vmem:[%s10933_s2 + $0xa0] sm:$0xff]  ;;  %v6662_v62 = vld [vmem:[%s10933_s2 + $0xb0] sm:$0xff] }
  0x43   :  { %356 = vmatprep.subr.mxu0 %v6621_v1  ;;  %427 = vmatprep.subr.mxu1 %v6626_v0  ;;  %11839 = vst [vmem:[#allocation79_spill] sm:$0xff] %v6657_v61  ;;  %11840 = vst [vmem:[#allocation80_spill] sm:$0xff] %v6662_v62  ;;  %v6669_v1 = vld [vmem:[%s10933_s2 + $0x88] sm:$0xff]  ;;  %v6674_v0 = vld [vmem:[%s10933_s2 + $0x98] sm:$0xff] }
  0x44   :  { %357 = vmatpush1.msra.mxu0 %v6633_v60  ;;  %428 = vmatpush1.msra.mxu1 %v6638_v57  ;;  %11841 = vst [vmem:[#allocation81_spill] sm:$0xff] %v6669_v1  ;;  %11842 = vst [vmem:[#allocation82_spill] sm:$0xff] %v6674_v0  ;;  %v6681_v60 = vld [vmem:[%s10933_s2 + $0x80] sm:$0xff]  ;;  %v6686_v57 = vld [vmem:[%s10933_s2 + $0x90] sm:$0xff] }
  0x45   :  { %358 = vmatprep.subr.mxu0 %v6645_v59  ;;  %429 = vmatprep.subr.mxu1 %v6650_v58  ;;  %11843 = vst [vmem:[#allocation83_spill] sm:$0xff] %v6681_v60  ;;  %11844 = vst [vmem:[#allocation84_spill] sm:$0xff] %v6686_v57  ;;  %v6693_v59 = vld [vmem:[%s10933_s2 + $0x68] sm:$0xff]  ;;  %v6698_v58 = vld [vmem:[%s10933_s2 + $0x78] sm:$0xff] }
  0x46   :  { %359 = vmatpush1.msra.mxu0 %v6657_v61  ;;  %430 = vmatpush1.msra.mxu1 %v6662_v62  ;;  %11845 = vst [vmem:[#allocation85_spill] sm:$0xff] %v6693_v59  ;;  %11846 = vst [vmem:[#allocation86_spill] sm:$0xff] %v6698_v58  ;;  %v6705_v61 = vld [vmem:[%s10933_s2 + $0x60] sm:$0xff]  ;;  %v6710_v62 = vld [vmem:[%s10933_s2 + $0x70] sm:$0xff] }
  0x47   :  { %360 = vmatprep.subr.mxu0 %v6669_v1  ;;  %431 = vmatprep.subr.mxu1 %v6674_v0  ;;  %11847 = vst [vmem:[#allocation87_spill] sm:$0xff] %v6705_v61  ;;  %11848 = vst [vmem:[#allocation88_spill] sm:$0xff] %v6710_v62  ;;  %v6717_v1 = vld [vmem:[%s10933_s2 + $0x48] sm:$0xff]  ;;  %v6722_v0 = vld [vmem:[%s10933_s2 + $0x58] sm:$0xff] }
  0x48   :  { %361 = vmatpush1.msra.mxu0 %v6681_v60  ;;  %432 = vmatpush1.msra.mxu1 %v6686_v57  ;;  %11849 = vst [vmem:[#allocation89_spill] sm:$0xff] %v6717_v1  ;;  %11850 = vst [vmem:[#allocation90_spill] sm:$0xff] %v6722_v0  ;;  %v6729_v60 = vld [vmem:[%s10933_s2 + $0x40] sm:$0xff]  ;;  %v6734_v57 = vld [vmem:[%s10933_s2 + $0x50] sm:$0xff] }
  0x49   :  { %362 = vmatprep.subr.mxu0 %v6693_v59  ;;  %433 = vmatprep.subr.mxu1 %v6698_v58  ;;  %11851 = vst [vmem:[#allocation91_spill] sm:$0xff] %v6729_v60  ;;  %11852 = vst [vmem:[#allocation92_spill] sm:$0xff] %v6734_v57  ;;  %v6741_v59 = vld [vmem:[%s10933_s2 + $0x28] sm:$0xff]  ;;  %v6746_v58 = vld [vmem:[%s10933_s2 + $0x38] sm:$0xff] }
  0x4a   :  { %363 = vmatpush1.msra.mxu0 %v6705_v61  ;;  %434 = vmatpush1.msra.mxu1 %v6710_v62  ;;  %11853 = vst [vmem:[#allocation93_spill] sm:$0xff] %v6741_v59  ;;  %11854 = vst [vmem:[#allocation94_spill] sm:$0xff] %v6746_v58  ;;  %v6758_v62 = vld [vmem:[%s10933_s2 + $0x20] sm:$0xff]  ;;  %v6763_v61 = vld [vmem:[%s10933_s2 + $0x30] sm:$0xff] }
  0x4b   :  { %364 = vmatprep.subr.mxu0 %v6717_v1  ;;  %435 = vmatprep.subr.mxu1 %v6722_v0  ;;  %v6775_v0 = vld [vmem:[%s10933_s2 + $0x8] sm:$0xff]  ;;  %v6780_v1 = vld [vmem:[%s10933_s2 + $0x18] sm:$0xff] }
  0x4c   :  { %365 = vmatpush1.msra.mxu0 %v6729_v60  ;;  %436 = vmatpush1.msra.mxu1 %v6734_v57  ;;  %11856 = vst [vmem:[#allocation96_spill] sm:$0xff] %v6775_v0  ;;  %v6787_v60 = vld [vmem:[%s10933_s2] sm:$0xff]  ;;  %v6795_v57 = vld [vmem:[%s10933_s2 + $0x10] sm:$0xff] }
  0x4d   :  { %366 = vmatprep.subr.mxu0 %v6741_v59  ;;  %437 = vmatprep.subr.mxu1 %v6746_v58  ;;  %v195_v59 = vunpack.c.l.bf16 %v6768_v55  ;;  %v11857_v58 = vmov 0  }
  0x4e   :  { %367 = vmatpush1.msra.mxu0 %v6758_v62  ;;  %438 = vmatpush1.msra.mxu1 %v6763_v61  ;;  %v504_v54 = vsel %vm5308_vm0, 1, %v11857_v58 }
  0x4f   :  { %368 = vmatprep.subr.mxu0 %v6775_v0  ;;  %439 = vmatprep.subr.mxu1 %v6780_v1  ;;  %v823_v0 = vsel %vm5310_vm1, 1, %v11857_v58 }
  0x50   :  { %369 = vmatpush1.msra.mxu0 %v6787_v60  ;;  %402 = vmatprep.mubr.f32.mxu0 %v11800_v63 }
  0x51   :  { %440 = vmatpush1.msra.mxu1 %v6795_v57  ;;  %473 = vmatprep.mubr.f32.mxu1 %v11800_v63 }
  0x52   :  { %403 = vmatmul.mubr.f32.vlgmr.msra.gmra.mxu0 %v195_v59  ;;  %474 = vmatmul.mubr.f32.vlgmr.msra.gmra.mxu1 %v195_v59  ;;  %v3056_v59 = vsel %vm5324_vm4, 1, %v11857_v58 }
  0x53   :  { %506 = vperm.xlu0 %5346, %v504_v54   ;;  %514 = vmatprep.subr.mxu0 %v6212_v2  ;;  %v1780_v54 = vsel %vm5316_vm2, 1, %v11857_v58 }
  0x54   :  { %585 = vmatprep.subr.mxu1 %v6214_v3  ;;  %515 = vmatpush1.msra.mxu0 %v6216_v4 }
  0x55   :  { %586 = vmatpush1.msra.mxu1 %v6220_v5  ;;  %516 = vmatprep.subr.mxu0 %v6222_v6 }
  0x56   :  { %587 = vmatprep.subr.mxu1 %v6224_v7  ;;  %517 = vmatpush1.msra.mxu0 %v6228_v8 }
  0x57   :  { %825 = vperm.xlu0 %5346, %v823_v0   ;;  %588 = vmatpush1.msra.mxu1 %v6230_v9  ;;  %v2418_v0 = vsel %vm5320_vm3, 1, %v11857_v58 }
  0x58   :  { %518 = vmatprep.subr.mxu0 %v6232_v10  ;;  %589 = vmatprep.subr.mxu1 %v6236_v11 }
  0x59   :  { %519 = vmatpush1.msra.mxu0 %v6238_v12  ;;  %590 = vmatpush1.msra.mxu1 %v6240_v13 }
  0x5a   :  { %520 = vmatprep.subr.mxu0 %v6244_v14  ;;  %591 = vmatprep.subr.mxu1 %v6246_v15 }
  0x5b   :  { %1782 = vperm.xlu0 %5346, %v1780_v54   ;;  %521 = vmatpush1.msra.mxu0 %v6250_v16  ;;  %v3694_v54 = vsel %vm5328_vm5, 1, %v11857_v58 }
  0x5c   :  { %592 = vmatpush1.msra.mxu1 %v6252_v17  ;;  %522 = vmatprep.subr.mxu0 %v6256_v18 }
  0x5d   :  { %593 = vmatprep.subr.mxu1 %v6258_v19  ;;  %523 = vmatpush1.msra.mxu0 %v6262_v20 }
  0x5e   :  { %594 = vmatpush1.msra.mxu1 %v6264_v21  ;;  %524 = vmatprep.subr.mxu0 %v6268_v22 }
  0x5f   :  { %2420 = vperm.xlu0 %5346, %v2418_v0   ;;  %595 = vmatprep.subr.mxu1 %v6270_v23  ;;  %v4332_v0 = vsel %vm5332_vm6, 1, %v11857_v58 }
  0x60   :  { %525 = vmatpush1.msra.mxu0 %v6274_v24  ;;  %596 = vmatpush1.msra.mxu1 %v6276_v25 }
  0x61   :  { %526 = vmatprep.subr.mxu0 %v6280_v26  ;;  %597 = vmatprep.subr.mxu1 %v6282_v27 }
  0x62   :  { %527 = vmatpush1.msra.mxu0 %v6286_v28  ;;  %598 = vmatpush1.msra.mxu1 %v6288_v29 }
  0x63   :  { %3058 = vperm.xlu0 %5346, %v3056_v59   ;;  %528 = vmatprep.subr.mxu0 %v6292_v30  ;;  %v4970_v59 = vsel %vm5336_vm7, 1, %v11857_v58  ;;  %v11860_v58 = vld [vmem:[#allocation27_spill] sm:$0xff] }
  0x64   :  { %599 = vmatprep.subr.mxu1 %v6294_v31  ;;  %529 = vmatpush1.msra.mxu0 %v6298_v32 }
  0x65   :  { %600 = vmatpush1.msra.mxu1 %v6300_v33  ;;  %530 = vmatprep.subr.mxu0 %v6304_v34 }
  0x66   :  { %601 = vmatprep.subr.mxu1 %v6306_v35  ;;  %531 = vmatpush1.msra.mxu0 %v6310_v36 }
  0x67   :  { %3696 = vperm.xlu0 %5346, %v3694_v54   ;;  %602 = vmatpush1.msra.mxu1 %v6312_v37  ;;  %v11858_v54 = vld [vmem:[#allocation25_spill] sm:$0xff] }
  0x68   :  { %532 = vmatprep.subr.mxu0 %v6316_v38  ;;  %603 = vmatprep.subr.mxu1 %v6318_v39 }
  0x69   :  { %533 = vmatpush1.msra.mxu0 %v6322_v40  ;;  %604 = vmatpush1.msra.mxu1 %v6324_v41 }
  0x6a   :  { %534 = vmatprep.subr.mxu0 %v6328_v42  ;;  %605 = vmatprep.subr.mxu1 %v6330_v43 }
  0x6b   :  { %4334 = vperm.xlu0 %5346, %v4332_v0   ;;  %535 = vmatpush1.msra.mxu0 %v6334_v44  ;;  %v11859_v0 = vld [vmem:[#allocation26_spill] sm:$0xff] }
  0x6c   :  { %606 = vmatpush1.msra.mxu1 %v6336_v45  ;;  %536 = vmatprep.subr.mxu0 %v6340_v46 }
  0x6d   :  { %607 = vmatprep.subr.mxu1 %v6342_v47  ;;  %537 = vmatpush1.msra.mxu0 %v6346_v48  ;;  %v11862_v48 = vld [vmem:[#allocation29_spill] sm:$0xff] }
  0x6e   :  { %608 = vmatpush1.msra.mxu1 %v6348_v49  ;;  %538 = vmatprep.subr.mxu0 %v6352_v50  ;;  %v11863_v49 = vld [vmem:[#allocation30_spill] sm:$0xff]  ;;  %v11864_v50 = vld [vmem:[#allocation31_spill] sm:$0xff] }
  0x6f   :  { %4972 = vperm.xlu0 %5346, %v4970_v59   ;;  %609 = vmatprep.subr.mxu1 %v6354_v51  ;;  %v11865_v59 = vld [vmem:[#allocation32_spill] sm:$0xff]  ;;  %v11866_v51 = vld [vmem:[#allocation33_spill] sm:$0xff] }
  0x70   :  { %539 = vmatpush1.msra.mxu0 %v6358_v52  ;;  %610 = vmatpush1.msra.mxu1 %v6360_v53  ;;  %v11867_v52 = vld [vmem:[#allocation34_spill] sm:$0xff]  ;;  %v11868_v53 = vld [vmem:[#allocation35_spill] sm:$0xff] }
  0x71   :  { %540 = vmatprep.subr.mxu0 %v11858_v54  ;;  %611 = vmatprep.subr.mxu1 %v11859_v0  ;;  %v11869_v54 = vld [vmem:[#allocation36_spill] sm:$0xff] }
  0x72   :  { %541 = vmatpush1.msra.mxu0 %v11860_v58  ;;  %612 = vmatpush1.msra.mxu1 %v11861_v56  ;;  %v11870_v56 = vld [vmem:[#allocation37_spill] sm:$0xff] }
  0x73   :  { %542 = vmatprep.subr.mxu0 %v11862_v48  ;;  %613 = vmatprep.subr.mxu1 %v11863_v49  ;;  %v11871_v48 = vld [vmem:[#allocation38_spill] sm:$0xff]  ;;  %v171_v49 = vlaneseq }
  0x74   :  { %543 = vmatpush1.msra.mxu0 %v11864_v50  ;;  %614 = vmatpush1.msra.mxu1 %v11865_v59 }
  0x75   :  { %544 = vmatprep.subr.mxu0 %v11866_v51  ;;  %615 = vmatprep.subr.mxu1 %v11867_v52  ;;  %v172_v50 = vshrl.u32 %v171_v49, 7  ;;  %v169_v52 = vld [vmem:[%s10935_s4] sm:$0xf] }
  0x76   :  { %545 = vmatpush1.msra.mxu0 %v11868_v53  ;;  %616 = vmatpush1.msra.mxu1 %v11869_v54 }
  0x77   :  { %578 = vmatprep.mubr.f32.mxu0 %v11800_v63  ;;  %649 = vmatprep.mubr.f32.mxu1 %v11800_v63  ;;  %v173_v59 = vsub.s32 0, %v172_v50  ;;  %v177_v53 = vsub.s32 1, %v172_v50  ;;  %v181_v44 = vsub.s32 2, %v172_v50  ;;  %v185_v37 = vsub.s32 3, %v172_v50 }
  0x78   :  { %656 = vmatprep.subr.mxu0 %v11870_v56  ;;  %727 = vmatprep.subr.mxu1 %v11871_v48 }
  0x79   :  { %v6890_v54 = vrot.slane %v169_v52, %v173_v59  ;;  %v6892_v56 = vrot.slane %v169_v52, %v177_v53  ;;  %v6895_v40 = vrot.slane %v169_v52, %v181_v44  ;;  %v6899_v53 = vrot.slane %v169_v52, %v185_v37 }
  0x7b   :  { %11872 = vst [vmem:[#allocation97_spill] sm:$0xff] %v6892_v56 }
  0xf0   :  { %v262_v58 = vpop.f32.mrf.mxu0 }
  0xf1   :  { %v333_v0 = vpop.f32.mrf.mxu1 }
  0xf2   :  { %v264_v51 = vpop.f32.mrf.mxu0 }
  0xf3   :  { %v335_v47 = vpop.f32.mrf.mxu1 }
 0x112   :  { %v404_v46 = vpop.f32.mrf.mxu0  ;;  %v475_v48 = vpop.f32.mrf.mxu1 }
 0x113   :  { %v405_v45 = vadd.f32 %v404_v46, %v262_v58  ;;  %v476_v39 = vadd.f32 %v475_v48, %v333_v0 }
 0x114   :  { %v406_v43 = vpop.f32.mrf.mxu0  ;;  %v477_v36 = vpop.f32.mrf.mxu1 }
 0x115   :  { %v480_v49 = vadd.f32 %v405_v45, %v6890_v54  ;;  %v407_v42 = vadd.f32 %v406_v43, %v264_v51  ;;  %v482_v46 = vadd.f32 %v476_v39, %v6895_v40  ;;  %v478_v58 = vadd.f32 %v477_v36, %v335_v47 }
 0x117   :  { %v484_v41 = vmul.f32 0.5, %v480_v49  ;;  %v481_v38 = vadd.f32 %v407_v42, %v6892_v56  ;;  %v483_v45 = vadd.f32 %v478_v58, %v6899_v53  ;;  %v507_v56 = vpop.permute.xlu0 %506 }
 0x118   :  { %vm508_vm8 = vcmp.eq.s32.totalorder %v507_v56, 1  ;;  %v11876_v56 = vld [vmem:[#allocation42_spill] sm:$0xff] }
 0x119   :  { %5348 = vtanh.f32 %v484_v41  ;;  %v488_v59 = vmul.f32 0.5, %v481_v38  ;;  %v493_v43 = vmul.f32 0.5, %v483_v45  ;;  %v11873_v45 = vld [vmem:[#allocation39_spill] sm:$0xff] }
 0x11b   :  { %5350 = vtanh.f32 %v488_v59 }
 0x11c   :  { %5352 = vtanh.f32 %v482_v46 }
 0x11d   :  { %5354 = vtanh.f32 %v493_v43  ;;  %v11874_v43 = vld [vmem:[#allocation40_spill] sm:$0xff] }
 0x126   :  { %v5349_v51 = vpop.eup %5348 }
 0x127   :  { %v486_v44 = vmul.f32 0.5, %v5349_v51  ;;  %v11875_v51 = vld [vmem:[#allocation41_spill] sm:$0xff] }
 0x128   :  { %v5351_v49 = vpop.eup %5350 }
 0x129   :  { %v487_v48 = vadd.f32 0.5, %v486_v44  ;;  %v490_v0 = vmul.f32 0.5, %v5351_v49  ;;  %v5353_v38 = vpop.eup %5352  ;;  %v11877_v44 = vld [vmem:[#allocation43_spill] sm:$0xff]  ;;  %v11878_v49 = vld [vmem:[#allocation44_spill] sm:$0xff] }
 0x12a   :  { %v5355_v36 = vpop.eup %5354 }
 0x12b   :  { %v491_v41 = vadd.f32 0.5, %v490_v0  ;;  %v498_v50 = vmul.f32 %v5353_v38, %v487_v48  ;;  %v495_v47 = vmul.f32 0.5, %v5355_v36  ;;  %v11879_v48 = vld [vmem:[#allocation45_spill] sm:$0xff]  ;;  %v11880_v0 = vld [vmem:[#allocation46_spill] sm:$0xff]  ;;  %v11882_v38 = vld [vmem:[#allocation48_spill] sm:$0xff] }
 0x12c   :  { %v11886_v36 = vld [vmem:[#allocation52_spill] sm:$0xff] }
 0x12d   :  { %v497_v42 = vmul.f32 0.0, %v491_v41  ;;  %v496_v52 = vadd.f32 0.5, %v495_v47  ;;  %v11881_v41 = vld [vmem:[#allocation47_spill] sm:$0xff]  ;;  %v11887_v47 = vld [vmem:[#allocation53_spill] sm:$0xff] }
 0x12f   :  { %v499_v39 = vadd.f32 %v498_v50, %v497_v42  ;;  %v11883_v42 = vld [vmem:[#allocation49_spill] sm:$0xff]  ;;  %v11884_v50 = vld [vmem:[#allocation50_spill] sm:$0xff] }
 0x131   :  { %5356 = vtanh.f32 %v499_v39  ;;  %v6902_v37 = vsel %vm508_vm8, %v499_v39, 0.0  ;;  %v11885_v39 = vld [vmem:[#allocation51_spill] sm:$0xff] }
 0x13e   :  { %v5357_v59 = vpop.eup %5356 }
 0x13f   :  { %v501_v46 = vmul.f32 %v5357_v59, %v496_v52  ;;  %v11888_v52 = vld [vmem:[#allocation54_spill] sm:$0xff]  ;;  %v11889_v59 = vld [vmem:[#allocation55_spill] sm:$0xff] }
 0x141   :  { %v6904_v58 = vsel %vm508_vm8, %v501_v46, 0.0  ;;  %5339 = vmatmul.mubr.msk.f32.vlgmr.msra.gmra.mxu0 %vm508_vm8, %v501_v46  ;;  %5340 = vmatmul.mubr.msk.f32.vlgmr.msra.gmra.mxu1 %vm508_vm8, %v501_v46  ;;  %v11890_v46 = vld [vmem:[#allocation56_spill] sm:$0xff] }
 0x142   :  { %657 = vmatpush1.msra.mxu0 %v11873_v45  ;;  %728 = vmatpush1.msra.mxu1 %v11874_v43 }
 0x143   :  { %658 = vmatprep.subr.mxu0 %v11875_v51  ;;  %729 = vmatprep.subr.mxu1 %v11876_v56 }
 0x144   :  { %659 = vmatpush1.msra.mxu0 %v11877_v44  ;;  %730 = vmatpush1.msra.mxu1 %v11878_v49 }
 0x145   :  { %660 = vmatprep.subr.mxu0 %v11879_v48  ;;  %731 = vmatprep.subr.mxu1 %v11880_v0  ;;  %v11891_v0 = vld [vmem:[#allocation57_spill] sm:$0xff] }
 0x146   :  { %661 = vmatpush1.msra.mxu0 %v11881_v41  ;;  %732 = vmatpush1.msra.mxu1 %v11882_v38  ;;  %v11892_v41 = vld [vmem:[#allocation58_spill] sm:$0xff]  ;;  %v11893_v38 = vld [vmem:[#allocation59_spill] sm:$0xff] }
 0x147   :  { %662 = vmatprep.subr.mxu0 %v11883_v42  ;;  %733 = vmatprep.subr.mxu1 %v11884_v50  ;;  %v11894_v42 = vld [vmem:[#allocation60_spill] sm:$0xff]  ;;  %v11895_v50 = vld [vmem:[#allocation61_spill] sm:$0xff] }
 0x148   :  { %663 = vmatpush1.msra.mxu0 %v11885_v39  ;;  %734 = vmatpush1.msra.mxu1 %v11886_v36  ;;  %v11896_v39 = vld [vmem:[#allocation62_spill] sm:$0xff]  ;;  %v11897_v36 = vld [vmem:[#allocation63_spill] sm:$0xff] }
 0x149   :  { %664 = vmatprep.subr.mxu0 %v11887_v47  ;;  %735 = vmatprep.subr.mxu1 %v11888_v52  ;;  %v11898_v47 = vld [vmem:[#allocation64_spill] sm:$0xff]  ;;  %v11899_v52 = vld [vmem:[#allocation65_spill] sm:$0xff] }
 0x14a   :  { %665 = vmatpush1.msra.mxu0 %v11889_v59  ;;  %736 = vmatpush1.msra.mxu1 %v11890_v46  ;;  %v11900_v59 = vld [vmem:[#allocation66_spill] sm:$0xff]  ;;  %v11901_v46 = vld [vmem:[#allocation67_spill] sm:$0xff] }
 0x14b   :  { %666 = vmatprep.subr.mxu0 %v11891_v0  ;;  %737 = vmatprep.subr.mxu1 %v11892_v41  ;;  %v11902_v0 = vld [vmem:[#allocation68_spill] sm:$0xff]  ;;  %v11903_v41 = vld [vmem:[#allocation69_spill] sm:$0xff] }
 0x14c   :  { %667 = vmatpush1.msra.mxu0 %v11893_v38  ;;  %738 = vmatpush1.msra.mxu1 %v11894_v42  ;;  %v11904_v38 = vld [vmem:[#allocation70_spill] sm:$0xff]  ;;  %v11905_v42 = vld [vmem:[#allocation71_spill] sm:$0xff] }
 0x14d   :  { %668 = vmatprep.subr.mxu0 %v11895_v50  ;;  %739 = vmatprep.subr.mxu1 %v11896_v39  ;;  %v11906_v50 = vld [vmem:[#allocation72_spill] sm:$0xff]  ;;  %v11907_v39 = vld [vmem:[#allocation73_spill] sm:$0xff] }
 0x14e   :  { %669 = vmatpush1.msra.mxu0 %v11897_v36  ;;  %740 = vmatpush1.msra.mxu1 %v11898_v47  ;;  %v11908_v36 = vld [vmem:[#allocation74_spill] sm:$0xff]  ;;  %v11909_v47 = vld [vmem:[#allocation75_spill] sm:$0xff] }
 0x14f   :  { %670 = vmatprep.subr.mxu0 %v11899_v52  ;;  %741 = vmatprep.subr.mxu1 %v11900_v59  ;;  %v11910_v52 = vld [vmem:[#allocation76_spill] sm:$0xff]  ;;  %v11911_v59 = vld [vmem:[#allocation77_spill] sm:$0xff] }
 0x150   :  { %671 = vmatpush1.msra.mxu0 %v11901_v46  ;;  %742 = vmatpush1.msra.mxu1 %v11902_v0  ;;  %v11912_v46 = vld [vmem:[#allocation78_spill] sm:$0xff]  ;;  %v11913_v0 = vld [vmem:[#allocation79_spill] sm:$0xff] }
 0x151   :  { %672 = vmatprep.subr.mxu0 %v11903_v41  ;;  %743 = vmatprep.subr.mxu1 %v11904_v38  ;;  %v11914_v41 = vld [vmem:[#allocation80_spill] sm:$0xff]  ;;  %v11915_v38 = vld [vmem:[#allocation81_spill] sm:$0xff] }
 0x152   :  { %673 = vmatpush1.msra.mxu0 %v11905_v42  ;;  %744 = vmatpush1.msra.mxu1 %v11906_v50  ;;  %v11916_v42 = vld [vmem:[#allocation82_spill] sm:$0xff]  ;;  %v11917_v50 = vld [vmem:[#allocation83_spill] sm:$0xff] }
 0x153   :  { %674 = vmatprep.subr.mxu0 %v11907_v39  ;;  %745 = vmatprep.subr.mxu1 %v11908_v36  ;;  %v11918_v39 = vld [vmem:[#allocation84_spill] sm:$0xff]  ;;  %v11919_v36 = vld [vmem:[#allocation85_spill] sm:$0xff] }
 0x154   :  { %675 = vmatpush1.msra.mxu0 %v11909_v47  ;;  %746 = vmatpush1.msra.mxu1 %v11910_v52  ;;  %v11920_v47 = vld [vmem:[#allocation86_spill] sm:$0xff]  ;;  %v11921_v52 = vld [vmem:[#allocation87_spill] sm:$0xff] }
 0x155   :  { %676 = vmatprep.subr.mxu0 %v11911_v59  ;;  %747 = vmatprep.subr.mxu1 %v11912_v46  ;;  %v11922_v59 = vld [vmem:[#allocation88_spill] sm:$0xff]  ;;  %v11923_v46 = vld [vmem:[#allocation89_spill] sm:$0xff] }
 0x156   :  { %677 = vmatpush1.msra.mxu0 %v11913_v0  ;;  %748 = vmatpush1.msra.mxu1 %v11914_v41  ;;  %v11924_v0 = vld [vmem:[#allocation90_spill] sm:$0xff]  ;;  %v11925_v41 = vld [vmem:[#allocation91_spill] sm:$0xff] }
 0x157   :  { %678 = vmatprep.subr.mxu0 %v11915_v38  ;;  %749 = vmatprep.subr.mxu1 %v11916_v42  ;;  %v11926_v38 = vld [vmem:[#allocation92_spill] sm:$0xff]  ;;  %v11927_v42 = vld [vmem:[#allocation93_spill] sm:$0xff] }
 0x158   :  { %679 = vmatpush1.msra.mxu0 %v11917_v50  ;;  %750 = vmatpush1.msra.mxu1 %v11918_v39  ;;  %v11928_v50 = vld [vmem:[#allocation94_spill] sm:$0xff] }
 0x159   :  { %680 = vmatprep.subr.mxu0 %v11919_v36  ;;  %751 = vmatprep.subr.mxu1 %v11920_v47  ;;  %v11929_v47 = vld [vmem:[#allocation96_spill] sm:$0xff] }
 0x15a   :  { %681 = vmatpush1.msra.mxu0 %v11921_v52  ;;  %752 = vmatpush1.msra.mxu1 %v11922_v59  ;;  %v513_v52 = vunpack.c.h.bf16 %v6768_v55 }
 0x15b   :  { %682 = vmatprep.subr.mxu0 %v11923_v46  ;;  %753 = vmatprep.subr.mxu1 %v11924_v0 }
 0x15c   :  { %683 = vmatpush1.msra.mxu0 %v11925_v41  ;;  %754 = vmatpush1.msra.mxu1 %v11926_v38 }
 0x15d   :  { %684 = vmatprep.subr.mxu0 %v11927_v42  ;;  %755 = vmatprep.subr.mxu1 %v11928_v50 }
 0x15e   :  { %685 = vmatpush1.msra.mxu0 %v6758_v62  ;;  %756 = vmatpush1.msra.mxu1 %v6763_v61 }
 0x15f   :  { %686 = vmatprep.subr.mxu0 %v11929_v47  ;;  %757 = vmatprep.subr.mxu1 %v6780_v1 }
 0x160   :  { %687 = vmatpush1.msra.mxu0 %v6787_v60  ;;  %720 = vmatprep.mubr.f32.mxu0 %v11800_v63 }
 0x161   :  { %758 = vmatpush1.msra.mxu1 %v6795_v57  ;;  %791 = vmatprep.mubr.f32.mxu1 %v11800_v63 }
 0x162   :  { %721 = vmatmul.mubr.f32.vlgmr.msra.gmra.mxu0 %v513_v52  ;;  %792 = vmatmul.mubr.f32.vlgmr.msra.gmra.mxu1 %v513_v52 }
 0x163   :  { %833 = vmatprep.subr.mxu0 %v6212_v2  ;;  %904 = vmatprep.subr.mxu1 %v6214_v3  ;;  %v11930_v2 = vld [vmem:[#allocation7_spill] sm:$0xff]  ;;  %v11931_v3 = vld [vmem:[#allocation8_spill] sm:$0xff] }
 0x164   :  { %834 = vmatpush1.msra.mxu0 %v6216_v4  ;;  %905 = vmatpush1.msra.mxu1 %v6220_v5  ;;  %v11932_v4 = vld [vmem:[#allocation9_spill] sm:$0xff]  ;;  %v11933_v5 = vld [vmem:[#allocation10_spill] sm:$0xff] }
 0x165   :  { %835 = vmatprep.subr.mxu0 %v6222_v6  ;;  %906 = vmatprep.subr.mxu1 %v6224_v7  ;;  %v11934_v6 = vld [vmem:[#allocation11_spill] sm:$0xff]  ;;  %v11935_v7 = vld [vmem:[#allocation12_spill] sm:$0xff] }
 0x166   :  { %836 = vmatpush1.msra.mxu0 %v6228_v8  ;;  %907 = vmatpush1.msra.mxu1 %v6230_v9  ;;  %v11936_v8 = vld [vmem:[#allocation13_spill] sm:$0xff]  ;;  %v11937_v9 = vld [vmem:[#allocation14_spill] sm:$0xff] }
 0x167   :  { %837 = vmatprep.subr.mxu0 %v6232_v10  ;;  %908 = vmatprep.subr.mxu1 %v6236_v11  ;;  %v11938_v10 = vld [vmem:[#allocation15_spill] sm:$0xff]  ;;  %v11939_v11 = vld [vmem:[#allocation16_spill] sm:$0xff] }
 0x168   :  { %838 = vmatpush1.msra.mxu0 %v6238_v12  ;;  %909 = vmatpush1.msra.mxu1 %v6240_v13  ;;  %v11940_v12 = vld [vmem:[#allocation17_spill] sm:$0xff]  ;;  %v11941_v13 = vld [vmem:[#allocation18_spill] sm:$0xff] }
 0x169   :  { %839 = vmatprep.subr.mxu0 %v6244_v14  ;;  %910 = vmatprep.subr.mxu1 %v6246_v15  ;;  %v11942_v14 = vld [vmem:[#allocation19_spill] sm:$0xff]  ;;  %v11943_v15 = vld [vmem:[#allocation20_spill] sm:$0xff] }
 0x16a   :  { %840 = vmatpush1.msra.mxu0 %v6250_v16  ;;  %911 = vmatpush1.msra.mxu1 %v6252_v17  ;;  %v11944_v16 = vld [vmem:[#allocation21_spill] sm:$0xff]  ;;  %v11945_v17 = vld [vmem:[#allocation22_spill] sm:$0xff] }
 0x16b   :  { %841 = vmatprep.subr.mxu0 %v6256_v18  ;;  %912 = vmatprep.subr.mxu1 %v6258_v19  ;;  %v11946_v18 = vld [vmem:[#allocation23_spill] sm:$0xff]  ;;  %v11947_v19 = vld [vmem:[#allocation24_spill] sm:$0xff] }
 0x16c   :  { %842 = vmatpush1.msra.mxu0 %v6262_v20  ;;  %913 = vmatpush1.msra.mxu1 %v6264_v21  ;;  %v11948_v20 = vld [vmem:[#allocation25_spill] sm:$0xff]  ;;  %v11949_v21 = vld [vmem:[#allocation26_spill] sm:$0xff] }
 0x16d   :  { %843 = vmatprep.subr.mxu0 %v6268_v22  ;;  %914 = vmatprep.subr.mxu1 %v6270_v23  ;;  %v11950_v22 = vld [vmem:[#allocation27_spill] sm:$0xff]  ;;  %v11951_v23 = vld [vmem:[#allocation28_spill] sm:$0xff] }
 0x16e   :  { %844 = vmatpush1.msra.mxu0 %v6274_v24  ;;  %915 = vmatpush1.msra.mxu1 %v6276_v25  ;;  %v11952_v24 = vld [vmem:[#allocation29_spill] sm:$0xff]  ;;  %v11953_v25 = vld [vmem:[#allocation30_spill] sm:$0xff] }
 0x16f   :  { %845 = vmatprep.subr.mxu0 %v6280_v26  ;;  %916 = vmatprep.subr.mxu1 %v6282_v27  ;;  %v11954_v26 = vld [vmem:[#allocation31_spill] sm:$0xff]  ;;  %v11955_v27 = vld [vmem:[#allocation32_spill] sm:$0xff] }
 0x170   :  { %846 = vmatpush1.msra.mxu0 %v6286_v28  ;;  %917 = vmatpush1.msra.mxu1 %v6288_v29  ;;  %v11956_v28 = vld [vmem:[#allocation33_spill] sm:$0xff]  ;;  %v11957_v29 = vld [vmem:[#allocation34_spill] sm:$0xff] }
 0x171   :  { %847 = vmatprep.subr.mxu0 %v6292_v30  ;;  %918 = vmatprep.subr.mxu1 %v6294_v31  ;;  %v11958_v30 = vld [vmem:[#allocation35_spill] sm:$0xff]  ;;  %v11959_v31 = vld [vmem:[#allocation36_spill] sm:$0xff] }
 0x172   :  { %848 = vmatpush1.msra.mxu0 %v6298_v32  ;;  %919 = vmatpush1.msra.mxu1 %v6300_v33  ;;  %v11960_v32 = vld [vmem:[#allocation37_spill] sm:$0xff]  ;;  %v11961_v33 = vld [vmem:[#allocation38_spill] sm:$0xff] }
 0x173   :  { %849 = vmatprep.subr.mxu0 %v6304_v34  ;;  %920 = vmatprep.subr.mxu1 %v6306_v35  ;;  %v11962_v34 = vld [vmem:[#allocation95_spill] sm:$0xff]  ;;  %v11963_v35 = vmov 0  }
 0x174   :  { %850 = vmatpush1.msra.mxu0 %v11930_v2  ;;  %921 = vmatpush1.msra.mxu1 %v11931_v3  ;;  %vm5312_vm9 = vcmp.gt.s32.totalorder %v11962_v34, 2  ;;  %vm5314_vm10 = vcmp.gt.s32.totalorder %v11962_v34, 3  ;;  %vm5318_vm11 = vcmp.gt.s32.totalorder %v11962_v34, 5  ;;  %vm5322_vm12 = vcmp.gt.s32.totalorder %v11962_v34, 7 }
 0x175   :  { %851 = vmatprep.subr.mxu0 %v11932_v4  ;;  %922 = vmatprep.subr.mxu1 %v11933_v5  ;;  %v1142_v55 = vsel %vm5312_vm9, 1, %v11963_v35  ;;  %v1461_v52 = vsel %vm5314_vm10, 1, %v11963_v35  ;;  %v2099_v2 = vsel %vm5318_vm11, 1, %v11963_v35  ;;  %v2737_v3 = vsel %vm5322_vm12, 1, %v11963_v35 }
 0x176   :  { %852 = vmatpush1.msra.mxu0 %v11934_v6  ;;  %923 = vmatpush1.msra.mxu1 %v11935_v7  ;;  %vm5326_vm13 = vcmp.gt.s32.totalorder %v11962_v34, 9  ;;  %vm5330_vm14 = vcmp.gt.s32.totalorder %v11962_v34, 11  ;;  %vm5334_vm15 = vcmp.gt.s32.totalorder %v11962_v34, 13  ;;  %vm5338_vm0 = vcmp.gt.s32.totalorder %v11962_v34, 15 }
 0x177   :  { %853 = vmatprep.subr.mxu0 %v11936_v8  ;;  %924 = vmatprep.subr.mxu1 %v11937_v9  ;;  %v3375_v4 = vsel %vm5326_vm13, 1, %v11963_v35  ;;  %v4013_v5 = vsel %vm5330_vm14, 1, %v11963_v35  ;;  %v4651_v6 = vsel %vm5334_vm15, 1, %v11963_v35  ;;  %v5289_v7 = vsel %vm5338_vm0, 1, %v11963_v35 }
 0x178   :  { %854 = vmatpush1.msra.mxu0 %v11938_v10  ;;  %925 = vmatpush1.msra.mxu1 %v11939_v11 }
 0x179   :  { %855 = vmatprep.subr.mxu0 %v11940_v12  ;;  %926 = vmatprep.subr.mxu1 %v11941_v13 }
 0x17a   :  { %856 = vmatpush1.msra.mxu0 %v11942_v14  ;;  %927 = vmatpush1.msra.mxu1 %v11943_v15 }
 0x17b   :  { %857 = vmatprep.subr.mxu0 %v11944_v16  ;;  %928 = vmatprep.subr.mxu1 %v11945_v17 }
 0x17c   :  { %858 = vmatpush1.msra.mxu0 %v11946_v18  ;;  %929 = vmatpush1.msra.mxu1 %v11947_v19 }
 0x17d   :  { %859 = vmatprep.subr.mxu0 %v11948_v20  ;;  %930 = vmatprep.subr.mxu1 %v11949_v21  ;;  %v11964_v20 = vld [vmem:[#allocation97_spill] sm:$0xff] }
 0x17e   :  { %860 = vmatpush1.msra.mxu0 %v11950_v22  ;;  %931 = vmatpush1.msra.mxu1 %v11951_v23 }
 0x17f   :  { %861 = vmatprep.subr.mxu0 %v11952_v24  ;;  %932 = vmatprep.subr.mxu1 %v11953_v25 }
 0x180   :  { %862 = vmatpush1.msra.mxu0 %v11954_v26  ;;  %933 = vmatpush1.msra.mxu1 %v11955_v27 }
 0x181   :  { %863 = vmatprep.subr.mxu0 %v11956_v28  ;;  %934 = vmatprep.subr.mxu1 %v11957_v29 }
 0x182   :  { %864 = vmatpush1.msra.mxu0 %v11958_v30  ;;  %935 = vmatpush1.msra.mxu1 %v11959_v31 }
 0x183   :  { %897 = vmatprep.mubr.f32.mxu0 %v11800_v63  ;;  %968 = vmatprep.mubr.f32.mxu1 %v11800_v63 }
 0x184   :  { %975 = vmatprep.subr.mxu0 %v11960_v32  ;;  %1046 = vmatprep.subr.mxu1 %v11961_v33 }
 0x185   :  { %1144 = vperm.xlu1 %5347, %v1142_v55  }
 0x189   :  { %1463 = vperm.xlu1 %5347, %v1461_v52   ;;  %v826_v52 = vpop.permute.xlu0 %825 }
 0x18a   :  { %vm827_vm1 = vcmp.eq.s32.totalorder %v826_v52, 1  ;;  %v12000_v52 = vld [vmem:[#allocation81_spill] sm:$0xff] }
 0x18d   :  { %2101 = vperm.xlu1 %5347, %v2099_v2  }
 0x191   :  { %2739 = vperm.xlu1 %5347, %v2737_v3  }
 0x195   :  { %3377 = vperm.xlu1 %5347, %v3375_v4  }
 0x199   :  { %4015 = vperm.xlu1 %5347, %v4013_v5  }
 0x19d   :  { %4653 = vperm.xlu1 %5347, %v4651_v6  }
 0x1a1   :  { %5291 = vperm.xlu1 %5347, %v5289_v7  }
 0x201   :  { %v580_v8 = vpop.f32.mrf.mxu0  ;;  %v651_v9 = vpop.f32.mrf.mxu1 }
 0x203   :  { %v582_v10 = vpop.f32.mrf.mxu0  ;;  %v653_v11 = vpop.f32.mrf.mxu1 }
 0x222   :  { %v722_v12 = vpop.f32.mrf.mxu0  ;;  %v793_v14 = vpop.f32.mrf.mxu1 }
 0x223   :  { %v723_v13 = vadd.f32 %v722_v12, %v580_v8  ;;  %v794_v19 = vadd.f32 %v793_v14, %v651_v9  ;;  %v11976_v12 = vld [vmem:[#allocation57_spill] sm:$0xff]  ;;  %v11978_v14 = vld [vmem:[#allocation59_spill] sm:$0xff] }
 0x224   :  { %v724_v15 = vpop.f32.mrf.mxu0  ;;  %v795_v23 = vpop.f32.mrf.mxu1 }
 0x225   :  { %v798_v16 = vadd.f32 %v723_v13, %v6890_v54  ;;  %v725_v17 = vadd.f32 %v724_v15, %v582_v10  ;;  %v800_v24 = vadd.f32 %v794_v19, %v6895_v40  ;;  %v796_v25 = vadd.f32 %v795_v23, %v653_v11  ;;  %v11967_v10 = vld [vmem:[#allocation48_spill] sm:$0xff]  ;;  %v11968_v11 = vld [vmem:[#allocation49_spill] sm:$0xff]  ;;  %v11977_v13 = vld [vmem:[#allocation58_spill] sm:$0xff] }
 0x226   :  { %v11979_v15 = vld [vmem:[#allocation60_spill] sm:$0xff]  ;;  %v11986_v23 = vld [vmem:[#allocation67_spill] sm:$0xff] }
 0x227   :  { %v802_v18 = vmul.f32 0.5, %v798_v16  ;;  %v799_v21 = vadd.f32 %v725_v17, %v11964_v20  ;;  %v801_v26 = vadd.f32 %v796_v25, %v6899_v53  ;;  %v11980_v16 = vld [vmem:[#allocation61_spill] sm:$0xff]  ;;  %v11981_v17 = vld [vmem:[#allocation62_spill] sm:$0xff]  ;;  %v11983_v19 = vld [vmem:[#allocation64_spill] sm:$0xff] }
 0x228   :  { %v11988_v25 = vld [vmem:[#allocation69_spill] sm:$0xff] }
 0x229   :  { %5358 = vtanh.f32 %v802_v18  ;;  %v806_v22 = vmul.f32 0.5, %v799_v21  ;;  %v811_v27 = vmul.f32 0.5, %v801_v26  ;;  %v11982_v18 = vld [vmem:[#allocation63_spill] sm:$0xff]  ;;  %v11984_v21 = vld [vmem:[#allocation65_spill] sm:$0xff]  ;;  %v11989_v26 = vld [vmem:[#allocation70_spill] sm:$0xff] }
 0x22b   :  { %5360 = vtanh.f32 %v806_v22  ;;  %v11985_v22 = vld [vmem:[#allocation66_spill] sm:$0xff] }
 0x22c   :  { %5362 = vtanh.f32 %v800_v24  ;;  %v11987_v24 = vld [vmem:[#allocation68_spill] sm:$0xff] }
 0x22d   :  { %5364 = vtanh.f32 %v811_v27  ;;  %v11990_v27 = vld [vmem:[#allocation71_spill] sm:$0xff] }
 0x236   :  { %v5359_v28 = vpop.eup %5358 }
 0x237   :  { %v804_v29 = vmul.f32 0.5, %v5359_v28  ;;  %v11991_v28 = vld [vmem:[#allocation72_spill] sm:$0xff] }
 0x238   :  { %v5361_v30 = vpop.eup %5360 }
 0x239   :  { %v805_v31 = vadd.f32 0.5, %v804_v29  ;;  %v808_v32 = vmul.f32 0.5, %v5361_v30  ;;  %v5363_v34 = vpop.eup %5362  ;;  %v11992_v29 = vld [vmem:[#allocation73_spill] sm:$0xff]  ;;  %v11993_v30 = vld [vmem:[#allocation74_spill] sm:$0xff] }
 0x23a   :  { %v5365_v4 = vpop.eup %5364 }
 0x23b   :  { %v809_v33 = vadd.f32 0.5, %v808_v32  ;;  %v816_v55 = vmul.f32 %v5363_v34, %v805_v31  ;;  %v813_v5 = vmul.f32 0.5, %v5365_v4  ;;  %v11994_v31 = vld [vmem:[#allocation75_spill] sm:$0xff]  ;;  %v11995_v32 = vld [vmem:[#allocation76_spill] sm:$0xff]  ;;  %v11997_v34 = vld [vmem:[#allocation78_spill] sm:$0xff] }
 0x23c   :  { %v12002_v4 = vld [vmem:[#allocation83_spill] sm:$0xff] }
 0x23d   :  { %v815_v35 = vmul.f32 %v809_v33, %v6902_v37  ;;  %v814_v6 = vadd.f32 0.5, %v813_v5  ;;  %v11996_v33 = vld [vmem:[#allocation77_spill] sm:$0xff]  ;;  %v12003_v5 = vld [vmem:[#allocation86_spill] sm:$0xff] }
 0x23f   :  { %v817_v2 = vadd.f32 %v816_v55, %v815_v35  ;;  %v11998_v35 = vld [vmem:[#allocation79_spill] sm:$0xff]  ;;  %v11999_v55 = vld [vmem:[#allocation80_spill] sm:$0xff] }
 0x241   :  { %5366 = vtanh.f32 %v817_v2  ;;  %v7061_v3 = vsel %vm827_vm1, %v817_v2, %v6902_v37  ;;  %v11965_v37 = vld [vmem:[#allocation46_spill] sm:$0xff] }
 0x242   :  { %v12001_v2 = vld [vmem:[#allocation82_spill] sm:$0xff] }
 0x24e   :  { %v5367_v7 = vpop.eup %5366 }
 0x24f   :  { %v819_v8 = vmul.f32 %v5367_v7, %v814_v6  ;;  %v12004_v6 = vld [vmem:[#allocation87_spill] sm:$0xff]  ;;  %v7123_v7 = vld [vmem:[%s10932_s1 + $0x8] sm:$0xff]  }
 0x251   :  { %v7064_v9 = vsel %vm827_vm1, %v819_v8, %v6904_v58  ;;  %v11966_v58 = vld [vmem:[#allocation47_spill] sm:$0xff] }
 0x252   :  { %898 = vmatmul.mubr.f32.vlgmr.msra.gmra.mxu0 %v7064_v9  ;;  %969 = vmatmul.mubr.f32.vlgmr.msra.gmra.mxu1 %v7064_v9  ;;  %v7180_v8 = vld [vmem:[#allocation4 + $0x180] sm:$0xff] }
 0x253   :  { %976 = vmatpush1.msra.mxu0 %v11873_v45  ;;  %1047 = vmatpush1.msra.mxu1 %v11874_v43  ;;  %v11969_v45 = vld [vmem:[#allocation50_spill] sm:$0xff]  ;;  %v11970_v43 = vld [vmem:[#allocation51_spill] sm:$0xff] }
 0x254   :  { %977 = vmatprep.subr.mxu0 %v11875_v51  ;;  %1048 = vmatprep.subr.mxu1 %v11876_v56  ;;  %v11971_v51 = vld [vmem:[#allocation52_spill] sm:$0xff]  ;;  %v11972_v56 = vld [vmem:[#allocation53_spill] sm:$0xff] }
 0x255   :  { %978 = vmatpush1.msra.mxu0 %v11877_v44  ;;  %1049 = vmatpush1.msra.mxu1 %v11878_v49  ;;  %v11973_v44 = vld [vmem:[#allocation54_spill] sm:$0xff]  ;;  %v11974_v49 = vld [vmem:[#allocation55_spill] sm:$0xff] }
 0x256   :  { %979 = vmatprep.subr.mxu0 %v11879_v48  ;;  %1050 = vmatprep.subr.mxu1 %v11965_v37  ;;  %v11975_v48 = vld [vmem:[#allocation56_spill] sm:$0xff]  ;;  %v7183_v37 = vld [vmem:[#allocation4 + $0x190] sm:$0xff] }
 0x257   :  { %980 = vmatpush1.msra.mxu0 %v11966_v58  ;;  %1051 = vmatpush1.msra.mxu1 %v11967_v10  ;;  %v7186_v58 = vld [vmem:[#allocation4 + $0x168] sm:$0xff]  ;;  %v7189_v10 = vld [vmem:[#allocation4 + $0x178] sm:$0xff] }
 0x258   :  { %981 = vmatprep.subr.mxu0 %v11968_v11  ;;  %1052 = vmatprep.subr.mxu1 %v11969_v45  ;;  %12005 = vst [vmem:[#allocation39_spill] sm:$0xff] %v7189_v10  ;;  %v7192_v11 = vld [vmem:[#allocation4 + $0x160] sm:$0xff]  ;;  %v7195_v45 = vld [vmem:[#allocation4 + $0x170] sm:$0xff] }
 0x259   :  { %982 = vmatpush1.msra.mxu0 %v11970_v43  ;;  %1053 = vmatpush1.msra.mxu1 %v11971_v51  ;;  %12006 = vst [vmem:[#allocation40_spill] sm:$0xff] %v7192_v11  ;;  %12007 = vst [vmem:[#allocation41_spill] sm:$0xff] %v7195_v45  ;;  %v7198_v43 = vld [vmem:[#allocation4 + $0x148] sm:$0xff]  ;;  %v7201_v51 = vld [vmem:[#allocation4 + $0x158] sm:$0xff] }
 0x25a   :  { %983 = vmatprep.subr.mxu0 %v11972_v56  ;;  %1054 = vmatprep.subr.mxu1 %v11973_v44  ;;  %12008 = vst [vmem:[#allocation42_spill] sm:$0xff] %v7198_v43  ;;  %12009 = vst [vmem:[#allocation43_spill] sm:$0xff] %v7201_v51  ;;  %v7204_v56 = vld [vmem:[#allocation4 + $0x140] sm:$0xff]  ;;  %v7207_v44 = vld [vmem:[#allocation4 + $0x150] sm:$0xff] }
 0x25b   :  { %984 = vmatpush1.msra.mxu0 %v11974_v49  ;;  %1055 = vmatpush1.msra.mxu1 %v11975_v48  ;;  %12010 = vst [vmem:[#allocation44_spill] sm:$0xff] %v7204_v56  ;;  %12011 = vst [vmem:[#allocation45_spill] sm:$0xff] %v7207_v44  ;;  %v7210_v49 = vld [vmem:[#allocation4 + $0x128] sm:$0xff]  ;;  %v7213_v48 = vld [vmem:[#allocation4 + $0x138] sm:$0xff] }
 0x25c   :  { %985 = vmatprep.subr.mxu0 %v11976_v12  ;;  %1056 = vmatprep.subr.mxu1 %v11977_v13  ;;  %12012 = vst [vmem:[#allocation84_spill] sm:$0xff] %v7210_v49  ;;  %12013 = vst [vmem:[#allocation85_spill] sm:$0xff] %v7213_v48  ;;  %v7216_v12 = vld [vmem:[#allocation4 + $0x120] sm:$0xff]  ;;  %v7219_v13 = vld [vmem:[#allocation4 + $0x130] sm:$0xff] }
 0x25d   :  { %986 = vmatpush1.msra.mxu0 %v11978_v14  ;;  %1057 = vmatpush1.msra.mxu1 %v11979_v15  ;;  %12014 = vst [vmem:[#allocation88_spill] sm:$0xff] %v7216_v12  ;;  %12015 = vst [vmem:[#allocation89_spill] sm:$0xff] %v7219_v13  ;;  %v7222_v14 = vld [vmem:[#allocation4 + $0x108] sm:$0xff]  ;;  %v7225_v15 = vld [vmem:[#allocation4 + $0x118] sm:$0xff] }
 0x25e   :  { %987 = vmatprep.subr.mxu0 %v11980_v16  ;;  %1058 = vmatprep.subr.mxu1 %v11981_v17  ;;  %12016 = vst [vmem:[#allocation90_spill] sm:$0xff] %v7222_v14  ;;  %12017 = vst [vmem:[#allocation91_spill] sm:$0xff] %v7225_v15  ;;  %v7228_v16 = vld [vmem:[#allocation4 + $0x100] sm:$0xff]  ;;  %v7231_v17 = vld [vmem:[#allocation4 + $0x110] sm:$0xff] }
 0x25f   :  { %988 = vmatpush1.msra.mxu0 %v11982_v18  ;;  %1059 = vmatpush1.msra.mxu1 %v11983_v19  ;;  %12018 = vst [vmem:[#allocation92_spill] sm:$0xff] %v7228_v16  ;;  %12019 = vst [vmem:[#allocation93_spill] sm:$0xff] %v7231_v17  ;;  %v7234_v18 = vld [vmem:[#allocation4 + $0xe8] sm:$0xff]  ;;  %v7237_v19 = vld [vmem:[#allocation4 + $0xf8] sm:$0xff] }
 0x260   :  { %989 = vmatprep.subr.mxu0 %v11984_v21  ;;  %1060 = vmatprep.subr.mxu1 %v11985_v22  ;;  %12020 = vst [vmem:[#allocation94_spill] sm:$0xff] %v7234_v18  ;;  %12021 = vst [vmem:[#allocation96_spill] sm:$0xff] %v7237_v19  ;;  %v7240_v21 = vld [vmem:[#allocation4 + $0xe0] sm:$0xff]  ;;  %v7243_v22 = vld [vmem:[#allocation4 + $0xf0] sm:$0xff] }
 0x261   :  { %990 = vmatpush1.msra.mxu0 %v11986_v23  ;;  %1061 = vmatpush1.msra.mxu1 %v11987_v24  ;;  %12022 = vst [vmem:[#allocation7_spill] sm:$0xff] %v7240_v21  ;;  %12023 = vst [vmem:[#allocation8_spill] sm:$0xff] %v7243_v22  ;;  %v7246_v23 = vld [vmem:[#allocation4 + $0xc8] sm:$0xff]  ;;  %v7249_v24 = vld [vmem:[#allocation4 + $0xd8] sm:$0xff] }
 0x262   :  { %991 = vmatprep.subr.mxu0 %v11988_v25  ;;  %1062 = vmatprep.subr.mxu1 %v11989_v26  ;;  %12024 = vst [vmem:[#allocation9_spill] sm:$0xff] %v7246_v23  ;;  %12025 = vst [vmem:[#allocation10_spill] sm:$0xff] %v7249_v24  ;;  %v7252_v25 = vld [vmem:[#allocation4 + $0xc0] sm:$0xff]  ;;  %v7255_v26 = vld [vmem:[#allocation4 + $0xd0] sm:$0xff] }
 0x263   :  { %992 = vmatpush1.msra.mxu0 %v11990_v27  ;;  %1063 = vmatpush1.msra.mxu1 %v11991_v28  ;;  %12026 = vst [vmem:[#allocation11_spill] sm:$0xff] %v7252_v25  ;;  %12027 = vst [vmem:[#allocation12_spill] sm:$0xff] %v7255_v26  ;;  %v7258_v27 = vld [vmem:[#allocation4 + $0xa8] sm:$0xff]  ;;  %v7261_v28 = vld [vmem:[#allocation4 + $0xb8] sm:$0xff] }
 0x264   :  { %993 = vmatprep.subr.mxu0 %v11992_v29  ;;  %1064 = vmatprep.subr.mxu1 %v11993_v30  ;;  %12028 = vst [vmem:[#allocation13_spill] sm:$0xff] %v7258_v27  ;;  %12029 = vst [vmem:[#allocation14_spill] sm:$0xff] %v7261_v28  ;;  %v7264_v29 = vld [vmem:[#allocation4 + $0xa0] sm:$0xff]  ;;  %v7267_v30 = vld [vmem:[#allocation4 + $0xb0] sm:$0xff] }
 0x265   :  { %994 = vmatpush1.msra.mxu0 %v11994_v31  ;;  %1065 = vmatpush1.msra.mxu1 %v11995_v32  ;;  %12030 = vst [vmem:[#allocation15_spill] sm:$0xff] %v7264_v29  ;;  %12031 = vst [vmem:[#allocation16_spill] sm:$0xff] %v7267_v30  ;;  %v7270_v31 = vld [vmem:[#allocation4 + $0x88] sm:$0xff]  ;;  %v7273_v32 = vld [vmem:[#allocation4 + $0x98] sm:$0xff] }
 0x266   :  { %995 = vmatprep.subr.mxu0 %v11996_v33  ;;  %1066 = vmatprep.subr.mxu1 %v11997_v34  ;;  %12032 = vst [vmem:[#allocation17_spill] sm:$0xff] %v7270_v31  ;;  %12033 = vst [vmem:[#allocation18_spill] sm:$0xff] %v7273_v32  ;;  %v7276_v33 = vld [vmem:[#allocation4 + $0x80] sm:$0xff]  ;;  %v7279_v34 = vld [vmem:[#allocation4 + $0x90] sm:$0xff] }
 0x267   :  { %996 = vmatpush1.msra.mxu0 %v11998_v35  ;;  %1067 = vmatpush1.msra.mxu1 %v11999_v55  ;;  %12034 = vst [vmem:[#allocation19_spill] sm:$0xff] %v7276_v33  ;;  %12035 = vst [vmem:[#allocation20_spill] sm:$0xff] %v7279_v34  ;;  %v7282_v35 = vld [vmem:[#allocation4 + $0x68] sm:$0xff]  ;;  %v7285_v55 = vld [vmem:[#allocation4 + $0x78] sm:$0xff] }
 0x268   :  { %997 = vmatprep.subr.mxu0 %v12000_v52  ;;  %1068 = vmatprep.subr.mxu1 %v12001_v2  ;;  %12036 = vst [vmem:[#allocation21_spill] sm:$0xff] %v7282_v35  ;;  %12037 = vst [vmem:[#allocation22_spill] sm:$0xff] %v7285_v55  ;;  %v7288_v52 = vld [vmem:[#allocation4 + $0x60] sm:$0xff]  ;;  %v7291_v2 = vld [vmem:[#allocation4 + $0x70] sm:$0xff] }
 0x269   :  { %998 = vmatpush1.msra.mxu0 %v12002_v4  ;;  %1069 = vmatpush1.msra.mxu1 %v11918_v39  ;;  %v832_v39 = vunpack.c.l.bf16 %v7123_v7  ;;  %12038 = vst [vmem:[#allocation23_spill] sm:$0xff] %v7288_v52  ;;  %12039 = vst [vmem:[#allocation24_spill] sm:$0xff] %v7291_v2  ;;  %v7294_v4 = vld [vmem:[#allocation4 + $0x48] sm:$0xff] }
 0x26a   :  { %999 = vmatprep.subr.mxu0 %v11919_v36  ;;  %1070 = vmatprep.subr.mxu1 %v12003_v5  ;;  %v7168_v36 = vld [vmem:[#allocation4 + $0x1a0] sm:$0xff]  ;;  %12040 = vst [vmem:[#allocation25_spill] sm:$0xff] %v7294_v4  ;;  %v7297_v5 = vld [vmem:[#allocation4 + $0x58] sm:$0xff] }
 0x26b   :  { %1000 = vmatpush1.msra.mxu0 %v12004_v6  ;;  %1071 = vmatpush1.msra.mxu1 %v11922_v59  ;;  %v7174_v59 = vld [vmem:[#allocation4 + $0x188] sm:$0xff]  ;;  %12041 = vst [vmem:[#allocation26_spill] sm:$0xff] %v7297_v5  ;;  %v7300_v6 = vld [vmem:[#allocation4 + $0x40] sm:$0xff] }
 0x26c   :  { %1001 = vmatprep.subr.mxu0 %v11923_v46  ;;  %1072 = vmatprep.subr.mxu1 %v11924_v0  ;;  %v7138_v0 = vld [vmem:[#allocation4 + $0x1e8] sm:$0xff]  ;;  %v7177_v46 = vld [vmem:[#allocation4 + $0x198] sm:$0xff]  ;;  %12042 = vst [vmem:[#allocation27_spill] sm:$0xff] %v7300_v6 }
 0x26d   :  { %1002 = vmatpush1.msra.mxu0 %v11925_v41  ;;  %1073 = vmatpush1.msra.mxu1 %v11926_v38  ;;  %v7156_v41 = vld [vmem:[#allocation4 + $0x1c0] sm:$0xff]  ;;  %v7159_v38 = vld [vmem:[#allocation4 + $0x1d0] sm:$0xff] }
 0x26e   :  { %1003 = vmatprep.subr.mxu0 %v11927_v42  ;;  %1074 = vmatprep.subr.mxu1 %v11928_v50  ;;  %v7162_v42 = vld [vmem:[#allocation4 + $0x1a8] sm:$0xff]  ;;  %v7165_v50 = vld [vmem:[#allocation4 + $0x1b8] sm:$0xff] }
 0x26f   :  { %1004 = vmatpush1.msra.mxu0 %v6758_v62  ;;  %1075 = vmatpush1.msra.mxu1 %v6763_v61  ;;  %v7141_v61 = vld [vmem:[#allocation4 + $0x1f8] sm:$0xff]  ;;  %v7144_v62 = vld [vmem:[#allocation4 + $0x1e0] sm:$0xff] }
 0x270   :  { %1005 = vmatprep.subr.mxu0 %v11929_v47  ;;  %1076 = vmatprep.subr.mxu1 %v6780_v1  ;;  %v7147_v1 = vld [vmem:[#allocation4 + $0x1f0] sm:$0xff] }
 0x271   :  { %1006 = vmatpush1.msra.mxu0 %v6787_v60  ;;  %1039 = vmatprep.mubr.f32.mxu0 %v11800_v63  ;;  %v7153_v60 = vld [vmem:[#allocation4 + $0x1d8] sm:$0xff]  ;;  %v7171_v47 = vld [vmem:[#allocation4 + $0x1b0] sm:$0xff] }
 0x272   :  { %1077 = vmatpush1.msra.mxu1 %v6795_v57  ;;  %1110 = vmatprep.mubr.f32.mxu1 %v11800_v63  ;;  %v7150_v57 = vld [vmem:[#allocation4 + $0x1c8] sm:$0xff] }
 0x273   :  { %1040 = vmatmul.mubr.f32.vlgmr.msra.gmra.mxu0 %v832_v39  ;;  %1111 = vmatmul.mubr.f32.vlgmr.msra.gmra.mxu1 %v832_v39  ;;  %v7303_v39 = vld [vmem:[#allocation4 + $0x50] sm:$0xff] }
 0x274   :  { %1152 = vmatprep.subr.mxu0 %v7138_v0  ;;  %1223 = vmatprep.subr.mxu1 %v7141_v61  ;;  %12043 = vst [vmem:[#allocation28_spill] sm:$0xff] %v7303_v39 }
 0x275   :  { %1153 = vmatpush1.msra.mxu0 %v7144_v62  ;;  %1224 = vmatpush1.msra.mxu1 %v7147_v1 }
 0x276   :  { %1154 = vmatprep.subr.mxu0 %v7150_v57  ;;  %1225 = vmatprep.subr.mxu1 %v7153_v60 }
 0x277   :  { %1155 = vmatpush1.msra.mxu0 %v7156_v41  ;;  %1226 = vmatpush1.msra.mxu1 %v7159_v38 }
 0x278   :  { %1156 = vmatprep.subr.mxu0 %v7162_v42  ;;  %1227 = vmatprep.subr.mxu1 %v7165_v50 }
 0x279   :  { %1157 = vmatpush1.msra.mxu0 %v7168_v36  ;;  %1228 = vmatpush1.msra.mxu1 %v7171_v47 }
 0x27a   :  { %1158 = vmatprep.subr.mxu0 %v7174_v59  ;;  %1229 = vmatprep.subr.mxu1 %v7177_v46 }
 0x27b   :  { %1159 = vmatpush1.msra.mxu0 %v7180_v8  ;;  %1230 = vmatpush1.msra.mxu1 %v7183_v37 }
 0x27c   :  { %1160 = vmatprep.subr.mxu0 %v7186_v58  ;;  %1231 = vmatprep.subr.mxu1 %v7189_v10 }
 0x27d   :  { %1161 = vmatpush1.msra.mxu0 %v7192_v11  ;;  %1232 = vmatpush1.msra.mxu1 %v7195_v45 }
 0x27e   :  { %1162 = vmatprep.subr.mxu0 %v7198_v43  ;;  %1233 = vmatprep.subr.mxu1 %v7201_v51 }
 0x27f   :  { %1163 = vmatpush1.msra.mxu0 %v7204_v56  ;;  %1234 = vmatpush1.msra.mxu1 %v7207_v44 }
 0x280   :  { %1164 = vmatprep.subr.mxu0 %v7210_v49  ;;  %1235 = vmatprep.subr.mxu1 %v7213_v48 }
 0x281   :  { %1165 = vmatpush1.msra.mxu0 %v7216_v12  ;;  %1236 = vmatpush1.msra.mxu1 %v7219_v13 }
 0x282   :  { %1166 = vmatprep.subr.mxu0 %v7222_v14  ;;  %1237 = vmatprep.subr.mxu1 %v7225_v15 }
 0x283   :  { %1167 = vmatpush1.msra.mxu0 %v7228_v16  ;;  %1238 = vmatpush1.msra.mxu1 %v7231_v17 }
 0x284   :  { %1168 = vmatprep.subr.mxu0 %v7234_v18  ;;  %1239 = vmatprep.subr.mxu1 %v7237_v19 }
 0x285   :  { %1169 = vmatpush1.msra.mxu0 %v7240_v21  ;;  %1240 = vmatpush1.msra.mxu1 %v7243_v22 }
 0x286   :  { %1170 = vmatprep.subr.mxu0 %v7246_v23  ;;  %1241 = vmatprep.subr.mxu1 %v7249_v24 }
 0x287   :  { %1171 = vmatpush1.msra.mxu0 %v7252_v25  ;;  %1242 = vmatpush1.msra.mxu1 %v7255_v26 }
 0x288   :  { %1172 = vmatprep.subr.mxu0 %v7258_v27  ;;  %1243 = vmatprep.subr.mxu1 %v7261_v28 }
 0x289   :  { %1173 = vmatpush1.msra.mxu0 %v7264_v29  ;;  %1244 = vmatpush1.msra.mxu1 %v7267_v30 }
 0x28a   :  { %1174 = vmatprep.subr.mxu0 %v7270_v31  ;;  %1245 = vmatprep.subr.mxu1 %v7273_v32 }
 0x28b   :  { %1175 = vmatpush1.msra.mxu0 %v7276_v33  ;;  %1246 = vmatpush1.msra.mxu1 %v7279_v34 }
 0x28c   :  { %1176 = vmatprep.subr.mxu0 %v7282_v35  ;;  %1247 = vmatprep.subr.mxu1 %v7285_v55 }
 0x28d   :  { %1177 = vmatpush1.msra.mxu0 %v7288_v52  ;;  %1248 = vmatpush1.msra.mxu1 %v7291_v2  ;;  %v7306_v52 = vld [vmem:[#allocation4 + $0x28] sm:$0xff]  ;;  %v7309_v2 = vld [vmem:[#allocation4 + $0x38] sm:$0xff] }
 0x28e   :  { %1178 = vmatprep.subr.mxu0 %v7294_v4  ;;  %1249 = vmatprep.subr.mxu1 %v7297_v5  ;;  %12044 = vst [vmem:[#allocation29_spill] sm:$0xff] %v7306_v52  ;;  %12045 = vst [vmem:[#allocation30_spill] sm:$0xff] %v7309_v2  ;;  %v7312_v4 = vld [vmem:[#allocation4 + $0x20] sm:$0xff]  ;;  %v7315_v5 = vld [vmem:[#allocation4 + $0x30] sm:$0xff] }
 0x28f   :  { %1179 = vmatpush1.msra.mxu0 %v7300_v6  ;;  %1250 = vmatpush1.msra.mxu1 %v7303_v39  ;;  %12046 = vst [vmem:[#allocation31_spill] sm:$0xff] %v7312_v4  ;;  %12047 = vst [vmem:[#allocation32_spill] sm:$0xff] %v7315_v5  ;;  %v7318_v6 = vld [vmem:[#allocation4 + $0x8] sm:$0xff]  ;;  %v7321_v39 = vld [vmem:[#allocation4 + $0x18] sm:$0xff] }
 0x290   :  { %1180 = vmatprep.subr.mxu0 %v7306_v52  ;;  %1251 = vmatprep.subr.mxu1 %v7309_v2  ;;  %12048 = vst [vmem:[#allocation33_spill] sm:$0xff] %v7318_v6  ;;  %12049 = vst [vmem:[#allocation34_spill] sm:$0xff] %v7321_v39  ;;  %v7324_v52 = vld [vmem:[#allocation4] sm:$0xff]  ;;  %v7327_v2 = vld [vmem:[#allocation4 + $0x10] sm:$0xff] }
 0x291   :  { %1181 = vmatpush1.msra.mxu0 %v7312_v4  ;;  %1252 = vmatpush1.msra.mxu1 %v7315_v5  ;;  %12050 = vst [vmem:[#allocation35_spill] sm:$0xff] %v7324_v52  ;;  %12051 = vst [vmem:[#allocation36_spill] sm:$0xff] %v7327_v2 }
 0x292   :  { %1182 = vmatprep.subr.mxu0 %v7318_v6  ;;  %1253 = vmatprep.subr.mxu1 %v7321_v39  ;;  %v7335_v6 = vld [vmem:[%s10933_s2 + $0x1e8] sm:$0xff]  ;;  %v7341_v39 = vld [vmem:[%s10933_s2 + $0x1f8] sm:$0xff] }
 0x293   :  { %1183 = vmatpush1.msra.mxu0 %v7324_v52  ;;  %1254 = vmatpush1.msra.mxu1 %v7327_v2  ;;  %12052 = vst [vmem:[#allocation37_spill] sm:$0xff] %v7335_v6  ;;  %12053 = vst [vmem:[#allocation38_spill] sm:$0xff] %v7341_v39 }
 0x294   :  { %1216 = vmatprep.mubr.f32.mxu0 %v11800_v63  ;;  %1287 = vmatprep.mubr.f32.mxu1 %v11800_v63 }
 0x295   :  { %1294 = vmatprep.subr.mxu0 %v7335_v6  ;;  %1365 = vmatprep.subr.mxu1 %v7341_v39 }
 0x312   :  { %v899_v52 = vpop.f32.mrf.mxu0  ;;  %v970_v2 = vpop.f32.mrf.mxu1 }
 0x314   :  { %v901_v5 = vpop.f32.mrf.mxu0  ;;  %v972_v4 = vpop.f32.mrf.mxu1 }
 0x333   :  { %v1041_v55 = vpop.f32.mrf.mxu0  ;;  %v1112_v34 = vpop.f32.mrf.mxu1 }
 0x334   :  { %v1042_v35 = vadd.f32 %v1041_v55, %v899_v52  ;;  %v1113_v6 = vadd.f32 %v1112_v34, %v970_v2 }
 0x335   :  { %v1043_v33 = vpop.f32.mrf.mxu0  ;;  %v1114_v27 = vpop.f32.mrf.mxu1 }
 0x336   :  { %v1117_v32 = vadd.f32 %v1042_v35, %v6890_v54  ;;  %v1044_v31 = vadd.f32 %v1043_v33, %v901_v5  ;;  %v1119_v39 = vadd.f32 %v1113_v6, %v6895_v40  ;;  %v1115_v26 = vadd.f32 %v1114_v27, %v972_v4  ;;  %v7378_v6 = vld [vmem:[%s10933_s2 + $0x1d8] sm:$0xff] }
 0x338   :  { %v1121_v30 = vmul.f32 0.5, %v1117_v32  ;;  %v1118_v29 = vadd.f32 %v1044_v31, %v11964_v20  ;;  %v1120_v25 = vadd.f32 %v1115_v26, %v6899_v53  ;;  %v1145_v31 = vpop.permute.xlu1 %1144 }
 0x339   :  { %vm1146_vm2 = vcmp.eq.s32.totalorder %v1145_v31, 1  ;;  %v7426_v31 = vld [vmem:[%s10933_s2 + $0x198] sm:$0xff] }
 0x33a   :  { %5368 = vtanh.f32 %v1121_v30  ;;  %v1125_v28 = vmul.f32 0.5, %v1118_v29  ;;  %v1130_v55 = vmul.f32 0.5, %v1120_v25 }
 0x33c   :  { %5370 = vtanh.f32 %v1125_v28 }
 0x33d   :  { %5372 = vtanh.f32 %v1119_v39  ;;  %v7384_v39 = vld [vmem:[%s10933_s2 + $0x1c0] sm:$0xff] }
 0x33e   :  { %5374 = vtanh.f32 %v1130_v55  ;;  %v7390_v55 = vld [vmem:[%s10933_s2 + $0x1d0] sm:$0xff] }
 0x347   :  { %v5369_v52 = vpop.eup %5368 }
 0x348   :  { %v1123_v24 = vmul.f32 0.5, %v5369_v52  ;;  %v7396_v52 = vld [vmem:[%s10933_s2 + $0x1a8] sm:$0xff] }
 0x349   :  { %v5371_v23 = vpop.eup %5370 }
 0x34a   :  { %v1124_v35 = vadd.f32 0.5, %v1123_v24  ;;  %v1127_v33 = vmul.f32 0.5, %v5371_v23  ;;  %v5373_v34 = vpop.eup %5372  ;;  %v7360_v24 = vld [vmem:[%s10933_s2 + $0x1e0] sm:$0xff] }
 0x34b   :  { %v5375_v26 = vpop.eup %5374 }
 0x34c   :  { %v1128_v32 = vadd.f32 0.5, %v1127_v33  ;;  %v1135_v30 = vmul.f32 %v5373_v34, %v1124_v35  ;;  %v1132_v25 = vmul.f32 0.5, %v5375_v26  ;;  %v7402_v35 = vld [vmem:[%s10933_s2 + $0x1b8] sm:$0xff]  ;;  %v7408_v33 = vld [vmem:[%s10933_s2 + $0x1a0] sm:$0xff]  ;;  %v7420_v34 = vld [vmem:[%s10933_s2 + $0x188] sm:$0xff] }
 0x34d   :  { %v7450_v26 = vld [vmem:[%s10933_s2 + $0x178] sm:$0xff] }
 0x34e   :  { %v1134_v29 = vmul.f32 %v1128_v32, %v7061_v3  ;;  %v1133_v28 = vadd.f32 0.5, %v1132_v25  ;;  %v7414_v32 = vld [vmem:[%s10933_s2 + $0x1b0] sm:$0xff]  ;;  %v7456_v25 = vld [vmem:[%s10933_s2 + $0x160] sm:$0xff] }
 0x34f   :  { %12054 = vst [vmem:[#allocation95_spill] sm:$0xff] %v7456_v25 }
 0x350   :  { %v1136_v2 = vadd.f32 %v1135_v30, %v1134_v29  ;;  %v7432_v29 = vld [vmem:[%s10933_s2 + $0x180] sm:$0xff]  ;;  %v7438_v30 = vld [vmem:[%s10933_s2 + $0x190] sm:$0xff] }
 0x352   :  { %5376 = vtanh.f32 %v1136_v2  ;;  %v7350_v27 = vsel %vm1146_vm2, %v1136_v2, %v7061_v3  ;;  %v7366_v3 = vld [vmem:[%s10933_s2 + $0x1f0] sm:$0xff]  ;;  %v7444_v2 = vld [vmem:[%s10933_s2 + $0x168] sm:$0xff] }
 0x35f   :  { %v5377_v4 = vpop.eup %5376 }
 0x360   :  { %v1138_v5 = vmul.f32 %v5377_v4, %v1133_v28  ;;  %v7462_v28 = vld [vmem:[%s10933_s2 + $0x170] sm:$0xff]  ;;  %v7468_v4 = vld [vmem:[%s10933_s2 + $0x148] sm:$0xff] }
 0x361   :  { %12055 = vst [vmem:[#allocation97_spill] sm:$0xff] %v7462_v28  ;;  %12056 = vst [vmem:[#allocation46_spill] sm:$0xff] %v7468_v4 }
 0x362   :  { %v7353_v23 = vsel %vm1146_vm2, %v1138_v5, %v7064_v9  ;;  %v7372_v9 = vld [vmem:[%s10933_s2 + $0x1c8] sm:$0xff]  ;;  %v7474_v5 = vld [vmem:[%s10933_s2 + $0x158] sm:$0xff] }
 0x363   :  { %1217 = vmatmul.mubr.f32.vlgmr.msra.gmra.mxu0 %v7353_v23  ;;  %1288 = vmatmul.mubr.f32.vlgmr.msra.gmra.mxu1 %v7353_v23  ;;  %12057 = vst [vmem:[#allocation47_spill] sm:$0xff] %v7474_v5 }
 0x364   :  { %1295 = vmatpush1.msra.mxu0 %v7360_v24  ;;  %1366 = vmatpush1.msra.mxu1 %v7366_v3 }
 0x365   :  { %1296 = vmatprep.subr.mxu0 %v7372_v9  ;;  %1367 = vmatprep.subr.mxu1 %v7378_v6 }
 0x366   :  { %1297 = vmatpush1.msra.mxu0 %v7384_v39  ;;  %1368 = vmatpush1.msra.mxu1 %v7390_v55 }
 0x367   :  { %1298 = vmatprep.subr.mxu0 %v7396_v52  ;;  %1369 = vmatprep.subr.mxu1 %v7402_v35 }
 0x368   :  { %1299 = vmatpush1.msra.mxu0 %v7408_v33  ;;  %1370 = vmatpush1.msra.mxu1 %v7414_v32 }
 0x369   :  { %1300 = vmatprep.subr.mxu0 %v7420_v34  ;;  %1371 = vmatprep.subr.mxu1 %v7426_v31 }
 0x36a   :  { %1301 = vmatpush1.msra.mxu0 %v7432_v29  ;;  %1372 = vmatpush1.msra.mxu1 %v7438_v30 }
 0x36b   :  { %1302 = vmatprep.subr.mxu0 %v7444_v2  ;;  %1373 = vmatprep.subr.mxu1 %v7450_v26 }
 0x36c   :  { %1303 = vmatpush1.msra.mxu0 %v7456_v25  ;;  %1374 = vmatpush1.msra.mxu1 %v7462_v28  ;;  %v7480_v25 = vld [vmem:[%s10933_s2 + $0x140] sm:$0xff]  ;;  %v7486_v28 = vld [vmem:[%s10933_s2 + $0x150] sm:$0xff] }
 0x36d   :  { %1304 = vmatprep.subr.mxu0 %v7468_v4  ;;  %1375 = vmatprep.subr.mxu1 %v7474_v5  ;;  %12058 = vst [vmem:[#allocation48_spill] sm:$0xff] %v7480_v25  ;;  %12059 = vst [vmem:[#allocation49_spill] sm:$0xff] %v7486_v28  ;;  %v7492_v4 = vld [vmem:[%s10933_s2 + $0x128] sm:$0xff]  ;;  %v7498_v5 = vld [vmem:[%s10933_s2 + $0x138] sm:$0xff] }
 0x36e   :  { %1305 = vmatpush1.msra.mxu0 %v7480_v25  ;;  %1376 = vmatpush1.msra.mxu1 %v7486_v28  ;;  %12060 = vst [vmem:[#allocation50_spill] sm:$0xff] %v7492_v4  ;;  %12061 = vst [vmem:[#allocation51_spill] sm:$0xff] %v7498_v5  ;;  %v7504_v25 = vld [vmem:[%s10933_s2 + $0x120] sm:$0xff]  ;;  %v7510_v28 = vld [vmem:[%s10933_s2 + $0x130] sm:$0xff] }
 0x36f   :  { %1306 = vmatprep.subr.mxu0 %v7492_v4  ;;  %1377 = vmatprep.subr.mxu1 %v7498_v5  ;;  %12062 = vst [vmem:[#allocation52_spill] sm:$0xff] %v7504_v25  ;;  %12063 = vst [vmem:[#allocation53_spill] sm:$0xff] %v7510_v28  ;;  %v7516_v4 = vld [vmem:[%s10933_s2 + $0x108] sm:$0xff]  ;;  %v7522_v5 = vld [vmem:[%s10933_s2 + $0x118] sm:$0xff] }
 0x370   :  { %1307 = vmatpush1.msra.mxu0 %v7504_v25  ;;  %1378 = vmatpush1.msra.mxu1 %v7510_v28  ;;  %12064 = vst [vmem:[#allocation54_spill] sm:$0xff] %v7516_v4  ;;  %12065 = vst [vmem:[#allocation55_spill] sm:$0xff] %v7522_v5  ;;  %v7528_v25 = vld [vmem:[%s10933_s2 + $0x100] sm:$0xff]  ;;  %v7534_v28 = vld [vmem:[%s10933_s2 + $0x110] sm:$0xff] }
 0x371   :  { %1308 = vmatprep.subr.mxu0 %v7516_v4  ;;  %1379 = vmatprep.subr.mxu1 %v7522_v5  ;;  %12066 = vst [vmem:[#allocation56_spill] sm:$0xff] %v7528_v25  ;;  %12067 = vst [vmem:[#allocation57_spill] sm:$0xff] %v7534_v28  ;;  %v7540_v4 = vld [vmem:[%s10933_s2 + $0xe8] sm:$0xff]  ;;  %v7546_v5 = vld [vmem:[%s10933_s2 + $0xf8] sm:$0xff] }
 0x372   :  { %1309 = vmatpush1.msra.mxu0 %v7528_v25  ;;  %1380 = vmatpush1.msra.mxu1 %v7534_v28  ;;  %12068 = vst [vmem:[#allocation58_spill] sm:$0xff] %v7540_v4  ;;  %12069 = vst [vmem:[#allocation59_spill] sm:$0xff] %v7546_v5  ;;  %v7552_v25 = vld [vmem:[%s10933_s2 + $0xe0] sm:$0xff]  ;;  %v7558_v28 = vld [vmem:[%s10933_s2 + $0xf0] sm:$0xff] }
 0x373   :  { %1310 = vmatprep.subr.mxu0 %v7540_v4  ;;  %1381 = vmatprep.subr.mxu1 %v7546_v5  ;;  %12070 = vst [vmem:[#allocation60_spill] sm:$0xff] %v7552_v25  ;;  %12071 = vst [vmem:[#allocation61_spill] sm:$0xff] %v7558_v28  ;;  %v7564_v4 = vld [vmem:[%s10933_s2 + $0xc8] sm:$0xff]  ;;  %v7570_v5 = vld [vmem:[%s10933_s2 + $0xd8] sm:$0xff] }
 0x374   :  { %1311 = vmatpush1.msra.mxu0 %v7552_v25  ;;  %1382 = vmatpush1.msra.mxu1 %v7558_v28  ;;  %12072 = vst [vmem:[#allocation62_spill] sm:$0xff] %v7564_v4  ;;  %12073 = vst [vmem:[#allocation63_spill] sm:$0xff] %v7570_v5  ;;  %v7576_v25 = vld [vmem:[%s10933_s2 + $0xc0] sm:$0xff]  ;;  %v7582_v28 = vld [vmem:[%s10933_s2 + $0xd0] sm:$0xff] }
 0x375   :  { %1312 = vmatprep.subr.mxu0 %v7564_v4  ;;  %1383 = vmatprep.subr.mxu1 %v7570_v5  ;;  %12074 = vst [vmem:[#allocation64_spill] sm:$0xff] %v7576_v25  ;;  %12075 = vst [vmem:[#allocation65_spill] sm:$0xff] %v7582_v28  ;;  %v7588_v4 = vld [vmem:[%s10933_s2 + $0xa8] sm:$0xff]  ;;  %v7594_v5 = vld [vmem:[%s10933_s2 + $0xb8] sm:$0xff] }
 0x376   :  { %1313 = vmatpush1.msra.mxu0 %v7576_v25  ;;  %1384 = vmatpush1.msra.mxu1 %v7582_v28  ;;  %12076 = vst [vmem:[#allocation66_spill] sm:$0xff] %v7588_v4  ;;  %12077 = vst [vmem:[#allocation67_spill] sm:$0xff] %v7594_v5  ;;  %v7600_v25 = vld [vmem:[%s10933_s2 + $0xa0] sm:$0xff]  ;;  %v7606_v28 = vld [vmem:[%s10933_s2 + $0xb0] sm:$0xff] }
 0x377   :  { %1314 = vmatprep.subr.mxu0 %v7588_v4  ;;  %1385 = vmatprep.subr.mxu1 %v7594_v5  ;;  %12078 = vst [vmem:[#allocation68_spill] sm:$0xff] %v7600_v25  ;;  %12079 = vst [vmem:[#allocation69_spill] sm:$0xff] %v7606_v28  ;;  %v7612_v4 = vld [vmem:[%s10933_s2 + $0x88] sm:$0xff]  ;;  %v7618_v5 = vld [vmem:[%s10933_s2 + $0x98] sm:$0xff] }
 0x378   :  { %1315 = vmatpush1.msra.mxu0 %v7600_v25  ;;  %1386 = vmatpush1.msra.mxu1 %v7606_v28  ;;  %12080 = vst [vmem:[#allocation70_spill] sm:$0xff] %v7612_v4  ;;  %12081 = vst [vmem:[#allocation71_spill] sm:$0xff] %v7618_v5  ;;  %v7624_v25 = vld [vmem:[%s10933_s2 + $0x80] sm:$0xff]  ;;  %v7630_v28 = vld [vmem:[%s10933_s2 + $0x90] sm:$0xff] }
 0x379   :  { %1316 = vmatprep.subr.mxu0 %v7612_v4  ;;  %1387 = vmatprep.subr.mxu1 %v7618_v5  ;;  %12082 = vst [vmem:[#allocation72_spill] sm:$0xff] %v7624_v25  ;;  %12083 = vst [vmem:[#allocation73_spill] sm:$0xff] %v7630_v28  ;;  %v7636_v4 = vld [vmem:[%s10933_s2 + $0x68] sm:$0xff]  ;;  %v7642_v5 = vld [vmem:[%s10933_s2 + $0x78] sm:$0xff] }
 0x37a   :  { %1317 = vmatpush1.msra.mxu0 %v7624_v25  ;;  %1388 = vmatpush1.msra.mxu1 %v7630_v28  ;;  %12084 = vst [vmem:[#allocation74_spill] sm:$0xff] %v7636_v4  ;;  %12085 = vst [vmem:[#allocation75_spill] sm:$0xff] %v7642_v5  ;;  %v7648_v25 = vld [vmem:[%s10933_s2 + $0x60] sm:$0xff]  ;;  %v7654_v28 = vld [vmem:[%s10933_s2 + $0x70] sm:$0xff] }
 0x37b   :  { %1318 = vmatprep.subr.mxu0 %v7636_v4  ;;  %1389 = vmatprep.subr.mxu1 %v7642_v5  ;;  %12086 = vst [vmem:[#allocation76_spill] sm:$0xff] %v7648_v25  ;;  %12087 = vst [vmem:[#allocation77_spill] sm:$0xff] %v7654_v28  ;;  %v7660_v4 = vld [vmem:[%s10933_s2 + $0x48] sm:$0xff]  ;;  %v7666_v5 = vld [vmem:[%s10933_s2 + $0x58] sm:$0xff] }
 0x37c   :  { %1319 = vmatpush1.msra.mxu0 %v7648_v25  ;;  %1390 = vmatpush1.msra.mxu1 %v7654_v28  ;;  %12088 = vst [vmem:[#allocation78_spill] sm:$0xff] %v7660_v4  ;;  %12089 = vst [vmem:[#allocation79_spill] sm:$0xff] %v7666_v5  ;;  %v7672_v25 = vld [vmem:[%s10933_s2 + $0x40] sm:$0xff]  ;;  %v7678_v28 = vld [vmem:[%s10933_s2 + $0x50] sm:$0xff] }
 0x37d   :  { %1320 = vmatprep.subr.mxu0 %v7660_v4  ;;  %1391 = vmatprep.subr.mxu1 %v7666_v5  ;;  %12090 = vst [vmem:[#allocation80_spill] sm:$0xff] %v7672_v25  ;;  %12091 = vst [vmem:[#allocation81_spill] sm:$0xff] %v7678_v28  ;;  %v7684_v4 = vld [vmem:[%s10933_s2 + $0x28] sm:$0xff]  ;;  %v7690_v5 = vld [vmem:[%s10933_s2 + $0x38] sm:$0xff] }
 0x37e   :  { %1321 = vmatpush1.msra.mxu0 %v7672_v25  ;;  %1392 = vmatpush1.msra.mxu1 %v7678_v28  ;;  %12092 = vst [vmem:[#allocation82_spill] sm:$0xff] %v7684_v4  ;;  %12093 = vst [vmem:[#allocation83_spill] sm:$0xff] %v7690_v5  ;;  %v7696_v25 = vld [vmem:[%s10933_s2 + $0x20] sm:$0xff]  ;;  %v7702_v28 = vld [vmem:[%s10933_s2 + $0x30] sm:$0xff] }
 0x37f   :  { %1322 = vmatprep.subr.mxu0 %v7684_v4  ;;  %1393 = vmatprep.subr.mxu1 %v7690_v5  ;;  %12094 = vst [vmem:[#allocation86_spill] sm:$0xff] %v7696_v25  ;;  %12095 = vst [vmem:[#allocation87_spill] sm:$0xff] %v7702_v28  ;;  %v1151_v4 = vunpack.c.h.bf16 %v7123_v7  ;;  %v7709_v5 = vld [vmem:[%s10933_s2 + $0x8] sm:$0xff]  ;;  %v7728_v7 = vld [vmem:[%s10933_s2 + $0x10] sm:$0xff] }
 0x380   :  { %1323 = vmatpush1.msra.mxu0 %v7696_v25  ;;  %1394 = vmatpush1.msra.mxu1 %v7702_v28  ;;  %v7715_v25 = vld [vmem:[%s10933_s2 + $0x18] sm:$0xff]  ;;  %v7721_v28 = vld [vmem:[%s10933_s2] sm:$0xff]  ;;  %12096 = vst [vmem:[#allocation98_spill] sm:$0xff] %v7728_v7 }
 0x381   :  { %1324 = vmatprep.subr.mxu0 %v7709_v5  ;;  %1395 = vmatprep.subr.mxu1 %v7715_v25 }
 0x382   :  { %1325 = vmatpush1.msra.mxu0 %v7721_v28  ;;  %1358 = vmatprep.mubr.f32.mxu0 %v11800_v63 }
 0x383   :  { %1396 = vmatpush1.msra.mxu1 %v7728_v7  ;;  %1429 = vmatprep.mubr.f32.mxu1 %v11800_v63 }
 0x384   :  { %1359 = vmatmul.mubr.f32.vlgmr.msra.gmra.mxu0 %v1151_v4  ;;  %1430 = vmatmul.mubr.f32.vlgmr.msra.gmra.mxu1 %v1151_v4  ;;  %v12097_v4 = vld [vmem:[#allocation9_spill] sm:$0xff] }
 0x385   :  { %1471 = vmatprep.subr.mxu0 %v7138_v0  ;;  %1542 = vmatprep.subr.mxu1 %v7141_v61 }
 0x386   :  { %1472 = vmatpush1.msra.mxu0 %v7144_v62  ;;  %1543 = vmatpush1.msra.mxu1 %v7147_v1 }
 0x387   :  { %1473 = vmatprep.subr.mxu0 %v7150_v57  ;;  %1544 = vmatprep.subr.mxu1 %v7153_v60 }
 0x388   :  { %1474 = vmatpush1.msra.mxu0 %v7156_v41  ;;  %1545 = vmatpush1.msra.mxu1 %v7159_v38 }
 0x389   :  { %1475 = vmatprep.subr.mxu0 %v7162_v42  ;;  %1546 = vmatprep.subr.mxu1 %v7165_v50 }
 0x38a   :  { %1476 = vmatpush1.msra.mxu0 %v7168_v36  ;;  %1547 = vmatpush1.msra.mxu1 %v7171_v47 }
 0x38b   :  { %1477 = vmatprep.subr.mxu0 %v7174_v59  ;;  %1548 = vmatprep.subr.mxu1 %v7177_v46 }
 0x38c   :  { %1478 = vmatpush1.msra.mxu0 %v7180_v8  ;;  %1549 = vmatpush1.msra.mxu1 %v7183_v37 }
 0x38d   :  { %1479 = vmatprep.subr.mxu0 %v7186_v58  ;;  %1550 = vmatprep.subr.mxu1 %v7189_v10 }
 0x38e   :  { %1480 = vmatpush1.msra.mxu0 %v7192_v11  ;;  %1551 = vmatpush1.msra.mxu1 %v7195_v45 }
 0x38f   :  { %1481 = vmatprep.subr.mxu0 %v7198_v43  ;;  %1552 = vmatprep.subr.mxu1 %v7201_v51 }
 0x390   :  { %1482 = vmatpush1.msra.mxu0 %v7204_v56  ;;  %1553 = vmatpush1.msra.mxu1 %v7207_v44 }
 0x391   :  { %1483 = vmatprep.subr.mxu0 %v7210_v49  ;;  %1554 = vmatprep.subr.mxu1 %v7213_v48 }
 0x392   :  { %1484 = vmatpush1.msra.mxu0 %v7216_v12  ;;  %1555 = vmatpush1.msra.mxu1 %v7219_v13  ;;  %v12098_v12 = vld [vmem:[#allocation10_spill] sm:$0xff]  ;;  %v12099_v13 = vld [vmem:[#allocation11_spill] sm:$0xff] }
 0x393   :  { %1485 = vmatprep.subr.mxu0 %v7222_v14  ;;  %1556 = vmatprep.subr.mxu1 %v7225_v15  ;;  %v12100_v14 = vld [vmem:[#allocation12_spill] sm:$0xff]  ;;  %v12101_v15 = vld [vmem:[#allocation13_spill] sm:$0xff] }
 0x394   :  { %1486 = vmatpush1.msra.mxu0 %v7228_v16  ;;  %1557 = vmatpush1.msra.mxu1 %v7231_v17  ;;  %v12102_v16 = vld [vmem:[#allocation14_spill] sm:$0xff]  ;;  %v12103_v17 = vld [vmem:[#allocation15_spill] sm:$0xff] }
 0x395   :  { %1487 = vmatprep.subr.mxu0 %v7234_v18  ;;  %1558 = vmatprep.subr.mxu1 %v7237_v19  ;;  %v12104_v18 = vld [vmem:[#allocation16_spill] sm:$0xff]  ;;  %v12105_v19 = vld [vmem:[#allocation17_spill] sm:$0xff] }
 0x396   :  { %1488 = vmatpush1.msra.mxu0 %v7240_v21  ;;  %1559 = vmatpush1.msra.mxu1 %v7243_v22  ;;  %v12106_v21 = vld [vmem:[#allocation18_spill] sm:$0xff]  ;;  %v12107_v22 = vld [vmem:[#allocation19_spill] sm:$0xff] }
 0x397   :  { %1489 = vmatprep.subr.mxu0 %v12097_v4  ;;  %1560 = vmatprep.subr.mxu1 %v12098_v12  ;;  %v12108_v4 = vld [vmem:[#allocation20_spill] sm:$0xff]  ;;  %v12109_v12 = vld [vmem:[#allocation21_spill] sm:$0xff] }
 0x398   :  { %1490 = vmatpush1.msra.mxu0 %v12099_v13  ;;  %1561 = vmatpush1.msra.mxu1 %v12100_v14  ;;  %v12110_v13 = vld [vmem:[#allocation22_spill] sm:$0xff]  ;;  %v12111_v14 = vld [vmem:[#allocation23_spill] sm:$0xff] }
 0x399   :  { %1491 = vmatprep.subr.mxu0 %v12101_v15  ;;  %1562 = vmatprep.subr.mxu1 %v12102_v16  ;;  %v12112_v15 = vld [vmem:[#allocation24_spill] sm:$0xff]  ;;  %v12113_v16 = vld [vmem:[#allocation25_spill] sm:$0xff] }
 0x39a   :  { %1492 = vmatpush1.msra.mxu0 %v12103_v17  ;;  %1563 = vmatpush1.msra.mxu1 %v12104_v18  ;;  %v12114_v17 = vld [vmem:[#allocation26_spill] sm:$0xff]  ;;  %v12115_v18 = vld [vmem:[#allocation27_spill] sm:$0xff] }
 0x39b   :  { %1493 = vmatprep.subr.mxu0 %v12105_v19  ;;  %1564 = vmatprep.subr.mxu1 %v12106_v21  ;;  %v12116_v19 = vld [vmem:[#allocation28_spill] sm:$0xff]  ;;  %v12117_v21 = vld [vmem:[#allocation29_spill] sm:$0xff] }
 0x39c   :  { %1494 = vmatpush1.msra.mxu0 %v12107_v22  ;;  %1565 = vmatpush1.msra.mxu1 %v12108_v4  ;;  %v12118_v22 = vld [vmem:[#allocation30_spill] sm:$0xff]  ;;  %v12119_v4 = vld [vmem:[#allocation31_spill] sm:$0xff] }
 0x39d   :  { %1495 = vmatprep.subr.mxu0 %v12109_v12  ;;  %1566 = vmatprep.subr.mxu1 %v12110_v13  ;;  %v12120_v12 = vld [vmem:[#allocation32_spill] sm:$0xff]  ;;  %v12121_v13 = vld [vmem:[#allocation33_spill] sm:$0xff] }
 0x39e   :  { %1496 = vmatpush1.msra.mxu0 %v12111_v14  ;;  %1567 = vmatpush1.msra.mxu1 %v12112_v15  ;;  %v12122_v14 = vld [vmem:[#allocation34_spill] sm:$0xff]  ;;  %v12123_v15 = vld [vmem:[#allocation35_spill] sm:$0xff] }
 0x39f   :  { %1497 = vmatprep.subr.mxu0 %v12113_v16  ;;  %1568 = vmatprep.subr.mxu1 %v12114_v17  ;;  %v12124_v16 = vld [vmem:[#allocation36_spill] sm:$0xff] }
 0x3a0   :  { %1498 = vmatpush1.msra.mxu0 %v12115_v18  ;;  %1569 = vmatpush1.msra.mxu1 %v12116_v19  ;;  %v12125_v19 = vld [vmem:[#allocation37_spill] sm:$0xff] }
 0x3a1   :  { %1499 = vmatprep.subr.mxu0 %v12117_v21  ;;  %1570 = vmatprep.subr.mxu1 %v12118_v22  ;;  %v12126_v21 = vld [vmem:[#allocation38_spill] sm:$0xff] }
 0x3a2   :  { %1500 = vmatpush1.msra.mxu0 %v12119_v4  ;;  %1571 = vmatpush1.msra.mxu1 %v12120_v12 }
 0x3a3   :  { %1501 = vmatprep.subr.mxu0 %v12121_v13  ;;  %1572 = vmatprep.subr.mxu1 %v12122_v14 }
 0x3a4   :  { %1502 = vmatpush1.msra.mxu0 %v12123_v15  ;;  %1573 = vmatpush1.msra.mxu1 %v12124_v16 }
 0x3a5   :  { %1535 = vmatprep.mubr.f32.mxu0 %v11800_v63  ;;  %1606 = vmatprep.mubr.f32.mxu1 %v11800_v63 }
 0x3a6   :  { %1613 = vmatprep.subr.mxu0 %v12125_v19  ;;  %1684 = vmatprep.subr.mxu1 %v12126_v21 }
 0x423   :  { %v1218_v22 = vpop.f32.mrf.mxu0  ;;  %v1289_v4 = vpop.f32.mrf.mxu1 }
 0x425   :  { %v1220_v18 = vpop.f32.mrf.mxu0  ;;  %v1291_v12 = vpop.f32.mrf.mxu1 }
 0x444   :  { %v1360_v17 = vpop.f32.mrf.mxu0  ;;  %v1431_v48 = vpop.f32.mrf.mxu1 }
 0x445   :  { %v1361_v13 = vadd.f32 %v1360_v17, %v1218_v22  ;;  %v1432_v44 = vadd.f32 %v1431_v48, %v1289_v4  ;;  %v12131_v4 = vld [vmem:[#allocation48_spill] sm:$0xff] }
 0x446   :  { %v1362_v14 = vpop.f32.mrf.mxu0  ;;  %v1433_v19 = vpop.f32.mrf.mxu1 }
 0x447   :  { %v1436_v15 = vadd.f32 %v1361_v13, %v6890_v54  ;;  %v1363_v49 = vadd.f32 %v1362_v14, %v1220_v18  ;;  %v1438_v21 = vadd.f32 %v1432_v44, %v6895_v40  ;;  %v1434_v43 = vadd.f32 %v1433_v19, %v1291_v12 }
 0x449   :  { %v1440_v16 = vmul.f32 0.5, %v1436_v15  ;;  %v1437_v56 = vadd.f32 %v1363_v49, %v11964_v20  ;;  %v1439_v45 = vadd.f32 %v1434_v43, %v6899_v53 }
 0x44b   :  { %5378 = vtanh.f32 %v1440_v16  ;;  %v1444_v51 = vmul.f32 0.5, %v1437_v56  ;;  %v1449_v17 = vmul.f32 0.5, %v1439_v45  ;;  %v1464_v16 = vpop.permute.xlu1 %1463 }
 0x44c   :  { %vm1465_vm3 = vcmp.eq.s32.totalorder %v1464_v16, 1  ;;  %v12140_v16 = vld [vmem:[#allocation57_spill] sm:$0xff] }
 0x44d   :  { %5380 = vtanh.f32 %v1444_v51 }
 0x44e   :  { %5382 = vtanh.f32 %v1438_v21  ;;  %v12128_v21 = vld [vmem:[#allocation97_spill] sm:$0xff] }
 0x44f   :  { %5384 = vtanh.f32 %v1449_v17  ;;  %v12132_v17 = vld [vmem:[#allocation49_spill] sm:$0xff] }
 0x458   :  { %v5379_v22 = vpop.eup %5378 }
 0x459   :  { %v1442_v11 = vmul.f32 0.5, %v5379_v22  ;;  %v12133_v22 = vld [vmem:[#allocation50_spill] sm:$0xff] }
 0x45a   :  { %v5381_v10 = vpop.eup %5380 }
 0x45b   :  { %v1443_v13 = vadd.f32 0.5, %v1442_v11  ;;  %v1446_v14 = vmul.f32 0.5, %v5381_v10  ;;  %v5383_v15 = vpop.eup %5382  ;;  %v12127_v11 = vld [vmem:[#allocation95_spill] sm:$0xff] }
 0x45c   :  { %v5385_v43 = vpop.eup %5384 }
 0x45d   :  { %v1447_v48 = vadd.f32 0.5, %v1446_v14  ;;  %v1454_v56 = vmul.f32 %v5383_v15, %v1443_v13  ;;  %v1451_v45 = vmul.f32 0.5, %v5385_v43  ;;  %v12134_v13 = vld [vmem:[#allocation51_spill] sm:$0xff]  ;;  %v12135_v14 = vld [vmem:[#allocation52_spill] sm:$0xff]  ;;  %v12137_v15 = vld [vmem:[#allocation54_spill] sm:$0xff] }
 0x45e   :  { %v12142_v43 = vld [vmem:[#allocation59_spill] sm:$0xff] }
 0x45f   :  { %v1453_v49 = vmul.f32 %v1447_v48, %v7350_v27  ;;  %v1452_v44 = vadd.f32 0.5, %v1451_v45  ;;  %v12136_v48 = vld [vmem:[#allocation53_spill] sm:$0xff]  ;;  %v12143_v45 = vld [vmem:[#allocation60_spill] sm:$0xff] }
 0x461   :  { %v1455_v18 = vadd.f32 %v1454_v56, %v1453_v49  ;;  %v12138_v49 = vld [vmem:[#allocation55_spill] sm:$0xff]  ;;  %v12139_v56 = vld [vmem:[#allocation56_spill] sm:$0xff] }
 0x463   :  { %5386 = vtanh.f32 %v1455_v18  ;;  %v7806_v51 = vsel %vm1465_vm3, %v1455_v18, %v7350_v27  ;;  %v12129_v27 = vld [vmem:[#allocation46_spill] sm:$0xff] }
 0x464   :  { %v12141_v18 = vld [vmem:[#allocation58_spill] sm:$0xff] }
 0x470   :  { %v5387_v12 = vpop.eup %5386 }
 0x471   :  { %v1457_v19 = vmul.f32 %v5387_v12, %v1452_v44  ;;  %v12144_v44 = vld [vmem:[#allocation61_spill] sm:$0xff]  ;;  %v12145_v12 = vld [vmem:[#allocation62_spill] sm:$0xff] }
 0x473   :  { %v7809_v10 = vsel %vm1465_vm3, %v1457_v19, %v7353_v23  ;;  %v12130_v23 = vld [vmem:[#allocation47_spill] sm:$0xff] }
 0x474   :  { %1536 = vmatmul.mubr.f32.vlgmr.msra.gmra.mxu0 %v7809_v10  ;;  %1607 = vmatmul.mubr.f32.vlgmr.msra.gmra.mxu1 %v7809_v10  ;;  %v12146_v19 = vld [vmem:[#allocation63_spill] sm:$0xff] }
 0x475   :  { %1614 = vmatpush1.msra.mxu0 %v7360_v24  ;;  %1685 = vmatpush1.msra.mxu1 %v7366_v3 }
 0x476   :  { %1615 = vmatprep.subr.mxu0 %v7372_v9  ;;  %1686 = vmatprep.subr.mxu1 %v7378_v6 }
 0x477   :  { %1616 = vmatpush1.msra.mxu0 %v7384_v39  ;;  %1687 = vmatpush1.msra.mxu1 %v7390_v55 }
 0x478   :  { %1617 = vmatprep.subr.mxu0 %v7396_v52  ;;  %1688 = vmatprep.subr.mxu1 %v7402_v35 }
 0x479   :  { %1618 = vmatpush1.msra.mxu0 %v7408_v33  ;;  %1689 = vmatpush1.msra.mxu1 %v7414_v32 }
 0x47a   :  { %1619 = vmatprep.subr.mxu0 %v7420_v34  ;;  %1690 = vmatprep.subr.mxu1 %v7426_v31 }
 0x47b   :  { %1620 = vmatpush1.msra.mxu0 %v7432_v29  ;;  %1691 = vmatpush1.msra.mxu1 %v7438_v30 }
 0x47c   :  { %1621 = vmatprep.subr.mxu0 %v7444_v2  ;;  %1692 = vmatprep.subr.mxu1 %v7450_v26 }
 0x47d   :  { %1622 = vmatpush1.msra.mxu0 %v12127_v11  ;;  %1693 = vmatpush1.msra.mxu1 %v12128_v21 }
 0x47e   :  { %1623 = vmatprep.subr.mxu0 %v12129_v27  ;;  %1694 = vmatprep.subr.mxu1 %v12130_v23 }
 0x47f   :  { %1624 = vmatpush1.msra.mxu0 %v12131_v4  ;;  %1695 = vmatpush1.msra.mxu1 %v12132_v17 }
 0x480   :  { %1625 = vmatprep.subr.mxu0 %v12133_v22  ;;  %1696 = vmatprep.subr.mxu1 %v12134_v13 }
 0x481   :  { %1626 = vmatpush1.msra.mxu0 %v12135_v14  ;;  %1697 = vmatpush1.msra.mxu1 %v12136_v48  ;;  %v12147_v48 = vld [vmem:[#allocation64_spill] sm:$0xff] }
 0x482   :  { %1627 = vmatprep.subr.mxu0 %v12137_v15  ;;  %1698 = vmatprep.subr.mxu1 %v12138_v49  ;;  %v12148_v15 = vld [vmem:[#allocation65_spill] sm:$0xff]  ;;  %v12149_v49 = vld [vmem:[#allocation66_spill] sm:$0xff] }
 0x483   :  { %1628 = vmatpush1.msra.mxu0 %v12139_v56  ;;  %1699 = vmatpush1.msra.mxu1 %v12140_v16  ;;  %v12150_v56 = vld [vmem:[#allocation67_spill] sm:$0xff]  ;;  %v12151_v16 = vld [vmem:[#allocation68_spill] sm:$0xff] }
 0x484   :  { %1629 = vmatprep.subr.mxu0 %v12141_v18  ;;  %1700 = vmatprep.subr.mxu1 %v12142_v43  ;;  %v12152_v18 = vld [vmem:[#allocation69_spill] sm:$0xff]  ;;  %v12153_v43 = vld [vmem:[#allocation70_spill] sm:$0xff] }
 0x485   :  { %1630 = vmatpush1.msra.mxu0 %v12143_v45  ;;  %1701 = vmatpush1.msra.mxu1 %v12144_v44  ;;  %v12154_v45 = vld [vmem:[#allocation71_spill] sm:$0xff]  ;;  %v12155_v44 = vld [vmem:[#allocation72_spill] sm:$0xff] }
 0x486   :  { %1631 = vmatprep.subr.mxu0 %v12145_v12  ;;  %1702 = vmatprep.subr.mxu1 %v12146_v19  ;;  %v12156_v12 = vld [vmem:[#allocation73_spill] sm:$0xff]  ;;  %v12157_v19 = vld [vmem:[#allocation74_spill] sm:$0xff] }
 0x487   :  { %1632 = vmatpush1.msra.mxu0 %v12147_v48  ;;  %1703 = vmatpush1.msra.mxu1 %v12148_v15  ;;  %v12158_v48 = vld [vmem:[#allocation75_spill] sm:$0xff]  ;;  %v12159_v15 = vld [vmem:[#allocation76_spill] sm:$0xff] }
 0x488   :  { %1633 = vmatprep.subr.mxu0 %v12149_v49  ;;  %1704 = vmatprep.subr.mxu1 %v12150_v56  ;;  %v12160_v49 = vld [vmem:[#allocation77_spill] sm:$0xff]  ;;  %v12161_v56 = vld [vmem:[#allocation78_spill] sm:$0xff] }
 0x489   :  { %1634 = vmatpush1.msra.mxu0 %v12151_v16  ;;  %1705 = vmatpush1.msra.mxu1 %v12152_v18  ;;  %v12162_v16 = vld [vmem:[#allocation79_spill] sm:$0xff] }
 0x48a   :  { %1635 = vmatprep.subr.mxu0 %v12153_v43  ;;  %1706 = vmatprep.subr.mxu1 %v12154_v45  ;;  %v7868_v45 = vld [vmem:[%s10932_s1 + $0x10] sm:$0xff]  }
 0x48b   :  { %1636 = vmatpush1.msra.mxu0 %v12155_v44  ;;  %1707 = vmatpush1.msra.mxu1 %v12156_v12  ;;  %v12163_v44 = vld [vmem:[#allocation80_spill] sm:$0xff]  ;;  %v12164_v12 = vld [vmem:[#allocation81_spill] sm:$0xff] }
 0x48c   :  { %1637 = vmatprep.subr.mxu0 %v12157_v19  ;;  %1708 = vmatprep.subr.mxu1 %v12158_v48  ;;  %v12165_v19 = vld [vmem:[#allocation82_spill] sm:$0xff]  ;;  %v12166_v48 = vld [vmem:[#allocation83_spill] sm:$0xff] }
 0x48d   :  { %1638 = vmatpush1.msra.mxu0 %v12159_v15  ;;  %1709 = vmatpush1.msra.mxu1 %v12160_v49  ;;  %v12167_v15 = vld [vmem:[#allocation86_spill] sm:$0xff]  ;;  %v12168_v49 = vld [vmem:[#allocation87_spill] sm:$0xff] }
 0x48e   :  { %1639 = vmatprep.subr.mxu0 %v12161_v56  ;;  %1710 = vmatprep.subr.mxu1 %v12162_v16  ;;  %v1470_v56 = vunpack.c.l.bf16 %v7868_v45 }
 0x48f   :  { %1640 = vmatpush1.msra.mxu0 %v12163_v44  ;;  %1711 = vmatpush1.msra.mxu1 %v12164_v12 }
 0x490   :  { %1641 = vmatprep.subr.mxu0 %v12165_v19  ;;  %1712 = vmatprep.subr.mxu1 %v12166_v48 }
 0x491   :  { %1642 = vmatpush1.msra.mxu0 %v12167_v15  ;;  %1713 = vmatpush1.msra.mxu1 %v12168_v49 }
 0x492   :  { %1643 = vmatprep.subr.mxu0 %v7709_v5  ;;  %1714 = vmatprep.subr.mxu1 %v7715_v25 }
 0x493   :  { %1644 = vmatpush1.msra.mxu0 %v7721_v28  ;;  %1677 = vmatprep.mubr.f32.mxu0 %v11800_v63 }
 0x494   :  { %1715 = vmatpush1.msra.mxu1 %v7728_v7  ;;  %1748 = vmatprep.mubr.f32.mxu1 %v11800_v63 }
 0x495   :  { %1678 = vmatmul.mubr.f32.vlgmr.msra.gmra.mxu0 %v1470_v56  ;;  %1749 = vmatmul.mubr.f32.vlgmr.msra.gmra.mxu1 %v1470_v56  ;;  %v12186_v56 = vld [vmem:[#allocation7_spill] sm:$0xff] }
 0x496   :  { %1790 = vmatprep.subr.mxu0 %v7138_v0  ;;  %1861 = vmatprep.subr.mxu1 %v7141_v61  ;;  %v12169_v0 = vld [vmem:[#allocation39_spill] sm:$0xff]  ;;  %v12170_v61 = vld [vmem:[#allocation40_spill] sm:$0xff] }
 0x497   :  { %1791 = vmatpush1.msra.mxu0 %v7144_v62  ;;  %1862 = vmatpush1.msra.mxu1 %v7147_v1  ;;  %v12171_v62 = vld [vmem:[#allocation41_spill] sm:$0xff]  ;;  %v12172_v1 = vld [vmem:[#allocation42_spill] sm:$0xff] }
 0x498   :  { %1792 = vmatprep.subr.mxu0 %v7150_v57  ;;  %1863 = vmatprep.subr.mxu1 %v7153_v60  ;;  %v12173_v57 = vld [vmem:[#allocation43_spill] sm:$0xff]  ;;  %v12174_v60 = vld [vmem:[#allocation44_spill] sm:$0xff] }
 0x499   :  { %1793 = vmatpush1.msra.mxu0 %v7156_v41  ;;  %1864 = vmatpush1.msra.mxu1 %v7159_v38  ;;  %v12175_v41 = vld [vmem:[#allocation45_spill] sm:$0xff]  ;;  %v12176_v38 = vld [vmem:[#allocation84_spill] sm:$0xff] }
 0x49a   :  { %1794 = vmatprep.subr.mxu0 %v7162_v42  ;;  %1865 = vmatprep.subr.mxu1 %v7165_v50  ;;  %v12177_v42 = vld [vmem:[#allocation85_spill] sm:$0xff]  ;;  %v12178_v50 = vld [vmem:[#allocation88_spill] sm:$0xff] }
 0x49b   :  { %1795 = vmatpush1.msra.mxu0 %v7168_v36  ;;  %1866 = vmatpush1.msra.mxu1 %v7171_v47  ;;  %v12179_v36 = vld [vmem:[#allocation89_spill] sm:$0xff]  ;;  %v12180_v47 = vld [vmem:[#allocation90_spill] sm:$0xff] }
 0x49c   :  { %1796 = vmatprep.subr.mxu0 %v7174_v59  ;;  %1867 = vmatprep.subr.mxu1 %v7177_v46  ;;  %v12181_v59 = vld [vmem:[#allocation91_spill] sm:$0xff]  ;;  %v12182_v46 = vld [vmem:[#allocation92_spill] sm:$0xff] }
 0x49d   :  { %1797 = vmatpush1.msra.mxu0 %v7180_v8  ;;  %1868 = vmatpush1.msra.mxu1 %v7183_v37  ;;  %v12183_v8 = vld [vmem:[#allocation93_spill] sm:$0xff]  ;;  %v12184_v37 = vld [vmem:[#allocation94_spill] sm:$0xff] }
 0x49e   :  { %1798 = vmatprep.subr.mxu0 %v7186_v58  ;;  %1869 = vmatprep.subr.mxu1 %v12169_v0  ;;  %v12185_v58 = vld [vmem:[#allocation96_spill] sm:$0xff] }
 0x49f   :  { %1799 = vmatpush1.msra.mxu0 %v12170_v61  ;;  %1870 = vmatpush1.msra.mxu1 %v12171_v62  ;;  %v12187_v0 = vld [vmem:[#allocation8_spill] sm:$0xff]  ;;  %v12188_v61 = vld [vmem:[#allocation9_spill] sm:$0xff]  ;;  %v12189_v62 = vld [vmem:[#allocation10_spill] sm:$0xff] }
 0x4a0   :  { %1800 = vmatprep.subr.mxu0 %v12172_v1  ;;  %1871 = vmatprep.subr.mxu1 %v12173_v57  ;;  %v12190_v1 = vld [vmem:[#allocation11_spill] sm:$0xff]  ;;  %v12191_v57 = vld [vmem:[#allocation12_spill] sm:$0xff] }
 0x4a1   :  { %1801 = vmatpush1.msra.mxu0 %v12174_v60  ;;  %1872 = vmatpush1.msra.mxu1 %v12175_v41  ;;  %v12192_v60 = vld [vmem:[#allocation13_spill] sm:$0xff]  ;;  %v12193_v41 = vld [vmem:[#allocation14_spill] sm:$0xff] }
 0x4a2   :  { %1802 = vmatprep.subr.mxu0 %v12176_v38  ;;  %1873 = vmatprep.subr.mxu1 %v12177_v42  ;;  %v12194_v38 = vld [vmem:[#allocation15_spill] sm:$0xff]  ;;  %v12195_v42 = vld [vmem:[#allocation16_spill] sm:$0xff] }
 0x4a3   :  { %1803 = vmatpush1.msra.mxu0 %v12178_v50  ;;  %1874 = vmatpush1.msra.mxu1 %v12179_v36  ;;  %v12196_v50 = vld [vmem:[#allocation17_spill] sm:$0xff]  ;;  %v12197_v36 = vld [vmem:[#allocation18_spill] sm:$0xff] }
 0x4a4   :  { %1804 = vmatprep.subr.mxu0 %v12180_v47  ;;  %1875 = vmatprep.subr.mxu1 %v12181_v59  ;;  %v12198_v47 = vld [vmem:[#allocation19_spill] sm:$0xff]  ;;  %v12199_v59 = vld [vmem:[#allocation20_spill] sm:$0xff] }
 0x4a5   :  { %1805 = vmatpush1.msra.mxu0 %v12182_v46  ;;  %1876 = vmatpush1.msra.mxu1 %v12183_v8  ;;  %v12200_v46 = vld [vmem:[#allocation21_spill] sm:$0xff]  ;;  %v12201_v8 = vld [vmem:[#allocation22_spill] sm:$0xff] }
 0x4a6   :  { %1806 = vmatprep.subr.mxu0 %v12184_v37  ;;  %1877 = vmatprep.subr.mxu1 %v12185_v58  ;;  %v12202_v37 = vld [vmem:[#allocation23_spill] sm:$0xff]  ;;  %v12203_v58 = vld [vmem:[#allocation24_spill] sm:$0xff] }
 0x4a7   :  { %1807 = vmatpush1.msra.mxu0 %v12186_v56  ;;  %1878 = vmatpush1.msra.mxu1 %v12187_v0  ;;  %v12204_v56 = vld [vmem:[#allocation25_spill] sm:$0xff]  ;;  %v12205_v0 = vld [vmem:[#allocation26_spill] sm:$0xff] }
 0x4a8   :  { %1808 = vmatprep.subr.mxu0 %v12188_v61  ;;  %1879 = vmatprep.subr.mxu1 %v12189_v62  ;;  %v12206_v61 = vld [vmem:[#allocation27_spill] sm:$0xff]  ;;  %v12207_v62 = vld [vmem:[#allocation28_spill] sm:$0xff] }
 0x4a9   :  { %1809 = vmatpush1.msra.mxu0 %v12190_v1  ;;  %1880 = vmatpush1.msra.mxu1 %v12191_v57  ;;  %v12208_v1 = vld [vmem:[#allocation29_spill] sm:$0xff]  ;;  %v12209_v57 = vld [vmem:[#allocation30_spill] sm:$0xff] }
 0x4aa   :  { %1810 = vmatprep.subr.mxu0 %v12192_v60  ;;  %1881 = vmatprep.subr.mxu1 %v12193_v41  ;;  %v12210_v60 = vld [vmem:[#allocation31_spill] sm:$0xff]  ;;  %v12211_v41 = vld [vmem:[#allocation32_spill] sm:$0xff] }
 0x4ab   :  { %1811 = vmatpush1.msra.mxu0 %v12194_v38  ;;  %1882 = vmatpush1.msra.mxu1 %v12195_v42  ;;  %v12212_v38 = vld [vmem:[#allocation33_spill] sm:$0xff]  ;;  %v12213_v42 = vld [vmem:[#allocation34_spill] sm:$0xff] }
 0x4ac   :  { %1812 = vmatprep.subr.mxu0 %v12196_v50  ;;  %1883 = vmatprep.subr.mxu1 %v12197_v36  ;;  %v12214_v50 = vld [vmem:[#allocation35_spill] sm:$0xff]  ;;  %v12215_v36 = vld [vmem:[#allocation36_spill] sm:$0xff] }
 0x4ad   :  { %1813 = vmatpush1.msra.mxu0 %v12198_v47  ;;  %1884 = vmatpush1.msra.mxu1 %v12199_v59  ;;  %v12216_v47 = vld [vmem:[#allocation37_spill] sm:$0xff]  ;;  %v12217_v59 = vld [vmem:[#allocation38_spill] sm:$0xff] }
 0x4ae   :  { %1814 = vmatprep.subr.mxu0 %v12200_v46  ;;  %1885 = vmatprep.subr.mxu1 %v12201_v8 }
 0x4af   :  { %1815 = vmatpush1.msra.mxu0 %v12202_v37  ;;  %1886 = vmatpush1.msra.mxu1 %v12203_v58 }
 0x4b0   :  { %1816 = vmatprep.subr.mxu0 %v12204_v56  ;;  %1887 = vmatprep.subr.mxu1 %v12205_v0 }
 0x4b1   :  { %1817 = vmatpush1.msra.mxu0 %v12206_v61  ;;  %1888 = vmatpush1.msra.mxu1 %v12207_v62 }
 0x4b2   :  { %1818 = vmatprep.subr.mxu0 %v12208_v1  ;;  %1889 = vmatprep.subr.mxu1 %v12209_v57 }
 0x4b3   :  { %1819 = vmatpush1.msra.mxu0 %v12210_v60  ;;  %1890 = vmatpush1.msra.mxu1 %v12211_v41 }
 0x4b4   :  { %1820 = vmatprep.subr.mxu0 %v12212_v38  ;;  %1891 = vmatprep.subr.mxu1 %v12213_v42 }
 0x4b5   :  { %1821 = vmatpush1.msra.mxu0 %v12214_v50  ;;  %1892 = vmatpush1.msra.mxu1 %v12215_v36 }
 0x4b6   :  { %1854 = vmatprep.mubr.f32.mxu0 %v11800_v63  ;;  %1925 = vmatprep.mubr.f32.mxu1 %v11800_v63 }
 0x4b7   :  { %1932 = vmatprep.subr.mxu0 %v12216_v47  ;;  %2003 = vmatprep.subr.mxu1 %v12217_v59 }
 0x534   :  { %v1537_v46 = vpop.f32.mrf.mxu0  ;;  %v1608_v8 = vpop.f32.mrf.mxu1 }
 0x536   :  { %v1539_v37 = vpop.f32.mrf.mxu0  ;;  %v1610_v58 = vpop.f32.mrf.mxu1 }
 0x555   :  { %v1679_v56 = vpop.f32.mrf.mxu0  ;;  %v1750_v61 = vpop.f32.mrf.mxu1 }
 0x556   :  { %v1680_v0 = vadd.f32 %v1679_v56, %v1537_v46  ;;  %v1751_v41 = vadd.f32 %v1750_v61, %v1608_v8 }
 0x557   :  { %v1681_v62 = vpop.f32.mrf.mxu0  ;;  %v1752_v50 = vpop.f32.mrf.mxu1 }
 0x558   :  { %v1755_v1 = vadd.f32 %v1680_v0, %v6890_v54  ;;  %v1682_v57 = vadd.f32 %v1681_v62, %v1539_v37  ;;  %v1757_v36 = vadd.f32 %v1751_v41, %v6895_v40  ;;  %v1753_v47 = vadd.f32 %v1752_v50, %v1610_v58 }
 0x55a   :  { %v1759_v60 = vmul.f32 0.5, %v1755_v1  ;;  %v1756_v38 = vadd.f32 %v1682_v57, %v11964_v20  ;;  %v1758_v59 = vadd.f32 %v1753_v47, %v6899_v53  ;;  %v1783_v57 = vpop.permute.xlu0 %1782  ;;  %v8071_v47 = vld [vmem:[#allocation4 + $0x180] sm:$0xff] }
 0x55b   :  { %vm1784_vm4 = vcmp.eq.s32.totalorder %v1783_v57, 1  ;;  %v8101_v57 = vld [vmem:[#allocation4 + $0x128] sm:$0xff] }
 0x55c   :  { %5388 = vtanh.f32 %v1759_v60  ;;  %v1763_v42 = vmul.f32 0.5, %v1756_v38  ;;  %v1768_v46 = vmul.f32 0.5, %v1758_v59  ;;  %v8074_v59 = vld [vmem:[#allocation4 + $0x190] sm:$0xff]  ;;  %12250 = vst [vmem:[#allocation50_spill] sm:$0xff] %v8101_v57 }
 0x55e   :  { %5390 = vtanh.f32 %v1763_v42 }
 0x55f   :  { %5392 = vtanh.f32 %v1757_v36 }
 0x560   :  { %5394 = vtanh.f32 %v1768_v46  ;;  %v8077_v46 = vld [vmem:[#allocation4 + $0x168] sm:$0xff] }
 0x569   :  { %v5389_v56 = vpop.eup %5388 }
 0x56a   :  { %v1761_v7 = vmul.f32 0.5, %v5389_v56  ;;  %v8080_v56 = vld [vmem:[#allocation4 + $0x178] sm:$0xff] }
 0x56b   :  { %v5391_v63 = vpop.eup %5390 }
 0x56c   :  { %v1762_v0 = vadd.f32 0.5, %v1761_v7  ;;  %v1765_v37 = vmul.f32 0.5, %v5391_v63  ;;  %v5393_v61 = vpop.eup %5392  ;;  %v12234_v7 = vld [vmem:[#allocation71_spill] sm:$0xff] }
 0x56d   :  { %v5395_v41 = vpop.eup %5394 }
 0x56e   :  { %v1766_v8 = vadd.f32 0.5, %v1765_v37  ;;  %v1773_v1 = vmul.f32 %v5393_v61, %v1762_v0  ;;  %v1770_v38 = vmul.f32 0.5, %v5395_v41  ;;  %v8083_v0 = vld [vmem:[#allocation4 + $0x160] sm:$0xff]  ;;  %v8086_v37 = vld [vmem:[#allocation4 + $0x170] sm:$0xff]  ;;  %v8092_v61 = vld [vmem:[#allocation4 + $0x158] sm:$0xff] }
 0x56f   :  { %12244 = vst [vmem:[#allocation95_spill] sm:$0xff] %v8083_v0  ;;  %12245 = vst [vmem:[#allocation97_spill] sm:$0xff] %v8086_v37  ;;  %v8107_v41 = vld [vmem:[#allocation4 + $0x120] sm:$0xff] }
 0x570   :  { %v1772_v62 = vmul.f32 %v1766_v8, %v7806_v51  ;;  %v1771_v42 = vadd.f32 0.5, %v1770_v38  ;;  %v8089_v8 = vld [vmem:[#allocation4 + $0x148] sm:$0xff]  ;;  %12247 = vst [vmem:[#allocation47_spill] sm:$0xff] %v8092_v61  ;;  %12252 = vst [vmem:[#allocation52_spill] sm:$0xff] %v8107_v41  ;;  %v8110_v38 = vld [vmem:[#allocation4 + $0x130] sm:$0xff] }
 0x571   :  { %12246 = vst [vmem:[#allocation46_spill] sm:$0xff] %v8089_v8  ;;  %12253 = vst [vmem:[#allocation69_spill] sm:$0xff] %v8110_v38 }
 0x572   :  { %v1774_v60 = vadd.f32 %v1773_v1, %v1772_v62  ;;  %v8095_v62 = vld [vmem:[#allocation4 + $0x140] sm:$0xff]  ;;  %v8098_v1 = vld [vmem:[#allocation4 + $0x150] sm:$0xff] }
 0x573   :  { %12248 = vst [vmem:[#allocation48_spill] sm:$0xff] %v8095_v62  ;;  %12249 = vst [vmem:[#allocation49_spill] sm:$0xff] %v8098_v1 }
 0x574   :  { %5396 = vtanh.f32 %v1774_v60  ;;  %v7957_v58 = vsel %vm1784_vm4, %v1774_v60, %v7806_v51  ;;  %v12235_v51 = vld [vmem:[#allocation72_spill] sm:$0xff]  ;;  %v8104_v60 = vld [vmem:[#allocation4 + $0x138] sm:$0xff] }
 0x575   :  { %12251 = vst [vmem:[#allocation51_spill] sm:$0xff] %v8104_v60 }
 0x581   :  { %v5397_v50 = vpop.eup %5396 }
 0x582   :  { %v1776_v36 = vmul.f32 %v5397_v50, %v1771_v42  ;;  %v8113_v42 = vld [vmem:[#allocation4 + $0x108] sm:$0xff]  ;;  %v8116_v50 = vld [vmem:[#allocation4 + $0x118] sm:$0xff] }
 0x583   :  { %12254 = vst [vmem:[#allocation70_spill] sm:$0xff] %v8113_v42  ;;  %12255 = vst [vmem:[#allocation79_spill] sm:$0xff] %v8116_v50 }
 0x584   :  { %v7960_v63 = vsel %vm1784_vm4, %v1776_v36, %v7809_v10  ;;  %v12236_v10 = vld [vmem:[#allocation73_spill] sm:$0xff]  ;;  %v8119_v36 = vld [vmem:[#allocation4 + $0x100] sm:$0xff] }
 0x585   :  { %1855 = vmatmul.mubr.f32.vlgmr.msra.gmra.mxu0 %v7960_v63  ;;  %1926 = vmatmul.mubr.f32.vlgmr.msra.gmra.mxu1 %v7960_v63  ;;  %12256 = vst [vmem:[#allocation80_spill] sm:$0xff] %v8119_v36 }
 0x586   :  { %1933 = vmatpush1.msra.mxu0 %v7360_v24  ;;  %2004 = vmatpush1.msra.mxu1 %v7366_v3  ;;  %v12218_v24 = vld [vmem:[#allocation53_spill] sm:$0xff]  ;;  %v12219_v3 = vld [vmem:[#allocation54_spill] sm:$0xff] }
 0x587   :  { %1934 = vmatprep.subr.mxu0 %v7372_v9  ;;  %2005 = vmatprep.subr.mxu1 %v7378_v6  ;;  %v12220_v9 = vld [vmem:[#allocation55_spill] sm:$0xff]  ;;  %v12221_v6 = vld [vmem:[#allocation56_spill] sm:$0xff] }
 0x588   :  { %1935 = vmatpush1.msra.mxu0 %v7384_v39  ;;  %2006 = vmatpush1.msra.mxu1 %v7390_v55  ;;  %v12222_v39 = vld [vmem:[#allocation57_spill] sm:$0xff]  ;;  %v12223_v55 = vld [vmem:[#allocation58_spill] sm:$0xff] }
 0x589   :  { %1936 = vmatprep.subr.mxu0 %v7396_v52  ;;  %2007 = vmatprep.subr.mxu1 %v7402_v35  ;;  %v12224_v52 = vld [vmem:[#allocation59_spill] sm:$0xff]  ;;  %v12225_v35 = vld [vmem:[#allocation60_spill] sm:$0xff] }
 0x58a   :  { %1937 = vmatpush1.msra.mxu0 %v7408_v33  ;;  %2008 = vmatpush1.msra.mxu1 %v7414_v32  ;;  %v12226_v33 = vld [vmem:[#allocation61_spill] sm:$0xff]  ;;  %v12227_v32 = vld [vmem:[#allocation62_spill] sm:$0xff] }
 0x58b   :  { %1938 = vmatprep.subr.mxu0 %v7420_v34  ;;  %2009 = vmatprep.subr.mxu1 %v7426_v31  ;;  %v12228_v34 = vld [vmem:[#allocation63_spill] sm:$0xff]  ;;  %v12229_v31 = vld [vmem:[#allocation64_spill] sm:$0xff] }
 0x58c   :  { %1939 = vmatpush1.msra.mxu0 %v7432_v29  ;;  %2010 = vmatpush1.msra.mxu1 %v7438_v30  ;;  %v12230_v29 = vld [vmem:[#allocation65_spill] sm:$0xff]  ;;  %v12231_v30 = vld [vmem:[#allocation66_spill] sm:$0xff] }
 0x58d   :  { %1940 = vmatprep.subr.mxu0 %v7444_v2  ;;  %2011 = vmatprep.subr.mxu1 %v7450_v26  ;;  %v12232_v2 = vld [vmem:[#allocation67_spill] sm:$0xff]  ;;  %v12233_v26 = vld [vmem:[#allocation68_spill] sm:$0xff] }
 0x58e   :  { %1941 = vmatpush1.msra.mxu0 %v12127_v11  ;;  %2012 = vmatpush1.msra.mxu1 %v12128_v21  ;;  %v12237_v11 = vld [vmem:[#allocation74_spill] sm:$0xff]  ;;  %v12238_v21 = vld [vmem:[#allocation75_spill] sm:$0xff] }
 0x58f   :  { %1942 = vmatprep.subr.mxu0 %v12129_v27  ;;  %2013 = vmatprep.subr.mxu1 %v12130_v23  ;;  %v12239_v27 = vld [vmem:[#allocation76_spill] sm:$0xff]  ;;  %v12240_v23 = vld [vmem:[#allocation77_spill] sm:$0xff] }
 0x590   :  { %1943 = vmatpush1.msra.mxu0 %v12131_v4  ;;  %2014 = vmatpush1.msra.mxu1 %v12132_v17  ;;  %v12241_v4 = vld [vmem:[#allocation78_spill] sm:$0xff]  ;;  %v1789_v17 = vunpack.c.h.bf16 %v7868_v45  ;;  %v8059_v45 = vld [vmem:[#allocation4 + $0x1a0] sm:$0xff] }
 0x591   :  { %1944 = vmatprep.subr.mxu0 %v12133_v22  ;;  %2015 = vmatprep.subr.mxu1 %v12134_v13  ;;  %v12242_v22 = vmov 0.0   ;;  %v12243_v13 = vld [vmem:[#allocation98_spill] sm:$0xff] }
 0x592   :  { %1945 = vmatpush1.msra.mxu0 %v12135_v14  ;;  %2016 = vmatpush1.msra.mxu1 %v12218_v24  ;;  %v8029_v14 = vld [vmem:[#allocation4 + $0x1e8] sm:$0xff]  ;;  %v8122_v24 = vld [vmem:[#allocation4 + $0x110] sm:$0xff] }
 0x593   :  { %1946 = vmatprep.subr.mxu0 %v12219_v3  ;;  %2017 = vmatprep.subr.mxu1 %v12220_v9  ;;  %12257 = vst [vmem:[#allocation81_spill] sm:$0xff] %v8122_v24  ;;  %v8125_v3 = vld [vmem:[#allocation4 + $0xe8] sm:$0xff]  ;;  %v8128_v9 = vld [vmem:[#allocation4 + $0xf8] sm:$0xff] }
 0x594   :  { %1947 = vmatpush1.msra.mxu0 %v12221_v6  ;;  %2018 = vmatpush1.msra.mxu1 %v12222_v39  ;;  %12258 = vst [vmem:[#allocation82_spill] sm:$0xff] %v8125_v3  ;;  %12259 = vst [vmem:[#allocation83_spill] sm:$0xff] %v8128_v9  ;;  %v8131_v6 = vld [vmem:[#allocation4 + $0xe0] sm:$0xff]  ;;  %v8134_v39 = vld [vmem:[#allocation4 + $0xf0] sm:$0xff] }
 0x595   :  { %1948 = vmatprep.subr.mxu0 %v12223_v55  ;;  %2019 = vmatprep.subr.mxu1 %v12224_v52  ;;  %12260 = vst [vmem:[#allocation86_spill] sm:$0xff] %v8131_v6  ;;  %12261 = vst [vmem:[#allocation87_spill] sm:$0xff] %v8134_v39  ;;  %v8137_v55 = vld [vmem:[#allocation4 + $0xc8] sm:$0xff]  ;;  %v8140_v52 = vld [vmem:[#allocation4 + $0xd8] sm:$0xff] }
 0x596   :  { %1949 = vmatpush1.msra.mxu0 %v12225_v35  ;;  %2020 = vmatpush1.msra.mxu1 %v12226_v33  ;;  %12262 = vst [vmem:[#allocation39_spill] sm:$0xff] %v8137_v55  ;;  %12263 = vst [vmem:[#allocation40_spill] sm:$0xff] %v8140_v52  ;;  %v8143_v35 = vld [vmem:[#allocation4 + $0xc0] sm:$0xff]  ;;  %v8146_v33 = vld [vmem:[#allocation4 + $0xd0] sm:$0xff] }
 0x597   :  { %1950 = vmatprep.subr.mxu0 %v12227_v32  ;;  %2021 = vmatprep.subr.mxu1 %v12228_v34  ;;  %12264 = vst [vmem:[#allocation41_spill] sm:$0xff] %v8143_v35  ;;  %12265 = vst [vmem:[#allocation42_spill] sm:$0xff] %v8146_v33  ;;  %v8149_v32 = vld [vmem:[#allocation4 + $0xa8] sm:$0xff]  ;;  %v8152_v34 = vld [vmem:[#allocation4 + $0xb8] sm:$0xff] }
 0x598   :  { %1951 = vmatpush1.msra.mxu0 %v12229_v31  ;;  %2022 = vmatpush1.msra.mxu1 %v12230_v29  ;;  %12266 = vst [vmem:[#allocation43_spill] sm:$0xff] %v8149_v32  ;;  %12267 = vst [vmem:[#allocation44_spill] sm:$0xff] %v8152_v34  ;;  %v8155_v31 = vld [vmem:[#allocation4 + $0xa0] sm:$0xff]  ;;  %v8158_v29 = vld [vmem:[#allocation4 + $0xb0] sm:$0xff] }
 0x599   :  { %1952 = vmatprep.subr.mxu0 %v12231_v30  ;;  %2023 = vmatprep.subr.mxu1 %v12232_v2  ;;  %12268 = vst [vmem:[#allocation45_spill] sm:$0xff] %v8155_v31  ;;  %12269 = vst [vmem:[#allocation84_spill] sm:$0xff] %v8158_v29  ;;  %v8161_v30 = vld [vmem:[#allocation4 + $0x88] sm:$0xff]  ;;  %v8164_v2 = vld [vmem:[#allocation4 + $0x98] sm:$0xff] }
 0x59a   :  { %1953 = vmatpush1.msra.mxu0 %v12233_v26  ;;  %2024 = vmatpush1.msra.mxu1 %v12152_v18  ;;  %v8053_v18 = vld [vmem:[#allocation4 + $0x1a8] sm:$0xff]  ;;  %12270 = vst [vmem:[#allocation85_spill] sm:$0xff] %v8161_v30  ;;  %12271 = vst [vmem:[#allocation88_spill] sm:$0xff] %v8164_v2  ;;  %v8167_v26 = vld [vmem:[#allocation4 + $0x80] sm:$0xff] }
 0x59b   :  { %1954 = vmatprep.subr.mxu0 %v12153_v43  ;;  %2025 = vmatprep.subr.mxu1 %v12234_v7  ;;  %v8056_v43 = vld [vmem:[#allocation4 + $0x1b8] sm:$0xff]  ;;  %12272 = vst [vmem:[#allocation89_spill] sm:$0xff] %v8167_v26  ;;  %v8170_v7 = vld [vmem:[#allocation4 + $0x90] sm:$0xff] }
 0x59c   :  { %1955 = vmatpush1.msra.mxu0 %v12235_v51  ;;  %2026 = vmatpush1.msra.mxu1 %v12236_v10  ;;  %12273 = vst [vmem:[#allocation90_spill] sm:$0xff] %v8170_v7  ;;  %v8173_v51 = vld [vmem:[#allocation4 + $0x68] sm:$0xff]  ;;  %v8176_v10 = vld [vmem:[#allocation4 + $0x78] sm:$0xff] }
 0x59d   :  { %1956 = vmatprep.subr.mxu0 %v12237_v11  ;;  %2027 = vmatprep.subr.mxu1 %v12238_v21  ;;  %12274 = vst [vmem:[#allocation91_spill] sm:$0xff] %v8173_v51  ;;  %12275 = vst [vmem:[#allocation92_spill] sm:$0xff] %v8176_v10  ;;  %v8179_v11 = vld [vmem:[#allocation4 + $0x60] sm:$0xff]  ;;  %v8182_v21 = vld [vmem:[#allocation4 + $0x70] sm:$0xff] }
 0x59e   :  { %1957 = vmatpush1.msra.mxu0 %v12239_v27  ;;  %2028 = vmatpush1.msra.mxu1 %v12240_v23  ;;  %12276 = vst [vmem:[#allocation93_spill] sm:$0xff] %v8179_v11  ;;  %12277 = vst [vmem:[#allocation94_spill] sm:$0xff] %v8182_v21  ;;  %v8185_v27 = vld [vmem:[#allocation4 + $0x48] sm:$0xff]  ;;  %v8188_v23 = vld [vmem:[#allocation4 + $0x58] sm:$0xff] }
 0x59f   :  { %1958 = vmatprep.subr.mxu0 %v12241_v4  ;;  %2029 = vmatprep.subr.mxu1 %v12162_v16  ;;  %v8050_v16 = vld [vmem:[#allocation4 + $0x1d0] sm:$0xff]  ;;  %12278 = vst [vmem:[#allocation96_spill] sm:$0xff] %v8185_v27  ;;  %12279 = vst [vmem:[#allocation7_spill] sm:$0xff] %v8188_v23  ;;  %v8191_v4 = vld [vmem:[#allocation4 + $0x40] sm:$0xff] }
 0x5a0   :  { %1959 = vmatpush1.msra.mxu0 %v12163_v44  ;;  %2030 = vmatpush1.msra.mxu1 %v12164_v12  ;;  %v8062_v44 = vld [vmem:[#allocation4 + $0x1b0] sm:$0xff]  ;;  %v8065_v12 = vld [vmem:[#allocation4 + $0x188] sm:$0xff]  ;;  %12280 = vst [vmem:[#allocation8_spill] sm:$0xff] %v8191_v4 }
 0x5a1   :  { %1960 = vmatprep.subr.mxu0 %v12165_v19  ;;  %2031 = vmatprep.subr.mxu1 %v12166_v48  ;;  %v8032_v48 = vld [vmem:[#allocation4 + $0x1f8] sm:$0xff] }
 0x5a2   :  { %1961 = vmatpush1.msra.mxu0 %v12167_v15  ;;  %2032 = vmatpush1.msra.mxu1 %v12168_v49  ;;  %v8044_v15 = vld [vmem:[#allocation4 + $0x1d8] sm:$0xff]  ;;  %v8047_v49 = vld [vmem:[#allocation4 + $0x1c0] sm:$0xff] }
 0x5a3   :  { %1962 = vmatprep.subr.mxu0 %v7709_v5  ;;  %2033 = vmatprep.subr.mxu1 %v7715_v25  ;;  %v8035_v5 = vld [vmem:[#allocation4 + $0x1e0] sm:$0xff]  ;;  %v8038_v25 = vld [vmem:[#allocation4 + $0x1f0] sm:$0xff]  ;;  %v8068_v19 = vld [vmem:[#allocation4 + $0x198] sm:$0xff] }
 0x5a4   :  { %1963 = vmatpush1.msra.mxu0 %v7721_v28  ;;  %1996 = vmatprep.mubr.f32.mxu0 %v12242_v22  ;;  %v8041_v28 = vld [vmem:[#allocation4 + $0x1c8] sm:$0xff] }
 0x5a5   :  { %2034 = vmatpush1.msra.mxu1 %v12243_v13  ;;  %2067 = vmatprep.mubr.f32.mxu1 %v12242_v22  ;;  %v8197_v13 = vld [vmem:[#allocation4 + $0x28] sm:$0xff] }
 0x5a6   :  { %1997 = vmatmul.mubr.f32.vlgmr.msra.gmra.mxu0 %v1789_v17  ;;  %2068 = vmatmul.mubr.f32.vlgmr.msra.gmra.mxu1 %v1789_v17  ;;  %v8194_v17 = vld [vmem:[#allocation4 + $0x50] sm:$0xff]  ;;  %12282 = vst [vmem:[#allocation10_spill] sm:$0xff] %v8197_v13 }
 0x5a7   :  { %2109 = vmatprep.subr.mxu0 %v8029_v14  ;;  %2180 = vmatprep.subr.mxu1 %v8032_v48  ;;  %12281 = vst [vmem:[#allocation9_spill] sm:$0xff] %v8194_v17 }
 0x5a8   :  { %2110 = vmatpush1.msra.mxu0 %v8035_v5  ;;  %2181 = vmatpush1.msra.mxu1 %v8038_v25 }
 0x5a9   :  { %2111 = vmatprep.subr.mxu0 %v8041_v28  ;;  %2182 = vmatprep.subr.mxu1 %v8044_v15 }
 0x5aa   :  { %2112 = vmatpush1.msra.mxu0 %v8047_v49  ;;  %2183 = vmatpush1.msra.mxu1 %v8050_v16 }
 0x5ab   :  { %2113 = vmatprep.subr.mxu0 %v8053_v18  ;;  %2184 = vmatprep.subr.mxu1 %v8056_v43 }
 0x5ac   :  { %2114 = vmatpush1.msra.mxu0 %v8059_v45  ;;  %2185 = vmatpush1.msra.mxu1 %v8062_v44 }
 0x5ad   :  { %2115 = vmatprep.subr.mxu0 %v8065_v12  ;;  %2186 = vmatprep.subr.mxu1 %v8068_v19 }
 0x5ae   :  { %2116 = vmatpush1.msra.mxu0 %v8071_v47  ;;  %2187 = vmatpush1.msra.mxu1 %v8074_v59 }
 0x5af   :  { %2117 = vmatprep.subr.mxu0 %v8077_v46  ;;  %2188 = vmatprep.subr.mxu1 %v8080_v56 }
 0x5b0   :  { %2118 = vmatpush1.msra.mxu0 %v8083_v0  ;;  %2189 = vmatpush1.msra.mxu1 %v8086_v37 }
 0x5b1   :  { %2119 = vmatprep.subr.mxu0 %v8089_v8  ;;  %2190 = vmatprep.subr.mxu1 %v8092_v61 }
 0x5b2   :  { %2120 = vmatpush1.msra.mxu0 %v8095_v62  ;;  %2191 = vmatpush1.msra.mxu1 %v8098_v1 }
 0x5b3   :  { %2121 = vmatprep.subr.mxu0 %v8101_v57  ;;  %2192 = vmatprep.subr.mxu1 %v8104_v60 }
 0x5b4   :  { %2122 = vmatpush1.msra.mxu0 %v8107_v41  ;;  %2193 = vmatpush1.msra.mxu1 %v8110_v38 }
 0x5b5   :  { %2123 = vmatprep.subr.mxu0 %v8113_v42  ;;  %2194 = vmatprep.subr.mxu1 %v8116_v50 }
 0x5b6   :  { %2124 = vmatpush1.msra.mxu0 %v8119_v36  ;;  %2195 = vmatpush1.msra.mxu1 %v8122_v24 }
 0x5b7   :  { %2125 = vmatprep.subr.mxu0 %v8125_v3  ;;  %2196 = vmatprep.subr.mxu1 %v8128_v9 }
 0x5b8   :  { %2126 = vmatpush1.msra.mxu0 %v8131_v6  ;;  %2197 = vmatpush1.msra.mxu1 %v8134_v39 }
 0x5b9   :  { %2127 = vmatprep.subr.mxu0 %v8137_v55  ;;  %2198 = vmatprep.subr.mxu1 %v8140_v52 }
 0x5ba   :  { %2128 = vmatpush1.msra.mxu0 %v8143_v35  ;;  %2199 = vmatpush1.msra.mxu1 %v8146_v33 }
 0x5bb   :  { %2129 = vmatprep.subr.mxu0 %v8149_v32  ;;  %2200 = vmatprep.subr.mxu1 %v8152_v34 }
 0x5bc   :  { %2130 = vmatpush1.msra.mxu0 %v8155_v31  ;;  %2201 = vmatpush1.msra.mxu1 %v8158_v29 }
 0x5bd   :  { %2131 = vmatprep.subr.mxu0 %v8161_v30  ;;  %2202 = vmatprep.subr.mxu1 %v8164_v2 }
 0x5be   :  { %2132 = vmatpush1.msra.mxu0 %v8167_v26  ;;  %2203 = vmatpush1.msra.mxu1 %v8170_v7 }
 0x5bf   :  { %2133 = vmatprep.subr.mxu0 %v8173_v51  ;;  %2204 = vmatprep.subr.mxu1 %v8176_v10 }
 0x5c0   :  { %2134 = vmatpush1.msra.mxu0 %v8179_v11  ;;  %2205 = vmatpush1.msra.mxu1 %v8182_v21  ;;  %v8200_v21 = vld [vmem:[#allocation4 + $0x38] sm:$0xff] }
 0x5c1   :  { %2135 = vmatprep.subr.mxu0 %v8185_v27  ;;  %2206 = vmatprep.subr.mxu1 %v8188_v23  ;;  %12283 = vst [vmem:[#allocation11_spill] sm:$0xff] %v8200_v21  ;;  %v8203_v27 = vld [vmem:[#allocation4 + $0x20] sm:$0xff]  ;;  %v8206_v23 = vld [vmem:[#allocation4 + $0x30] sm:$0xff] }
 0x5c2   :  { %2136 = vmatpush1.msra.mxu0 %v8191_v4  ;;  %2207 = vmatpush1.msra.mxu1 %v8194_v17  ;;  %12284 = vst [vmem:[#allocation12_spill] sm:$0xff] %v8203_v27  ;;  %12285 = vst [vmem:[#allocation13_spill] sm:$0xff] %v8206_v23  ;;  %v8209_v4 = vld [vmem:[#allocation4 + $0x8] sm:$0xff]  ;;  %v8212_v17 = vld [vmem:[#allocation4 + $0x18] sm:$0xff] }
 0x5c3   :  { %2137 = vmatprep.subr.mxu0 %v8197_v13  ;;  %2208 = vmatprep.subr.mxu1 %v8200_v21  ;;  %12286 = vst [vmem:[#allocation14_spill] sm:$0xff] %v8209_v4  ;;  %12287 = vst [vmem:[#allocation15_spill] sm:$0xff] %v8212_v17  ;;  %v8215_v13 = vld [vmem:[#allocation4] sm:$0xff]  ;;  %v8218_v21 = vld [vmem:[#allocation4 + $0x10] sm:$0xff] }
 0x5c4   :  { %2138 = vmatpush1.msra.mxu0 %v8203_v27  ;;  %2209 = vmatpush1.msra.mxu1 %v8206_v23  ;;  %12288 = vst [vmem:[#allocation16_spill] sm:$0xff] %v8215_v13  ;;  %12289 = vst [vmem:[#allocation17_spill] sm:$0xff] %v8218_v21 }
 0x5c5   :  { %2139 = vmatprep.subr.mxu0 %v8209_v4  ;;  %2210 = vmatprep.subr.mxu1 %v8212_v17  ;;  %v8226_v4 = vld [vmem:[%s10933_s2 + $0x1e8] sm:$0xff]  ;;  %v8232_v17 = vld [vmem:[%s10933_s2 + $0x1f8] sm:$0xff] }
 0x5c6   :  { %2140 = vmatpush1.msra.mxu0 %v8215_v13  ;;  %2211 = vmatpush1.msra.mxu1 %v8218_v21  ;;  %12290 = vst [vmem:[#allocation18_spill] sm:$0xff] %v8226_v4  ;;  %12291 = vst [vmem:[#allocation19_spill] sm:$0xff] %v8232_v17 }
 0x5c7   :  { %2173 = vmatprep.mubr.f32.mxu0 %v12242_v22  ;;  %2244 = vmatprep.mubr.f32.mxu1 %v12242_v22 }
 0x5c8   :  { %2251 = vmatprep.subr.mxu0 %v8226_v4  ;;  %2322 = vmatprep.subr.mxu1 %v8232_v17 }
 0x645   :  { %v1856_v13 = vpop.f32.mrf.mxu0  ;;  %v1927_v21 = vpop.f32.mrf.mxu1 }
 0x647   :  { %v1858_v23 = vpop.f32.mrf.mxu0  ;;  %v1929_v27 = vpop.f32.mrf.mxu1 }
 0x666   :  { %v1998_v11 = vpop.f32.mrf.mxu0  ;;  %v2069_v51 = vpop.f32.mrf.mxu1 }
 0x667   :  { %v1999_v10 = vadd.f32 %v1998_v11, %v1856_v13  ;;  %v2070_v4 = vadd.f32 %v2069_v51, %v1927_v21 }
 0x668   :  { %v2000_v7 = vpop.f32.mrf.mxu0  ;;  %v2071_v34 = vpop.f32.mrf.mxu1 }
 0x669   :  { %v2074_v26 = vadd.f32 %v1999_v10, %v6890_v54  ;;  %v2001_v2 = vadd.f32 %v2000_v7, %v1858_v23  ;;  %v2076_v17 = vadd.f32 %v2070_v4, %v6895_v40  ;;  %v2072_v32 = vadd.f32 %v2071_v34, %v1929_v27  ;;  %v8269_v4 = vld [vmem:[%s10933_s2 + $0x1d8] sm:$0xff] }
 0x66b   :  { %v2078_v30 = vmul.f32 0.5, %v2074_v26  ;;  %v2075_v29 = vadd.f32 %v2001_v2, %v11964_v20  ;;  %v2077_v33 = vadd.f32 %v2072_v32, %v6899_v53  ;;  %v2102_v2 = vpop.permute.xlu1 %2101 }
 0x66c   :  { %vm2103_vm5 = vcmp.eq.s32.totalorder %v2102_v2, 1  ;;  %v8329_v2 = vld [vmem:[%s10933_s2 + $0x190] sm:$0xff] }
 0x66d   :  { %5398 = vtanh.f32 %v2078_v30  ;;  %v2082_v31 = vmul.f32 0.5, %v2075_v29  ;;  %v2087_v11 = vmul.f32 0.5, %v2077_v33 }
 0x66f   :  { %5400 = vtanh.f32 %v2082_v31 }
 0x670   :  { %5402 = vtanh.f32 %v2076_v17  ;;  %v8275_v17 = vld [vmem:[%s10933_s2 + $0x1c0] sm:$0xff] }
 0x671   :  { %5404 = vtanh.f32 %v2087_v11  ;;  %v8281_v11 = vld [vmem:[%s10933_s2 + $0x1d0] sm:$0xff] }
 0x67a   :  { %v5399_v13 = vpop.eup %5398 }
 0x67b   :  { %v2080_v35 = vmul.f32 0.5, %v5399_v13  ;;  %v8287_v13 = vld [vmem:[%s10933_s2 + $0x1a8] sm:$0xff] }
 0x67c   :  { %v5401_v52 = vpop.eup %5400 }
 0x67d   :  { %v2081_v10 = vadd.f32 0.5, %v2080_v35  ;;  %v2084_v7 = vmul.f32 0.5, %v5401_v52  ;;  %v5403_v51 = vpop.eup %5402  ;;  %v8251_v35 = vld [vmem:[%s10933_s2 + $0x1e0] sm:$0xff] }
 0x67e   :  { %v5405_v32 = vpop.eup %5404 }
 0x67f   :  { %v2085_v26 = vadd.f32 0.5, %v2084_v7  ;;  %v2092_v29 = vmul.f32 %v5403_v51, %v2081_v10  ;;  %v2089_v33 = vmul.f32 0.5, %v5405_v32  ;;  %v8293_v10 = vld [vmem:[%s10933_s2 + $0x1b8] sm:$0xff]  ;;  %v8299_v7 = vld [vmem:[%s10933_s2 + $0x1a0] sm:$0xff]  ;;  %v8311_v51 = vld [vmem:[%s10933_s2 + $0x188] sm:$0xff] }
 0x680   :  { %v8341_v32 = vld [vmem:[%s10933_s2 + $0x178] sm:$0xff] }
 0x681   :  { %v2091_v30 = vmul.f32 %v2085_v26, %v7957_v58  ;;  %v2090_v31 = vadd.f32 0.5, %v2089_v33  ;;  %v8305_v26 = vld [vmem:[%s10933_s2 + $0x1b0] sm:$0xff]  ;;  %12292 = vst [vmem:[#allocation20_spill] sm:$0xff] %v8341_v32  ;;  %v8347_v33 = vld [vmem:[%s10933_s2 + $0x160] sm:$0xff] }
 0x682   :  { %12293 = vst [vmem:[#allocation21_spill] sm:$0xff] %v8347_v33 }
 0x683   :  { %v2093_v21 = vadd.f32 %v2092_v29, %v2091_v30  ;;  %v8317_v30 = vld [vmem:[%s10933_s2 + $0x198] sm:$0xff]  ;;  %v8323_v29 = vld [vmem:[%s10933_s2 + $0x180] sm:$0xff] }
 0x685   :  { %5406 = vtanh.f32 %v2093_v21  ;;  %v8241_v34 = vsel %vm2103_vm5, %v2093_v21, %v7957_v58  ;;  %v8257_v58 = vld [vmem:[%s10933_s2 + $0x1f0] sm:$0xff]  ;;  %v8335_v21 = vld [vmem:[%s10933_s2 + $0x168] sm:$0xff] }
 0x692   :  { %v5407_v27 = vpop.eup %5406 }
 0x693   :  { %v2095_v23 = vmul.f32 %v5407_v27, %v2090_v31  ;;  %v8353_v31 = vld [vmem:[%s10933_s2 + $0x170] sm:$0xff]  ;;  %v8359_v27 = vld [vmem:[%s10933_s2 + $0x148] sm:$0xff] }
 0x694   :  { %12294 = vst [vmem:[#allocation22_spill] sm:$0xff] %v8353_v31  ;;  %12295 = vst [vmem:[#allocation23_spill] sm:$0xff] %v8359_v27 }
 0x695   :  { %v8244_v52 = vsel %vm2103_vm5, %v2095_v23, %v7960_v63  ;;  %v8263_v63 = vld [vmem:[%s10933_s2 + $0x1c8] sm:$0xff]  ;;  %v8365_v23 = vld [vmem:[%s10933_s2 + $0x158] sm:$0xff] }
 0x696   :  { %2174 = vmatmul.mubr.f32.vlgmr.msra.gmra.mxu0 %v8244_v52  ;;  %2245 = vmatmul.mubr.f32.vlgmr.msra.gmra.mxu1 %v8244_v52  ;;  %12296 = vst [vmem:[#allocation24_spill] sm:$0xff] %v8365_v23 }
 0x697   :  { %2252 = vmatpush1.msra.mxu0 %v8251_v35  ;;  %2323 = vmatpush1.msra.mxu1 %v8257_v58 }
 0x698   :  { %2253 = vmatprep.subr.mxu0 %v8263_v63  ;;  %2324 = vmatprep.subr.mxu1 %v8269_v4 }
 0x699   :  { %2254 = vmatpush1.msra.mxu0 %v8275_v17  ;;  %2325 = vmatpush1.msra.mxu1 %v8281_v11 }
 0x69a   :  { %2255 = vmatprep.subr.mxu0 %v8287_v13  ;;  %2326 = vmatprep.subr.mxu1 %v8293_v10 }
 0x69b   :  { %2256 = vmatpush1.msra.mxu0 %v8299_v7  ;;  %2327 = vmatpush1.msra.mxu1 %v8305_v26 }
 0x69c   :  { %2257 = vmatprep.subr.mxu0 %v8311_v51  ;;  %2328 = vmatprep.subr.mxu1 %v8317_v30 }
 0x69d   :  { %2258 = vmatpush1.msra.mxu0 %v8323_v29  ;;  %2329 = vmatpush1.msra.mxu1 %v8329_v2 }
 0x69e   :  { %2259 = vmatprep.subr.mxu0 %v8335_v21  ;;  %2330 = vmatprep.subr.mxu1 %v8341_v32  ;;  %v8586_v32 = vld [vmem:[%s10933_s2 + $0x38] sm:$0xff] }
 0x69f   :  { %2260 = vmatpush1.msra.mxu0 %v8347_v33  ;;  %2331 = vmatpush1.msra.mxu1 %v8353_v31  ;;  %v8371_v33 = vld [vmem:[%s10933_s2 + $0x140] sm:$0xff]  ;;  %v8377_v31 = vld [vmem:[%s10933_s2 + $0x150] sm:$0xff]  ;;  %12332 = vst [vmem:[#allocation76_spill] sm:$0xff] %v8586_v32 }
 0x6a0   :  { %2261 = vmatprep.subr.mxu0 %v8359_v27  ;;  %2332 = vmatprep.subr.mxu1 %v8365_v23  ;;  %12297 = vst [vmem:[#allocation25_spill] sm:$0xff] %v8371_v33  ;;  %12298 = vst [vmem:[#allocation26_spill] sm:$0xff] %v8377_v31  ;;  %v8383_v27 = vld [vmem:[%s10933_s2 + $0x128] sm:$0xff]  ;;  %v8389_v23 = vld [vmem:[%s10933_s2 + $0x138] sm:$0xff] }
 0x6a1   :  { %2262 = vmatpush1.msra.mxu0 %v8371_v33  ;;  %2333 = vmatpush1.msra.mxu1 %v8377_v31  ;;  %12299 = vst [vmem:[#allocation27_spill] sm:$0xff] %v8383_v27  ;;  %12300 = vst [vmem:[#allocation28_spill] sm:$0xff] %v8389_v23  ;;  %v8395_v33 = vld [vmem:[%s10933_s2 + $0x120] sm:$0xff]  ;;  %v8401_v31 = vld [vmem:[%s10933_s2 + $0x130] sm:$0xff] }
 0x6a2   :  { %2263 = vmatprep.subr.mxu0 %v8383_v27  ;;  %2334 = vmatprep.subr.mxu1 %v8389_v23  ;;  %12301 = vst [vmem:[#allocation29_spill] sm:$0xff] %v8395_v33  ;;  %12302 = vst [vmem:[#allocation30_spill] sm:$0xff] %v8401_v31  ;;  %v8407_v27 = vld [vmem:[%s10933_s2 + $0x108] sm:$0xff]  ;;  %v8413_v23 = vld [vmem:[%s10933_s2 + $0x118] sm:$0xff] }
 0x6a3   :  { %2264 = vmatpush1.msra.mxu0 %v8395_v33  ;;  %2335 = vmatpush1.msra.mxu1 %v8401_v31  ;;  %12303 = vst [vmem:[#allocation31_spill] sm:$0xff] %v8407_v27  ;;  %12304 = vst [vmem:[#allocation32_spill] sm:$0xff] %v8413_v23  ;;  %v8419_v33 = vld [vmem:[%s10933_s2 + $0x100] sm:$0xff]  ;;  %v8425_v31 = vld [vmem:[%s10933_s2 + $0x110] sm:$0xff] }
 0x6a4   :  { %2265 = vmatprep.subr.mxu0 %v8407_v27  ;;  %2336 = vmatprep.subr.mxu1 %v8413_v23  ;;  %12305 = vst [vmem:[#allocation33_spill] sm:$0xff] %v8419_v33  ;;  %12306 = vst [vmem:[#allocation34_spill] sm:$0xff] %v8425_v31  ;;  %v8431_v27 = vld [vmem:[%s10933_s2 + $0xe8] sm:$0xff]  ;;  %v8437_v23 = vld [vmem:[%s10933_s2 + $0xf8] sm:$0xff] }
 0x6a5   :  { %2266 = vmatpush1.msra.mxu0 %v8419_v33  ;;  %2337 = vmatpush1.msra.mxu1 %v8425_v31  ;;  %12307 = vst [vmem:[#allocation35_spill] sm:$0xff] %v8431_v27  ;;  %12308 = vst [vmem:[#allocation36_spill] sm:$0xff] %v8437_v23  ;;  %v8443_v33 = vld [vmem:[%s10933_s2 + $0xe0] sm:$0xff]  ;;  %v8449_v31 = vld [vmem:[%s10933_s2 + $0xf0] sm:$0xff] }
 0x6a6   :  { %2267 = vmatprep.subr.mxu0 %v8431_v27  ;;  %2338 = vmatprep.subr.mxu1 %v8437_v23  ;;  %12309 = vst [vmem:[#allocation37_spill] sm:$0xff] %v8443_v33  ;;  %12310 = vst [vmem:[#allocation38_spill] sm:$0xff] %v8449_v31  ;;  %v8455_v27 = vld [vmem:[%s10933_s2 + $0xc8] sm:$0xff]  ;;  %v8461_v23 = vld [vmem:[%s10933_s2 + $0xd8] sm:$0xff] }
 0x6a7   :  { %2268 = vmatpush1.msra.mxu0 %v8443_v33  ;;  %2339 = vmatpush1.msra.mxu1 %v8449_v31  ;;  %12311 = vst [vmem:[#allocation53_spill] sm:$0xff] %v8455_v27  ;;  %12312 = vst [vmem:[#allocation54_spill] sm:$0xff] %v8461_v23  ;;  %v8467_v33 = vld [vmem:[%s10933_s2 + $0xc0] sm:$0xff]  ;;  %v8473_v31 = vld [vmem:[%s10933_s2 + $0xd0] sm:$0xff] }
 0x6a8   :  { %2269 = vmatprep.subr.mxu0 %v8455_v27  ;;  %2340 = vmatprep.subr.mxu1 %v8461_v23  ;;  %12313 = vst [vmem:[#allocation55_spill] sm:$0xff] %v8467_v33  ;;  %12314 = vst [vmem:[#allocation56_spill] sm:$0xff] %v8473_v31  ;;  %v8479_v27 = vld [vmem:[%s10933_s2 + $0xa8] sm:$0xff]  ;;  %v8485_v23 = vld [vmem:[%s10933_s2 + $0xb8] sm:$0xff] }
 0x6a9   :  { %2270 = vmatpush1.msra.mxu0 %v8467_v33  ;;  %2341 = vmatpush1.msra.mxu1 %v8473_v31  ;;  %12315 = vst [vmem:[#allocation57_spill] sm:$0xff] %v8479_v27  ;;  %12316 = vst [vmem:[#allocation58_spill] sm:$0xff] %v8485_v23  ;;  %v8491_v33 = vld [vmem:[%s10933_s2 + $0xa0] sm:$0xff]  ;;  %v8497_v31 = vld [vmem:[%s10933_s2 + $0xb0] sm:$0xff] }
 0x6aa   :  { %2271 = vmatprep.subr.mxu0 %v8479_v27  ;;  %2342 = vmatprep.subr.mxu1 %v8485_v23  ;;  %12317 = vst [vmem:[#allocation59_spill] sm:$0xff] %v8491_v33  ;;  %12318 = vst [vmem:[#allocation60_spill] sm:$0xff] %v8497_v31  ;;  %v8503_v27 = vld [vmem:[%s10933_s2 + $0x88] sm:$0xff]  ;;  %v8509_v23 = vld [vmem:[%s10933_s2 + $0x98] sm:$0xff] }
 0x6ab   :  { %2272 = vmatpush1.msra.mxu0 %v8491_v33  ;;  %2343 = vmatpush1.msra.mxu1 %v8497_v31  ;;  %12319 = vst [vmem:[#allocation61_spill] sm:$0xff] %v8503_v27  ;;  %12320 = vst [vmem:[#allocation62_spill] sm:$0xff] %v8509_v23  ;;  %v8515_v33 = vld [vmem:[%s10933_s2 + $0x80] sm:$0xff]  ;;  %v8521_v31 = vld [vmem:[%s10933_s2 + $0x90] sm:$0xff] }
 0x6ac   :  { %2273 = vmatprep.subr.mxu0 %v8503_v27  ;;  %2344 = vmatprep.subr.mxu1 %v8509_v23  ;;  %12321 = vst [vmem:[#allocation63_spill] sm:$0xff] %v8515_v33  ;;  %12322 = vst [vmem:[#allocation64_spill] sm:$0xff] %v8521_v31  ;;  %v8527_v27 = vld [vmem:[%s10933_s2 + $0x68] sm:$0xff]  ;;  %v8533_v23 = vld [vmem:[%s10933_s2 + $0x78] sm:$0xff] }
 0x6ad   :  { %2274 = vmatpush1.msra.mxu0 %v8515_v33  ;;  %2345 = vmatpush1.msra.mxu1 %v8521_v31  ;;  %12323 = vst [vmem:[#allocation65_spill] sm:$0xff] %v8527_v27  ;;  %12324 = vst [vmem:[#allocation66_spill] sm:$0xff] %v8533_v23  ;;  %v8539_v33 = vld [vmem:[%s10933_s2 + $0x60] sm:$0xff]  ;;  %v8545_v31 = vld [vmem:[%s10933_s2 + $0x70] sm:$0xff] }
 0x6ae   :  { %2275 = vmatprep.subr.mxu0 %v8527_v27  ;;  %2346 = vmatprep.subr.mxu1 %v8533_v23  ;;  %12325 = vst [vmem:[#allocation67_spill] sm:$0xff] %v8539_v33  ;;  %12326 = vst [vmem:[#allocation68_spill] sm:$0xff] %v8545_v31  ;;  %v8551_v27 = vld [vmem:[%s10933_s2 + $0x48] sm:$0xff]  ;;  %v8557_v23 = vld [vmem:[%s10933_s2 + $0x58] sm:$0xff] }
 0x6af   :  { %2276 = vmatpush1.msra.mxu0 %v8539_v33  ;;  %2347 = vmatpush1.msra.mxu1 %v8545_v31  ;;  %12327 = vst [vmem:[#allocation71_spill] sm:$0xff] %v8551_v27  ;;  %12328 = vst [vmem:[#allocation72_spill] sm:$0xff] %v8557_v23  ;;  %v8563_v33 = vld [vmem:[%s10932_s1 + $0x18] sm:$0xff]   ;;  %v8568_v31 = vld [vmem:[%s10933_s2 + $0x40] sm:$0xff] }
 0x6b0   :  { %2277 = vmatprep.subr.mxu0 %v8551_v27  ;;  %2348 = vmatprep.subr.mxu1 %v8557_v23  ;;  %12329 = vst [vmem:[#allocation73_spill] sm:$0xff] %v8568_v31  ;;  %v8574_v27 = vld [vmem:[%s10933_s2 + $0x50] sm:$0xff]  ;;  %v8580_v23 = vld [vmem:[%s10933_s2 + $0x28] sm:$0xff] }
 0x6b1   :  { %2278 = vmatpush1.msra.mxu0 %v8568_v31  ;;  %12330 = vst [vmem:[#allocation74_spill] sm:$0xff] %v8574_v27  ;;  %2349 = vmatpush1.msra.mxu1 %v8574_v27  ;;  %12331 = vst [vmem:[#allocation75_spill] sm:$0xff] %v8580_v23  ;;  %v8592_v31 = vld [vmem:[%s10933_s2 + $0x20] sm:$0xff]  ;;  %v8598_v27 = vld [vmem:[%s10933_s2 + $0x30] sm:$0xff] }
 0x6b2   :  { %2279 = vmatprep.subr.mxu0 %v8580_v23  ;;  %2350 = vmatprep.subr.mxu1 %v8586_v32  ;;  %12333 = vst [vmem:[#allocation77_spill] sm:$0xff] %v8592_v31  ;;  %12334 = vst [vmem:[#allocation78_spill] sm:$0xff] %v8598_v27  ;;  %v2108_v23 = vunpack.c.l.bf16 %v8563_v33  ;;  %v8605_v32 = vld [vmem:[%s10933_s2 + $0x8] sm:$0xff] }
 0x6b3   :  { %2280 = vmatpush1.msra.mxu0 %v8592_v31  ;;  %2351 = vmatpush1.msra.mxu1 %v8598_v27  ;;  %12335 = vst [vmem:[#allocation98_spill] sm:$0xff] %v8605_v32  ;;  %v8611_v31 = vld [vmem:[%s10933_s2 + $0x18] sm:$0xff]  ;;  %v8617_v27 = vld [vmem:[%s10933_s2] sm:$0xff] }
 0x6b4   :  { %2281 = vmatprep.subr.mxu0 %v8605_v32  ;;  %2352 = vmatprep.subr.mxu1 %v8611_v31  ;;  %v8624_v32 = vld [vmem:[%s10933_s2 + $0x10] sm:$0xff] }
 0x6b5   :  { %2282 = vmatpush1.msra.mxu0 %v8617_v27  ;;  %2315 = vmatprep.mubr.f32.mxu0 %v12242_v22 }
 0x6b6   :  { %2353 = vmatpush1.msra.mxu1 %v8624_v32  ;;  %2386 = vmatprep.mubr.f32.mxu1 %v12242_v22 }
 0x6b7   :  { %2316 = vmatmul.mubr.f32.vlgmr.msra.gmra.mxu0 %v2108_v23  ;;  %2387 = vmatmul.mubr.f32.vlgmr.msra.gmra.mxu1 %v2108_v23  ;;  %v12336_v23 = vld [vmem:[#allocation40_spill] sm:$0xff] }
 0x6b8   :  { %2428 = vmatprep.subr.mxu0 %v8029_v14  ;;  %2499 = vmatprep.subr.mxu1 %v8032_v48 }
 0x6b9   :  { %2429 = vmatpush1.msra.mxu0 %v8035_v5  ;;  %2500 = vmatpush1.msra.mxu1 %v8038_v25 }
 0x6ba   :  { %2430 = vmatprep.subr.mxu0 %v8041_v28  ;;  %2501 = vmatprep.subr.mxu1 %v8044_v15 }
 0x6bb   :  { %2431 = vmatpush1.msra.mxu0 %v8047_v49  ;;  %2502 = vmatpush1.msra.mxu1 %v8050_v16 }
 0x6bc   :  { %2432 = vmatprep.subr.mxu0 %v8053_v18  ;;  %2503 = vmatprep.subr.mxu1 %v8056_v43 }
 0x6bd   :  { %2433 = vmatpush1.msra.mxu0 %v8059_v45  ;;  %2504 = vmatpush1.msra.mxu1 %v8062_v44 }
 0x6be   :  { %2434 = vmatprep.subr.mxu0 %v8065_v12  ;;  %2505 = vmatprep.subr.mxu1 %v8068_v19 }
 0x6bf   :  { %2435 = vmatpush1.msra.mxu0 %v8071_v47  ;;  %2506 = vmatpush1.msra.mxu1 %v8074_v59 }
 0x6c0   :  { %2436 = vmatprep.subr.mxu0 %v8077_v46  ;;  %2507 = vmatprep.subr.mxu1 %v8080_v56 }
 0x6c1   :  { %2437 = vmatpush1.msra.mxu0 %v8083_v0  ;;  %2508 = vmatpush1.msra.mxu1 %v8086_v37 }
 0x6c2   :  { %2438 = vmatprep.subr.mxu0 %v8089_v8  ;;  %2509 = vmatprep.subr.mxu1 %v8092_v61 }
 0x6c3   :  { %2439 = vmatpush1.msra.mxu0 %v8095_v62  ;;  %2510 = vmatpush1.msra.mxu1 %v8098_v1 }
 0x6c4   :  { %2440 = vmatprep.subr.mxu0 %v8101_v57  ;;  %2511 = vmatprep.subr.mxu1 %v8104_v60 }
 0x6c5   :  { %2441 = vmatpush1.msra.mxu0 %v8107_v41  ;;  %2512 = vmatpush1.msra.mxu1 %v8110_v38  ;;  %v12337_v38 = vld [vmem:[#allocation41_spill] sm:$0xff] }
 0x6c6   :  { %2442 = vmatprep.subr.mxu0 %v8113_v42  ;;  %2513 = vmatprep.subr.mxu1 %v8116_v50  ;;  %v12338_v42 = vld [vmem:[#allocation42_spill] sm:$0xff]  ;;  %v12339_v50 = vld [vmem:[#allocation43_spill] sm:$0xff] }
 0x6c7   :  { %2443 = vmatpush1.msra.mxu0 %v8119_v36  ;;  %2514 = vmatpush1.msra.mxu1 %v8122_v24  ;;  %v12340_v36 = vld [vmem:[#allocation44_spill] sm:$0xff]  ;;  %v12341_v24 = vld [vmem:[#allocation45_spill] sm:$0xff] }
 0x6c8   :  { %2444 = vmatprep.subr.mxu0 %v8125_v3  ;;  %2515 = vmatprep.subr.mxu1 %v8128_v9  ;;  %v12342_v3 = vld [vmem:[#allocation84_spill] sm:$0xff]  ;;  %v12343_v9 = vld [vmem:[#allocation85_spill] sm:$0xff] }
 0x6c9   :  { %2445 = vmatpush1.msra.mxu0 %v8131_v6  ;;  %2516 = vmatpush1.msra.mxu1 %v8134_v39  ;;  %v12344_v6 = vld [vmem:[#allocation88_spill] sm:$0xff]  ;;  %v12345_v39 = vld [vmem:[#allocation89_spill] sm:$0xff] }
 0x6ca   :  { %2446 = vmatprep.subr.mxu0 %v8137_v55  ;;  %2517 = vmatprep.subr.mxu1 %v12336_v23  ;;  %v12346_v55 = vld [vmem:[#allocation90_spill] sm:$0xff]  ;;  %v12347_v23 = vld [vmem:[#allocation91_spill] sm:$0xff] }
 0x6cb   :  { %2447 = vmatpush1.msra.mxu0 %v12337_v38  ;;  %2518 = vmatpush1.msra.mxu1 %v12338_v42  ;;  %v12348_v38 = vld [vmem:[#allocation92_spill] sm:$0xff]  ;;  %v12349_v42 = vld [vmem:[#allocation93_spill] sm:$0xff] }
 0x6cc   :  { %2448 = vmatprep.subr.mxu0 %v12339_v50  ;;  %2519 = vmatprep.subr.mxu1 %v12340_v36  ;;  %v12350_v50 = vld [vmem:[#allocation94_spill] sm:$0xff]  ;;  %v12351_v36 = vld [vmem:[#allocation96_spill] sm:$0xff] }
 0x6cd   :  { %2449 = vmatpush1.msra.mxu0 %v12341_v24  ;;  %2520 = vmatpush1.msra.mxu1 %v12342_v3  ;;  %v12352_v24 = vld [vmem:[#allocation7_spill] sm:$0xff]  ;;  %v12353_v3 = vld [vmem:[#allocation8_spill] sm:$0xff] }
 0x6ce   :  { %2450 = vmatprep.subr.mxu0 %v12343_v9  ;;  %2521 = vmatprep.subr.mxu1 %v12344_v6  ;;  %v12354_v9 = vld [vmem:[#allocation9_spill] sm:$0xff]  ;;  %v12355_v6 = vld [vmem:[#allocation10_spill] sm:$0xff] }
 0x6cf   :  { %2451 = vmatpush1.msra.mxu0 %v12345_v39  ;;  %2522 = vmatpush1.msra.mxu1 %v12346_v55  ;;  %v12356_v39 = vld [vmem:[#allocation11_spill] sm:$0xff]  ;;  %v12357_v55 = vld [vmem:[#allocation12_spill] sm:$0xff] }
 0x6d0   :  { %2452 = vmatprep.subr.mxu0 %v12347_v23  ;;  %2523 = vmatprep.subr.mxu1 %v12348_v38  ;;  %v12358_v23 = vld [vmem:[#allocation13_spill] sm:$0xff]  ;;  %v12359_v38 = vld [vmem:[#allocation14_spill] sm:$0xff] }
 0x6d1   :  { %2453 = vmatpush1.msra.mxu0 %v12349_v42  ;;  %2524 = vmatpush1.msra.mxu1 %v12350_v50  ;;  %v12360_v42 = vld [vmem:[#allocation15_spill] sm:$0xff]  ;;  %v12361_v50 = vld [vmem:[#allocation16_spill] sm:$0xff] }
 0x6d2   :  { %2454 = vmatprep.subr.mxu0 %v12351_v36  ;;  %2525 = vmatprep.subr.mxu1 %v12352_v24  ;;  %v12362_v36 = vld [vmem:[#allocation17_spill] sm:$0xff] }
 0x6d3   :  { %2455 = vmatpush1.msra.mxu0 %v12353_v3  ;;  %2526 = vmatpush1.msra.mxu1 %v12354_v9  ;;  %v12363_v9 = vld [vmem:[#allocation18_spill] sm:$0xff] }
 0x6d4   :  { %2456 = vmatprep.subr.mxu0 %v12355_v6  ;;  %2527 = vmatprep.subr.mxu1 %v12356_v39  ;;  %v12364_v6 = vld [vmem:[#allocation19_spill] sm:$0xff] }
 0x6d5   :  { %2457 = vmatpush1.msra.mxu0 %v12357_v55  ;;  %2528 = vmatpush1.msra.mxu1 %v12358_v23 }
 0x6d6   :  { %2458 = vmatprep.subr.mxu0 %v12359_v38  ;;  %2529 = vmatprep.subr.mxu1 %v12360_v42 }
 0x6d7   :  { %2459 = vmatpush1.msra.mxu0 %v12361_v50  ;;  %2530 = vmatpush1.msra.mxu1 %v12362_v36 }
 0x6d8   :  { %2492 = vmatprep.mubr.f32.mxu0 %v12242_v22  ;;  %2563 = vmatprep.mubr.f32.mxu1 %v12242_v22 }
 0x6d9   :  { %2570 = vmatprep.subr.mxu0 %v12363_v9  ;;  %2641 = vmatprep.subr.mxu1 %v12364_v6 }
 0x756   :  { %v2175_v39 = vpop.f32.mrf.mxu0  ;;  %v2246_v55 = vpop.f32.mrf.mxu1 }
 0x758   :  { %v2177_v3 = vpop.f32.mrf.mxu0  ;;  %v2248_v23 = vpop.f32.mrf.mxu1 }
 0x777   :  { %v2317_v24 = vpop.f32.mrf.mxu0  ;;  %v2388_v41 = vpop.f32.mrf.mxu1 }
 0x778   :  { %v2318_v38 = vadd.f32 %v2317_v24, %v2175_v39  ;;  %v2389_v57 = vadd.f32 %v2388_v41, %v2246_v55  ;;  %v12366_v55 = vld [vmem:[#allocation21_spill] sm:$0xff] }
 0x779   :  { %v2319_v42 = vpop.f32.mrf.mxu0  ;;  %v2390_v9 = vpop.f32.mrf.mxu1 }
 0x77a   :  { %v2393_v50 = vadd.f32 %v2318_v38, %v6890_v54  ;;  %v2320_v60 = vadd.f32 %v2319_v42, %v2177_v3  ;;  %v2395_v6 = vadd.f32 %v2389_v57, %v6895_v40  ;;  %v2391_v61 = vadd.f32 %v2390_v9, %v2248_v23  ;;  %v12369_v23 = vld [vmem:[#allocation24_spill] sm:$0xff] }
 0x77c   :  { %v2397_v36 = vmul.f32 0.5, %v2393_v50  ;;  %v2394_v1 = vadd.f32 %v2320_v60, %v11964_v20  ;;  %v2396_v8 = vadd.f32 %v2391_v61, %v6899_v53 }
 0x77e   :  { %5408 = vtanh.f32 %v2397_v36  ;;  %v2401_v62 = vmul.f32 0.5, %v2394_v1  ;;  %v2406_v24 = vmul.f32 0.5, %v2396_v8  ;;  %v2421_v36 = vpop.permute.xlu0 %2420 }
 0x77f   :  { %vm2422_vm6 = vcmp.eq.s32.totalorder %v2421_v36, 1  ;;  %v12378_v36 = vld [vmem:[#allocation33_spill] sm:$0xff] }
 0x780   :  { %5410 = vtanh.f32 %v2401_v62 }
 0x781   :  { %5412 = vtanh.f32 %v2395_v6 }
 0x782   :  { %5414 = vtanh.f32 %v2406_v24  ;;  %v12370_v24 = vld [vmem:[#allocation25_spill] sm:$0xff] }
 0x78b   :  { %v5409_v39 = vpop.eup %5408 }
 0x78c   :  { %v2399_v37 = vmul.f32 0.5, %v5409_v39  ;;  %v12371_v39 = vld [vmem:[#allocation26_spill] sm:$0xff] }
 0x78d   :  { %v5411_v0 = vpop.eup %5410 }
 0x78e   :  { %v2400_v38 = vadd.f32 0.5, %v2399_v37  ;;  %v2403_v42 = vmul.f32 0.5, %v5411_v0  ;;  %v5413_v50 = vpop.eup %5412  ;;  %v12365_v37 = vld [vmem:[#allocation20_spill] sm:$0xff] }
 0x78f   :  { %v5415_v61 = vpop.eup %5414 }
 0x790   :  { %v2404_v41 = vadd.f32 0.5, %v2403_v42  ;;  %v2411_v1 = vmul.f32 %v5413_v50, %v2400_v38  ;;  %v2408_v8 = vmul.f32 0.5, %v5415_v61  ;;  %v12372_v38 = vld [vmem:[#allocation27_spill] sm:$0xff]  ;;  %v12373_v42 = vld [vmem:[#allocation28_spill] sm:$0xff]  ;;  %v12375_v50 = vld [vmem:[#allocation30_spill] sm:$0xff] }
 0x791   :  { %v12380_v61 = vld [vmem:[#allocation35_spill] sm:$0xff] }
 0x792   :  { %v2410_v60 = vmul.f32 %v2404_v41, %v8241_v34  ;;  %v2409_v57 = vadd.f32 0.5, %v2408_v8  ;;  %v12374_v41 = vld [vmem:[#allocation29_spill] sm:$0xff]  ;;  %v12381_v8 = vld [vmem:[#allocation36_spill] sm:$0xff] }
 0x794   :  { %v2412_v3 = vadd.f32 %v2411_v1, %v2410_v60  ;;  %v12376_v60 = vld [vmem:[#allocation31_spill] sm:$0xff]  ;;  %v12377_v1 = vld [vmem:[#allocation32_spill] sm:$0xff] }
 0x796   :  { %5416 = vtanh.f32 %v2412_v3  ;;  %v8702_v62 = vsel %vm2422_vm6, %v2412_v3, %v8241_v34  ;;  %v12367_v34 = vld [vmem:[#allocation22_spill] sm:$0xff] }
 0x797   :  { %v12379_v3 = vld [vmem:[#allocation34_spill] sm:$0xff] }
 0x7a3   :  { %v5417_v9 = vpop.eup %5416 }
 0x7a4   :  { %v2414_v6 = vmul.f32 %v5417_v9, %v2409_v57  ;;  %v12382_v57 = vld [vmem:[#allocation37_spill] sm:$0xff]  ;;  %v12383_v9 = vld [vmem:[#allocation38_spill] sm:$0xff] }
 0x7a6   :  { %v8705_v0 = vsel %vm2422_vm6, %v2414_v6, %v8244_v52  ;;  %v12368_v52 = vld [vmem:[#allocation23_spill] sm:$0xff]  ;;  %v12384_v6 = vld [vmem:[#allocation53_spill] sm:$0xff] }
 0x7a7   :  { %2493 = vmatmul.mubr.f32.vlgmr.msra.gmra.mxu0 %v8705_v0  ;;  %2564 = vmatmul.mubr.f32.vlgmr.msra.gmra.mxu1 %v8705_v0 }
 0x7a8   :  { %2571 = vmatpush1.msra.mxu0 %v8251_v35  ;;  %2642 = vmatpush1.msra.mxu1 %v8257_v58 }
 0x7a9   :  { %2572 = vmatprep.subr.mxu0 %v8263_v63  ;;  %2643 = vmatprep.subr.mxu1 %v8269_v4 }
 0x7aa   :  { %2573 = vmatpush1.msra.mxu0 %v8275_v17  ;;  %2644 = vmatpush1.msra.mxu1 %v8281_v11 }
 0x7ab   :  { %2574 = vmatprep.subr.mxu0 %v8287_v13  ;;  %2645 = vmatprep.subr.mxu1 %v8293_v10 }
 0x7ac   :  { %2575 = vmatpush1.msra.mxu0 %v8299_v7  ;;  %2646 = vmatpush1.msra.mxu1 %v8305_v26 }
 0x7ad   :  { %2576 = vmatprep.subr.mxu0 %v8311_v51  ;;  %2647 = vmatprep.subr.mxu1 %v8317_v30 }
 0x7ae   :  { %2577 = vmatpush1.msra.mxu0 %v8323_v29  ;;  %2648 = vmatpush1.msra.mxu1 %v8329_v2 }
 0x7af   :  { %2578 = vmatprep.subr.mxu0 %v8335_v21  ;;  %2649 = vmatprep.subr.mxu1 %v12365_v37 }
 0x7b0   :  { %2579 = vmatpush1.msra.mxu0 %v12366_v55  ;;  %2650 = vmatpush1.msra.mxu1 %v12367_v34 }
 0x7b1   :  { %2580 = vmatprep.subr.mxu0 %v12368_v52  ;;  %2651 = vmatprep.subr.mxu1 %v12369_v23 }
 0x7b2   :  { %2581 = vmatpush1.msra.mxu0 %v12370_v24  ;;  %2652 = vmatpush1.msra.mxu1 %v12371_v39 }
 0x7b3   :  { %2582 = vmatprep.subr.mxu0 %v12372_v38  ;;  %2653 = vmatprep.subr.mxu1 %v12373_v42 }
 0x7b4   :  { %2583 = vmatpush1.msra.mxu0 %v12374_v41  ;;  %2654 = vmatpush1.msra.mxu1 %v12375_v50  ;;  %v12385_v41 = vld [vmem:[#allocation54_spill] sm:$0xff]  ;;  %v12386_v50 = vld [vmem:[#allocation55_spill] sm:$0xff] }
 0x7b5   :  { %2584 = vmatprep.subr.mxu0 %v12376_v60  ;;  %2655 = vmatprep.subr.mxu1 %v12377_v1  ;;  %v12387_v60 = vld [vmem:[#allocation56_spill] sm:$0xff]  ;;  %v12388_v1 = vld [vmem:[#allocation57_spill] sm:$0xff] }
 0x7b6   :  { %2585 = vmatpush1.msra.mxu0 %v12378_v36  ;;  %2656 = vmatpush1.msra.mxu1 %v12379_v3  ;;  %v12389_v36 = vld [vmem:[#allocation58_spill] sm:$0xff]  ;;  %v12390_v3 = vld [vmem:[#allocation59_spill] sm:$0xff] }
 0x7b7   :  { %2586 = vmatprep.subr.mxu0 %v12380_v61  ;;  %2657 = vmatprep.subr.mxu1 %v12381_v8  ;;  %v12391_v61 = vld [vmem:[#allocation60_spill] sm:$0xff]  ;;  %v12392_v8 = vld [vmem:[#allocation61_spill] sm:$0xff] }
 0x7b8   :  { %2587 = vmatpush1.msra.mxu0 %v12382_v57  ;;  %2658 = vmatpush1.msra.mxu1 %v12383_v9  ;;  %v12393_v57 = vld [vmem:[#allocation62_spill] sm:$0xff]  ;;  %v12394_v9 = vld [vmem:[#allocation63_spill] sm:$0xff] }
 0x7b9   :  { %2588 = vmatprep.subr.mxu0 %v12384_v6  ;;  %2659 = vmatprep.subr.mxu1 %v12385_v41  ;;  %v12395_v6 = vld [vmem:[#allocation64_spill] sm:$0xff]  ;;  %v12396_v41 = vld [vmem:[#allocation65_spill] sm:$0xff] }
 0x7ba   :  { %2589 = vmatpush1.msra.mxu0 %v12386_v50  ;;  %2660 = vmatpush1.msra.mxu1 %v12387_v60  ;;  %v12397_v50 = vld [vmem:[#allocation66_spill] sm:$0xff]  ;;  %v12398_v60 = vld [vmem:[#allocation67_spill] sm:$0xff] }
 0x7bb   :  { %2590 = vmatprep.subr.mxu0 %v12388_v1  ;;  %2661 = vmatprep.subr.mxu1 %v12389_v36  ;;  %v12399_v1 = vld [vmem:[#allocation68_spill] sm:$0xff]  ;;  %v12400_v36 = vld [vmem:[#allocation71_spill] sm:$0xff] }
 0x7bc   :  { %2591 = vmatpush1.msra.mxu0 %v12390_v3  ;;  %2662 = vmatpush1.msra.mxu1 %v12391_v61  ;;  %v12401_v3 = vld [vmem:[#allocation72_spill] sm:$0xff]  ;;  %v12402_v61 = vld [vmem:[#allocation73_spill] sm:$0xff] }
 0x7bd   :  { %2592 = vmatprep.subr.mxu0 %v12392_v8  ;;  %2663 = vmatprep.subr.mxu1 %v12393_v57  ;;  %v12403_v8 = vld [vmem:[#allocation74_spill] sm:$0xff]  ;;  %v12404_v57 = vld [vmem:[#allocation75_spill] sm:$0xff] }
 0x7be   :  { %2593 = vmatpush1.msra.mxu0 %v12394_v9  ;;  %2664 = vmatpush1.msra.mxu1 %v12395_v6  ;;  %v12405_v9 = vld [vmem:[#allocation76_spill] sm:$0xff]  ;;  %v12406_v6 = vld [vmem:[#allocation77_spill] sm:$0xff] }
 0x7bf   :  { %2594 = vmatprep.subr.mxu0 %v12396_v41  ;;  %2665 = vmatprep.subr.mxu1 %v12397_v50  ;;  %v12407_v41 = vld [vmem:[#allocation78_spill] sm:$0xff] }
 0x7c0   :  { %2595 = vmatpush1.msra.mxu0 %v12398_v60  ;;  %2666 = vmatpush1.msra.mxu1 %v12399_v1  ;;  %v2427_v60 = vunpack.c.h.bf16 %v8563_v33  ;;  %v12408_v50 = vld [vmem:[#allocation98_spill] sm:$0xff]  ;;  %v12427_v33 = vld [vmem:[#allocation39_spill] sm:$0xff] }
 0x7c1   :  { %2596 = vmatprep.subr.mxu0 %v12400_v36  ;;  %2667 = vmatprep.subr.mxu1 %v12401_v3 }
 0x7c2   :  { %2597 = vmatpush1.msra.mxu0 %v12402_v61  ;;  %2668 = vmatpush1.msra.mxu1 %v12403_v8 }
 0x7c3   :  { %2598 = vmatprep.subr.mxu0 %v12404_v57  ;;  %2669 = vmatprep.subr.mxu1 %v12405_v9 }
 0x7c4   :  { %2599 = vmatpush1.msra.mxu0 %v12406_v6  ;;  %2670 = vmatpush1.msra.mxu1 %v12407_v41 }
 0x7c5   :  { %2600 = vmatprep.subr.mxu0 %v12408_v50  ;;  %2671 = vmatprep.subr.mxu1 %v8611_v31 }
 0x7c6   :  { %2601 = vmatpush1.msra.mxu0 %v8617_v27  ;;  %2634 = vmatprep.mubr.f32.mxu0 %v12242_v22 }
 0x7c7   :  { %2672 = vmatpush1.msra.mxu1 %v8624_v32  ;;  %2705 = vmatprep.mubr.f32.mxu1 %v12242_v22 }
 0x7c8   :  { %2635 = vmatmul.mubr.f32.vlgmr.msra.gmra.mxu0 %v2427_v60  ;;  %2706 = vmatmul.mubr.f32.vlgmr.msra.gmra.mxu1 %v2427_v60  ;;  %v12428_v60 = vld [vmem:[#allocation40_spill] sm:$0xff] }
 0x7c9   :  { %2747 = vmatprep.subr.mxu0 %v8029_v14  ;;  %2818 = vmatprep.subr.mxu1 %v8032_v48  ;;  %v12409_v14 = vld [vmem:[#allocation95_spill] sm:$0xff]  ;;  %v12410_v48 = vld [vmem:[#allocation97_spill] sm:$0xff] }
 0x7ca   :  { %2748 = vmatpush1.msra.mxu0 %v8035_v5  ;;  %2819 = vmatpush1.msra.mxu1 %v8038_v25  ;;  %v12411_v5 = vld [vmem:[#allocation46_spill] sm:$0xff]  ;;  %v12412_v25 = vld [vmem:[#allocation47_spill] sm:$0xff] }
 0x7cb   :  { %2749 = vmatprep.subr.mxu0 %v8041_v28  ;;  %2820 = vmatprep.subr.mxu1 %v8044_v15  ;;  %v12413_v28 = vld [vmem:[#allocation48_spill] sm:$0xff]  ;;  %v12414_v15 = vld [vmem:[#allocation49_spill] sm:$0xff] }
 0x7cc   :  { %2750 = vmatpush1.msra.mxu0 %v8047_v49  ;;  %2821 = vmatpush1.msra.mxu1 %v8050_v16  ;;  %v12415_v49 = vld [vmem:[#allocation50_spill] sm:$0xff]  ;;  %v12416_v16 = vld [vmem:[#allocation51_spill] sm:$0xff] }
 0x7cd   :  { %2751 = vmatprep.subr.mxu0 %v8053_v18  ;;  %2822 = vmatprep.subr.mxu1 %v8056_v43  ;;  %v12417_v18 = vld [vmem:[#allocation52_spill] sm:$0xff]  ;;  %v12418_v43 = vld [vmem:[#allocation69_spill] sm:$0xff] }
 0x7ce   :  { %2752 = vmatpush1.msra.mxu0 %v8059_v45  ;;  %2823 = vmatpush1.msra.mxu1 %v8062_v44  ;;  %v12419_v45 = vld [vmem:[#allocation70_spill] sm:$0xff]  ;;  %v12420_v44 = vld [vmem:[#allocation79_spill] sm:$0xff] }
 0x7cf   :  { %2753 = vmatprep.subr.mxu0 %v8065_v12  ;;  %2824 = vmatprep.subr.mxu1 %v8068_v19  ;;  %v12421_v12 = vld [vmem:[#allocation80_spill] sm:$0xff]  ;;  %v12422_v19 = vld [vmem:[#allocation81_spill] sm:$0xff] }
 0x7d0   :  { %2754 = vmatpush1.msra.mxu0 %v8071_v47  ;;  %2825 = vmatpush1.msra.mxu1 %v8074_v59  ;;  %v12423_v47 = vld [vmem:[#allocation82_spill] sm:$0xff]  ;;  %v12424_v59 = vld [vmem:[#allocation83_spill] sm:$0xff] }
 0x7d1   :  { %2755 = vmatprep.subr.mxu0 %v8077_v46  ;;  %2826 = vmatprep.subr.mxu1 %v8080_v56  ;;  %v12425_v46 = vld [vmem:[#allocation86_spill] sm:$0xff]  ;;  %v12426_v56 = vld [vmem:[#allocation87_spill] sm:$0xff] }
 0x7d2   :  { %2756 = vmatpush1.msra.mxu0 %v12409_v14  ;;  %2827 = vmatpush1.msra.mxu1 %v12410_v48  ;;  %v12429_v14 = vld [vmem:[#allocation41_spill] sm:$0xff]  ;;  %v12430_v48 = vld [vmem:[#allocation42_spill] sm:$0xff] }
 0x7d3   :  { %2757 = vmatprep.subr.mxu0 %v12411_v5  ;;  %2828 = vmatprep.subr.mxu1 %v12412_v25  ;;  %v12431_v5 = vld [vmem:[#allocation43_spill] sm:$0xff]  ;;  %v12432_v25 = vld [vmem:[#allocation44_spill] sm:$0xff] }
 0x7d4   :  { %2758 = vmatpush1.msra.mxu0 %v12413_v28  ;;  %2829 = vmatpush1.msra.mxu1 %v12414_v15  ;;  %v12433_v28 = vld [vmem:[#allocation45_spill] sm:$0xff]  ;;  %v12434_v15 = vld [vmem:[#allocation84_spill] sm:$0xff] }
 0x7d5   :  { %2759 = vmatprep.subr.mxu0 %v12415_v49  ;;  %2830 = vmatprep.subr.mxu1 %v12416_v16  ;;  %v12435_v49 = vld [vmem:[#allocation85_spill] sm:$0xff]  ;;  %v12436_v16 = vld [vmem:[#allocation88_spill] sm:$0xff] }
 0x7d6   :  { %2760 = vmatpush1.msra.mxu0 %v12417_v18  ;;  %2831 = vmatpush1.msra.mxu1 %v12418_v43  ;;  %v12437_v18 = vld [vmem:[#allocation89_spill] sm:$0xff]  ;;  %v12438_v43 = vld [vmem:[#allocation90_spill] sm:$0xff] }
 0x7d7   :  { %2761 = vmatprep.subr.mxu0 %v12419_v45  ;;  %2832 = vmatprep.subr.mxu1 %v12420_v44  ;;  %v12439_v45 = vld [vmem:[#allocation91_spill] sm:$0xff]  ;;  %v12440_v44 = vld [vmem:[#allocation92_spill] sm:$0xff] }
 0x7d8   :  { %2762 = vmatpush1.msra.mxu0 %v12421_v12  ;;  %2833 = vmatpush1.msra.mxu1 %v12422_v19  ;;  %v12441_v12 = vld [vmem:[#allocation93_spill] sm:$0xff]  ;;  %v12442_v19 = vld [vmem:[#allocation94_spill] sm:$0xff] }
 0x7d9   :  { %2763 = vmatprep.subr.mxu0 %v12423_v47  ;;  %2834 = vmatprep.subr.mxu1 %v12424_v59  ;;  %v12443_v47 = vld [vmem:[#allocation96_spill] sm:$0xff]  ;;  %v12444_v59 = vld [vmem:[#allocation7_spill] sm:$0xff] }
 0x7da   :  { %2764 = vmatpush1.msra.mxu0 %v12425_v46  ;;  %2835 = vmatpush1.msra.mxu1 %v12426_v56  ;;  %v12445_v46 = vld [vmem:[#allocation8_spill] sm:$0xff]  ;;  %v12446_v56 = vld [vmem:[#allocation9_spill] sm:$0xff] }
 0x7db   :  { %2765 = vmatprep.subr.mxu0 %v12427_v33  ;;  %2836 = vmatprep.subr.mxu1 %v12428_v60  ;;  %v12447_v33 = vld [vmem:[#allocation10_spill] sm:$0xff]  ;;  %v12448_v60 = vld [vmem:[#allocation11_spill] sm:$0xff] }
 0x7dc   :  { %2766 = vmatpush1.msra.mxu0 %v12429_v14  ;;  %2837 = vmatpush1.msra.mxu1 %v12430_v48  ;;  %v12449_v14 = vld [vmem:[#allocation12_spill] sm:$0xff]  ;;  %v12450_v48 = vld [vmem:[#allocation13_spill] sm:$0xff] }
 0x7dd   :  { %2767 = vmatprep.subr.mxu0 %v12431_v5  ;;  %2838 = vmatprep.subr.mxu1 %v12432_v25  ;;  %v12451_v5 = vld [vmem:[#allocation14_spill] sm:$0xff]  ;;  %v12452_v25 = vld [vmem:[#allocation15_spill] sm:$0xff] }
 0x7de   :  { %2768 = vmatpush1.msra.mxu0 %v12433_v28  ;;  %2839 = vmatpush1.msra.mxu1 %v12434_v15  ;;  %v12453_v28 = vld [vmem:[#allocation16_spill] sm:$0xff]  ;;  %v12454_v15 = vld [vmem:[#allocation17_spill] sm:$0xff] }
 0x7df   :  { %2769 = vmatprep.subr.mxu0 %v12435_v49  ;;  %2840 = vmatprep.subr.mxu1 %v12436_v16  ;;  %v12455_v49 = vld [vmem:[#allocation18_spill] sm:$0xff]  ;;  %v12456_v16 = vld [vmem:[#allocation19_spill] sm:$0xff] }
 0x7e0   :  { %2770 = vmatpush1.msra.mxu0 %v12437_v18  ;;  %2841 = vmatpush1.msra.mxu1 %v12438_v43 }
 0x7e1   :  { %2771 = vmatprep.subr.mxu0 %v12439_v45  ;;  %2842 = vmatprep.subr.mxu1 %v12440_v44 }
 0x7e2   :  { %2772 = vmatpush1.msra.mxu0 %v12441_v12  ;;  %2843 = vmatpush1.msra.mxu1 %v12442_v19 }
 0x7e3   :  { %2773 = vmatprep.subr.mxu0 %v12443_v47  ;;  %2844 = vmatprep.subr.mxu1 %v12444_v59 }
 0x7e4   :  { %2774 = vmatpush1.msra.mxu0 %v12445_v46  ;;  %2845 = vmatpush1.msra.mxu1 %v12446_v56 }
 0x7e5   :  { %2775 = vmatprep.subr.mxu0 %v12447_v33  ;;  %2846 = vmatprep.subr.mxu1 %v12448_v60 }
 0x7e6   :  { %2776 = vmatpush1.msra.mxu0 %v12449_v14  ;;  %2847 = vmatpush1.msra.mxu1 %v12450_v48 }
 0x7e7   :  { %2777 = vmatprep.subr.mxu0 %v12451_v5  ;;  %2848 = vmatprep.subr.mxu1 %v12452_v25 }
 0x7e8   :  { %2778 = vmatpush1.msra.mxu0 %v12453_v28  ;;  %2849 = vmatpush1.msra.mxu1 %v12454_v15 }
 0x7e9   :  { %2811 = vmatprep.mubr.f32.mxu0 %v12242_v22  ;;  %2882 = vmatprep.mubr.f32.mxu1 %v12242_v22 }
 0x7ea   :  { %2889 = vmatprep.subr.mxu0 %v12455_v49  ;;  %2960 = vmatprep.subr.mxu1 %v12456_v16 }
 0x867   :  { %v2494_v18 = vpop.f32.mrf.mxu0  ;;  %v2565_v43 = vpop.f32.mrf.mxu1 }
 0x869   :  { %v2496_v45 = vpop.f32.mrf.mxu0  ;;  %v2567_v44 = vpop.f32.mrf.mxu1 }
 0x888   :  { %v2636_v12 = vpop.f32.mrf.mxu0  ;;  %v2707_v47 = vpop.f32.mrf.mxu1 }
 0x889   :  { %v2637_v19 = vadd.f32 %v2636_v12, %v2494_v18  ;;  %v2708_v60 = vadd.f32 %v2707_v47, %v2565_v43 }
 0x88a   :  { %v2638_v59 = vpop.f32.mrf.mxu0  ;;  %v2709_v5 = vpop.f32.mrf.mxu1 }
 0x88b   :  { %v2712_v46 = vadd.f32 %v2637_v19, %v6890_v54  ;;  %v2639_v56 = vadd.f32 %v2638_v59, %v2496_v45  ;;  %v2714_v25 = vadd.f32 %v2708_v60, %v6895_v40  ;;  %v2710_v28 = vadd.f32 %v2709_v5, %v2567_v44 }
 0x88d   :  { %v2716_v33 = vmul.f32 0.5, %v2712_v46  ;;  %v2713_v14 = vadd.f32 %v2639_v56, %v11964_v20  ;;  %v2715_v15 = vadd.f32 %v2710_v28, %v6899_v53  ;;  %v2740_v56 = vpop.permute.xlu1 %2739 }
 0x88e   :  { %vm2741_vm7 = vcmp.eq.s32.totalorder %v2740_v56, 1  ;;  %v8994_v56 = vld [vmem:[#allocation4 + $0x150] sm:$0xff] }
 0x88f   :  { %5418 = vtanh.f32 %v2716_v33  ;;  %v2720_v48 = vmul.f32 0.5, %v2713_v14  ;;  %v2725_v49 = vmul.f32 0.5, %v2715_v15  ;;  %v8961_v15 = vld [vmem:[#allocation4 + $0x188] sm:$0xff]  ;;  %12488 = vst [vmem:[#allocation26_spill] sm:$0xff] %v8994_v56 }
 0x891   :  { %5420 = vtanh.f32 %v2720_v48 }
 0x892   :  { %5422 = vtanh.f32 %v2714_v25 }
 0x893   :  { %5424 = vtanh.f32 %v2725_v49  ;;  %v8964_v49 = vld [vmem:[#allocation4 + $0x198] sm:$0xff] }
 0x89c   :  { %v5419_v16 = vpop.eup %5418 }
 0x89d   :  { %v2718_v18 = vmul.f32 0.5, %v5419_v16  ;;  %v8967_v16 = vld [vmem:[#allocation4 + $0x180] sm:$0xff] }
 0x89e   :  { %v5421_v12 = vpop.eup %5420 }
 0x89f   :  { %v2719_v19 = vadd.f32 0.5, %v2718_v18  ;;  %v2722_v45 = vmul.f32 0.5, %v5421_v12  ;;  %v5423_v47 = vpop.eup %5422  ;;  %v8970_v18 = vld [vmem:[#allocation4 + $0x190] sm:$0xff]  ;;  %v8973_v12 = vld [vmem:[#allocation4 + $0x168] sm:$0xff] }
 0x8a0   :  { %v5425_v60 = vpop.eup %5424 }
 0x8a1   :  { %v2723_v43 = vadd.f32 0.5, %v2722_v45  ;;  %v2730_v46 = vmul.f32 %v5423_v47, %v2719_v19  ;;  %v2727_v14 = vmul.f32 0.5, %v5425_v60  ;;  %v8976_v19 = vld [vmem:[#allocation4 + $0x178] sm:$0xff]  ;;  %v8979_v45 = vld [vmem:[#allocation4 + $0x160] sm:$0xff]  ;;  %v8985_v47 = vld [vmem:[#allocation4 + $0x148] sm:$0xff] }
 0x8a2   :  { %12482 = vst [vmem:[#allocation20_spill] sm:$0xff] %v8976_v19  ;;  %12483 = vst [vmem:[#allocation21_spill] sm:$0xff] %v8979_v45  ;;  %v9000_v60 = vld [vmem:[#allocation4 + $0x138] sm:$0xff] }
 0x8a3   :  { %v2729_v59 = vmul.f32 %v2723_v43, %v8702_v62  ;;  %v2728_v48 = vadd.f32 0.5, %v2727_v14  ;;  %v8982_v43 = vld [vmem:[#allocation4 + $0x170] sm:$0xff]  ;;  %12485 = vst [vmem:[#allocation23_spill] sm:$0xff] %v8985_v47  ;;  %12490 = vst [vmem:[#allocation28_spill] sm:$0xff] %v9000_v60  ;;  %v9003_v14 = vld [vmem:[#allocation4 + $0x120] sm:$0xff] }
 0x8a4   :  { %12484 = vst [vmem:[#allocation22_spill] sm:$0xff] %v8982_v43  ;;  %12491 = vst [vmem:[#allocation68_spill] sm:$0xff] %v9003_v14 }
 0x8a5   :  { %v2731_v33 = vadd.f32 %v2730_v46, %v2729_v59  ;;  %v8988_v59 = vld [vmem:[#allocation4 + $0x158] sm:$0xff]  ;;  %v8991_v46 = vld [vmem:[#allocation4 + $0x140] sm:$0xff] }
 0x8a6   :  { %12486 = vst [vmem:[#allocation24_spill] sm:$0xff] %v8988_v59  ;;  %12487 = vst [vmem:[#allocation25_spill] sm:$0xff] %v8991_v46 }
 0x8a7   :  { %5426 = vtanh.f32 %v2731_v33  ;;  %v8848_v44 = vsel %vm2741_vm7, %v2731_v33, %v8702_v62  ;;  %v12472_v62 = vld [vmem:[#allocation58_spill] sm:$0xff]  ;;  %v8997_v33 = vld [vmem:[#allocation4 + $0x128] sm:$0xff] }
 0x8a8   :  { %12489 = vst [vmem:[#allocation27_spill] sm:$0xff] %v8997_v33 }
 0x8b4   :  { %v5427_v5 = vpop.eup %5426 }
 0x8b5   :  { %v2733_v25 = vmul.f32 %v5427_v5, %v2728_v48  ;;  %v9006_v48 = vld [vmem:[#allocation4 + $0x130] sm:$0xff]  ;;  %v9009_v5 = vld [vmem:[#allocation4 + $0x108] sm:$0xff] }
 0x8b6   :  { %12492 = vst [vmem:[#allocation71_spill] sm:$0xff] %v9006_v48  ;;  %12493 = vst [vmem:[#allocation72_spill] sm:$0xff] %v9009_v5 }
 0x8b7   :  { %v8851_v28 = vsel %vm2741_vm7, %v2733_v25, %v8705_v0  ;;  %v12473_v0 = vld [vmem:[#allocation59_spill] sm:$0xff]  ;;  %v9012_v25 = vld [vmem:[#allocation4 + $0x118] sm:$0xff] }
 0x8b8   :  { %2812 = vmatmul.mubr.f32.vlgmr.msra.gmra.mxu0 %v8851_v28  ;;  %2883 = vmatmul.mubr.f32.vlgmr.msra.gmra.mxu1 %v8851_v28  ;;  %12494 = vst [vmem:[#allocation73_spill] sm:$0xff] %v9012_v25 }
 0x8b9   :  { %2890 = vmatpush1.msra.mxu0 %v8251_v35  ;;  %2961 = vmatpush1.msra.mxu1 %v8257_v58  ;;  %v12457_v35 = vld [vmem:[#allocation29_spill] sm:$0xff]  ;;  %v12458_v58 = vld [vmem:[#allocation30_spill] sm:$0xff] }
 0x8ba   :  { %2891 = vmatprep.subr.mxu0 %v8263_v63  ;;  %2962 = vmatprep.subr.mxu1 %v8269_v4  ;;  %v12459_v63 = vld [vmem:[#allocation31_spill] sm:$0xff]  ;;  %v12460_v4 = vld [vmem:[#allocation32_spill] sm:$0xff] }
 0x8bb   :  { %2892 = vmatpush1.msra.mxu0 %v8275_v17  ;;  %2963 = vmatpush1.msra.mxu1 %v8281_v11  ;;  %v12461_v17 = vld [vmem:[#allocation33_spill] sm:$0xff]  ;;  %v12462_v11 = vld [vmem:[#allocation34_spill] sm:$0xff] }
 0x8bc   :  { %2893 = vmatprep.subr.mxu0 %v8287_v13  ;;  %2964 = vmatprep.subr.mxu1 %v8293_v10  ;;  %v12463_v13 = vld [vmem:[#allocation35_spill] sm:$0xff]  ;;  %v12464_v10 = vld [vmem:[#allocation36_spill] sm:$0xff] }
 0x8bd   :  { %2894 = vmatpush1.msra.mxu0 %v8299_v7  ;;  %2965 = vmatpush1.msra.mxu1 %v8305_v26  ;;  %v12465_v7 = vld [vmem:[#allocation37_spill] sm:$0xff]  ;;  %v12466_v26 = vld [vmem:[#allocation38_spill] sm:$0xff] }
 0x8be   :  { %2895 = vmatprep.subr.mxu0 %v8311_v51  ;;  %2966 = vmatprep.subr.mxu1 %v8317_v30  ;;  %v12467_v51 = vld [vmem:[#allocation53_spill] sm:$0xff]  ;;  %v12468_v30 = vld [vmem:[#allocation54_spill] sm:$0xff] }
 0x8bf   :  { %2896 = vmatpush1.msra.mxu0 %v8323_v29  ;;  %2967 = vmatpush1.msra.mxu1 %v8329_v2  ;;  %v12469_v29 = vld [vmem:[#allocation55_spill] sm:$0xff]  ;;  %v12470_v2 = vld [vmem:[#allocation56_spill] sm:$0xff] }
 0x8c0   :  { %2897 = vmatprep.subr.mxu0 %v8335_v21  ;;  %2968 = vmatprep.subr.mxu1 %v12365_v37  ;;  %v12471_v21 = vld [vmem:[#allocation57_spill] sm:$0xff]  ;;  %v12474_v37 = vld [vmem:[#allocation60_spill] sm:$0xff] }
 0x8c1   :  { %2898 = vmatpush1.msra.mxu0 %v12366_v55  ;;  %2969 = vmatpush1.msra.mxu1 %v12367_v34  ;;  %v12475_v55 = vld [vmem:[#allocation61_spill] sm:$0xff]  ;;  %v12476_v34 = vld [vmem:[#allocation62_spill] sm:$0xff] }
 0x8c2   :  { %2899 = vmatprep.subr.mxu0 %v12368_v52  ;;  %2970 = vmatprep.subr.mxu1 %v12369_v23  ;;  %v12477_v52 = vld [vmem:[#allocation63_spill] sm:$0xff]  ;;  %v12478_v23 = vld [vmem:[#allocation64_spill] sm:$0xff] }
 0x8c3   :  { %2900 = vmatpush1.msra.mxu0 %v12370_v24  ;;  %2971 = vmatpush1.msra.mxu1 %v12371_v39  ;;  %v12479_v24 = vld [vmem:[#allocation65_spill] sm:$0xff]  ;;  %v12480_v39 = vld [vmem:[#allocation66_spill] sm:$0xff] }
 0x8c4   :  { %2901 = vmatprep.subr.mxu0 %v12372_v38  ;;  %2972 = vmatprep.subr.mxu1 %v12373_v42  ;;  %v12481_v38 = vld [vmem:[#allocation67_spill] sm:$0xff] }
 0x8c5   :  { %2902 = vmatpush1.msra.mxu0 %v12457_v35  ;;  %2973 = vmatpush1.msra.mxu1 %v12458_v58  ;;  %v8910_v42 = vld [vmem:[%s10932_s1 + $0x20] sm:$0xff]   ;;  %v9018_v58 = vld [vmem:[#allocation4 + $0x110] sm:$0xff] }
 0x8c6   :  { %2903 = vmatprep.subr.mxu0 %v12459_v63  ;;  %2974 = vmatprep.subr.mxu1 %v12460_v4  ;;  %v9015_v35 = vld [vmem:[#allocation4 + $0x100] sm:$0xff]  ;;  %12496 = vst [vmem:[#allocation75_spill] sm:$0xff] %v9018_v58  ;;  %v9021_v63 = vld [vmem:[#allocation4 + $0xe8] sm:$0xff]  ;;  %v9024_v4 = vld [vmem:[#allocation4 + $0xf8] sm:$0xff] }
 0x8c7   :  { %2904 = vmatpush1.msra.mxu0 %v12461_v17  ;;  %2975 = vmatpush1.msra.mxu1 %v12462_v11  ;;  %12495 = vst [vmem:[#allocation74_spill] sm:$0xff] %v9015_v35  ;;  %12497 = vst [vmem:[#allocation76_spill] sm:$0xff] %v9021_v63  ;;  %v9027_v17 = vld [vmem:[#allocation4 + $0xe0] sm:$0xff]  ;;  %v9030_v11 = vld [vmem:[#allocation4 + $0xf0] sm:$0xff] }
 0x8c8   :  { %2905 = vmatprep.subr.mxu0 %v12463_v13  ;;  %2976 = vmatprep.subr.mxu1 %v12464_v10  ;;  %12498 = vst [vmem:[#allocation77_spill] sm:$0xff] %v9024_v4  ;;  %12499 = vst [vmem:[#allocation78_spill] sm:$0xff] %v9027_v17  ;;  %v9033_v13 = vld [vmem:[#allocation4 + $0xc8] sm:$0xff]  ;;  %v9036_v10 = vld [vmem:[#allocation4 + $0xd8] sm:$0xff] }
 0x8c9   :  { %2906 = vmatpush1.msra.mxu0 %v12465_v7  ;;  %2977 = vmatpush1.msra.mxu1 %v12466_v26  ;;  %12500 = vst [vmem:[#allocation98_spill] sm:$0xff] %v9030_v11  ;;  %12501 = vst [vmem:[#allocation95_spill] sm:$0xff] %v9033_v13  ;;  %v9039_v7 = vld [vmem:[#allocation4 + $0xc0] sm:$0xff]  ;;  %v9042_v26 = vld [vmem:[#allocation4 + $0xd0] sm:$0xff] }
 0x8ca   :  { %2907 = vmatprep.subr.mxu0 %v12467_v51  ;;  %2978 = vmatprep.subr.mxu1 %v12468_v30  ;;  %12502 = vst [vmem:[#allocation97_spill] sm:$0xff] %v9036_v10  ;;  %12503 = vst [vmem:[#allocation46_spill] sm:$0xff] %v9039_v7  ;;  %v9045_v51 = vld [vmem:[#allocation4 + $0xa8] sm:$0xff]  ;;  %v9048_v30 = vld [vmem:[#allocation4 + $0xb8] sm:$0xff] }
 0x8cb   :  { %2908 = vmatpush1.msra.mxu0 %v12469_v29  ;;  %2979 = vmatpush1.msra.mxu1 %v12470_v2  ;;  %12504 = vst [vmem:[#allocation47_spill] sm:$0xff] %v9042_v26  ;;  %12505 = vst [vmem:[#allocation48_spill] sm:$0xff] %v9045_v51  ;;  %v9051_v29 = vld [vmem:[#allocation4 + $0xa0] sm:$0xff]  ;;  %v9054_v2 = vld [vmem:[#allocation4 + $0xb0] sm:$0xff] }
 0x8cc   :  { %2909 = vmatprep.subr.mxu0 %v12471_v21  ;;  %2980 = vmatprep.subr.mxu1 %v12472_v62  ;;  %12506 = vst [vmem:[#allocation49_spill] sm:$0xff] %v9048_v30  ;;  %12507 = vst [vmem:[#allocation50_spill] sm:$0xff] %v9051_v29  ;;  %v9057_v21 = vld [vmem:[#allocation4 + $0x88] sm:$0xff]  ;;  %v9060_v62 = vld [vmem:[#allocation4 + $0x98] sm:$0xff] }
 0x8cd   :  { %2910 = vmatpush1.msra.mxu0 %v12473_v0  ;;  %2981 = vmatpush1.msra.mxu1 %v12474_v37  ;;  %12508 = vst [vmem:[#allocation51_spill] sm:$0xff] %v9054_v2  ;;  %12509 = vst [vmem:[#allocation52_spill] sm:$0xff] %v9057_v21  ;;  %v9063_v0 = vld [vmem:[#allocation4 + $0x80] sm:$0xff]  ;;  %v9066_v37 = vld [vmem:[#allocation4 + $0x90] sm:$0xff] }
 0x8ce   :  { %2911 = vmatprep.subr.mxu0 %v12475_v55  ;;  %2982 = vmatprep.subr.mxu1 %v12476_v34  ;;  %12510 = vst [vmem:[#allocation69_spill] sm:$0xff] %v9060_v62  ;;  %12511 = vst [vmem:[#allocation70_spill] sm:$0xff] %v9063_v0  ;;  %v9069_v55 = vld [vmem:[#allocation4 + $0x68] sm:$0xff]  ;;  %v9072_v34 = vld [vmem:[#allocation4 + $0x78] sm:$0xff] }
 0x8cf   :  { %2912 = vmatpush1.msra.mxu0 %v12477_v52  ;;  %2983 = vmatpush1.msra.mxu1 %v12478_v23  ;;  %12512 = vst [vmem:[#allocation79_spill] sm:$0xff] %v9066_v37  ;;  %12513 = vst [vmem:[#allocation80_spill] sm:$0xff] %v9069_v55  ;;  %v9075_v52 = vld [vmem:[#allocation4 + $0x60] sm:$0xff]  ;;  %v9078_v23 = vld [vmem:[#allocation4 + $0x70] sm:$0xff] }
 0x8d0   :  { %2913 = vmatprep.subr.mxu0 %v12479_v24  ;;  %2984 = vmatprep.subr.mxu1 %v12480_v39  ;;  %12514 = vst [vmem:[#allocation81_spill] sm:$0xff] %v9072_v34  ;;  %12515 = vst [vmem:[#allocation82_spill] sm:$0xff] %v9075_v52  ;;  %v9081_v24 = vld [vmem:[#allocation4 + $0x48] sm:$0xff]  ;;  %v9084_v39 = vld [vmem:[#allocation4 + $0x58] sm:$0xff] }
 0x8d1   :  { %2914 = vmatpush1.msra.mxu0 %v12481_v38  ;;  %2985 = vmatpush1.msra.mxu1 %v12399_v1  ;;  %v2746_v1 = vunpack.c.l.bf16 %v8910_v42  ;;  %12516 = vst [vmem:[#allocation83_spill] sm:$0xff] %v9078_v23  ;;  %12517 = vst [vmem:[#allocation86_spill] sm:$0xff] %v9081_v24  ;;  %v9087_v38 = vld [vmem:[#allocation4 + $0x40] sm:$0xff] }
 0x8d2   :  { %2915 = vmatprep.subr.mxu0 %v12400_v36  ;;  %2986 = vmatprep.subr.mxu1 %v12401_v3  ;;  %v8925_v36 = vld [vmem:[#allocation4 + $0x1e8] sm:$0xff]  ;;  %v8943_v3 = vld [vmem:[#allocation4 + $0x1c0] sm:$0xff]  ;;  %12518 = vst [vmem:[#allocation87_spill] sm:$0xff] %v9084_v39  ;;  %12519 = vst [vmem:[#allocation39_spill] sm:$0xff] %v9087_v38 }
 0x8d3   :  { %2916 = vmatpush1.msra.mxu0 %v12402_v61  ;;  %2987 = vmatpush1.msra.mxu1 %v12403_v8  ;;  %v8946_v61 = vld [vmem:[#allocation4 + $0x1d0] sm:$0xff]  ;;  %v8949_v8 = vld [vmem:[#allocation4 + $0x1a8] sm:$0xff] }
 0x8d4   :  { %2917 = vmatprep.subr.mxu0 %v12404_v57  ;;  %2988 = vmatprep.subr.mxu1 %v12405_v9  ;;  %v8952_v57 = vld [vmem:[#allocation4 + $0x1b8] sm:$0xff]  ;;  %v8955_v9 = vld [vmem:[#allocation4 + $0x1a0] sm:$0xff] }
 0x8d5   :  { %2918 = vmatpush1.msra.mxu0 %v12406_v6  ;;  %2989 = vmatpush1.msra.mxu1 %v12407_v41  ;;  %v8928_v41 = vld [vmem:[#allocation4 + $0x1f8] sm:$0xff]  ;;  %v8958_v6 = vld [vmem:[#allocation4 + $0x1b0] sm:$0xff] }
 0x8d6   :  { %2919 = vmatprep.subr.mxu0 %v12408_v50  ;;  %2990 = vmatprep.subr.mxu1 %v8611_v31  ;;  %v8931_v50 = vld [vmem:[#allocation4 + $0x1e0] sm:$0xff]  ;;  %v8934_v31 = vld [vmem:[#allocation4 + $0x1f0] sm:$0xff] }
 0x8d7   :  { %2920 = vmatpush1.msra.mxu0 %v8617_v27  ;;  %2953 = vmatprep.mubr.f32.mxu0 %v12242_v22  ;;  %v8940_v27 = vld [vmem:[#allocation4 + $0x1d8] sm:$0xff] }
 0x8d8   :  { %2991 = vmatpush1.msra.mxu1 %v8624_v32  ;;  %3024 = vmatprep.mubr.f32.mxu1 %v12242_v22  ;;  %v8937_v32 = vld [vmem:[#allocation4 + $0x1c8] sm:$0xff] }
 0x8d9   :  { %2954 = vmatmul.mubr.f32.vlgmr.msra.gmra.mxu0 %v2746_v1  ;;  %3025 = vmatmul.mubr.f32.vlgmr.msra.gmra.mxu1 %v2746_v1  ;;  %v9090_v1 = vld [vmem:[#allocation4 + $0x50] sm:$0xff] }
 0x8da   :  { %3066 = vmatprep.subr.mxu0 %v8925_v36  ;;  %3137 = vmatprep.subr.mxu1 %v8928_v41  ;;  %12520 = vst [vmem:[#allocation40_spill] sm:$0xff] %v9090_v1 }
 0x8db   :  { %3067 = vmatpush1.msra.mxu0 %v8931_v50  ;;  %3138 = vmatpush1.msra.mxu1 %v8934_v31 }
 0x8dc   :  { %3068 = vmatprep.subr.mxu0 %v8937_v32  ;;  %3139 = vmatprep.subr.mxu1 %v8940_v27 }
 0x8dd   :  { %3069 = vmatpush1.msra.mxu0 %v8943_v3  ;;  %3140 = vmatpush1.msra.mxu1 %v8946_v61 }
 0x8de   :  { %3070 = vmatprep.subr.mxu0 %v8949_v8  ;;  %3141 = vmatprep.subr.mxu1 %v8952_v57 }
 0x8df   :  { %3071 = vmatpush1.msra.mxu0 %v8955_v9  ;;  %3142 = vmatpush1.msra.mxu1 %v8958_v6 }
 0x8e0   :  { %3072 = vmatprep.subr.mxu0 %v8961_v15  ;;  %3143 = vmatprep.subr.mxu1 %v8964_v49 }
 0x8e1   :  { %3073 = vmatpush1.msra.mxu0 %v8967_v16  ;;  %3144 = vmatpush1.msra.mxu1 %v8970_v18 }
 0x8e2   :  { %3074 = vmatprep.subr.mxu0 %v8973_v12  ;;  %3145 = vmatprep.subr.mxu1 %v8976_v19 }
 0x8e3   :  { %3075 = vmatpush1.msra.mxu0 %v8979_v45  ;;  %3146 = vmatpush1.msra.mxu1 %v8982_v43 }
 0x8e4   :  { %3076 = vmatprep.subr.mxu0 %v8985_v47  ;;  %3147 = vmatprep.subr.mxu1 %v8988_v59 }
 0x8e5   :  { %3077 = vmatpush1.msra.mxu0 %v8991_v46  ;;  %3148 = vmatpush1.msra.mxu1 %v8994_v56 }
 0x8e6   :  { %3078 = vmatprep.subr.mxu0 %v8997_v33  ;;  %3149 = vmatprep.subr.mxu1 %v9000_v60 }
 0x8e7   :  { %3079 = vmatpush1.msra.mxu0 %v9003_v14  ;;  %3150 = vmatpush1.msra.mxu1 %v9006_v48 }
 0x8e8   :  { %3080 = vmatprep.subr.mxu0 %v9009_v5  ;;  %3151 = vmatprep.subr.mxu1 %v9012_v25 }
 0x8e9   :  { %3081 = vmatpush1.msra.mxu0 %v9015_v35  ;;  %3152 = vmatpush1.msra.mxu1 %v9018_v58 }
 0x8ea   :  { %3082 = vmatprep.subr.mxu0 %v9021_v63  ;;  %3153 = vmatprep.subr.mxu1 %v9024_v4 }
 0x8eb   :  { %3083 = vmatpush1.msra.mxu0 %v9027_v17  ;;  %3154 = vmatpush1.msra.mxu1 %v9030_v11 }
 0x8ec   :  { %3084 = vmatprep.subr.mxu0 %v9033_v13  ;;  %3155 = vmatprep.subr.mxu1 %v9036_v10 }
 0x8ed   :  { %3085 = vmatpush1.msra.mxu0 %v9039_v7  ;;  %3156 = vmatpush1.msra.mxu1 %v9042_v26 }
 0x8ee   :  { %3086 = vmatprep.subr.mxu0 %v9045_v51  ;;  %3157 = vmatprep.subr.mxu1 %v9048_v30 }
 0x8ef   :  { %3087 = vmatpush1.msra.mxu0 %v9051_v29  ;;  %3158 = vmatpush1.msra.mxu1 %v9054_v2 }
 0x8f0   :  { %3088 = vmatprep.subr.mxu0 %v9057_v21  ;;  %3159 = vmatprep.subr.mxu1 %v9060_v62 }
 0x8f1   :  { %3089 = vmatpush1.msra.mxu0 %v9063_v0  ;;  %3160 = vmatpush1.msra.mxu1 %v9066_v37 }
 0x8f2   :  { %3090 = vmatprep.subr.mxu0 %v9069_v55  ;;  %3161 = vmatprep.subr.mxu1 %v9072_v34 }
 0x8f3   :  { %3091 = vmatpush1.msra.mxu0 %v9075_v52  ;;  %3162 = vmatpush1.msra.mxu1 %v9078_v23  ;;  %v9093_v52 = vld [vmem:[#allocation4 + $0x28] sm:$0xff]  ;;  %v9096_v23 = vld [vmem:[#allocation4 + $0x38] sm:$0xff] }
 0x8f4   :  { %3092 = vmatprep.subr.mxu0 %v9081_v24  ;;  %3163 = vmatprep.subr.mxu1 %v9084_v39  ;;  %12521 = vst [vmem:[#allocation41_spill] sm:$0xff] %v9093_v52  ;;  %12522 = vst [vmem:[#allocation42_spill] sm:$0xff] %v9096_v23  ;;  %v9099_v24 = vld [vmem:[#allocation4 + $0x20] sm:$0xff]  ;;  %v9102_v39 = vld [vmem:[#allocation4 + $0x30] sm:$0xff] }
 0x8f5   :  { %3093 = vmatpush1.msra.mxu0 %v9087_v38  ;;  %3164 = vmatpush1.msra.mxu1 %v9090_v1  ;;  %12523 = vst [vmem:[#allocation43_spill] sm:$0xff] %v9099_v24  ;;  %12524 = vst [vmem:[#allocation44_spill] sm:$0xff] %v9102_v39  ;;  %v9105_v38 = vld [vmem:[#allocation4 + $0x8] sm:$0xff]  ;;  %v9108_v1 = vld [vmem:[#allocation4 + $0x18] sm:$0xff] }
 0x8f6   :  { %3094 = vmatprep.subr.mxu0 %v9093_v52  ;;  %3165 = vmatprep.subr.mxu1 %v9096_v23  ;;  %12525 = vst [vmem:[#allocation45_spill] sm:$0xff] %v9105_v38  ;;  %12526 = vst [vmem:[#allocation84_spill] sm:$0xff] %v9108_v1  ;;  %v9111_v52 = vld [vmem:[#allocation4] sm:$0xff]  ;;  %v9114_v23 = vld [vmem:[#allocation4 + $0x10] sm:$0xff] }
 0x8f7   :  { %3095 = vmatpush1.msra.mxu0 %v9099_v24  ;;  %3166 = vmatpush1.msra.mxu1 %v9102_v39  ;;  %12527 = vst [vmem:[#allocation85_spill] sm:$0xff] %v9111_v52  ;;  %12528 = vst [vmem:[#allocation88_spill] sm:$0xff] %v9114_v23 }
 0x8f8   :  { %3096 = vmatprep.subr.mxu0 %v9105_v38  ;;  %3167 = vmatprep.subr.mxu1 %v9108_v1  ;;  %v9122_v38 = vld [vmem:[%s10933_s2 + $0x1e8] sm:$0xff]  ;;  %v9128_v1 = vld [vmem:[%s10933_s2 + $0x1f8] sm:$0xff] }
 0x8f9   :  { %3097 = vmatpush1.msra.mxu0 %v9111_v52  ;;  %3168 = vmatpush1.msra.mxu1 %v9114_v23  ;;  %12529 = vst [vmem:[#allocation89_spill] sm:$0xff] %v9122_v38  ;;  %12530 = vst [vmem:[#allocation90_spill] sm:$0xff] %v9128_v1 }
 0x8fa   :  { %3130 = vmatprep.mubr.f32.mxu0 %v12242_v22  ;;  %3201 = vmatprep.mubr.f32.mxu1 %v12242_v22 }
 0x8fb   :  { %3208 = vmatprep.subr.mxu0 %v9122_v38  ;;  %3279 = vmatprep.subr.mxu1 %v9128_v1 }
 0x978   :  { %v2813_v52 = vpop.f32.mrf.mxu0  ;;  %v2884_v23 = vpop.f32.mrf.mxu1 }
 0x97a   :  { %v2815_v39 = vpop.f32.mrf.mxu0  ;;  %v2886_v24 = vpop.f32.mrf.mxu1 }
 0x999   :  { %v2955_v34 = vpop.f32.mrf.mxu0  ;;  %v3026_v37 = vpop.f32.mrf.mxu1 }
 0x99a   :  { %v2956_v55 = vadd.f32 %v2955_v34, %v2813_v52  ;;  %v3027_v38 = vadd.f32 %v3026_v37, %v2884_v23 }
 0x99b   :  { %v2957_v0 = vpop.f32.mrf.mxu0  ;;  %v3028_v51 = vpop.f32.mrf.mxu1 }
 0x99c   :  { %v3031_v62 = vadd.f32 %v2956_v55, %v6890_v54  ;;  %v2958_v21 = vadd.f32 %v2957_v0, %v2815_v39  ;;  %v3033_v1 = vadd.f32 %v3027_v38, %v6895_v40  ;;  %v3029_v26 = vadd.f32 %v3028_v51, %v2886_v24  ;;  %v9165_v38 = vld [vmem:[%s10933_s2 + $0x1d8] sm:$0xff] }
 0x99e   :  { %v3035_v2 = vmul.f32 0.5, %v3031_v62  ;;  %v3032_v29 = vadd.f32 %v2958_v21, %v11964_v20  ;;  %v3034_v7 = vadd.f32 %v3029_v26, %v6899_v53  ;;  %v3059_v21 = vpop.permute.xlu0 %3058 }
 0x99f   :  { %vm3060_vm8 = vcmp.eq.s32.totalorder %v3059_v21, 1  ;;  %v9225_v21 = vld [vmem:[%s10933_s2 + $0x190] sm:$0xff] }
 0x9a0   :  { %5428 = vtanh.f32 %v3035_v2  ;;  %v3039_v30 = vmul.f32 0.5, %v3032_v29  ;;  %v3044_v34 = vmul.f32 0.5, %v3034_v7 }
 0x9a2   :  { %5430 = vtanh.f32 %v3039_v30 }
 0x9a3   :  { %5432 = vtanh.f32 %v3033_v1  ;;  %v9171_v1 = vld [vmem:[%s10933_s2 + $0x1c0] sm:$0xff] }
 0x9a4   :  { %5434 = vtanh.f32 %v3044_v34  ;;  %v9177_v34 = vld [vmem:[%s10933_s2 + $0x1d0] sm:$0xff] }
 0x9ad   :  { %v5429_v52 = vpop.eup %5428 }
 0x9ae   :  { %v3037_v10 = vmul.f32 0.5, %v5429_v52  ;;  %v9183_v52 = vld [vmem:[%s10933_s2 + $0x1a8] sm:$0xff] }
 0x9af   :  { %v5431_v13 = vpop.eup %5430 }
 0x9b0   :  { %v3038_v55 = vadd.f32 0.5, %v3037_v10  ;;  %v3041_v0 = vmul.f32 0.5, %v5431_v13  ;;  %v5433_v37 = vpop.eup %5432  ;;  %v9147_v10 = vld [vmem:[%s10933_s2 + $0x1e0] sm:$0xff] }
 0x9b1   :  { %v5435_v26 = vpop.eup %5434 }
 0x9b2   :  { %v3042_v62 = vadd.f32 0.5, %v3041_v0  ;;  %v3049_v29 = vmul.f32 %v5433_v37, %v3038_v55  ;;  %v3046_v7 = vmul.f32 0.5, %v5435_v26  ;;  %v9189_v55 = vld [vmem:[%s10933_s2 + $0x1b8] sm:$0xff]  ;;  %v9195_v0 = vld [vmem:[%s10933_s2 + $0x1a0] sm:$0xff]  ;;  %v9207_v37 = vld [vmem:[%s10933_s2 + $0x188] sm:$0xff] }
 0x9b3   :  { %v9237_v26 = vld [vmem:[%s10933_s2 + $0x178] sm:$0xff] }
 0x9b4   :  { %v3048_v2 = vmul.f32 %v3042_v62, %v8848_v44  ;;  %v3047_v30 = vadd.f32 0.5, %v3046_v7  ;;  %v9201_v62 = vld [vmem:[%s10933_s2 + $0x1b0] sm:$0xff]  ;;  %v9243_v7 = vld [vmem:[%s10933_s2 + $0x160] sm:$0xff] }
 0x9b5   :  { %12531 = vst [vmem:[#allocation91_spill] sm:$0xff] %v9243_v7 }
 0x9b6   :  { %v3050_v23 = vadd.f32 %v3049_v29, %v3048_v2  ;;  %v9213_v2 = vld [vmem:[%s10933_s2 + $0x198] sm:$0xff]  ;;  %v9219_v29 = vld [vmem:[%s10933_s2 + $0x180] sm:$0xff] }
 0x9b8   :  { %5436 = vtanh.f32 %v3050_v23  ;;  %v9137_v51 = vsel %vm3060_vm8, %v3050_v23, %v8848_v44  ;;  %v9153_v44 = vld [vmem:[%s10933_s2 + $0x1f0] sm:$0xff]  ;;  %v9231_v23 = vld [vmem:[%s10933_s2 + $0x168] sm:$0xff] }
 0x9c5   :  { %v5437_v24 = vpop.eup %5436 }
 0x9c6   :  { %v3052_v39 = vmul.f32 %v5437_v24, %v3047_v30  ;;  %v9249_v30 = vld [vmem:[%s10933_s2 + $0x170] sm:$0xff]  ;;  %v9255_v24 = vld [vmem:[%s10933_s2 + $0x148] sm:$0xff] }
 0x9c7   :  { %12532 = vst [vmem:[#allocation92_spill] sm:$0xff] %v9249_v30  ;;  %12533 = vst [vmem:[#allocation93_spill] sm:$0xff] %v9255_v24 }
 0x9c8   :  { %v9140_v13 = vsel %vm3060_vm8, %v3052_v39, %v8851_v28  ;;  %v9159_v28 = vld [vmem:[%s10933_s2 + $0x1c8] sm:$0xff]  ;;  %v9261_v39 = vld [vmem:[%s10933_s2 + $0x158] sm:$0xff] }
 0x9c9   :  { %3131 = vmatmul.mubr.f32.vlgmr.msra.gmra.mxu0 %v9140_v13  ;;  %3202 = vmatmul.mubr.f32.vlgmr.msra.gmra.mxu1 %v9140_v13  ;;  %12534 = vst [vmem:[#allocation94_spill] sm:$0xff] %v9261_v39 }
 0x9ca   :  { %3209 = vmatpush1.msra.mxu0 %v9147_v10  ;;  %3280 = vmatpush1.msra.mxu1 %v9153_v44 }
 0x9cb   :  { %3210 = vmatprep.subr.mxu0 %v9159_v28  ;;  %3281 = vmatprep.subr.mxu1 %v9165_v38 }
 0x9cc   :  { %3211 = vmatpush1.msra.mxu0 %v9171_v1  ;;  %3282 = vmatpush1.msra.mxu1 %v9177_v34 }
 0x9cd   :  { %3212 = vmatprep.subr.mxu0 %v9183_v52  ;;  %3283 = vmatprep.subr.mxu1 %v9189_v55 }
 0x9ce   :  { %3213 = vmatpush1.msra.mxu0 %v9195_v0  ;;  %3284 = vmatpush1.msra.mxu1 %v9201_v62 }
 0x9cf   :  { %3214 = vmatprep.subr.mxu0 %v9207_v37  ;;  %3285 = vmatprep.subr.mxu1 %v9213_v2 }
 0x9d0   :  { %3215 = vmatpush1.msra.mxu0 %v9219_v29  ;;  %3286 = vmatpush1.msra.mxu1 %v9225_v21 }
 0x9d1   :  { %3216 = vmatprep.subr.mxu0 %v9231_v23  ;;  %3287 = vmatprep.subr.mxu1 %v9237_v26 }
 0x9d2   :  { %3217 = vmatpush1.msra.mxu0 %v9243_v7  ;;  %3288 = vmatpush1.msra.mxu1 %v9249_v30  ;;  %v9267_v7 = vld [vmem:[%s10933_s2 + $0x140] sm:$0xff]  ;;  %v9273_v30 = vld [vmem:[%s10933_s2 + $0x150] sm:$0xff] }
 0x9d3   :  { %3218 = vmatprep.subr.mxu0 %v9255_v24  ;;  %3289 = vmatprep.subr.mxu1 %v9261_v39  ;;  %12535 = vst [vmem:[#allocation96_spill] sm:$0xff] %v9267_v7  ;;  %12536 = vst [vmem:[#allocation7_spill] sm:$0xff] %v9273_v30  ;;  %v9279_v24 = vld [vmem:[%s10933_s2 + $0x128] sm:$0xff]  ;;  %v9285_v39 = vld [vmem:[%s10933_s2 + $0x138] sm:$0xff] }
 0x9d4   :  { %3219 = vmatpush1.msra.mxu0 %v9267_v7  ;;  %3290 = vmatpush1.msra.mxu1 %v9273_v30  ;;  %12537 = vst [vmem:[#allocation8_spill] sm:$0xff] %v9279_v24  ;;  %12538 = vst [vmem:[#allocation9_spill] sm:$0xff] %v9285_v39  ;;  %v9291_v7 = vld [vmem:[%s10933_s2 + $0x120] sm:$0xff]  ;;  %v9297_v30 = vld [vmem:[%s10933_s2 + $0x130] sm:$0xff] }
 0x9d5   :  { %3220 = vmatprep.subr.mxu0 %v9279_v24  ;;  %3291 = vmatprep.subr.mxu1 %v9285_v39  ;;  %12539 = vst [vmem:[#allocation10_spill] sm:$0xff] %v9291_v7  ;;  %12540 = vst [vmem:[#allocation11_spill] sm:$0xff] %v9297_v30  ;;  %v9303_v24 = vld [vmem:[%s10933_s2 + $0x108] sm:$0xff]  ;;  %v9309_v39 = vld [vmem:[%s10933_s2 + $0x118] sm:$0xff] }
 0x9d6   :  { %3221 = vmatpush1.msra.mxu0 %v9291_v7  ;;  %3292 = vmatpush1.msra.mxu1 %v9297_v30  ;;  %12541 = vst [vmem:[#allocation12_spill] sm:$0xff] %v9303_v24  ;;  %12542 = vst [vmem:[#allocation13_spill] sm:$0xff] %v9309_v39  ;;  %v9315_v7 = vld [vmem:[%s10933_s2 + $0x100] sm:$0xff]  ;;  %v9321_v30 = vld [vmem:[%s10933_s2 + $0x110] sm:$0xff] }
 0x9d7   :  { %3222 = vmatprep.subr.mxu0 %v9303_v24  ;;  %3293 = vmatprep.subr.mxu1 %v9309_v39  ;;  %12543 = vst [vmem:[#allocation14_spill] sm:$0xff] %v9315_v7  ;;  %12544 = vst [vmem:[#allocation15_spill] sm:$0xff] %v9321_v30  ;;  %v9327_v24 = vld [vmem:[%s10933_s2 + $0xe8] sm:$0xff]  ;;  %v9333_v39 = vld [vmem:[%s10933_s2 + $0xf8] sm:$0xff] }
 0x9d8   :  { %3223 = vmatpush1.msra.mxu0 %v9315_v7  ;;  %3294 = vmatpush1.msra.mxu1 %v9321_v30  ;;  %12545 = vst [vmem:[#allocation16_spill] sm:$0xff] %v9327_v24  ;;  %12546 = vst [vmem:[#allocation17_spill] sm:$0xff] %v9333_v39  ;;  %v9339_v7 = vld [vmem:[%s10933_s2 + $0xe0] sm:$0xff]  ;;  %v9345_v30 = vld [vmem:[%s10933_s2 + $0xf0] sm:$0xff] }
 0x9d9   :  { %3224 = vmatprep.subr.mxu0 %v9327_v24  ;;  %3295 = vmatprep.subr.mxu1 %v9333_v39  ;;  %12547 = vst [vmem:[#allocation18_spill] sm:$0xff] %v9339_v7  ;;  %12548 = vst [vmem:[#allocation19_spill] sm:$0xff] %v9345_v30  ;;  %v9351_v24 = vld [vmem:[%s10933_s2 + $0xc8] sm:$0xff]  ;;  %v9357_v39 = vld [vmem:[%s10933_s2 + $0xd8] sm:$0xff] }
 0x9da   :  { %3225 = vmatpush1.msra.mxu0 %v9339_v7  ;;  %3296 = vmatpush1.msra.mxu1 %v9345_v30  ;;  %12549 = vst [vmem:[#allocation29_spill] sm:$0xff] %v9351_v24  ;;  %12550 = vst [vmem:[#allocation30_spill] sm:$0xff] %v9357_v39  ;;  %v9363_v7 = vld [vmem:[%s10933_s2 + $0xc0] sm:$0xff]  ;;  %v9369_v30 = vld [vmem:[%s10933_s2 + $0xd0] sm:$0xff] }
 0x9db   :  { %3226 = vmatprep.subr.mxu0 %v9351_v24  ;;  %3297 = vmatprep.subr.mxu1 %v9357_v39  ;;  %12551 = vst [vmem:[#allocation31_spill] sm:$0xff] %v9363_v7  ;;  %12552 = vst [vmem:[#allocation32_spill] sm:$0xff] %v9369_v30  ;;  %v9375_v24 = vld [vmem:[%s10933_s2 + $0xa8] sm:$0xff]  ;;  %v9381_v39 = vld [vmem:[%s10933_s2 + $0xb8] sm:$0xff] }
 0x9dc   :  { %3227 = vmatpush1.msra.mxu0 %v9363_v7  ;;  %3298 = vmatpush1.msra.mxu1 %v9369_v30  ;;  %12553 = vst [vmem:[#allocation33_spill] sm:$0xff] %v9375_v24  ;;  %12554 = vst [vmem:[#allocation34_spill] sm:$0xff] %v9381_v39  ;;  %v9387_v7 = vld [vmem:[%s10933_s2 + $0xa0] sm:$0xff]  ;;  %v9393_v30 = vld [vmem:[%s10933_s2 + $0xb0] sm:$0xff] }
 0x9dd   :  { %3228 = vmatprep.subr.mxu0 %v9375_v24  ;;  %3299 = vmatprep.subr.mxu1 %v9381_v39  ;;  %12555 = vst [vmem:[#allocation35_spill] sm:$0xff] %v9387_v7  ;;  %12556 = vst [vmem:[#allocation36_spill] sm:$0xff] %v9393_v30  ;;  %v9399_v24 = vld [vmem:[%s10933_s2 + $0x88] sm:$0xff]  ;;  %v9405_v39 = vld [vmem:[%s10933_s2 + $0x98] sm:$0xff] }
 0x9de   :  { %3229 = vmatpush1.msra.mxu0 %v9387_v7  ;;  %3300 = vmatpush1.msra.mxu1 %v9393_v30  ;;  %12557 = vst [vmem:[#allocation37_spill] sm:$0xff] %v9399_v24  ;;  %12558 = vst [vmem:[#allocation38_spill] sm:$0xff] %v9405_v39  ;;  %v9411_v7 = vld [vmem:[%s10933_s2 + $0x80] sm:$0xff]  ;;  %v9417_v30 = vld [vmem:[%s10933_s2 + $0x90] sm:$0xff] }
 0x9df   :  { %3230 = vmatprep.subr.mxu0 %v9399_v24  ;;  %3301 = vmatprep.subr.mxu1 %v9405_v39  ;;  %12559 = vst [vmem:[#allocation53_spill] sm:$0xff] %v9411_v7  ;;  %12560 = vst [vmem:[#allocation54_spill] sm:$0xff] %v9417_v30  ;;  %v9423_v24 = vld [vmem:[%s10933_s2 + $0x68] sm:$0xff]  ;;  %v9429_v39 = vld [vmem:[%s10933_s2 + $0x78] sm:$0xff] }
 0x9e0   :  { %3231 = vmatpush1.msra.mxu0 %v9411_v7  ;;  %3302 = vmatpush1.msra.mxu1 %v9417_v30  ;;  %12561 = vst [vmem:[#allocation55_spill] sm:$0xff] %v9423_v24  ;;  %12562 = vst [vmem:[#allocation56_spill] sm:$0xff] %v9429_v39  ;;  %v9435_v7 = vld [vmem:[%s10933_s2 + $0x60] sm:$0xff]  ;;  %v9441_v30 = vld [vmem:[%s10933_s2 + $0x70] sm:$0xff] }
 0x9e1   :  { %3232 = vmatprep.subr.mxu0 %v9423_v24  ;;  %3303 = vmatprep.subr.mxu1 %v9429_v39  ;;  %12563 = vst [vmem:[#allocation57_spill] sm:$0xff] %v9435_v7  ;;  %12564 = vst [vmem:[#allocation58_spill] sm:$0xff] %v9441_v30  ;;  %v9447_v24 = vld [vmem:[%s10933_s2 + $0x48] sm:$0xff]  ;;  %v9453_v39 = vld [vmem:[%s10933_s2 + $0x58] sm:$0xff] }
 0x9e2   :  { %3233 = vmatpush1.msra.mxu0 %v9435_v7  ;;  %3304 = vmatpush1.msra.mxu1 %v9441_v30  ;;  %12565 = vst [vmem:[#allocation59_spill] sm:$0xff] %v9447_v24  ;;  %12566 = vst [vmem:[#allocation60_spill] sm:$0xff] %v9453_v39  ;;  %v9459_v7 = vld [vmem:[%s10933_s2 + $0x40] sm:$0xff]  ;;  %v9465_v30 = vld [vmem:[%s10933_s2 + $0x50] sm:$0xff] }
 0x9e3   :  { %3234 = vmatprep.subr.mxu0 %v9447_v24  ;;  %3305 = vmatprep.subr.mxu1 %v9453_v39  ;;  %12567 = vst [vmem:[#allocation61_spill] sm:$0xff] %v9459_v7  ;;  %12568 = vst [vmem:[#allocation62_spill] sm:$0xff] %v9465_v30  ;;  %v9471_v24 = vld [vmem:[%s10933_s2 + $0x28] sm:$0xff]  ;;  %v9477_v39 = vld [vmem:[%s10933_s2 + $0x38] sm:$0xff] }
 0x9e4   :  { %3235 = vmatpush1.msra.mxu0 %v9459_v7  ;;  %3306 = vmatpush1.msra.mxu1 %v9465_v30  ;;  %12569 = vst [vmem:[#allocation63_spill] sm:$0xff] %v9471_v24  ;;  %12570 = vst [vmem:[#allocation64_spill] sm:$0xff] %v9477_v39  ;;  %v9483_v7 = vld [vmem:[%s10933_s2 + $0x20] sm:$0xff]  ;;  %v9489_v30 = vld [vmem:[%s10933_s2 + $0x30] sm:$0xff] }
 0x9e5   :  { %3236 = vmatprep.subr.mxu0 %v9471_v24  ;;  %3307 = vmatprep.subr.mxu1 %v9477_v39  ;;  %12571 = vst [vmem:[#allocation65_spill] sm:$0xff] %v9483_v7  ;;  %12572 = vst [vmem:[#allocation66_spill] sm:$0xff] %v9489_v30  ;;  %v3065_v24 = vunpack.c.h.bf16 %v8910_v42  ;;  %v9496_v39 = vld [vmem:[%s10933_s2 + $0x8] sm:$0xff]  ;;  %v9515_v42 = vld [vmem:[%s10933_s2 + $0x10] sm:$0xff] }
 0x9e6   :  { %3237 = vmatpush1.msra.mxu0 %v9483_v7  ;;  %3308 = vmatpush1.msra.mxu1 %v9489_v30  ;;  %v9502_v7 = vld [vmem:[%s10933_s2 + $0x18] sm:$0xff]  ;;  %v9508_v30 = vld [vmem:[%s10933_s2] sm:$0xff]  ;;  %12573 = vst [vmem:[#allocation67_spill] sm:$0xff] %v9515_v42 }
 0x9e7   :  { %3238 = vmatprep.subr.mxu0 %v9496_v39  ;;  %3309 = vmatprep.subr.mxu1 %v9502_v7 }
 0x9e8   :  { %3239 = vmatpush1.msra.mxu0 %v9508_v30  ;;  %3272 = vmatprep.mubr.f32.mxu0 %v12242_v22 }
 0x9e9   :  { %3310 = vmatpush1.msra.mxu1 %v9515_v42  ;;  %3343 = vmatprep.mubr.f32.mxu1 %v12242_v22 }
 0x9ea   :  { %3273 = vmatmul.mubr.f32.vlgmr.msra.gmra.mxu0 %v3065_v24  ;;  %3344 = vmatmul.mubr.f32.vlgmr.msra.gmra.mxu1 %v3065_v24  ;;  %v12574_v24 = vld [vmem:[#allocation95_spill] sm:$0xff] }
 0x9eb   :  { %3385 = vmatprep.subr.mxu0 %v8925_v36  ;;  %3456 = vmatprep.subr.mxu1 %v8928_v41 }
 0x9ec   :  { %3386 = vmatpush1.msra.mxu0 %v8931_v50  ;;  %3457 = vmatpush1.msra.mxu1 %v8934_v31 }
 0x9ed   :  { %3387 = vmatprep.subr.mxu0 %v8937_v32  ;;  %3458 = vmatprep.subr.mxu1 %v8940_v27 }
 0x9ee   :  { %3388 = vmatpush1.msra.mxu0 %v8943_v3  ;;  %3459 = vmatpush1.msra.mxu1 %v8946_v61 }
 0x9ef   :  { %3389 = vmatprep.subr.mxu0 %v8949_v8  ;;  %3460 = vmatprep.subr.mxu1 %v8952_v57 }
 0x9f0   :  { %3390 = vmatpush1.msra.mxu0 %v8955_v9  ;;  %3461 = vmatpush1.msra.mxu1 %v8958_v6 }
 0x9f1   :  { %3391 = vmatprep.subr.mxu0 %v8961_v15  ;;  %3462 = vmatprep.subr.mxu1 %v8964_v49 }
 0x9f2   :  { %3392 = vmatpush1.msra.mxu0 %v8967_v16  ;;  %3463 = vmatpush1.msra.mxu1 %v8970_v18 }
 0x9f3   :  { %3393 = vmatprep.subr.mxu0 %v8973_v12  ;;  %3464 = vmatprep.subr.mxu1 %v8976_v19 }
 0x9f4   :  { %3394 = vmatpush1.msra.mxu0 %v8979_v45  ;;  %3465 = vmatpush1.msra.mxu1 %v8982_v43 }
 0x9f5   :  { %3395 = vmatprep.subr.mxu0 %v8985_v47  ;;  %3466 = vmatprep.subr.mxu1 %v8988_v59 }
 0x9f6   :  { %3396 = vmatpush1.msra.mxu0 %v8991_v46  ;;  %3467 = vmatpush1.msra.mxu1 %v8994_v56 }
 0x9f7   :  { %3397 = vmatprep.subr.mxu0 %v8997_v33  ;;  %3468 = vmatprep.subr.mxu1 %v9000_v60 }
 0x9f8   :  { %3398 = vmatpush1.msra.mxu0 %v9003_v14  ;;  %3469 = vmatpush1.msra.mxu1 %v9006_v48  ;;  %v12575_v14 = vld [vmem:[#allocation97_spill] sm:$0xff]  ;;  %v12576_v48 = vld [vmem:[#allocation46_spill] sm:$0xff] }
 0x9f9   :  { %3399 = vmatprep.subr.mxu0 %v9009_v5  ;;  %3470 = vmatprep.subr.mxu1 %v9012_v25  ;;  %v12577_v5 = vld [vmem:[#allocation47_spill] sm:$0xff]  ;;  %v12578_v25 = vld [vmem:[#allocation48_spill] sm:$0xff] }
 0x9fa   :  { %3400 = vmatpush1.msra.mxu0 %v9015_v35  ;;  %3471 = vmatpush1.msra.mxu1 %v9018_v58  ;;  %v12579_v35 = vld [vmem:[#allocation49_spill] sm:$0xff]  ;;  %v12580_v58 = vld [vmem:[#allocation50_spill] sm:$0xff] }
 0x9fb   :  { %3401 = vmatprep.subr.mxu0 %v9021_v63  ;;  %3472 = vmatprep.subr.mxu1 %v9024_v4  ;;  %v12581_v63 = vld [vmem:[#allocation51_spill] sm:$0xff]  ;;  %v12582_v4 = vld [vmem:[#allocation52_spill] sm:$0xff] }
 0x9fc   :  { %3402 = vmatpush1.msra.mxu0 %v9027_v17  ;;  %3473 = vmatpush1.msra.mxu1 %v9030_v11  ;;  %v12583_v17 = vld [vmem:[#allocation69_spill] sm:$0xff]  ;;  %v12584_v11 = vld [vmem:[#allocation70_spill] sm:$0xff] }
 0x9fd   :  { %3403 = vmatprep.subr.mxu0 %v12574_v24  ;;  %3474 = vmatprep.subr.mxu1 %v12575_v14  ;;  %v12585_v24 = vld [vmem:[#allocation79_spill] sm:$0xff]  ;;  %v12586_v14 = vld [vmem:[#allocation80_spill] sm:$0xff] }
 0x9fe   :  { %3404 = vmatpush1.msra.mxu0 %v12576_v48  ;;  %3475 = vmatpush1.msra.mxu1 %v12577_v5  ;;  %v12587_v48 = vld [vmem:[#allocation81_spill] sm:$0xff]  ;;  %v12588_v5 = vld [vmem:[#allocation82_spill] sm:$0xff] }
 0x9ff   :  { %3405 = vmatprep.subr.mxu0 %v12578_v25  ;;  %3476 = vmatprep.subr.mxu1 %v12579_v35  ;;  %v12589_v25 = vld [vmem:[#allocation83_spill] sm:$0xff]  ;;  %v12590_v35 = vld [vmem:[#allocation86_spill] sm:$0xff] }
 0xa00   :  { %3406 = vmatpush1.msra.mxu0 %v12580_v58  ;;  %3477 = vmatpush1.msra.mxu1 %v12581_v63  ;;  %v12591_v58 = vld [vmem:[#allocation87_spill] sm:$0xff] }
 0xa01   :  { %3407 = vmatprep.subr.mxu0 %v12582_v4  ;;  %3478 = vmatprep.subr.mxu1 %v12583_v17  ;;  %v12592_v63 = vld [vmem:[#allocation39_spill] sm:$0xff]  ;;  %v12593_v4 = vld [vmem:[#allocation40_spill] sm:$0xff]  ;;  %v12594_v17 = vld [vmem:[#allocation41_spill] sm:$0xff] }
 0xa02   :  { %3408 = vmatpush1.msra.mxu0 %v12584_v11  ;;  %3479 = vmatpush1.msra.mxu1 %v12585_v24  ;;  %v12595_v11 = vld [vmem:[#allocation42_spill] sm:$0xff]  ;;  %v12596_v24 = vld [vmem:[#allocation43_spill] sm:$0xff] }
 0xa03   :  { %3409 = vmatprep.subr.mxu0 %v12586_v14  ;;  %3480 = vmatprep.subr.mxu1 %v12587_v48  ;;  %v12597_v14 = vld [vmem:[#allocation44_spill] sm:$0xff]  ;;  %v12598_v48 = vld [vmem:[#allocation45_spill] sm:$0xff] }
 0xa04   :  { %3410 = vmatpush1.msra.mxu0 %v12588_v5  ;;  %3481 = vmatpush1.msra.mxu1 %v12589_v25  ;;  %v12599_v5 = vld [vmem:[#allocation84_spill] sm:$0xff]  ;;  %v12600_v25 = vld [vmem:[#allocation85_spill] sm:$0xff] }
 0xa05   :  { %3411 = vmatprep.subr.mxu0 %v12590_v35  ;;  %3482 = vmatprep.subr.mxu1 %v12591_v58  ;;  %v12601_v35 = vld [vmem:[#allocation88_spill] sm:$0xff] }
 0xa06   :  { %3412 = vmatpush1.msra.mxu0 %v12592_v63  ;;  %3483 = vmatpush1.msra.mxu1 %v12593_v4  ;;  %v12602_v4 = vld [vmem:[#allocation89_spill] sm:$0xff] }
 0xa07   :  { %3413 = vmatprep.subr.mxu0 %v12594_v17  ;;  %3484 = vmatprep.subr.mxu1 %v12595_v11  ;;  %v12603_v17 = vld [vmem:[#allocation90_spill] sm:$0xff] }
 0xa08   :  { %3414 = vmatpush1.msra.mxu0 %v12596_v24  ;;  %3485 = vmatpush1.msra.mxu1 %v12597_v14 }
 0xa09   :  { %3415 = vmatprep.subr.mxu0 %v12598_v48  ;;  %3486 = vmatprep.subr.mxu1 %v12599_v5 }
 0xa0a   :  { %3416 = vmatpush1.msra.mxu0 %v12600_v25  ;;  %3487 = vmatpush1.msra.mxu1 %v12601_v35 }
 0xa0b   :  { %3449 = vmatprep.mubr.f32.mxu0 %v12242_v22  ;;  %3520 = vmatprep.mubr.f32.mxu1 %v12242_v22 }
 0xa0c   :  { %3527 = vmatprep.subr.mxu0 %v12602_v4  ;;  %3598 = vmatprep.subr.mxu1 %v12603_v17 }
 0xa89   :  { %v3132_v11 = vpop.f32.mrf.mxu0  ;;  %v3203_v24 = vpop.f32.mrf.mxu1 }
 0xa8b   :  { %v3134_v63 = vpop.f32.mrf.mxu0  ;;  %v3205_v14 = vpop.f32.mrf.mxu1 }
 0xaaa   :  { %v3274_v58 = vpop.f32.mrf.mxu0  ;;  %v3345_v60 = vpop.f32.mrf.mxu1 }
 0xaab   :  { %v3275_v48 = vadd.f32 %v3274_v58, %v3132_v11  ;;  %v3346_v56 = vadd.f32 %v3345_v60, %v3203_v24  ;;  %v12608_v24 = vld [vmem:[#allocation96_spill] sm:$0xff] }
 0xaac   :  { %v3276_v5 = vpop.f32.mrf.mxu0  ;;  %v3347_v4 = vpop.f32.mrf.mxu1 }
 0xaad   :  { %v3350_v25 = vadd.f32 %v3275_v48, %v6890_v54  ;;  %v3277_v33 = vadd.f32 %v3276_v5, %v3134_v63  ;;  %v3352_v17 = vadd.f32 %v3346_v56, %v6895_v40  ;;  %v3348_v47 = vadd.f32 %v3347_v4, %v3205_v14 }
 0xaaf   :  { %v3354_v35 = vmul.f32 0.5, %v3350_v25  ;;  %v3351_v46 = vadd.f32 %v3277_v33, %v11964_v20  ;;  %v3353_v43 = vadd.f32 %v3348_v47, %v6899_v53 }
 0xab1   :  { %5438 = vtanh.f32 %v3354_v35  ;;  %v3358_v59 = vmul.f32 0.5, %v3351_v46  ;;  %v3363_v58 = vmul.f32 0.5, %v3353_v43  ;;  %v3378_v35 = vpop.permute.xlu1 %3377 }
 0xab2   :  { %vm3379_vm9 = vcmp.eq.s32.totalorder %v3378_v35, 1  ;;  %v12617_v35 = vld [vmem:[#allocation15_spill] sm:$0xff] }
 0xab3   :  { %5440 = vtanh.f32 %v3358_v59 }
 0xab4   :  { %5442 = vtanh.f32 %v3352_v17  ;;  %v12605_v17 = vld [vmem:[#allocation92_spill] sm:$0xff] }
 0xab5   :  { %5444 = vtanh.f32 %v3363_v58  ;;  %v12609_v58 = vld [vmem:[#allocation7_spill] sm:$0xff] }
 0xabe   :  { %v5439_v11 = vpop.eup %5438 }
 0xabf   :  { %v3356_v45 = vmul.f32 0.5, %v5439_v11  ;;  %v12610_v11 = vld [vmem:[#allocation8_spill] sm:$0xff] }
 0xac0   :  { %v5441_v19 = vpop.eup %5440 }
 0xac1   :  { %v3357_v48 = vadd.f32 0.5, %v3356_v45  ;;  %v3360_v5 = vmul.f32 0.5, %v5441_v19  ;;  %v5443_v25 = vpop.eup %5442  ;;  %v12604_v45 = vld [vmem:[#allocation91_spill] sm:$0xff] }
 0xac2   :  { %v5445_v47 = vpop.eup %5444 }
 0xac3   :  { %v3361_v60 = vadd.f32 0.5, %v3360_v5  ;;  %v3368_v46 = vmul.f32 %v5443_v25, %v3357_v48  ;;  %v3365_v43 = vmul.f32 0.5, %v5445_v47  ;;  %v12611_v48 = vld [vmem:[#allocation9_spill] sm:$0xff]  ;;  %v12612_v5 = vld [vmem:[#allocation10_spill] sm:$0xff]  ;;  %v12614_v25 = vld [vmem:[#allocation12_spill] sm:$0xff] }
 0xac4   :  { %v12619_v47 = vld [vmem:[#allocation17_spill] sm:$0xff] }
 0xac5   :  { %v3367_v33 = vmul.f32 %v3361_v60, %v9137_v51  ;;  %v3366_v56 = vadd.f32 0.5, %v3365_v43  ;;  %v12613_v60 = vld [vmem:[#allocation11_spill] sm:$0xff]  ;;  %v12620_v43 = vld [vmem:[#allocation18_spill] sm:$0xff] }
 0xac7   :  { %v3369_v63 = vadd.f32 %v3368_v46, %v3367_v33  ;;  %v12615_v33 = vld [vmem:[#allocation13_spill] sm:$0xff]  ;;  %v12616_v46 = vld [vmem:[#allocation14_spill] sm:$0xff] }
 0xac9   :  { %5446 = vtanh.f32 %v3369_v63  ;;  %v9593_v59 = vsel %vm3379_vm9, %v3369_v63, %v9137_v51  ;;  %v12606_v51 = vld [vmem:[#allocation93_spill] sm:$0xff]  ;;  %v12618_v63 = vld [vmem:[#allocation16_spill] sm:$0xff] }
 0xad6   :  { %v5447_v14 = vpop.eup %5446 }
 0xad7   :  { %v3371_v4 = vmul.f32 %v5447_v14, %v3366_v56  ;;  %v12621_v56 = vld [vmem:[#allocation19_spill] sm:$0xff]  ;;  %v12622_v14 = vld [vmem:[#allocation29_spill] sm:$0xff] }
 0xad9   :  { %v9596_v19 = vsel %vm3379_vm9, %v3371_v4, %v9140_v13  ;;  %v12607_v13 = vld [vmem:[#allocation94_spill] sm:$0xff] }
 0xada   :  { %3450 = vmatmul.mubr.f32.vlgmr.msra.gmra.mxu0 %v9596_v19  ;;  %3521 = vmatmul.mubr.f32.vlgmr.msra.gmra.mxu1 %v9596_v19  ;;  %v12623_v4 = vld [vmem:[#allocation30_spill] sm:$0xff] }
 0xadb   :  { %3528 = vmatpush1.msra.mxu0 %v9147_v10  ;;  %3599 = vmatpush1.msra.mxu1 %v9153_v44 }
 0xadc   :  { %3529 = vmatprep.subr.mxu0 %v9159_v28  ;;  %3600 = vmatprep.subr.mxu1 %v9165_v38 }
 0xadd   :  { %3530 = vmatpush1.msra.mxu0 %v9171_v1  ;;  %3601 = vmatpush1.msra.mxu1 %v9177_v34 }
 0xade   :  { %3531 = vmatprep.subr.mxu0 %v9183_v52  ;;  %3602 = vmatprep.subr.mxu1 %v9189_v55 }
 0xadf   :  { %3532 = vmatpush1.msra.mxu0 %v9195_v0  ;;  %3603 = vmatpush1.msra.mxu1 %v9201_v62 }
 0xae0   :  { %3533 = vmatprep.subr.mxu0 %v9207_v37  ;;  %3604 = vmatprep.subr.mxu1 %v9213_v2 }
 0xae1   :  { %3534 = vmatpush1.msra.mxu0 %v9219_v29  ;;  %3605 = vmatpush1.msra.mxu1 %v9225_v21 }
 0xae2   :  { %3535 = vmatprep.subr.mxu0 %v9231_v23  ;;  %3606 = vmatprep.subr.mxu1 %v9237_v26 }
 0xae3   :  { %3536 = vmatpush1.msra.mxu0 %v12604_v45  ;;  %3607 = vmatpush1.msra.mxu1 %v12605_v17 }
 0xae4   :  { %3537 = vmatprep.subr.mxu0 %v12606_v51  ;;  %3608 = vmatprep.subr.mxu1 %v12607_v13 }
 0xae5   :  { %3538 = vmatpush1.msra.mxu0 %v12608_v24  ;;  %3609 = vmatpush1.msra.mxu1 %v12609_v58 }
 0xae6   :  { %3539 = vmatprep.subr.mxu0 %v12610_v11  ;;  %3610 = vmatprep.subr.mxu1 %v12611_v48 }
 0xae7   :  { %3540 = vmatpush1.msra.mxu0 %v12612_v5  ;;  %3611 = vmatpush1.msra.mxu1 %v12613_v60  ;;  %v12624_v60 = vld [vmem:[#allocation31_spill] sm:$0xff] }
 0xae8   :  { %3541 = vmatprep.subr.mxu0 %v12614_v25  ;;  %3612 = vmatprep.subr.mxu1 %v12615_v33  ;;  %v12625_v25 = vld [vmem:[#allocation32_spill] sm:$0xff]  ;;  %v12626_v33 = vld [vmem:[#allocation33_spill] sm:$0xff] }
 0xae9   :  { %3542 = vmatpush1.msra.mxu0 %v12616_v46  ;;  %3613 = vmatpush1.msra.mxu1 %v12617_v35  ;;  %v12627_v46 = vld [vmem:[#allocation34_spill] sm:$0xff]  ;;  %v12628_v35 = vld [vmem:[#allocation35_spill] sm:$0xff] }
 0xaea   :  { %3543 = vmatprep.subr.mxu0 %v12618_v63  ;;  %3614 = vmatprep.subr.mxu1 %v12619_v47  ;;  %v12629_v63 = vld [vmem:[#allocation36_spill] sm:$0xff]  ;;  %v12630_v47 = vld [vmem:[#allocation37_spill] sm:$0xff] }
 0xaeb   :  { %3544 = vmatpush1.msra.mxu0 %v12620_v43  ;;  %3615 = vmatpush1.msra.mxu1 %v12621_v56  ;;  %v12631_v43 = vld [vmem:[#allocation38_spill] sm:$0xff]  ;;  %v12632_v56 = vld [vmem:[#allocation53_spill] sm:$0xff] }
 0xaec   :  { %3545 = vmatprep.subr.mxu0 %v12622_v14  ;;  %3616 = vmatprep.subr.mxu1 %v12623_v4  ;;  %v12633_v14 = vld [vmem:[#allocation54_spill] sm:$0xff]  ;;  %v12634_v4 = vld [vmem:[#allocation55_spill] sm:$0xff] }
 0xaed   :  { %3546 = vmatpush1.msra.mxu0 %v12624_v60  ;;  %3617 = vmatpush1.msra.mxu1 %v12625_v25  ;;  %v12635_v60 = vld [vmem:[#allocation56_spill] sm:$0xff]  ;;  %v12636_v25 = vld [vmem:[#allocation57_spill] sm:$0xff] }
 0xaee   :  { %3547 = vmatprep.subr.mxu0 %v12626_v33  ;;  %3618 = vmatprep.subr.mxu1 %v12627_v46  ;;  %v12637_v33 = vld [vmem:[#allocation58_spill] sm:$0xff]  ;;  %v12638_v46 = vld [vmem:[#allocation59_spill] sm:$0xff] }
 0xaef   :  { %3548 = vmatpush1.msra.mxu0 %v12628_v35  ;;  %3619 = vmatpush1.msra.mxu1 %v12629_v63  ;;  %v12639_v35 = vld [vmem:[#allocation60_spill] sm:$0xff] }
 0xaf0   :  { %3549 = vmatprep.subr.mxu0 %v12630_v47  ;;  %3620 = vmatprep.subr.mxu1 %v12631_v43  ;;  %v9655_v43 = vld [vmem:[%s10932_s1 + $0x28] sm:$0xff]  }
 0xaf1   :  { %3550 = vmatpush1.msra.mxu0 %v12632_v56  ;;  %3621 = vmatpush1.msra.mxu1 %v12633_v14  ;;  %v12640_v56 = vld [vmem:[#allocation61_spill] sm:$0xff]  ;;  %v12641_v14 = vld [vmem:[#allocation62_spill] sm:$0xff] }
 0xaf2   :  { %3551 = vmatprep.subr.mxu0 %v12634_v4  ;;  %3622 = vmatprep.subr.mxu1 %v12635_v60  ;;  %v12642_v4 = vld [vmem:[#allocation63_spill] sm:$0xff]  ;;  %v12643_v60 = vld [vmem:[#allocation64_spill] sm:$0xff] }
 0xaf3   :  { %3552 = vmatpush1.msra.mxu0 %v12636_v25  ;;  %3623 = vmatpush1.msra.mxu1 %v12637_v33  ;;  %v12644_v25 = vld [vmem:[#allocation65_spill] sm:$0xff]  ;;  %v12645_v33 = vld [vmem:[#allocation66_spill] sm:$0xff] }
 0xaf4   :  { %3553 = vmatprep.subr.mxu0 %v12638_v46  ;;  %3624 = vmatprep.subr.mxu1 %v12639_v35  ;;  %v3384_v46 = vunpack.c.l.bf16 %v9655_v43 }
 0xaf5   :  { %3554 = vmatpush1.msra.mxu0 %v12640_v56  ;;  %3625 = vmatpush1.msra.mxu1 %v12641_v14 }
 0xaf6   :  { %3555 = vmatprep.subr.mxu0 %v12642_v4  ;;  %3626 = vmatprep.subr.mxu1 %v12643_v60 }
 0xaf7   :  { %3556 = vmatpush1.msra.mxu0 %v12644_v25  ;;  %3627 = vmatpush1.msra.mxu1 %v12645_v33 }
 0xaf8   :  { %3557 = vmatprep.subr.mxu0 %v9496_v39  ;;  %3628 = vmatprep.subr.mxu1 %v9502_v7 }
 0xaf9   :  { %3558 = vmatpush1.msra.mxu0 %v9508_v30  ;;  %3591 = vmatprep.mubr.f32.mxu0 %v12242_v22 }
 0xafa   :  { %3629 = vmatpush1.msra.mxu1 %v9515_v42  ;;  %3662 = vmatprep.mubr.f32.mxu1 %v12242_v22 }
 0xafb   :  { %3592 = vmatmul.mubr.f32.vlgmr.msra.gmra.mxu0 %v3384_v46  ;;  %3663 = vmatmul.mubr.f32.vlgmr.msra.gmra.mxu1 %v3384_v46  ;;  %v12663_v46 = vld [vmem:[#allocation78_spill] sm:$0xff] }
 0xafc   :  { %3704 = vmatprep.subr.mxu0 %v8925_v36  ;;  %3775 = vmatprep.subr.mxu1 %v8928_v41  ;;  %v12646_v36 = vld [vmem:[#allocation20_spill] sm:$0xff]  ;;  %v12647_v41 = vld [vmem:[#allocation21_spill] sm:$0xff] }
 0xafd   :  { %3705 = vmatpush1.msra.mxu0 %v8931_v50  ;;  %3776 = vmatpush1.msra.mxu1 %v8934_v31  ;;  %v12648_v50 = vld [vmem:[#allocation22_spill] sm:$0xff]  ;;  %v12649_v31 = vld [vmem:[#allocation23_spill] sm:$0xff] }
 0xafe   :  { %3706 = vmatprep.subr.mxu0 %v8937_v32  ;;  %3777 = vmatprep.subr.mxu1 %v8940_v27  ;;  %v12650_v32 = vld [vmem:[#allocation24_spill] sm:$0xff]  ;;  %v12651_v27 = vld [vmem:[#allocation25_spill] sm:$0xff] }
 0xaff   :  { %3707 = vmatpush1.msra.mxu0 %v8943_v3  ;;  %3778 = vmatpush1.msra.mxu1 %v8946_v61  ;;  %v12652_v3 = vld [vmem:[#allocation26_spill] sm:$0xff]  ;;  %v12653_v61 = vld [vmem:[#allocation27_spill] sm:$0xff] }
 0xb00   :  { %3708 = vmatprep.subr.mxu0 %v8949_v8  ;;  %3779 = vmatprep.subr.mxu1 %v8952_v57  ;;  %v12654_v8 = vld [vmem:[#allocation28_spill] sm:$0xff] }
 0xb01   :  { %3709 = vmatpush1.msra.mxu0 %v8955_v9  ;;  %3780 = vmatpush1.msra.mxu1 %v8958_v6  ;;  %v12655_v57 = vld [vmem:[#allocation68_spill] sm:$0xff]  ;;  %v12656_v9 = vld [vmem:[#allocation71_spill] sm:$0xff] }
 0xb02   :  { %3710 = vmatprep.subr.mxu0 %v8961_v15  ;;  %3781 = vmatprep.subr.mxu1 %v8964_v49  ;;  %v12657_v6 = vld [vmem:[#allocation72_spill] sm:$0xff]  ;;  %v12658_v15 = vld [vmem:[#allocation73_spill] sm:$0xff]  ;;  %v12659_v49 = vld [vmem:[#allocation74_spill] sm:$0xff] }
 0xb03   :  { %3711 = vmatpush1.msra.mxu0 %v8967_v16  ;;  %3782 = vmatpush1.msra.mxu1 %v8970_v18  ;;  %v12660_v16 = vld [vmem:[#allocation75_spill] sm:$0xff]  ;;  %v12661_v18 = vld [vmem:[#allocation76_spill] sm:$0xff] }
 0xb04   :  { %3712 = vmatprep.subr.mxu0 %v8973_v12  ;;  %3783 = vmatprep.subr.mxu1 %v12646_v36  ;;  %v12662_v12 = vld [vmem:[#allocation77_spill] sm:$0xff]  ;;  %v12664_v36 = vld [vmem:[#allocation98_spill] sm:$0xff] }
 0xb05   :  { %3713 = vmatpush1.msra.mxu0 %v12647_v41  ;;  %3784 = vmatpush1.msra.mxu1 %v12648_v50  ;;  %v12665_v41 = vld [vmem:[#allocation95_spill] sm:$0xff]  ;;  %v12666_v50 = vld [vmem:[#allocation97_spill] sm:$0xff] }
 0xb06   :  { %3714 = vmatprep.subr.mxu0 %v12649_v31  ;;  %3785 = vmatprep.subr.mxu1 %v12650_v32  ;;  %v12667_v31 = vld [vmem:[#allocation46_spill] sm:$0xff]  ;;  %v12668_v32 = vld [vmem:[#allocation47_spill] sm:$0xff] }
 0xb07   :  { %3715 = vmatpush1.msra.mxu0 %v12651_v27  ;;  %3786 = vmatpush1.msra.mxu1 %v12652_v3  ;;  %v12669_v27 = vld [vmem:[#allocation48_spill] sm:$0xff]  ;;  %v12670_v3 = vld [vmem:[#allocation49_spill] sm:$0xff] }
 0xb08   :  { %3716 = vmatprep.subr.mxu0 %v12653_v61  ;;  %3787 = vmatprep.subr.mxu1 %v12654_v8  ;;  %v12671_v61 = vld [vmem:[#allocation50_spill] sm:$0xff]  ;;  %v12672_v8 = vld [vmem:[#allocation51_spill] sm:$0xff] }
 0xb09   :  { %3717 = vmatpush1.msra.mxu0 %v12655_v57  ;;  %3788 = vmatpush1.msra.mxu1 %v12656_v9  ;;  %v12673_v57 = vld [vmem:[#allocation52_spill] sm:$0xff]  ;;  %v12674_v9 = vld [vmem:[#allocation69_spill] sm:$0xff] }
 0xb0a   :  { %3718 = vmatprep.subr.mxu0 %v12657_v6  ;;  %3789 = vmatprep.subr.mxu1 %v12658_v15  ;;  %v12675_v6 = vld [vmem:[#allocation70_spill] sm:$0xff]  ;;  %v12676_v15 = vld [vmem:[#allocation79_spill] sm:$0xff] }
 0xb0b   :  { %3719 = vmatpush1.msra.mxu0 %v12659_v49  ;;  %3790 = vmatpush1.msra.mxu1 %v12660_v16  ;;  %v12677_v49 = vld [vmem:[#allocation80_spill] sm:$0xff]  ;;  %v12678_v16 = vld [vmem:[#allocation81_spill] sm:$0xff] }
 0xb0c   :  { %3720 = vmatprep.subr.mxu0 %v12661_v18  ;;  %3791 = vmatprep.subr.mxu1 %v12662_v12  ;;  %v12679_v18 = vld [vmem:[#allocation82_spill] sm:$0xff]  ;;  %v12680_v12 = vld [vmem:[#allocation83_spill] sm:$0xff] }
 0xb0d   :  { %3721 = vmatpush1.msra.mxu0 %v12663_v46  ;;  %3792 = vmatpush1.msra.mxu1 %v12664_v36  ;;  %v12681_v46 = vld [vmem:[#allocation86_spill] sm:$0xff]  ;;  %v12682_v36 = vld [vmem:[#allocation87_spill] sm:$0xff] }
 0xb0e   :  { %3722 = vmatprep.subr.mxu0 %v12665_v41  ;;  %3793 = vmatprep.subr.mxu1 %v12666_v50  ;;  %v12683_v41 = vld [vmem:[#allocation39_spill] sm:$0xff]  ;;  %v12684_v50 = vld [vmem:[#allocation40_spill] sm:$0xff] }
 0xb0f   :  { %3723 = vmatpush1.msra.mxu0 %v12667_v31  ;;  %3794 = vmatpush1.msra.mxu1 %v12668_v32  ;;  %v12685_v31 = vld [vmem:[#allocation41_spill] sm:$0xff]  ;;  %v12686_v32 = vld [vmem:[#allocation42_spill] sm:$0xff] }
 0xb10   :  { %3724 = vmatprep.subr.mxu0 %v12669_v27  ;;  %3795 = vmatprep.subr.mxu1 %v12670_v3  ;;  %v12687_v27 = vld [vmem:[#allocation43_spill] sm:$0xff]  ;;  %v12688_v3 = vld [vmem:[#allocation44_spill] sm:$0xff] }
 0xb11   :  { %3725 = vmatpush1.msra.mxu0 %v12671_v61  ;;  %3796 = vmatpush1.msra.mxu1 %v12672_v8  ;;  %v12689_v61 = vld [vmem:[#allocation45_spill] sm:$0xff]  ;;  %v12690_v8 = vld [vmem:[#allocation84_spill] sm:$0xff] }
 0xb12   :  { %3726 = vmatprep.subr.mxu0 %v12673_v57  ;;  %3797 = vmatprep.subr.mxu1 %v12674_v9  ;;  %v12691_v57 = vld [vmem:[#allocation85_spill] sm:$0xff]  ;;  %v12692_v9 = vld [vmem:[#allocation88_spill] sm:$0xff] }
 0xb13   :  { %3727 = vmatpush1.msra.mxu0 %v12675_v6  ;;  %3798 = vmatpush1.msra.mxu1 %v12676_v15  ;;  %v12693_v6 = vld [vmem:[#allocation89_spill] sm:$0xff]  ;;  %v12694_v15 = vld [vmem:[#allocation90_spill] sm:$0xff] }
 0xb14   :  { %3728 = vmatprep.subr.mxu0 %v12677_v49  ;;  %3799 = vmatprep.subr.mxu1 %v12678_v16 }
 0xb15   :  { %3729 = vmatpush1.msra.mxu0 %v12679_v18  ;;  %3800 = vmatpush1.msra.mxu1 %v12680_v12 }
 0xb16   :  { %3730 = vmatprep.subr.mxu0 %v12681_v46  ;;  %3801 = vmatprep.subr.mxu1 %v12682_v36 }
 0xb17   :  { %3731 = vmatpush1.msra.mxu0 %v12683_v41  ;;  %3802 = vmatpush1.msra.mxu1 %v12684_v50 }
 0xb18   :  { %3732 = vmatprep.subr.mxu0 %v12685_v31  ;;  %3803 = vmatprep.subr.mxu1 %v12686_v32 }
 0xb19   :  { %3733 = vmatpush1.msra.mxu0 %v12687_v27  ;;  %3804 = vmatpush1.msra.mxu1 %v12688_v3 }
 0xb1a   :  { %3734 = vmatprep.subr.mxu0 %v12689_v61  ;;  %3805 = vmatprep.subr.mxu1 %v12690_v8 }
 0xb1b   :  { %3735 = vmatpush1.msra.mxu0 %v12691_v57  ;;  %3806 = vmatpush1.msra.mxu1 %v12692_v9 }
 0xb1c   :  { %3768 = vmatprep.mubr.f32.mxu0 %v12242_v22  ;;  %3839 = vmatprep.mubr.f32.mxu1 %v12242_v22 }
 0xb1d   :  { %3846 = vmatprep.subr.mxu0 %v12693_v6  ;;  %3917 = vmatprep.subr.mxu1 %v12694_v15 }
 0xb9a   :  { %v3451_v49 = vpop.f32.mrf.mxu0  ;;  %v3522_v16 = vpop.f32.mrf.mxu1 }
 0xb9c   :  { %v3453_v18 = vpop.f32.mrf.mxu0  ;;  %v3524_v12 = vpop.f32.mrf.mxu1 }
 0xbbb   :  { %v3593_v46 = vpop.f32.mrf.mxu0  ;;  %v3664_v41 = vpop.f32.mrf.mxu1 }
 0xbbc   :  { %v3594_v36 = vadd.f32 %v3593_v46, %v3451_v49  ;;  %v3665_v3 = vadd.f32 %v3664_v41, %v3522_v16 }
 0xbbd   :  { %v3595_v50 = vpop.f32.mrf.mxu0  ;;  %v3666_v57 = vpop.f32.mrf.mxu1 }
 0xbbe   :  { %v3669_v31 = vadd.f32 %v3594_v36, %v6890_v54  ;;  %v3596_v32 = vadd.f32 %v3595_v50, %v3453_v18  ;;  %v3671_v9 = vadd.f32 %v3665_v3, %v6895_v40  ;;  %v3667_v6 = vadd.f32 %v3666_v57, %v3524_v12 }
 0xbc0   :  { %v3673_v27 = vmul.f32 0.5, %v3669_v31  ;;  %v3670_v61 = vadd.f32 %v3596_v32, %v11964_v20  ;;  %v3672_v15 = vadd.f32 %v3667_v6, %v6899_v53  ;;  %v3697_v32 = vpop.permute.xlu0 %3696  ;;  %v9858_v6 = vld [vmem:[#allocation4 + $0x180] sm:$0xff] }
 0xbc1   :  { %vm3698_vm10 = vcmp.eq.s32.totalorder %v3697_v32, 1  ;;  %v9888_v32 = vld [vmem:[#allocation4 + $0x128] sm:$0xff] }
 0xbc2   :  { %5448 = vtanh.f32 %v3673_v27  ;;  %v3677_v8 = vmul.f32 0.5, %v3670_v61  ;;  %v3682_v49 = vmul.f32 0.5, %v3672_v15  ;;  %v9861_v15 = vld [vmem:[#allocation4 + $0x190] sm:$0xff]  ;;  %12727 = vst [vmem:[#allocation8_spill] sm:$0xff] %v9888_v32 }
 0xbc4   :  { %5450 = vtanh.f32 %v3677_v8 }
 0xbc5   :  { %5452 = vtanh.f32 %v3671_v9 }
 0xbc6   :  { %5454 = vtanh.f32 %v3682_v49  ;;  %v9864_v49 = vld [vmem:[#allocation4 + $0x168] sm:$0xff] }
 0xbcf   :  { %v5449_v46 = vpop.eup %5448 }
 0xbd0   :  { %v3675_v42 = vmul.f32 0.5, %v5449_v46  ;;  %v9867_v46 = vld [vmem:[#allocation4 + $0x178] sm:$0xff] }
 0xbd1   :  { %v5451_v22 = vpop.eup %5450 }
 0xbd2   :  { %v3676_v36 = vadd.f32 0.5, %v3675_v42  ;;  %v3679_v18 = vmul.f32 0.5, %v5451_v22  ;;  %v5453_v41 = vpop.eup %5452  ;;  %v12711_v42 = vld [vmem:[#allocation38_spill] sm:$0xff] }
 0xbd3   :  { %v5455_v3 = vpop.eup %5454 }
 0xbd4   :  { %v3680_v16 = vadd.f32 0.5, %v3679_v18  ;;  %v3687_v31 = vmul.f32 %v5453_v41, %v3676_v36  ;;  %v3684_v61 = vmul.f32 0.5, %v5455_v3  ;;  %v9870_v36 = vld [vmem:[#allocation4 + $0x160] sm:$0xff]  ;;  %v9873_v18 = vld [vmem:[#allocation4 + $0x170] sm:$0xff]  ;;  %v9879_v41 = vld [vmem:[#allocation4 + $0x158] sm:$0xff] }
 0xbd5   :  { %12721 = vst [vmem:[#allocation91_spill] sm:$0xff] %v9870_v36  ;;  %12722 = vst [vmem:[#allocation92_spill] sm:$0xff] %v9873_v18  ;;  %v9894_v3 = vld [vmem:[#allocation4 + $0x120] sm:$0xff] }
 0xbd6   :  { %v3686_v50 = vmul.f32 %v3680_v16, %v9593_v59  ;;  %v3685_v8 = vadd.f32 0.5, %v3684_v61  ;;  %v9876_v16 = vld [vmem:[#allocation4 + $0x148] sm:$0xff]  ;;  %12724 = vst [vmem:[#allocation94_spill] sm:$0xff] %v9879_v41  ;;  %12729 = vst [vmem:[#allocation10_spill] sm:$0xff] %v9894_v3  ;;  %v9897_v61 = vld [vmem:[#allocation4 + $0x130] sm:$0xff] }
 0xbd7   :  { %12723 = vst [vmem:[#allocation93_spill] sm:$0xff] %v9876_v16  ;;  %12730 = vst [vmem:[#allocation36_spill] sm:$0xff] %v9897_v61 }
 0xbd8   :  { %v3688_v27 = vadd.f32 %v3687_v31, %v3686_v50  ;;  %v9882_v50 = vld [vmem:[#allocation4 + $0x140] sm:$0xff]  ;;  %v9885_v31 = vld [vmem:[#allocation4 + $0x150] sm:$0xff] }
 0xbd9   :  { %12725 = vst [vmem:[#allocation96_spill] sm:$0xff] %v9882_v50  ;;  %12726 = vst [vmem:[#allocation7_spill] sm:$0xff] %v9885_v31 }
 0xbda   :  { %5456 = vtanh.f32 %v3688_v27  ;;  %v9744_v12 = vsel %vm3698_vm10, %v3688_v27, %v9593_v59  ;;  %v12712_v59 = vld [vmem:[#allocation53_spill] sm:$0xff]  ;;  %v9891_v27 = vld [vmem:[#allocation4 + $0x138] sm:$0xff] }
 0xbdb   :  { %12728 = vst [vmem:[#allocation9_spill] sm:$0xff] %v9891_v27 }
 0xbe7   :  { %v5457_v57 = vpop.eup %5456 }
 0xbe8   :  { %v3690_v9 = vmul.f32 %v5457_v57, %v3685_v8  ;;  %v9900_v8 = vld [vmem:[#allocation4 + $0x108] sm:$0xff]  ;;  %v9903_v57 = vld [vmem:[#allocation4 + $0x118] sm:$0xff] }
 0xbe9   :  { %12731 = vst [vmem:[#allocation37_spill] sm:$0xff] %v9900_v8  ;;  %12732 = vst [vmem:[#allocation60_spill] sm:$0xff] %v9903_v57 }
 0xbea   :  { %v9747_v22 = vsel %vm3698_vm10, %v3690_v9, %v9596_v19  ;;  %v12713_v19 = vld [vmem:[#allocation54_spill] sm:$0xff]  ;;  %v9906_v9 = vld [vmem:[#allocation4 + $0x100] sm:$0xff] }
 0xbeb   :  { %3769 = vmatmul.mubr.f32.vlgmr.msra.gmra.mxu0 %v9747_v22  ;;  %3840 = vmatmul.mubr.f32.vlgmr.msra.gmra.mxu1 %v9747_v22  ;;  %12733 = vst [vmem:[#allocation61_spill] sm:$0xff] %v9906_v9 }
 0xbec   :  { %3847 = vmatpush1.msra.mxu0 %v9147_v10  ;;  %3918 = vmatpush1.msra.mxu1 %v9153_v44  ;;  %v12695_v10 = vld [vmem:[#allocation11_spill] sm:$0xff]  ;;  %v12696_v44 = vld [vmem:[#allocation12_spill] sm:$0xff] }
 0xbed   :  { %3848 = vmatprep.subr.mxu0 %v9159_v28  ;;  %3919 = vmatprep.subr.mxu1 %v9165_v38  ;;  %v12697_v28 = vld [vmem:[#allocation13_spill] sm:$0xff]  ;;  %v12698_v38 = vld [vmem:[#allocation14_spill] sm:$0xff] }
 0xbee   :  { %3849 = vmatpush1.msra.mxu0 %v9171_v1  ;;  %3920 = vmatpush1.msra.mxu1 %v9177_v34  ;;  %v12699_v1 = vld [vmem:[#allocation15_spill] sm:$0xff]  ;;  %v12700_v34 = vld [vmem:[#allocation16_spill] sm:$0xff] }
 0xbef   :  { %3850 = vmatprep.subr.mxu0 %v9183_v52  ;;  %3921 = vmatprep.subr.mxu1 %v9189_v55  ;;  %v12701_v52 = vld [vmem:[#allocation17_spill] sm:$0xff]  ;;  %v12702_v55 = vld [vmem:[#allocation18_spill] sm:$0xff] }
 0xbf0   :  { %3851 = vmatpush1.msra.mxu0 %v9195_v0  ;;  %3922 = vmatpush1.msra.mxu1 %v9201_v62  ;;  %v12703_v0 = vld [vmem:[#allocation19_spill] sm:$0xff]  ;;  %v12704_v62 = vld [vmem:[#allocation29_spill] sm:$0xff] }
 0xbf1   :  { %3852 = vmatprep.subr.mxu0 %v9207_v37  ;;  %3923 = vmatprep.subr.mxu1 %v9213_v2  ;;  %v12705_v37 = vld [vmem:[#allocation30_spill] sm:$0xff]  ;;  %v12706_v2 = vld [vmem:[#allocation31_spill] sm:$0xff] }
 0xbf2   :  { %3853 = vmatpush1.msra.mxu0 %v9219_v29  ;;  %3924 = vmatpush1.msra.mxu1 %v9225_v21  ;;  %v12707_v29 = vld [vmem:[#allocation32_spill] sm:$0xff]  ;;  %v12708_v21 = vld [vmem:[#allocation33_spill] sm:$0xff] }
 0xbf3   :  { %3854 = vmatprep.subr.mxu0 %v9231_v23  ;;  %3925 = vmatprep.subr.mxu1 %v9237_v26  ;;  %v12709_v23 = vld [vmem:[#allocation34_spill] sm:$0xff]  ;;  %v12710_v26 = vld [vmem:[#allocation35_spill] sm:$0xff] }
 0xbf4   :  { %3855 = vmatpush1.msra.mxu0 %v12604_v45  ;;  %3926 = vmatpush1.msra.mxu1 %v12605_v17  ;;  %v12714_v45 = vld [vmem:[#allocation55_spill] sm:$0xff]  ;;  %v12715_v17 = vld [vmem:[#allocation56_spill] sm:$0xff] }
 0xbf5   :  { %3856 = vmatprep.subr.mxu0 %v12606_v51  ;;  %3927 = vmatprep.subr.mxu1 %v12607_v13  ;;  %v12716_v51 = vld [vmem:[#allocation57_spill] sm:$0xff]  ;;  %v12717_v13 = vld [vmem:[#allocation58_spill] sm:$0xff] }
 0xbf6   :  { %3857 = vmatpush1.msra.mxu0 %v12608_v24  ;;  %3928 = vmatpush1.msra.mxu1 %v12609_v58  ;;  %v12718_v24 = vld [vmem:[#allocation59_spill] sm:$0xff]  ;;  %v3703_v58 = vunpack.c.h.bf16 %v9655_v43 }
 0xbf7   :  { %3858 = vmatprep.subr.mxu0 %v12610_v11  ;;  %3929 = vmatprep.subr.mxu1 %v12611_v48  ;;  %v12719_v11 = vmov 0.0   ;;  %v12720_v48 = vld [vmem:[#allocation67_spill] sm:$0xff] }
 0xbf8   :  { %3859 = vmatpush1.msra.mxu0 %v12612_v5  ;;  %3930 = vmatpush1.msra.mxu1 %v12695_v10  ;;  %v9816_v5 = vld [vmem:[#allocation4 + $0x1e8] sm:$0xff]  ;;  %v9846_v43 = vld [vmem:[#allocation4 + $0x1a0] sm:$0xff]  ;;  %v9909_v10 = vld [vmem:[#allocation4 + $0x110] sm:$0xff] }
 0xbf9   :  { %3860 = vmatprep.subr.mxu0 %v12696_v44  ;;  %3931 = vmatprep.subr.mxu1 %v12697_v28  ;;  %12734 = vst [vmem:[#allocation62_spill] sm:$0xff] %v9909_v10  ;;  %v9912_v44 = vld [vmem:[#allocation4 + $0xe8] sm:$0xff]  ;;  %v9915_v28 = vld [vmem:[#allocation4 + $0xf8] sm:$0xff] }
 0xbfa   :  { %3861 = vmatpush1.msra.mxu0 %v12698_v38  ;;  %3932 = vmatpush1.msra.mxu1 %v12699_v1  ;;  %12735 = vst [vmem:[#allocation63_spill] sm:$0xff] %v9912_v44  ;;  %12736 = vst [vmem:[#allocation64_spill] sm:$0xff] %v9915_v28  ;;  %v9918_v38 = vld [vmem:[#allocation4 + $0xe0] sm:$0xff]  ;;  %v9921_v1 = vld [vmem:[#allocation4 + $0xf0] sm:$0xff] }
 0xbfb   :  { %3862 = vmatprep.subr.mxu0 %v12700_v34  ;;  %3933 = vmatprep.subr.mxu1 %v12701_v52  ;;  %12737 = vst [vmem:[#allocation65_spill] sm:$0xff] %v9918_v38  ;;  %12738 = vst [vmem:[#allocation66_spill] sm:$0xff] %v9921_v1  ;;  %v9924_v34 = vld [vmem:[#allocation4 + $0xc8] sm:$0xff]  ;;  %v9927_v52 = vld [vmem:[#allocation4 + $0xd8] sm:$0xff] }
 0xbfc   :  { %3863 = vmatpush1.msra.mxu0 %v12702_v55  ;;  %3934 = vmatpush1.msra.mxu1 %v12703_v0  ;;  %12739 = vst [vmem:[#allocation20_spill] sm:$0xff] %v9924_v34  ;;  %12740 = vst [vmem:[#allocation21_spill] sm:$0xff] %v9927_v52  ;;  %v9930_v55 = vld [vmem:[#allocation4 + $0xc0] sm:$0xff]  ;;  %v9933_v0 = vld [vmem:[#allocation4 + $0xd0] sm:$0xff] }
 0xbfd   :  { %3864 = vmatprep.subr.mxu0 %v12704_v62  ;;  %3935 = vmatprep.subr.mxu1 %v12705_v37  ;;  %12741 = vst [vmem:[#allocation22_spill] sm:$0xff] %v9930_v55  ;;  %12742 = vst [vmem:[#allocation23_spill] sm:$0xff] %v9933_v0  ;;  %v9936_v62 = vld [vmem:[#allocation4 + $0xa8] sm:$0xff]  ;;  %v9939_v37 = vld [vmem:[#allocation4 + $0xb8] sm:$0xff] }
 0xbfe   :  { %3865 = vmatpush1.msra.mxu0 %v12706_v2  ;;  %3936 = vmatpush1.msra.mxu1 %v12707_v29  ;;  %12743 = vst [vmem:[#allocation24_spill] sm:$0xff] %v9936_v62  ;;  %12744 = vst [vmem:[#allocation25_spill] sm:$0xff] %v9939_v37  ;;  %v9942_v2 = vld [vmem:[#allocation4 + $0xa0] sm:$0xff]  ;;  %v9945_v29 = vld [vmem:[#allocation4 + $0xb0] sm:$0xff] }
 0xbff   :  { %3866 = vmatprep.subr.mxu0 %v12708_v21  ;;  %3937 = vmatprep.subr.mxu1 %v12709_v23  ;;  %12745 = vst [vmem:[#allocation26_spill] sm:$0xff] %v9942_v2  ;;  %12746 = vst [vmem:[#allocation27_spill] sm:$0xff] %v9945_v29  ;;  %v9948_v21 = vld [vmem:[#allocation4 + $0x88] sm:$0xff]  ;;  %v9951_v23 = vld [vmem:[#allocation4 + $0x98] sm:$0xff] }
 0xc00   :  { %3867 = vmatpush1.msra.mxu0 %v12710_v26  ;;  %3938 = vmatpush1.msra.mxu1 %v12629_v63  ;;  %v9840_v63 = vld [vmem:[#allocation4 + $0x1a8] sm:$0xff]  ;;  %12747 = vst [vmem:[#allocation28_spill] sm:$0xff] %v9948_v21  ;;  %12748 = vst [vmem:[#allocation68_spill] sm:$0xff] %v9951_v23  ;;  %v9954_v26 = vld [vmem:[#allocation4 + $0x80] sm:$0xff] }
 0xc01   :  { %3868 = vmatprep.subr.mxu0 %v12630_v47  ;;  %3939 = vmatprep.subr.mxu1 %v12711_v42  ;;  %v9843_v47 = vld [vmem:[#allocation4 + $0x1b8] sm:$0xff]  ;;  %12749 = vst [vmem:[#allocation71_spill] sm:$0xff] %v9954_v26  ;;  %v9957_v42 = vld [vmem:[#allocation4 + $0x90] sm:$0xff] }
 0xc02   :  { %3869 = vmatpush1.msra.mxu0 %v12712_v59  ;;  %3940 = vmatpush1.msra.mxu1 %v12713_v19  ;;  %12750 = vst [vmem:[#allocation72_spill] sm:$0xff] %v9957_v42  ;;  %v9960_v59 = vld [vmem:[#allocation4 + $0x68] sm:$0xff]  ;;  %v9963_v19 = vld [vmem:[#allocation4 + $0x78] sm:$0xff] }
 0xc03   :  { %3870 = vmatprep.subr.mxu0 %v12714_v45  ;;  %3941 = vmatprep.subr.mxu1 %v12715_v17  ;;  %12751 = vst [vmem:[#allocation73_spill] sm:$0xff] %v9960_v59  ;;  %12752 = vst [vmem:[#allocation74_spill] sm:$0xff] %v9963_v19  ;;  %v9966_v45 = vld [vmem:[#allocation4 + $0x60] sm:$0xff]  ;;  %v9969_v17 = vld [vmem:[#allocation4 + $0x70] sm:$0xff] }
 0xc04   :  { %3871 = vmatpush1.msra.mxu0 %v12716_v51  ;;  %3942 = vmatpush1.msra.mxu1 %v12717_v13  ;;  %12753 = vst [vmem:[#allocation75_spill] sm:$0xff] %v9966_v45  ;;  %12754 = vst [vmem:[#allocation76_spill] sm:$0xff] %v9969_v17  ;;  %v9972_v51 = vld [vmem:[#allocation4 + $0x48] sm:$0xff]  ;;  %v9975_v13 = vld [vmem:[#allocation4 + $0x58] sm:$0xff] }
 0xc05   :  { %3872 = vmatprep.subr.mxu0 %v12718_v24  ;;  %3943 = vmatprep.subr.mxu1 %v12639_v35  ;;  %v9837_v35 = vld [vmem:[#allocation4 + $0x1d0] sm:$0xff]  ;;  %12755 = vst [vmem:[#allocation77_spill] sm:$0xff] %v9972_v51  ;;  %12756 = vst [vmem:[#allocation78_spill] sm:$0xff] %v9975_v13  ;;  %v9978_v24 = vld [vmem:[#allocation4 + $0x40] sm:$0xff] }
 0xc06   :  { %3873 = vmatpush1.msra.mxu0 %v12640_v56  ;;  %3944 = vmatpush1.msra.mxu1 %v12641_v14  ;;  %v9849_v56 = vld [vmem:[#allocation4 + $0x1b0] sm:$0xff]  ;;  %v9852_v14 = vld [vmem:[#allocation4 + $0x188] sm:$0xff]  ;;  %12757 = vst [vmem:[#allocation98_spill] sm:$0xff] %v9978_v24 }
 0xc07   :  { %3874 = vmatprep.subr.mxu0 %v12642_v4  ;;  %3945 = vmatprep.subr.mxu1 %v12643_v60  ;;  %v9819_v60 = vld [vmem:[#allocation4 + $0x1f8] sm:$0xff] }
 0xc08   :  { %3875 = vmatpush1.msra.mxu0 %v12644_v25  ;;  %3946 = vmatpush1.msra.mxu1 %v12645_v33  ;;  %v9831_v25 = vld [vmem:[#allocation4 + $0x1d8] sm:$0xff]  ;;  %v9834_v33 = vld [vmem:[#allocation4 + $0x1c0] sm:$0xff] }
 0xc09   :  { %3876 = vmatprep.subr.mxu0 %v9496_v39  ;;  %3947 = vmatprep.subr.mxu1 %v9502_v7  ;;  %v9822_v39 = vld [vmem:[#allocation4 + $0x1e0] sm:$0xff]  ;;  %v9825_v7 = vld [vmem:[#allocation4 + $0x1f0] sm:$0xff]  ;;  %v9855_v4 = vld [vmem:[#allocation4 + $0x198] sm:$0xff] }
 0xc0a   :  { %3877 = vmatpush1.msra.mxu0 %v9508_v30  ;;  %3910 = vmatprep.mubr.f32.mxu0 %v12719_v11  ;;  %v9828_v30 = vld [vmem:[#allocation4 + $0x1c8] sm:$0xff] }
 0xc0b   :  { %3948 = vmatpush1.msra.mxu1 %v12720_v48  ;;  %3981 = vmatprep.mubr.f32.mxu1 %v12719_v11  ;;  %v9984_v48 = vld [vmem:[#allocation4 + $0x28] sm:$0xff] }
 0xc0c   :  { %3911 = vmatmul.mubr.f32.vlgmr.msra.gmra.mxu0 %v3703_v58  ;;  %3982 = vmatmul.mubr.f32.vlgmr.msra.gmra.mxu1 %v3703_v58  ;;  %v9981_v58 = vld [vmem:[#allocation4 + $0x50] sm:$0xff]  ;;  %12759 = vst [vmem:[#allocation97_spill] sm:$0xff] %v9984_v48 }
 0xc0d   :  { %4023 = vmatprep.subr.mxu0 %v9816_v5  ;;  %4094 = vmatprep.subr.mxu1 %v9819_v60  ;;  %12758 = vst [vmem:[#allocation95_spill] sm:$0xff] %v9981_v58 }
 0xc0e   :  { %4024 = vmatpush1.msra.mxu0 %v9822_v39  ;;  %4095 = vmatpush1.msra.mxu1 %v9825_v7 }
 0xc0f   :  { %4025 = vmatprep.subr.mxu0 %v9828_v30  ;;  %4096 = vmatprep.subr.mxu1 %v9831_v25 }
 0xc10   :  { %4026 = vmatpush1.msra.mxu0 %v9834_v33  ;;  %4097 = vmatpush1.msra.mxu1 %v9837_v35 }
 0xc11   :  { %4027 = vmatprep.subr.mxu0 %v9840_v63  ;;  %4098 = vmatprep.subr.mxu1 %v9843_v47 }
 0xc12   :  { %4028 = vmatpush1.msra.mxu0 %v9846_v43  ;;  %4099 = vmatpush1.msra.mxu1 %v9849_v56 }
 0xc13   :  { %4029 = vmatprep.subr.mxu0 %v9852_v14  ;;  %4100 = vmatprep.subr.mxu1 %v9855_v4 }
 0xc14   :  { %4030 = vmatpush1.msra.mxu0 %v9858_v6  ;;  %4101 = vmatpush1.msra.mxu1 %v9861_v15 }
 0xc15   :  { %4031 = vmatprep.subr.mxu0 %v9864_v49  ;;  %4102 = vmatprep.subr.mxu1 %v9867_v46 }
 0xc16   :  { %4032 = vmatpush1.msra.mxu0 %v9870_v36  ;;  %4103 = vmatpush1.msra.mxu1 %v9873_v18 }
 0xc17   :  { %4033 = vmatprep.subr.mxu0 %v9876_v16  ;;  %4104 = vmatprep.subr.mxu1 %v9879_v41 }
 0xc18   :  { %4034 = vmatpush1.msra.mxu0 %v9882_v50  ;;  %4105 = vmatpush1.msra.mxu1 %v9885_v31 }
 0xc19   :  { %4035 = vmatprep.subr.mxu0 %v9888_v32  ;;  %4106 = vmatprep.subr.mxu1 %v9891_v27 }
 0xc1a   :  { %4036 = vmatpush1.msra.mxu0 %v9894_v3  ;;  %4107 = vmatpush1.msra.mxu1 %v9897_v61 }
 0xc1b   :  { %4037 = vmatprep.subr.mxu0 %v9900_v8  ;;  %4108 = vmatprep.subr.mxu1 %v9903_v57 }
 0xc1c   :  { %4038 = vmatpush1.msra.mxu0 %v9906_v9  ;;  %4109 = vmatpush1.msra.mxu1 %v9909_v10 }
 0xc1d   :  { %4039 = vmatprep.subr.mxu0 %v9912_v44  ;;  %4110 = vmatprep.subr.mxu1 %v9915_v28 }
 0xc1e   :  { %4040 = vmatpush1.msra.mxu0 %v9918_v38  ;;  %4111 = vmatpush1.msra.mxu1 %v9921_v1 }
 0xc1f   :  { %4041 = vmatprep.subr.mxu0 %v9924_v34  ;;  %4112 = vmatprep.subr.mxu1 %v9927_v52 }
 0xc20   :  { %4042 = vmatpush1.msra.mxu0 %v9930_v55  ;;  %4113 = vmatpush1.msra.mxu1 %v9933_v0 }
 0xc21   :  { %4043 = vmatprep.subr.mxu0 %v9936_v62  ;;  %4114 = vmatprep.subr.mxu1 %v9939_v37 }
 0xc22   :  { %4044 = vmatpush1.msra.mxu0 %v9942_v2  ;;  %4115 = vmatpush1.msra.mxu1 %v9945_v29 }
 0xc23   :  { %4045 = vmatprep.subr.mxu0 %v9948_v21  ;;  %4116 = vmatprep.subr.mxu1 %v9951_v23 }
 0xc24   :  { %4046 = vmatpush1.msra.mxu0 %v9954_v26  ;;  %4117 = vmatpush1.msra.mxu1 %v9957_v42 }
 0xc25   :  { %4047 = vmatprep.subr.mxu0 %v9960_v59  ;;  %4118 = vmatprep.subr.mxu1 %v9963_v19 }
 0xc26   :  { %4048 = vmatpush1.msra.mxu0 %v9966_v45  ;;  %4119 = vmatpush1.msra.mxu1 %v9969_v17  ;;  %v9987_v17 = vld [vmem:[#allocation4 + $0x38] sm:$0xff] }
 0xc27   :  { %4049 = vmatprep.subr.mxu0 %v9972_v51  ;;  %4120 = vmatprep.subr.mxu1 %v9975_v13  ;;  %12760 = vst [vmem:[#allocation46_spill] sm:$0xff] %v9987_v17  ;;  %v9990_v51 = vld [vmem:[#allocation4 + $0x20] sm:$0xff]  ;;  %v9993_v13 = vld [vmem:[#allocation4 + $0x30] sm:$0xff] }
 0xc28   :  { %4050 = vmatpush1.msra.mxu0 %v9978_v24  ;;  %4121 = vmatpush1.msra.mxu1 %v9981_v58  ;;  %12761 = vst [vmem:[#allocation47_spill] sm:$0xff] %v9990_v51  ;;  %12762 = vst [vmem:[#allocation48_spill] sm:$0xff] %v9993_v13  ;;  %v9996_v24 = vld [vmem:[#allocation4 + $0x8] sm:$0xff]  ;;  %v9999_v58 = vld [vmem:[#allocation4 + $0x18] sm:$0xff] }
 0xc29   :  { %4051 = vmatprep.subr.mxu0 %v9984_v48  ;;  %4122 = vmatprep.subr.mxu1 %v9987_v17  ;;  %12763 = vst [vmem:[#allocation49_spill] sm:$0xff] %v9996_v24  ;;  %12764 = vst [vmem:[#allocation50_spill] sm:$0xff] %v9999_v58  ;;  %v10002_v48 = vld [vmem:[#allocation4] sm:$0xff]  ;;  %v10005_v17 = vld [vmem:[#allocation4 + $0x10] sm:$0xff] }
 0xc2a   :  { %4052 = vmatpush1.msra.mxu0 %v9990_v51  ;;  %4123 = vmatpush1.msra.mxu1 %v9993_v13  ;;  %12765 = vst [vmem:[#allocation51_spill] sm:$0xff] %v10002_v48  ;;  %12766 = vst [vmem:[#allocation52_spill] sm:$0xff] %v10005_v17 }
 0xc2b   :  { %4053 = vmatprep.subr.mxu0 %v9996_v24  ;;  %4124 = vmatprep.subr.mxu1 %v9999_v58  ;;  %v10013_v24 = vld [vmem:[%s10933_s2 + $0x1e8] sm:$0xff]  ;;  %v10019_v58 = vld [vmem:[%s10933_s2 + $0x1f8] sm:$0xff] }
 0xc2c   :  { %4054 = vmatpush1.msra.mxu0 %v10002_v48  ;;  %4125 = vmatpush1.msra.mxu1 %v10005_v17  ;;  %12767 = vst [vmem:[#allocation69_spill] sm:$0xff] %v10013_v24  ;;  %12768 = vst [vmem:[#allocation70_spill] sm:$0xff] %v10019_v58 }
 0xc2d   :  { %4087 = vmatprep.mubr.f32.mxu0 %v12719_v11  ;;  %4158 = vmatprep.mubr.f32.mxu1 %v12719_v11 }
 0xc2e   :  { %4165 = vmatprep.subr.mxu0 %v10013_v24  ;;  %4236 = vmatprep.subr.mxu1 %v10019_v58 }
 0xcab   :  { %v3770_v48 = vpop.f32.mrf.mxu0  ;;  %v3841_v17 = vpop.f32.mrf.mxu1 }
 0xcad   :  { %v3772_v13 = vpop.f32.mrf.mxu0  ;;  %v3843_v51 = vpop.f32.mrf.mxu1 }
 0xccc   :  { %v3912_v45 = vpop.f32.mrf.mxu0  ;;  %v3983_v59 = vpop.f32.mrf.mxu1 }
 0xccd   :  { %v3913_v19 = vadd.f32 %v3912_v45, %v3770_v48  ;;  %v3984_v24 = vadd.f32 %v3983_v59, %v3841_v17 }
 0xcce   :  { %v3914_v42 = vpop.f32.mrf.mxu0  ;;  %v3985_v37 = vpop.f32.mrf.mxu1 }
 0xccf   :  { %v3988_v26 = vadd.f32 %v3913_v19, %v6890_v54  ;;  %v3915_v23 = vadd.f32 %v3914_v42, %v3772_v13  ;;  %v3990_v58 = vadd.f32 %v3984_v24, %v6895_v40  ;;  %v3986_v62 = vadd.f32 %v3985_v37, %v3843_v51  ;;  %v10056_v24 = vld [vmem:[%s10933_s2 + $0x1d8] sm:$0xff] }
 0xcd1   :  { %v3992_v21 = vmul.f32 0.5, %v3988_v26  ;;  %v3989_v29 = vadd.f32 %v3915_v23, %v11964_v20  ;;  %v3991_v0 = vadd.f32 %v3986_v62, %v6899_v53  ;;  %v4016_v23 = vpop.permute.xlu1 %4015 }
 0xcd2   :  { %vm4017_vm11 = vcmp.eq.s32.totalorder %v4016_v23, 1  ;;  %v10116_v23 = vld [vmem:[%s10933_s2 + $0x190] sm:$0xff] }
 0xcd3   :  { %5458 = vtanh.f32 %v3992_v21  ;;  %v3996_v2 = vmul.f32 0.5, %v3989_v29  ;;  %v4001_v45 = vmul.f32 0.5, %v3991_v0 }
 0xcd5   :  { %5460 = vtanh.f32 %v3996_v2 }
 0xcd6   :  { %5462 = vtanh.f32 %v3990_v58  ;;  %v10062_v58 = vld [vmem:[%s10933_s2 + $0x1c0] sm:$0xff] }
 0xcd7   :  { %5464 = vtanh.f32 %v4001_v45  ;;  %v10068_v45 = vld [vmem:[%s10933_s2 + $0x1d0] sm:$0xff] }
 0xce0   :  { %v5459_v48 = vpop.eup %5458 }
 0xce1   :  { %v3994_v55 = vmul.f32 0.5, %v5459_v48  ;;  %v10074_v48 = vld [vmem:[%s10933_s2 + $0x1a8] sm:$0xff] }
 0xce2   :  { %v5461_v52 = vpop.eup %5460 }
 0xce3   :  { %v3995_v19 = vadd.f32 0.5, %v3994_v55  ;;  %v3998_v42 = vmul.f32 0.5, %v5461_v52  ;;  %v5463_v59 = vpop.eup %5462  ;;  %v10038_v55 = vld [vmem:[%s10933_s2 + $0x1e0] sm:$0xff] }
 0xce4   :  { %v5465_v62 = vpop.eup %5464 }
 0xce5   :  { %v3999_v26 = vadd.f32 0.5, %v3998_v42  ;;  %v4006_v29 = vmul.f32 %v5463_v59, %v3995_v19  ;;  %v4003_v0 = vmul.f32 0.5, %v5465_v62  ;;  %v10080_v19 = vld [vmem:[%s10933_s2 + $0x1b8] sm:$0xff]  ;;  %v10086_v42 = vld [vmem:[%s10933_s2 + $0x1a0] sm:$0xff]  ;;  %v10098_v59 = vld [vmem:[%s10933_s2 + $0x188] sm:$0xff] }
 0xce6   :  { %v10128_v62 = vld [vmem:[%s10933_s2 + $0x178] sm:$0xff] }
 0xce7   :  { %v4005_v21 = vmul.f32 %v3999_v26, %v9744_v12  ;;  %v4004_v2 = vadd.f32 0.5, %v4003_v0  ;;  %v10092_v26 = vld [vmem:[%s10933_s2 + $0x1b0] sm:$0xff]  ;;  %12769 = vst [vmem:[#allocation79_spill] sm:$0xff] %v10128_v62  ;;  %v10134_v0 = vld [vmem:[%s10933_s2 + $0x160] sm:$0xff] }
 0xce8   :  { %12770 = vst [vmem:[#allocation80_spill] sm:$0xff] %v10134_v0 }
 0xce9   :  { %v4007_v17 = vadd.f32 %v4006_v29, %v4005_v21  ;;  %v10104_v21 = vld [vmem:[%s10933_s2 + $0x198] sm:$0xff]  ;;  %v10110_v29 = vld [vmem:[%s10933_s2 + $0x180] sm:$0xff] }
 0xceb   :  { %5466 = vtanh.f32 %v4007_v17  ;;  %v10028_v37 = vsel %vm4017_vm11, %v4007_v17, %v9744_v12  ;;  %v10044_v12 = vld [vmem:[%s10933_s2 + $0x1f0] sm:$0xff]  ;;  %v10122_v17 = vld [vmem:[%s10933_s2 + $0x168] sm:$0xff] }
 0xcf8   :  { %v5467_v51 = vpop.eup %5466 }
 0xcf9   :  { %v4009_v13 = vmul.f32 %v5467_v51, %v4004_v2  ;;  %v10140_v2 = vld [vmem:[%s10933_s2 + $0x170] sm:$0xff]  ;;  %v10146_v51 = vld [vmem:[%s10933_s2 + $0x148] sm:$0xff] }
 0xcfa   :  { %12771 = vst [vmem:[#allocation81_spill] sm:$0xff] %v10140_v2  ;;  %12772 = vst [vmem:[#allocation82_spill] sm:$0xff] %v10146_v51 }
 0xcfb   :  { %v10031_v52 = vsel %vm4017_vm11, %v4009_v13, %v9747_v22  ;;  %v10050_v22 = vld [vmem:[%s10933_s2 + $0x1c8] sm:$0xff]  ;;  %v10152_v13 = vld [vmem:[%s10933_s2 + $0x158] sm:$0xff] }
 0xcfc   :  { %4088 = vmatmul.mubr.f32.vlgmr.msra.gmra.mxu0 %v10031_v52  ;;  %4159 = vmatmul.mubr.f32.vlgmr.msra.gmra.mxu1 %v10031_v52  ;;  %12773 = vst [vmem:[#allocation83_spill] sm:$0xff] %v10152_v13 }
 0xcfd   :  { %4166 = vmatpush1.msra.mxu0 %v10038_v55  ;;  %4237 = vmatpush1.msra.mxu1 %v10044_v12 }
 0xcfe   :  { %4167 = vmatprep.subr.mxu0 %v10050_v22  ;;  %4238 = vmatprep.subr.mxu1 %v10056_v24 }
 0xcff   :  { %4168 = vmatpush1.msra.mxu0 %v10062_v58  ;;  %4239 = vmatpush1.msra.mxu1 %v10068_v45 }
 0xd00   :  { %4169 = vmatprep.subr.mxu0 %v10074_v48  ;;  %4240 = vmatprep.subr.mxu1 %v10080_v19 }
 0xd01   :  { %4170 = vmatpush1.msra.mxu0 %v10086_v42  ;;  %4241 = vmatpush1.msra.mxu1 %v10092_v26 }
 0xd02   :  { %4171 = vmatprep.subr.mxu0 %v10098_v59  ;;  %4242 = vmatprep.subr.mxu1 %v10104_v21 }
 0xd03   :  { %4172 = vmatpush1.msra.mxu0 %v10110_v29  ;;  %4243 = vmatpush1.msra.mxu1 %v10116_v23 }
 0xd04   :  { %4173 = vmatprep.subr.mxu0 %v10122_v17  ;;  %4244 = vmatprep.subr.mxu1 %v10128_v62  ;;  %v10373_v62 = vld [vmem:[%s10933_s2 + $0x38] sm:$0xff] }
 0xd05   :  { %4174 = vmatpush1.msra.mxu0 %v10134_v0  ;;  %4245 = vmatpush1.msra.mxu1 %v10140_v2  ;;  %v10158_v0 = vld [vmem:[%s10933_s2 + $0x140] sm:$0xff]  ;;  %v10164_v2 = vld [vmem:[%s10933_s2 + $0x150] sm:$0xff]  ;;  %12809 = vst [vmem:[#allocation57_spill] sm:$0xff] %v10373_v62 }
 0xd06   :  { %4175 = vmatprep.subr.mxu0 %v10146_v51  ;;  %4246 = vmatprep.subr.mxu1 %v10152_v13  ;;  %12774 = vst [vmem:[#allocation86_spill] sm:$0xff] %v10158_v0  ;;  %12775 = vst [vmem:[#allocation87_spill] sm:$0xff] %v10164_v2  ;;  %v10170_v51 = vld [vmem:[%s10933_s2 + $0x128] sm:$0xff]  ;;  %v10176_v13 = vld [vmem:[%s10933_s2 + $0x138] sm:$0xff] }
 0xd07   :  { %4176 = vmatpush1.msra.mxu0 %v10158_v0  ;;  %4247 = vmatpush1.msra.mxu1 %v10164_v2  ;;  %12776 = vst [vmem:[#allocation39_spill] sm:$0xff] %v10170_v51  ;;  %12777 = vst [vmem:[#allocation40_spill] sm:$0xff] %v10176_v13  ;;  %v10182_v0 = vld [vmem:[%s10933_s2 + $0x120] sm:$0xff]  ;;  %v10188_v2 = vld [vmem:[%s10933_s2 + $0x130] sm:$0xff] }
 0xd08   :  { %4177 = vmatprep.subr.mxu0 %v10170_v51  ;;  %4248 = vmatprep.subr.mxu1 %v10176_v13  ;;  %12778 = vst [vmem:[#allocation41_spill] sm:$0xff] %v10182_v0  ;;  %12779 = vst [vmem:[#allocation42_spill] sm:$0xff] %v10188_v2  ;;  %v10194_v51 = vld [vmem:[%s10933_s2 + $0x108] sm:$0xff]  ;;  %v10200_v13 = vld [vmem:[%s10933_s2 + $0x118] sm:$0xff] }
 0xd09   :  { %4178 = vmatpush1.msra.mxu0 %v10182_v0  ;;  %4249 = vmatpush1.msra.mxu1 %v10188_v2  ;;  %12780 = vst [vmem:[#allocation43_spill] sm:$0xff] %v10194_v51  ;;  %12781 = vst [vmem:[#allocation44_spill] sm:$0xff] %v10200_v13  ;;  %v10206_v0 = vld [vmem:[%s10933_s2 + $0x100] sm:$0xff]  ;;  %v10212_v2 = vld [vmem:[%s10933_s2 + $0x110] sm:$0xff] }
 0xd0a   :  { %4179 = vmatprep.subr.mxu0 %v10194_v51  ;;  %4250 = vmatprep.subr.mxu1 %v10200_v13  ;;  %12782 = vst [vmem:[#allocation45_spill] sm:$0xff] %v10206_v0  ;;  %12783 = vst [vmem:[#allocation84_spill] sm:$0xff] %v10212_v2  ;;  %v10218_v51 = vld [vmem:[%s10933_s2 + $0xe8] sm:$0xff]  ;;  %v10224_v13 = vld [vmem:[%s10933_s2 + $0xf8] sm:$0xff] }
 0xd0b   :  { %4180 = vmatpush1.msra.mxu0 %v10206_v0  ;;  %4251 = vmatpush1.msra.mxu1 %v10212_v2  ;;  %12784 = vst [vmem:[#allocation85_spill] sm:$0xff] %v10218_v51  ;;  %12785 = vst [vmem:[#allocation88_spill] sm:$0xff] %v10224_v13  ;;  %v10230_v0 = vld [vmem:[%s10933_s2 + $0xe0] sm:$0xff]  ;;  %v10236_v2 = vld [vmem:[%s10933_s2 + $0xf0] sm:$0xff] }
 0xd0c   :  { %4181 = vmatprep.subr.mxu0 %v10218_v51  ;;  %4252 = vmatprep.subr.mxu1 %v10224_v13  ;;  %12786 = vst [vmem:[#allocation89_spill] sm:$0xff] %v10230_v0  ;;  %12787 = vst [vmem:[#allocation90_spill] sm:$0xff] %v10236_v2  ;;  %v10242_v51 = vld [vmem:[%s10933_s2 + $0xc8] sm:$0xff]  ;;  %v10248_v13 = vld [vmem:[%s10933_s2 + $0xd8] sm:$0xff] }
 0xd0d   :  { %4182 = vmatpush1.msra.mxu0 %v10230_v0  ;;  %4253 = vmatpush1.msra.mxu1 %v10236_v2  ;;  %12788 = vst [vmem:[#allocation11_spill] sm:$0xff] %v10242_v51  ;;  %12789 = vst [vmem:[#allocation12_spill] sm:$0xff] %v10248_v13  ;;  %v10254_v0 = vld [vmem:[%s10933_s2 + $0xc0] sm:$0xff]  ;;  %v10260_v2 = vld [vmem:[%s10933_s2 + $0xd0] sm:$0xff] }
 0xd0e   :  { %4183 = vmatprep.subr.mxu0 %v10242_v51  ;;  %4254 = vmatprep.subr.mxu1 %v10248_v13  ;;  %12790 = vst [vmem:[#allocation13_spill] sm:$0xff] %v10254_v0  ;;  %12791 = vst [vmem:[#allocation14_spill] sm:$0xff] %v10260_v2  ;;  %v10266_v51 = vld [vmem:[%s10933_s2 + $0xa8] sm:$0xff]  ;;  %v10272_v13 = vld [vmem:[%s10933_s2 + $0xb8] sm:$0xff] }
 0xd0f   :  { %4184 = vmatpush1.msra.mxu0 %v10254_v0  ;;  %4255 = vmatpush1.msra.mxu1 %v10260_v2  ;;  %12792 = vst [vmem:[#allocation15_spill] sm:$0xff] %v10266_v51  ;;  %12793 = vst [vmem:[#allocation16_spill] sm:$0xff] %v10272_v13  ;;  %v10278_v0 = vld [vmem:[%s10933_s2 + $0xa0] sm:$0xff]  ;;  %v10284_v2 = vld [vmem:[%s10933_s2 + $0xb0] sm:$0xff] }
 0xd10   :  { %4185 = vmatprep.subr.mxu0 %v10266_v51  ;;  %4256 = vmatprep.subr.mxu1 %v10272_v13  ;;  %12794 = vst [vmem:[#allocation17_spill] sm:$0xff] %v10278_v0  ;;  %12795 = vst [vmem:[#allocation18_spill] sm:$0xff] %v10284_v2  ;;  %v10290_v51 = vld [vmem:[%s10933_s2 + $0x88] sm:$0xff]  ;;  %v10296_v13 = vld [vmem:[%s10933_s2 + $0x98] sm:$0xff] }
 0xd11   :  { %4186 = vmatpush1.msra.mxu0 %v10278_v0  ;;  %4257 = vmatpush1.msra.mxu1 %v10284_v2  ;;  %12796 = vst [vmem:[#allocation19_spill] sm:$0xff] %v10290_v51  ;;  %12797 = vst [vmem:[#allocation29_spill] sm:$0xff] %v10296_v13  ;;  %v10302_v0 = vld [vmem:[%s10933_s2 + $0x80] sm:$0xff]  ;;  %v10308_v2 = vld [vmem:[%s10933_s2 + $0x90] sm:$0xff] }
 0xd12   :  { %4187 = vmatprep.subr.mxu0 %v10290_v51  ;;  %4258 = vmatprep.subr.mxu1 %v10296_v13  ;;  %12798 = vst [vmem:[#allocation30_spill] sm:$0xff] %v10302_v0  ;;  %12799 = vst [vmem:[#allocation31_spill] sm:$0xff] %v10308_v2  ;;  %v10314_v51 = vld [vmem:[%s10933_s2 + $0x68] sm:$0xff]  ;;  %v10320_v13 = vld [vmem:[%s10933_s2 + $0x78] sm:$0xff] }
 0xd13   :  { %4188 = vmatpush1.msra.mxu0 %v10302_v0  ;;  %4259 = vmatpush1.msra.mxu1 %v10308_v2  ;;  %12800 = vst [vmem:[#allocation32_spill] sm:$0xff] %v10314_v51  ;;  %12801 = vst [vmem:[#allocation33_spill] sm:$0xff] %v10320_v13  ;;  %v10326_v0 = vld [vmem:[%s10933_s2 + $0x60] sm:$0xff]  ;;  %v10332_v2 = vld [vmem:[%s10933_s2 + $0x70] sm:$0xff] }
 0xd14   :  { %4189 = vmatprep.subr.mxu0 %v10314_v51  ;;  %4260 = vmatprep.subr.mxu1 %v10320_v13  ;;  %12802 = vst [vmem:[#allocation34_spill] sm:$0xff] %v10326_v0  ;;  %12803 = vst [vmem:[#allocation35_spill] sm:$0xff] %v10332_v2  ;;  %v10338_v51 = vld [vmem:[%s10933_s2 + $0x48] sm:$0xff]  ;;  %v10344_v13 = vld [vmem:[%s10933_s2 + $0x58] sm:$0xff] }
 0xd15   :  { %4190 = vmatpush1.msra.mxu0 %v10326_v0  ;;  %4261 = vmatpush1.msra.mxu1 %v10332_v2  ;;  %12804 = vst [vmem:[#allocation38_spill] sm:$0xff] %v10338_v51  ;;  %12805 = vst [vmem:[#allocation53_spill] sm:$0xff] %v10344_v13  ;;  %v10350_v0 = vld [vmem:[%s10932_s1 + $0x30] sm:$0xff]   ;;  %v10355_v2 = vld [vmem:[%s10933_s2 + $0x40] sm:$0xff] }
 0xd16   :  { %4191 = vmatprep.subr.mxu0 %v10338_v51  ;;  %4262 = vmatprep.subr.mxu1 %v10344_v13  ;;  %12806 = vst [vmem:[#allocation54_spill] sm:$0xff] %v10355_v2  ;;  %v10361_v51 = vld [vmem:[%s10933_s2 + $0x50] sm:$0xff]  ;;  %v10367_v13 = vld [vmem:[%s10933_s2 + $0x28] sm:$0xff] }
 0xd17   :  { %4192 = vmatpush1.msra.mxu0 %v10355_v2  ;;  %12807 = vst [vmem:[#allocation55_spill] sm:$0xff] %v10361_v51  ;;  %4263 = vmatpush1.msra.mxu1 %v10361_v51  ;;  %12808 = vst [vmem:[#allocation56_spill] sm:$0xff] %v10367_v13  ;;  %v10379_v2 = vld [vmem:[%s10933_s2 + $0x20] sm:$0xff]  ;;  %v10385_v51 = vld [vmem:[%s10933_s2 + $0x30] sm:$0xff] }
 0xd18   :  { %4193 = vmatprep.subr.mxu0 %v10367_v13  ;;  %4264 = vmatprep.subr.mxu1 %v10373_v62  ;;  %12810 = vst [vmem:[#allocation58_spill] sm:$0xff] %v10379_v2  ;;  %12811 = vst [vmem:[#allocation59_spill] sm:$0xff] %v10385_v51  ;;  %v4022_v13 = vunpack.c.l.bf16 %v10350_v0  ;;  %v10392_v62 = vld [vmem:[%s10933_s2 + $0x8] sm:$0xff] }
 0xd19   :  { %4194 = vmatpush1.msra.mxu0 %v10379_v2  ;;  %4265 = vmatpush1.msra.mxu1 %v10385_v51  ;;  %12812 = vst [vmem:[#allocation67_spill] sm:$0xff] %v10392_v62  ;;  %v10398_v2 = vld [vmem:[%s10933_s2 + $0x18] sm:$0xff]  ;;  %v10404_v51 = vld [vmem:[%s10933_s2] sm:$0xff] }
 0xd1a   :  { %4195 = vmatprep.subr.mxu0 %v10392_v62  ;;  %4266 = vmatprep.subr.mxu1 %v10398_v2  ;;  %v10411_v62 = vld [vmem:[%s10933_s2 + $0x10] sm:$0xff] }
 0xd1b   :  { %4196 = vmatpush1.msra.mxu0 %v10404_v51  ;;  %4229 = vmatprep.mubr.f32.mxu0 %v12719_v11 }
 0xd1c   :  { %4267 = vmatpush1.msra.mxu1 %v10411_v62  ;;  %4300 = vmatprep.mubr.f32.mxu1 %v12719_v11 }
 0xd1d   :  { %4230 = vmatmul.mubr.f32.vlgmr.msra.gmra.mxu0 %v4022_v13  ;;  %4301 = vmatmul.mubr.f32.vlgmr.msra.gmra.mxu1 %v4022_v13  ;;  %v12813_v13 = vld [vmem:[#allocation21_spill] sm:$0xff] }
 0xd1e   :  { %4342 = vmatprep.subr.mxu0 %v9816_v5  ;;  %4413 = vmatprep.subr.mxu1 %v9819_v60 }
 0xd1f   :  { %4343 = vmatpush1.msra.mxu0 %v9822_v39  ;;  %4414 = vmatpush1.msra.mxu1 %v9825_v7 }
 0xd20   :  { %4344 = vmatprep.subr.mxu0 %v9828_v30  ;;  %4415 = vmatprep.subr.mxu1 %v9831_v25 }
 0xd21   :  { %4345 = vmatpush1.msra.mxu0 %v9834_v33  ;;  %4416 = vmatpush1.msra.mxu1 %v9837_v35 }
 0xd22   :  { %4346 = vmatprep.subr.mxu0 %v9840_v63  ;;  %4417 = vmatprep.subr.mxu1 %v9843_v47 }
 0xd23   :  { %4347 = vmatpush1.msra.mxu0 %v9846_v43  ;;  %4418 = vmatpush1.msra.mxu1 %v9849_v56 }
 0xd24   :  { %4348 = vmatprep.subr.mxu0 %v9852_v14  ;;  %4419 = vmatprep.subr.mxu1 %v9855_v4 }
 0xd25   :  { %4349 = vmatpush1.msra.mxu0 %v9858_v6  ;;  %4420 = vmatpush1.msra.mxu1 %v9861_v15 }
 0xd26   :  { %4350 = vmatprep.subr.mxu0 %v9864_v49  ;;  %4421 = vmatprep.subr.mxu1 %v9867_v46 }
 0xd27   :  { %4351 = vmatpush1.msra.mxu0 %v9870_v36  ;;  %4422 = vmatpush1.msra.mxu1 %v9873_v18 }
 0xd28   :  { %4352 = vmatprep.subr.mxu0 %v9876_v16  ;;  %4423 = vmatprep.subr.mxu1 %v9879_v41 }
 0xd29   :  { %4353 = vmatpush1.msra.mxu0 %v9882_v50  ;;  %4424 = vmatpush1.msra.mxu1 %v9885_v31 }
 0xd2a   :  { %4354 = vmatprep.subr.mxu0 %v9888_v32  ;;  %4425 = vmatprep.subr.mxu1 %v9891_v27 }
 0xd2b   :  { %4355 = vmatpush1.msra.mxu0 %v9894_v3  ;;  %4426 = vmatpush1.msra.mxu1 %v9897_v61  ;;  %v12814_v61 = vld [vmem:[#allocation22_spill] sm:$0xff] }
 0xd2c   :  { %4356 = vmatprep.subr.mxu0 %v9900_v8  ;;  %4427 = vmatprep.subr.mxu1 %v9903_v57  ;;  %v12815_v8 = vld [vmem:[#allocation23_spill] sm:$0xff]  ;;  %v12816_v57 = vld [vmem:[#allocation24_spill] sm:$0xff] }
 0xd2d   :  { %4357 = vmatpush1.msra.mxu0 %v9906_v9  ;;  %4428 = vmatpush1.msra.mxu1 %v9909_v10  ;;  %v12817_v9 = vld [vmem:[#allocation25_spill] sm:$0xff]  ;;  %v12818_v10 = vld [vmem:[#allocation26_spill] sm:$0xff] }
 0xd2e   :  { %4358 = vmatprep.subr.mxu0 %v9912_v44  ;;  %4429 = vmatprep.subr.mxu1 %v9915_v28  ;;  %v12819_v44 = vld [vmem:[#allocation27_spill] sm:$0xff]  ;;  %v12820_v28 = vld [vmem:[#allocation28_spill] sm:$0xff] }
 0xd2f   :  { %4359 = vmatpush1.msra.mxu0 %v9918_v38  ;;  %4430 = vmatpush1.msra.mxu1 %v9921_v1  ;;  %v12821_v38 = vld [vmem:[#allocation68_spill] sm:$0xff]  ;;  %v12822_v1 = vld [vmem:[#allocation71_spill] sm:$0xff] }
 0xd30   :  { %4360 = vmatprep.subr.mxu0 %v9924_v34  ;;  %4431 = vmatprep.subr.mxu1 %v12813_v13  ;;  %v12823_v34 = vld [vmem:[#allocation72_spill] sm:$0xff]  ;;  %v12824_v13 = vld [vmem:[#allocation73_spill] sm:$0xff] }
 0xd31   :  { %4361 = vmatpush1.msra.mxu0 %v12814_v61  ;;  %4432 = vmatpush1.msra.mxu1 %v12815_v8  ;;  %v12825_v61 = vld [vmem:[#allocation74_spill] sm:$0xff]  ;;  %v12826_v8 = vld [vmem:[#allocation75_spill] sm:$0xff] }
 0xd32   :  { %4362 = vmatprep.subr.mxu0 %v12816_v57  ;;  %4433 = vmatprep.subr.mxu1 %v12817_v9  ;;  %v12827_v57 = vld [vmem:[#allocation76_spill] sm:$0xff]  ;;  %v12828_v9 = vld [vmem:[#allocation77_spill] sm:$0xff] }
 0xd33   :  { %4363 = vmatpush1.msra.mxu0 %v12818_v10  ;;  %4434 = vmatpush1.msra.mxu1 %v12819_v44  ;;  %v12829_v10 = vld [vmem:[#allocation78_spill] sm:$0xff] }
 0xd34   :  { %4364 = vmatprep.subr.mxu0 %v12820_v28  ;;  %4435 = vmatprep.subr.mxu1 %v12821_v38  ;;  %v12830_v44 = vld [vmem:[#allocation98_spill] sm:$0xff]  ;;  %v12831_v28 = vld [vmem:[#allocation95_spill] sm:$0xff]  ;;  %v12832_v38 = vld [vmem:[#allocation97_spill] sm:$0xff] }
 0xd35   :  { %4365 = vmatpush1.msra.mxu0 %v12822_v1  ;;  %4436 = vmatpush1.msra.mxu1 %v12823_v34  ;;  %v12833_v1 = vld [vmem:[#allocation46_spill] sm:$0xff]  ;;  %v12834_v34 = vld [vmem:[#allocation47_spill] sm:$0xff] }
 0xd36   :  { %4366 = vmatprep.subr.mxu0 %v12824_v13  ;;  %4437 = vmatprep.subr.mxu1 %v12825_v61  ;;  %v12835_v13 = vld [vmem:[#allocation48_spill] sm:$0xff]  ;;  %v12836_v61 = vld [vmem:[#allocation49_spill] sm:$0xff] }
 0xd37   :  { %4367 = vmatpush1.msra.mxu0 %v12826_v8  ;;  %4438 = vmatpush1.msra.mxu1 %v12827_v57  ;;  %v12837_v8 = vld [vmem:[#allocation50_spill] sm:$0xff]  ;;  %v12838_v57 = vld [vmem:[#allocation51_spill] sm:$0xff] }
 0xd38   :  { %4368 = vmatprep.subr.mxu0 %v12828_v9  ;;  %4439 = vmatprep.subr.mxu1 %v12829_v10  ;;  %v12839_v9 = vld [vmem:[#allocation52_spill] sm:$0xff] }
 0xd39   :  { %4369 = vmatpush1.msra.mxu0 %v12830_v44  ;;  %4440 = vmatpush1.msra.mxu1 %v12831_v28  ;;  %v12840_v28 = vld [vmem:[#allocation69_spill] sm:$0xff] }
 0xd3a   :  { %4370 = vmatprep.subr.mxu0 %v12832_v38  ;;  %4441 = vmatprep.subr.mxu1 %v12833_v1  ;;  %v12841_v38 = vld [vmem:[#allocation70_spill] sm:$0xff] }
 0xd3b   :  { %4371 = vmatpush1.msra.mxu0 %v12834_v34  ;;  %4442 = vmatpush1.msra.mxu1 %v12835_v13 }
 0xd3c   :  { %4372 = vmatprep.subr.mxu0 %v12836_v61  ;;  %4443 = vmatprep.subr.mxu1 %v12837_v8 }
 0xd3d   :  { %4373 = vmatpush1.msra.mxu0 %v12838_v57  ;;  %4444 = vmatpush1.msra.mxu1 %v12839_v9 }
 0xd3e   :  { %4406 = vmatprep.mubr.f32.mxu0 %v12719_v11  ;;  %4477 = vmatprep.mubr.f32.mxu1 %v12719_v11 }
 0xd3f   :  { %4484 = vmatprep.subr.mxu0 %v12840_v28  ;;  %4555 = vmatprep.subr.mxu1 %v12841_v38 }
 0xdbc   :  { %v4089_v1 = vpop.f32.mrf.mxu0  ;;  %v4160_v34 = vpop.f32.mrf.mxu1 }
 0xdbe   :  { %v4091_v44 = vpop.f32.mrf.mxu0  ;;  %v4162_v13 = vpop.f32.mrf.mxu1 }
 0xddd   :  { %v4231_v10 = vpop.f32.mrf.mxu0  ;;  %v4302_v3 = vpop.f32.mrf.mxu1 }
 0xdde   :  { %v4232_v61 = vadd.f32 %v4231_v10, %v4089_v1  ;;  %v4303_v32 = vadd.f32 %v4302_v3, %v4160_v34  ;;  %v12843_v34 = vld [vmem:[#allocation80_spill] sm:$0xff] }
 0xddf   :  { %v4233_v8 = vpop.f32.mrf.mxu0  ;;  %v4304_v28 = vpop.f32.mrf.mxu1 }
 0xde0   :  { %v4307_v57 = vadd.f32 %v4232_v61, %v6890_v54  ;;  %v4234_v27 = vadd.f32 %v4233_v8, %v4091_v44  ;;  %v4309_v38 = vadd.f32 %v4303_v32, %v6895_v40  ;;  %v4305_v41 = vadd.f32 %v4304_v28, %v4162_v13  ;;  %v12846_v13 = vld [vmem:[#allocation83_spill] sm:$0xff] }
 0xde2   :  { %v4311_v9 = vmul.f32 0.5, %v4307_v57  ;;  %v4308_v31 = vadd.f32 %v4234_v27, %v11964_v20  ;;  %v4310_v16 = vadd.f32 %v4305_v41, %v6899_v53 }
 0xde4   :  { %5468 = vtanh.f32 %v4311_v9  ;;  %v4315_v50 = vmul.f32 0.5, %v4308_v31  ;;  %v4320_v10 = vmul.f32 0.5, %v4310_v16  ;;  %v4335_v9 = vpop.permute.xlu0 %4334 }
 0xde5   :  { %vm4336_vm12 = vcmp.eq.s32.totalorder %v4335_v9, 1  ;;  %v12855_v9 = vld [vmem:[#allocation45_spill] sm:$0xff] }
 0xde6   :  { %5470 = vtanh.f32 %v4315_v50 }
 0xde7   :  { %5472 = vtanh.f32 %v4309_v38 }
 0xde8   :  { %5474 = vtanh.f32 %v4320_v10  ;;  %v12847_v10 = vld [vmem:[#allocation86_spill] sm:$0xff] }
 0xdf1   :  { %v5469_v1 = vpop.eup %5468 }
 0xdf2   :  { %v4313_v18 = vmul.f32 0.5, %v5469_v1  ;;  %v12848_v1 = vld [vmem:[#allocation87_spill] sm:$0xff] }
 0xdf3   :  { %v5471_v36 = vpop.eup %5470 }
 0xdf4   :  { %v4314_v61 = vadd.f32 0.5, %v4313_v18  ;;  %v4317_v8 = vmul.f32 0.5, %v5471_v36  ;;  %v5473_v57 = vpop.eup %5472  ;;  %v12842_v18 = vld [vmem:[#allocation79_spill] sm:$0xff] }
 0xdf5   :  { %v5475_v41 = vpop.eup %5474 }
 0xdf6   :  { %v4318_v3 = vadd.f32 0.5, %v4317_v8  ;;  %v4325_v31 = vmul.f32 %v5473_v57, %v4314_v61  ;;  %v4322_v16 = vmul.f32 0.5, %v5475_v41  ;;  %v12849_v61 = vld [vmem:[#allocation39_spill] sm:$0xff]  ;;  %v12850_v8 = vld [vmem:[#allocation40_spill] sm:$0xff]  ;;  %v12852_v57 = vld [vmem:[#allocation42_spill] sm:$0xff] }
 0xdf7   :  { %v12857_v41 = vld [vmem:[#allocation85_spill] sm:$0xff] }
 0xdf8   :  { %v4324_v27 = vmul.f32 %v4318_v3, %v10028_v37  ;;  %v4323_v32 = vadd.f32 0.5, %v4322_v16  ;;  %v12851_v3 = vld [vmem:[#allocation41_spill] sm:$0xff]  ;;  %v12858_v16 = vld [vmem:[#allocation88_spill] sm:$0xff] }
 0xdfa   :  { %v4326_v44 = vadd.f32 %v4325_v31, %v4324_v27  ;;  %v12853_v27 = vld [vmem:[#allocation43_spill] sm:$0xff]  ;;  %v12854_v31 = vld [vmem:[#allocation44_spill] sm:$0xff] }
 0xdfc   :  { %5476 = vtanh.f32 %v4326_v44  ;;  %v10489_v50 = vsel %vm4336_vm12, %v4326_v44, %v10028_v37  ;;  %v12844_v37 = vld [vmem:[#allocation81_spill] sm:$0xff]  ;;  %v12856_v44 = vld [vmem:[#allocation84_spill] sm:$0xff] }
 0xe09   :  { %v5477_v28 = vpop.eup %5476 }
 0xe0a   :  { %v4328_v38 = vmul.f32 %v5477_v28, %v4323_v32  ;;  %v12859_v32 = vld [vmem:[#allocation89_spill] sm:$0xff]  ;;  %v12860_v28 = vld [vmem:[#allocation90_spill] sm:$0xff] }
 0xe0c   :  { %v10492_v36 = vsel %vm4336_vm12, %v4328_v38, %v10031_v52  ;;  %v12845_v52 = vld [vmem:[#allocation82_spill] sm:$0xff]  ;;  %v12861_v38 = vld [vmem:[#allocation11_spill] sm:$0xff] }
 0xe0d   :  { %4407 = vmatmul.mubr.f32.vlgmr.msra.gmra.mxu0 %v10492_v36  ;;  %4478 = vmatmul.mubr.f32.vlgmr.msra.gmra.mxu1 %v10492_v36 }
 0xe0e   :  { %4485 = vmatpush1.msra.mxu0 %v10038_v55  ;;  %4556 = vmatpush1.msra.mxu1 %v10044_v12 }
 0xe0f   :  { %4486 = vmatprep.subr.mxu0 %v10050_v22  ;;  %4557 = vmatprep.subr.mxu1 %v10056_v24 }
 0xe10   :  { %4487 = vmatpush1.msra.mxu0 %v10062_v58  ;;  %4558 = vmatpush1.msra.mxu1 %v10068_v45 }
 0xe11   :  { %4488 = vmatprep.subr.mxu0 %v10074_v48  ;;  %4559 = vmatprep.subr.mxu1 %v10080_v19 }
 0xe12   :  { %4489 = vmatpush1.msra.mxu0 %v10086_v42  ;;  %4560 = vmatpush1.msra.mxu1 %v10092_v26 }
 0xe13   :  { %4490 = vmatprep.subr.mxu0 %v10098_v59  ;;  %4561 = vmatprep.subr.mxu1 %v10104_v21 }
 0xe14   :  { %4491 = vmatpush1.msra.mxu0 %v10110_v29  ;;  %4562 = vmatpush1.msra.mxu1 %v10116_v23 }
 0xe15   :  { %4492 = vmatprep.subr.mxu0 %v10122_v17  ;;  %4563 = vmatprep.subr.mxu1 %v12842_v18 }
 0xe16   :  { %4493 = vmatpush1.msra.mxu0 %v12843_v34  ;;  %4564 = vmatpush1.msra.mxu1 %v12844_v37 }
 0xe17   :  { %4494 = vmatprep.subr.mxu0 %v12845_v52  ;;  %4565 = vmatprep.subr.mxu1 %v12846_v13 }
 0xe18   :  { %4495 = vmatpush1.msra.mxu0 %v12847_v10  ;;  %4566 = vmatpush1.msra.mxu1 %v12848_v1 }
 0xe19   :  { %4496 = vmatprep.subr.mxu0 %v12849_v61  ;;  %4567 = vmatprep.subr.mxu1 %v12850_v8 }
 0xe1a   :  { %4497 = vmatpush1.msra.mxu0 %v12851_v3  ;;  %4568 = vmatpush1.msra.mxu1 %v12852_v57  ;;  %v12862_v3 = vld [vmem:[#allocation12_spill] sm:$0xff]  ;;  %v12863_v57 = vld [vmem:[#allocation13_spill] sm:$0xff] }
 0xe1b   :  { %4498 = vmatprep.subr.mxu0 %v12853_v27  ;;  %4569 = vmatprep.subr.mxu1 %v12854_v31  ;;  %v12864_v27 = vld [vmem:[#allocation14_spill] sm:$0xff]  ;;  %v12865_v31 = vld [vmem:[#allocation15_spill] sm:$0xff] }
 0xe1c   :  { %4499 = vmatpush1.msra.mxu0 %v12855_v9  ;;  %4570 = vmatpush1.msra.mxu1 %v12856_v44  ;;  %v12866_v9 = vld [vmem:[#allocation16_spill] sm:$0xff]  ;;  %v12867_v44 = vld [vmem:[#allocation17_spill] sm:$0xff] }
 0xe1d   :  { %4500 = vmatprep.subr.mxu0 %v12857_v41  ;;  %4571 = vmatprep.subr.mxu1 %v12858_v16  ;;  %v12868_v41 = vld [vmem:[#allocation18_spill] sm:$0xff]  ;;  %v12869_v16 = vld [vmem:[#allocation19_spill] sm:$0xff] }
 0xe1e   :  { %4501 = vmatpush1.msra.mxu0 %v12859_v32  ;;  %4572 = vmatpush1.msra.mxu1 %v12860_v28  ;;  %v12870_v32 = vld [vmem:[#allocation29_spill] sm:$0xff]  ;;  %v12871_v28 = vld [vmem:[#allocation30_spill] sm:$0xff] }
 0xe1f   :  { %4502 = vmatprep.subr.mxu0 %v12861_v38  ;;  %4573 = vmatprep.subr.mxu1 %v12862_v3  ;;  %v12872_v38 = vld [vmem:[#allocation31_spill] sm:$0xff]  ;;  %v12873_v3 = vld [vmem:[#allocation32_spill] sm:$0xff] }
 0xe20   :  { %4503 = vmatpush1.msra.mxu0 %v12863_v57  ;;  %4574 = vmatpush1.msra.mxu1 %v12864_v27  ;;  %v12874_v57 = vld [vmem:[#allocation33_spill] sm:$0xff]  ;;  %v12875_v27 = vld [vmem:[#allocation34_spill] sm:$0xff] }
 0xe21   :  { %4504 = vmatprep.subr.mxu0 %v12865_v31  ;;  %4575 = vmatprep.subr.mxu1 %v12866_v9  ;;  %v12876_v31 = vld [vmem:[#allocation35_spill] sm:$0xff]  ;;  %v12877_v9 = vld [vmem:[#allocation38_spill] sm:$0xff] }
 0xe22   :  { %4505 = vmatpush1.msra.mxu0 %v12867_v44  ;;  %4576 = vmatpush1.msra.mxu1 %v12868_v41  ;;  %v12878_v44 = vld [vmem:[#allocation53_spill] sm:$0xff]  ;;  %v12879_v41 = vld [vmem:[#allocation54_spill] sm:$0xff] }
 0xe23   :  { %4506 = vmatprep.subr.mxu0 %v12869_v16  ;;  %4577 = vmatprep.subr.mxu1 %v12870_v32  ;;  %v12880_v16 = vld [vmem:[#allocation55_spill] sm:$0xff]  ;;  %v12881_v32 = vld [vmem:[#allocation56_spill] sm:$0xff] }
 0xe24   :  { %4507 = vmatpush1.msra.mxu0 %v12871_v28  ;;  %4578 = vmatpush1.msra.mxu1 %v12872_v38  ;;  %v12882_v28 = vld [vmem:[#allocation57_spill] sm:$0xff]  ;;  %v12883_v38 = vld [vmem:[#allocation58_spill] sm:$0xff] }
 0xe25   :  { %4508 = vmatprep.subr.mxu0 %v12873_v3  ;;  %4579 = vmatprep.subr.mxu1 %v12874_v57  ;;  %v12884_v3 = vld [vmem:[#allocation59_spill] sm:$0xff] }
 0xe26   :  { %4509 = vmatpush1.msra.mxu0 %v12875_v27  ;;  %4580 = vmatpush1.msra.mxu1 %v12876_v31  ;;  %v4341_v27 = vunpack.c.h.bf16 %v10350_v0  ;;  %v12885_v57 = vld [vmem:[#allocation67_spill] sm:$0xff]  ;;  %v12904_v0 = vld [vmem:[#allocation20_spill] sm:$0xff] }
 0xe27   :  { %4510 = vmatprep.subr.mxu0 %v12877_v9  ;;  %4581 = vmatprep.subr.mxu1 %v12878_v44 }
 0xe28   :  { %4511 = vmatpush1.msra.mxu0 %v12879_v41  ;;  %4582 = vmatpush1.msra.mxu1 %v12880_v16 }
 0xe29   :  { %4512 = vmatprep.subr.mxu0 %v12881_v32  ;;  %4583 = vmatprep.subr.mxu1 %v12882_v28 }
 0xe2a   :  { %4513 = vmatpush1.msra.mxu0 %v12883_v38  ;;  %4584 = vmatpush1.msra.mxu1 %v12884_v3 }
 0xe2b   :  { %4514 = vmatprep.subr.mxu0 %v12885_v57  ;;  %4585 = vmatprep.subr.mxu1 %v10398_v2 }
 0xe2c   :  { %4515 = vmatpush1.msra.mxu0 %v10404_v51  ;;  %4548 = vmatprep.mubr.f32.mxu0 %v12719_v11 }
 0xe2d   :  { %4586 = vmatpush1.msra.mxu1 %v10411_v62  ;;  %4619 = vmatprep.mubr.f32.mxu1 %v12719_v11 }
 0xe2e   :  { %4549 = vmatmul.mubr.f32.vlgmr.msra.gmra.mxu0 %v4341_v27  ;;  %4620 = vmatmul.mubr.f32.vlgmr.msra.gmra.mxu1 %v4341_v27  ;;  %v12905_v27 = vld [vmem:[#allocation21_spill] sm:$0xff] }
 0xe2f   :  { %4661 = vmatprep.subr.mxu0 %v9816_v5  ;;  %4732 = vmatprep.subr.mxu1 %v9819_v60  ;;  %v12886_v5 = vld [vmem:[#allocation91_spill] sm:$0xff]  ;;  %v12887_v60 = vld [vmem:[#allocation92_spill] sm:$0xff] }
 0xe30   :  { %4662 = vmatpush1.msra.mxu0 %v9822_v39  ;;  %4733 = vmatpush1.msra.mxu1 %v9825_v7  ;;  %v12888_v39 = vld [vmem:[#allocation93_spill] sm:$0xff]  ;;  %v12889_v7 = vld [vmem:[#allocation94_spill] sm:$0xff] }
 0xe31   :  { %4663 = vmatprep.subr.mxu0 %v9828_v30  ;;  %4734 = vmatprep.subr.mxu1 %v9831_v25  ;;  %v12890_v30 = vld [vmem:[#allocation96_spill] sm:$0xff]  ;;  %v12891_v25 = vld [vmem:[#allocation7_spill] sm:$0xff] }
 0xe32   :  { %4664 = vmatpush1.msra.mxu0 %v9834_v33  ;;  %4735 = vmatpush1.msra.mxu1 %v9837_v35  ;;  %v12892_v33 = vld [vmem:[#allocation8_spill] sm:$0xff]  ;;  %v12893_v35 = vld [vmem:[#allocation9_spill] sm:$0xff] }
 0xe33   :  { %4665 = vmatprep.subr.mxu0 %v9840_v63  ;;  %4736 = vmatprep.subr.mxu1 %v9843_v47  ;;  %v12894_v63 = vld [vmem:[#allocation10_spill] sm:$0xff]  ;;  %v12895_v47 = vld [vmem:[#allocation36_spill] sm:$0xff] }
 0xe34   :  { %4666 = vmatpush1.msra.mxu0 %v9846_v43  ;;  %4737 = vmatpush1.msra.mxu1 %v9849_v56  ;;  %v12896_v43 = vld [vmem:[#allocation37_spill] sm:$0xff]  ;;  %v12897_v56 = vld [vmem:[#allocation60_spill] sm:$0xff] }
 0xe35   :  { %4667 = vmatprep.subr.mxu0 %v9852_v14  ;;  %4738 = vmatprep.subr.mxu1 %v9855_v4  ;;  %v12898_v14 = vld [vmem:[#allocation61_spill] sm:$0xff]  ;;  %v12899_v4 = vld [vmem:[#allocation62_spill] sm:$0xff] }
 0xe36   :  { %4668 = vmatpush1.msra.mxu0 %v9858_v6  ;;  %4739 = vmatpush1.msra.mxu1 %v9861_v15  ;;  %v12900_v6 = vld [vmem:[#allocation63_spill] sm:$0xff]  ;;  %v12901_v15 = vld [vmem:[#allocation64_spill] sm:$0xff] }
 0xe37   :  { %4669 = vmatprep.subr.mxu0 %v9864_v49  ;;  %4740 = vmatprep.subr.mxu1 %v9867_v46  ;;  %v12902_v49 = vld [vmem:[#allocation65_spill] sm:$0xff]  ;;  %v12903_v46 = vld [vmem:[#allocation66_spill] sm:$0xff] }
 0xe38   :  { %4670 = vmatpush1.msra.mxu0 %v12886_v5  ;;  %4741 = vmatpush1.msra.mxu1 %v12887_v60  ;;  %v12906_v5 = vld [vmem:[#allocation22_spill] sm:$0xff]  ;;  %v12907_v60 = vld [vmem:[#allocation23_spill] sm:$0xff] }
 0xe39   :  { %4671 = vmatprep.subr.mxu0 %v12888_v39  ;;  %4742 = vmatprep.subr.mxu1 %v12889_v7  ;;  %v12908_v39 = vld [vmem:[#allocation24_spill] sm:$0xff]  ;;  %v12909_v7 = vld [vmem:[#allocation25_spill] sm:$0xff] }
 0xe3a   :  { %4672 = vmatpush1.msra.mxu0 %v12890_v30  ;;  %4743 = vmatpush1.msra.mxu1 %v12891_v25  ;;  %v12910_v30 = vld [vmem:[#allocation26_spill] sm:$0xff]  ;;  %v12911_v25 = vld [vmem:[#allocation27_spill] sm:$0xff] }
 0xe3b   :  { %4673 = vmatprep.subr.mxu0 %v12892_v33  ;;  %4744 = vmatprep.subr.mxu1 %v12893_v35  ;;  %v12912_v33 = vld [vmem:[#allocation28_spill] sm:$0xff] }
 0xe3c   :  { %4674 = vmatpush1.msra.mxu0 %v12894_v63  ;;  %4745 = vmatpush1.msra.mxu1 %v12895_v47  ;;  %v12913_v35 = vld [vmem:[#allocation68_spill] sm:$0xff]  ;;  %v12914_v63 = vld [vmem:[#allocation71_spill] sm:$0xff] }
 0xe3d   :  { %4675 = vmatprep.subr.mxu0 %v12896_v43  ;;  %4746 = vmatprep.subr.mxu1 %v12897_v56  ;;  %v12915_v47 = vld [vmem:[#allocation72_spill] sm:$0xff]  ;;  %v12916_v43 = vld [vmem:[#allocation73_spill] sm:$0xff]  ;;  %v12917_v56 = vld [vmem:[#allocation74_spill] sm:$0xff] }
 0xe3e   :  { %4676 = vmatpush1.msra.mxu0 %v12898_v14  ;;  %4747 = vmatpush1.msra.mxu1 %v12899_v4  ;;  %v12918_v14 = vld [vmem:[#allocation75_spill] sm:$0xff]  ;;  %v12919_v4 = vld [vmem:[#allocation76_spill] sm:$0xff] }
 0xe3f   :  { %4677 = vmatprep.subr.mxu0 %v12900_v6  ;;  %4748 = vmatprep.subr.mxu1 %v12901_v15  ;;  %v12920_v6 = vld [vmem:[#allocation77_spill] sm:$0xff]  ;;  %v12921_v15 = vld [vmem:[#allocation78_spill] sm:$0xff] }
 0xe40   :  { %4678 = vmatpush1.msra.mxu0 %v12902_v49  ;;  %4749 = vmatpush1.msra.mxu1 %v12903_v46  ;;  %v12922_v49 = vld [vmem:[#allocation98_spill] sm:$0xff]  ;;  %v12923_v46 = vld [vmem:[#allocation95_spill] sm:$0xff] }
 0xe41   :  { %4679 = vmatprep.subr.mxu0 %v12904_v0  ;;  %4750 = vmatprep.subr.mxu1 %v12905_v27  ;;  %v12924_v0 = vld [vmem:[#allocation97_spill] sm:$0xff]  ;;  %v12925_v27 = vld [vmem:[#allocation46_spill] sm:$0xff] }
 0xe42   :  { %4680 = vmatpush1.msra.mxu0 %v12906_v5  ;;  %4751 = vmatpush1.msra.mxu1 %v12907_v60  ;;  %v12926_v5 = vld [vmem:[#allocation47_spill] sm:$0xff]  ;;  %v12927_v60 = vld [vmem:[#allocation48_spill] sm:$0xff] }
 0xe43   :  { %4681 = vmatprep.subr.mxu0 %v12908_v39  ;;  %4752 = vmatprep.subr.mxu1 %v12909_v7  ;;  %v12928_v39 = vld [vmem:[#allocation49_spill] sm:$0xff]  ;;  %v12929_v7 = vld [vmem:[#allocation50_spill] sm:$0xff] }
 0xe44   :  { %4682 = vmatpush1.msra.mxu0 %v12910_v30  ;;  %4753 = vmatpush1.msra.mxu1 %v12911_v25  ;;  %v12930_v30 = vld [vmem:[#allocation51_spill] sm:$0xff]  ;;  %v12931_v25 = vld [vmem:[#allocation52_spill] sm:$0xff] }
 0xe45   :  { %4683 = vmatprep.subr.mxu0 %v12912_v33  ;;  %4754 = vmatprep.subr.mxu1 %v12913_v35  ;;  %v12932_v33 = vld [vmem:[#allocation69_spill] sm:$0xff]  ;;  %v12933_v35 = vld [vmem:[#allocation70_spill] sm:$0xff] }
 0xe46   :  { %4684 = vmatpush1.msra.mxu0 %v12914_v63  ;;  %4755 = vmatpush1.msra.mxu1 %v12915_v47 }
 0xe47   :  { %4685 = vmatprep.subr.mxu0 %v12916_v43  ;;  %4756 = vmatprep.subr.mxu1 %v12917_v56 }
 0xe48   :  { %4686 = vmatpush1.msra.mxu0 %v12918_v14  ;;  %4757 = vmatpush1.msra.mxu1 %v12919_v4 }
 0xe49   :  { %4687 = vmatprep.subr.mxu0 %v12920_v6  ;;  %4758 = vmatprep.subr.mxu1 %v12921_v15 }
 0xe4a   :  { %4688 = vmatpush1.msra.mxu0 %v12922_v49  ;;  %4759 = vmatpush1.msra.mxu1 %v12923_v46 }
 0xe4b   :  { %4689 = vmatprep.subr.mxu0 %v12924_v0  ;;  %4760 = vmatprep.subr.mxu1 %v12925_v27 }
 0xe4c   :  { %4690 = vmatpush1.msra.mxu0 %v12926_v5  ;;  %4761 = vmatpush1.msra.mxu1 %v12927_v60 }
 0xe4d   :  { %4691 = vmatprep.subr.mxu0 %v12928_v39  ;;  %4762 = vmatprep.subr.mxu1 %v12929_v7 }
 0xe4e   :  { %4692 = vmatpush1.msra.mxu0 %v12930_v30  ;;  %4763 = vmatpush1.msra.mxu1 %v12931_v25 }
 0xe4f   :  { %4725 = vmatprep.mubr.f32.mxu0 %v12719_v11  ;;  %4796 = vmatprep.mubr.f32.mxu1 %v12719_v11 }
 0xe50   :  { %4803 = vmatprep.subr.mxu0 %v12932_v33  ;;  %4874 = vmatprep.subr.mxu1 %v12933_v35 }
 0xecd   :  { %v4408_v63 = vpop.f32.mrf.mxu0  ;;  %v4479_v47 = vpop.f32.mrf.mxu1 }
 0xecf   :  { %v4410_v43 = vpop.f32.mrf.mxu0  ;;  %v4481_v56 = vpop.f32.mrf.mxu1 }
 0xeee   :  { %v4550_v14 = vpop.f32.mrf.mxu0  ;;  %v4621_v6 = vpop.f32.mrf.mxu1 }
 0xeef   :  { %v4551_v4 = vadd.f32 %v4550_v14, %v4408_v63  ;;  %v4622_v27 = vadd.f32 %v4621_v6, %v4479_v47 }
 0xef0   :  { %v4552_v15 = vpop.f32.mrf.mxu0  ;;  %v4623_v39 = vpop.f32.mrf.mxu1 }
 0xef1   :  { %v4626_v49 = vadd.f32 %v4551_v4, %v6890_v54  ;;  %v4553_v46 = vadd.f32 %v4552_v15, %v4410_v43  ;;  %v4628_v7 = vadd.f32 %v4622_v27, %v6895_v40  ;;  %v4624_v30 = vadd.f32 %v4623_v39, %v4481_v56 }
 0xef3   :  { %v4630_v0 = vmul.f32 0.5, %v4626_v49  ;;  %v4627_v5 = vadd.f32 %v4553_v46, %v11964_v20  ;;  %v4629_v25 = vadd.f32 %v4624_v30, %v6899_v53  ;;  %v4654_v46 = vpop.permute.xlu1 %4653 }
 0xef4   :  { %vm4655_vm13 = vcmp.eq.s32.totalorder %v4654_v46, 1  ;;  %v6043_v46 = vld [vmem:[#allocation4 + $0x150] sm:$0xff] }
 0xef5   :  { %5478 = vtanh.f32 %v4630_v0  ;;  %v4634_v60 = vmul.f32 0.5, %v4627_v5  ;;  %v4639_v33 = vmul.f32 0.5, %v4629_v25  ;;  %v6032_v25 = vld [vmem:[#allocation4 + $0x188] sm:$0xff] }
 0xef7   :  { %5480 = vtanh.f32 %v4634_v60 }
 0xef8   :  { %5482 = vtanh.f32 %v4628_v7 }
 0xef9   :  { %5484 = vtanh.f32 %v4639_v33  ;;  %v6033_v33 = vld [vmem:[#allocation4 + $0x198] sm:$0xff] }
 0xf02   :  { %v5479_v35 = vpop.eup %5478 }
 0xf03   :  { %v4632_v63 = vmul.f32 0.5, %v5479_v35  ;;  %v6034_v35 = vld [vmem:[#allocation4 + $0x180] sm:$0xff] }
 0xf04   :  { %v5481_v14 = vpop.eup %5480 }
 0xf05   :  { %v4633_v4 = vadd.f32 0.5, %v4632_v63  ;;  %v4636_v43 = vmul.f32 0.5, %v5481_v14  ;;  %v5483_v6 = vpop.eup %5482  ;;  %v6035_v63 = vld [vmem:[#allocation4 + $0x190] sm:$0xff]  ;;  %v6036_v14 = vld [vmem:[#allocation4 + $0x168] sm:$0xff] }
 0xf06   :  { %v5485_v27 = vpop.eup %5484 }
 0xf07   :  { %v4637_v47 = vadd.f32 0.5, %v4636_v43  ;;  %v4644_v49 = vmul.f32 %v5483_v6, %v4633_v4  ;;  %v4641_v5 = vmul.f32 0.5, %v5485_v27  ;;  %v6037_v4 = vld [vmem:[#allocation4 + $0x178] sm:$0xff]  ;;  %v6038_v43 = vld [vmem:[#allocation4 + $0x160] sm:$0xff]  ;;  %v6040_v6 = vld [vmem:[#allocation4 + $0x148] sm:$0xff] }
 0xf08   :  { %v6045_v27 = vld [vmem:[#allocation4 + $0x138] sm:$0xff] }
 0xf09   :  { %v4643_v15 = vmul.f32 %v4637_v47, %v10489_v50  ;;  %v4642_v60 = vadd.f32 0.5, %v4641_v5  ;;  %v6039_v47 = vld [vmem:[#allocation4 + $0x170] sm:$0xff]  ;;  %v6046_v5 = vld [vmem:[#allocation4 + $0x120] sm:$0xff] }
 0xf0b   :  { %v4645_v0 = vadd.f32 %v4644_v49, %v4643_v15  ;;  %v6041_v15 = vld [vmem:[#allocation4 + $0x158] sm:$0xff]  ;;  %v6042_v49 = vld [vmem:[#allocation4 + $0x140] sm:$0xff] }
 0xf0d   :  { %5486 = vtanh.f32 %v4645_v0  ;;  %v10635_v56 = vsel %vm4655_vm13, %v4645_v0, %v10489_v50  ;;  %v12949_v50 = vld [vmem:[#allocation16_spill] sm:$0xff] }
 0xf0e   :  { %v6044_v0 = vld [vmem:[#allocation4 + $0x128] sm:$0xff] }
 0xf1a   :  { %v5487_v39 = vpop.eup %5486 }
 0xf1b   :  { %v4647_v7 = vmul.f32 %v5487_v39, %v4642_v60  ;;  %v6047_v60 = vld [vmem:[#allocation4 + $0x130] sm:$0xff]  ;;  %v6048_v39 = vld [vmem:[#allocation4 + $0x108] sm:$0xff] }
 0xf1d   :  { %v10638_v30 = vsel %vm4655_vm13, %v4647_v7, %v10492_v36  ;;  %v12950_v36 = vld [vmem:[#allocation17_spill] sm:$0xff]  ;;  %v6049_v7 = vld [vmem:[#allocation4 + $0x118] sm:$0xff] }
 0xf1e   :  { %4726 = vmatmul.mubr.f32.vlgmr.msra.gmra.mxu0 %v10638_v30  ;;  %4797 = vmatmul.mubr.f32.vlgmr.msra.gmra.mxu1 %v10638_v30 }
 0xf1f   :  { %4804 = vmatpush1.msra.mxu0 %v10038_v55  ;;  %4875 = vmatpush1.msra.mxu1 %v10044_v12  ;;  %v12934_v55 = vld [vmem:[#allocation41_spill] sm:$0xff]  ;;  %v12935_v12 = vld [vmem:[#allocation42_spill] sm:$0xff] }
 0xf20   :  { %4805 = vmatprep.subr.mxu0 %v10050_v22  ;;  %4876 = vmatprep.subr.mxu1 %v10056_v24  ;;  %v12936_v22 = vld [vmem:[#allocation43_spill] sm:$0xff]  ;;  %v12937_v24 = vld [vmem:[#allocation44_spill] sm:$0xff] }
 0xf21   :  { %4806 = vmatpush1.msra.mxu0 %v10062_v58  ;;  %4877 = vmatpush1.msra.mxu1 %v10068_v45  ;;  %v12938_v58 = vld [vmem:[#allocation45_spill] sm:$0xff]  ;;  %v12939_v45 = vld [vmem:[#allocation84_spill] sm:$0xff] }
 0xf22   :  { %4807 = vmatprep.subr.mxu0 %v10074_v48  ;;  %4878 = vmatprep.subr.mxu1 %v10080_v19  ;;  %v12940_v48 = vld [vmem:[#allocation85_spill] sm:$0xff]  ;;  %v12941_v19 = vld [vmem:[#allocation88_spill] sm:$0xff] }
 0xf23   :  { %4808 = vmatpush1.msra.mxu0 %v10086_v42  ;;  %4879 = vmatpush1.msra.mxu1 %v10092_v26  ;;  %v12942_v42 = vld [vmem:[#allocation89_spill] sm:$0xff]  ;;  %v12943_v26 = vld [vmem:[#allocation90_spill] sm:$0xff] }
 0xf24   :  { %4809 = vmatprep.subr.mxu0 %v10098_v59  ;;  %4880 = vmatprep.subr.mxu1 %v10104_v21  ;;  %v12944_v59 = vld [vmem:[#allocation11_spill] sm:$0xff]  ;;  %v12945_v21 = vld [vmem:[#allocation12_spill] sm:$0xff] }
 0xf25   :  { %4810 = vmatpush1.msra.mxu0 %v10110_v29  ;;  %4881 = vmatpush1.msra.mxu1 %v10116_v23  ;;  %v12946_v29 = vld [vmem:[#allocation13_spill] sm:$0xff]  ;;  %v12947_v23 = vld [vmem:[#allocation14_spill] sm:$0xff] }
 0xf26   :  { %4811 = vmatprep.subr.mxu0 %v10122_v17  ;;  %4882 = vmatprep.subr.mxu1 %v12842_v18  ;;  %v12948_v17 = vld [vmem:[#allocation15_spill] sm:$0xff]  ;;  %v12951_v18 = vld [vmem:[#allocation18_spill] sm:$0xff] }
 0xf27   :  { %4812 = vmatpush1.msra.mxu0 %v12843_v34  ;;  %4883 = vmatpush1.msra.mxu1 %v12844_v37  ;;  %v12952_v34 = vld [vmem:[#allocation19_spill] sm:$0xff]  ;;  %v12953_v37 = vld [vmem:[#allocation29_spill] sm:$0xff] }
 0xf28   :  { %4813 = vmatprep.subr.mxu0 %v12845_v52  ;;  %4884 = vmatprep.subr.mxu1 %v12846_v13  ;;  %v12954_v52 = vld [vmem:[#allocation30_spill] sm:$0xff]  ;;  %v12955_v13 = vld [vmem:[#allocation31_spill] sm:$0xff] }
 0xf29   :  { %4814 = vmatpush1.msra.mxu0 %v12847_v10  ;;  %4885 = vmatpush1.msra.mxu1 %v12848_v1  ;;  %v12956_v10 = vld [vmem:[#allocation32_spill] sm:$0xff]  ;;  %v12957_v1 = vld [vmem:[#allocation33_spill] sm:$0xff] }
 0xf2a   :  { %4815 = vmatprep.subr.mxu0 %v12849_v61  ;;  %4886 = vmatprep.subr.mxu1 %v12850_v8  ;;  %v12958_v61 = vld [vmem:[#allocation34_spill] sm:$0xff] }
 0xf2b   :  { %4816 = vmatpush1.msra.mxu0 %v12934_v55  ;;  %4887 = vmatpush1.msra.mxu1 %v12935_v12  ;;  %v10697_v8 = vld [vmem:[%s10932_s1 + $0x38] sm:$0xff]   ;;  %v6050_v55 = vld [vmem:[#allocation4 + $0x100] sm:$0xff]  ;;  %v6051_v12 = vld [vmem:[#allocation4 + $0x110] sm:$0xff] }
 0xf2c   :  { %4817 = vmatprep.subr.mxu0 %v12936_v22  ;;  %4888 = vmatprep.subr.mxu1 %v12937_v24  ;;  %v6052_v22 = vld [vmem:[#allocation4 + $0xe8] sm:$0xff]  ;;  %v6053_v24 = vld [vmem:[#allocation4 + $0xf8] sm:$0xff] }
 0xf2d   :  { %4818 = vmatpush1.msra.mxu0 %v12938_v58  ;;  %4889 = vmatpush1.msra.mxu1 %v12939_v45  ;;  %v6054_v58 = vld [vmem:[#allocation4 + $0xe0] sm:$0xff]  ;;  %v6055_v45 = vld [vmem:[#allocation4 + $0xf0] sm:$0xff] }
 0xf2e   :  { %4819 = vmatprep.subr.mxu0 %v12940_v48  ;;  %4890 = vmatprep.subr.mxu1 %v12941_v19  ;;  %v6056_v48 = vld [vmem:[#allocation4 + $0xc8] sm:$0xff]  ;;  %v6057_v19 = vld [vmem:[#allocation4 + $0xd8] sm:$0xff] }
 0xf2f   :  { %4820 = vmatpush1.msra.mxu0 %v12942_v42  ;;  %4891 = vmatpush1.msra.mxu1 %v12943_v26  ;;  %v6058_v42 = vld [vmem:[#allocation4 + $0xc0] sm:$0xff]  ;;  %v6059_v26 = vld [vmem:[#allocation4 + $0xd0] sm:$0xff] }
 0xf30   :  { %4821 = vmatprep.subr.mxu0 %v12944_v59  ;;  %4892 = vmatprep.subr.mxu1 %v12945_v21  ;;  %v6060_v59 = vld [vmem:[#allocation4 + $0xa8] sm:$0xff]  ;;  %v6061_v21 = vld [vmem:[#allocation4 + $0xb8] sm:$0xff] }
 0xf31   :  { %4822 = vmatpush1.msra.mxu0 %v12946_v29  ;;  %4893 = vmatpush1.msra.mxu1 %v12947_v23  ;;  %v6062_v29 = vld [vmem:[#allocation4 + $0xa0] sm:$0xff]  ;;  %v6063_v23 = vld [vmem:[#allocation4 + $0xb0] sm:$0xff] }
 0xf32   :  { %4823 = vmatprep.subr.mxu0 %v12948_v17  ;;  %4894 = vmatprep.subr.mxu1 %v12949_v50  ;;  %v6064_v17 = vld [vmem:[#allocation4 + $0x88] sm:$0xff]  ;;  %v6065_v50 = vld [vmem:[#allocation4 + $0x98] sm:$0xff] }
 0xf33   :  { %4824 = vmatpush1.msra.mxu0 %v12950_v36  ;;  %4895 = vmatpush1.msra.mxu1 %v12951_v18  ;;  %v6066_v36 = vld [vmem:[#allocation4 + $0x80] sm:$0xff]  ;;  %v6067_v18 = vld [vmem:[#allocation4 + $0x90] sm:$0xff] }
 0xf34   :  { %4825 = vmatprep.subr.mxu0 %v12952_v34  ;;  %4896 = vmatprep.subr.mxu1 %v12953_v37  ;;  %v6068_v34 = vld [vmem:[#allocation4 + $0x68] sm:$0xff]  ;;  %v6069_v37 = vld [vmem:[#allocation4 + $0x78] sm:$0xff] }
 0xf35   :  { %4826 = vmatpush1.msra.mxu0 %v12954_v52  ;;  %4897 = vmatpush1.msra.mxu1 %v12955_v13  ;;  %v6070_v52 = vld [vmem:[#allocation4 + $0x60] sm:$0xff]  ;;  %v6071_v13 = vld [vmem:[#allocation4 + $0x70] sm:$0xff] }
 0xf36   :  { %4827 = vmatprep.subr.mxu0 %v12956_v10  ;;  %4898 = vmatprep.subr.mxu1 %v12957_v1  ;;  %v6072_v10 = vld [vmem:[#allocation4 + $0x48] sm:$0xff]  ;;  %v6073_v1 = vld [vmem:[#allocation4 + $0x58] sm:$0xff] }
 0xf37   :  { %4828 = vmatpush1.msra.mxu0 %v12958_v61  ;;  %4899 = vmatpush1.msra.mxu1 %v12876_v31  ;;  %v4660_v31 = vunpack.c.l.bf16 %v10697_v8  ;;  %v6074_v61 = vld [vmem:[#allocation4 + $0x40] sm:$0xff] }
 0xf38   :  { %4829 = vmatprep.subr.mxu0 %v12877_v9  ;;  %4900 = vmatprep.subr.mxu1 %v12878_v44  ;;  %v6020_v9 = vld [vmem:[#allocation4 + $0x1e8] sm:$0xff]  ;;  %v6021_v44 = vld [vmem:[#allocation4 + $0x1f8] sm:$0xff] }
 0xf39   :  { %4830 = vmatpush1.msra.mxu0 %v12879_v41  ;;  %4901 = vmatpush1.msra.mxu1 %v12880_v16  ;;  %v6023_v41 = vld [vmem:[#allocation4 + $0x1f0] sm:$0xff] }
 0xf3a   :  { %4831 = vmatprep.subr.mxu0 %v12881_v32  ;;  %4902 = vmatprep.subr.mxu1 %v12882_v28  ;;  %v6027_v16 = vld [vmem:[#allocation4 + $0x1d0] sm:$0xff]  ;;  %v6029_v32 = vld [vmem:[#allocation4 + $0x1b8] sm:$0xff]  ;;  %v6030_v28 = vld [vmem:[#allocation4 + $0x1a0] sm:$0xff] }
 0xf3b   :  { %4832 = vmatpush1.msra.mxu0 %v12883_v38  ;;  %4903 = vmatpush1.msra.mxu1 %v12884_v3  ;;  %v6022_v3 = vld [vmem:[#allocation4 + $0x1e0] sm:$0xff]  ;;  %v6031_v38 = vld [vmem:[#allocation4 + $0x1b0] sm:$0xff] }
 0xf3c   :  { %4833 = vmatprep.subr.mxu0 %v12885_v57  ;;  %4904 = vmatprep.subr.mxu1 %v10398_v2  ;;  %v6024_v57 = vld [vmem:[#allocation4 + $0x1c8] sm:$0xff]  ;;  %v6025_v2 = vld [vmem:[#allocation4 + $0x1d8] sm:$0xff] }
 0xf3d   :  { %4834 = vmatpush1.msra.mxu0 %v10404_v51  ;;  %4867 = vmatprep.mubr.f32.mxu0 %v12719_v11  ;;  %v6026_v51 = vld [vmem:[#allocation4 + $0x1c0] sm:$0xff] }
 0xf3e   :  { %4905 = vmatpush1.msra.mxu1 %v10411_v62  ;;  %4938 = vmatprep.mubr.f32.mxu1 %v12719_v11  ;;  %v6028_v62 = vld [vmem:[#allocation4 + $0x1a8] sm:$0xff] }
 0xf3f   :  { %4868 = vmatmul.mubr.f32.vlgmr.msra.gmra.mxu0 %v4660_v31  ;;  %4939 = vmatmul.mubr.f32.vlgmr.msra.gmra.mxu1 %v4660_v31  ;;  %v6075_v31 = vld [vmem:[#allocation4 + $0x50] sm:$0xff] }
 0xf40   :  { %4980 = vmatprep.subr.mxu0 %v6020_v9  ;;  %5051 = vmatprep.subr.mxu1 %v6021_v44  ;;  %v6076_v9 = vld [vmem:[#allocation4 + $0x28] sm:$0xff]  ;;  %v6077_v44 = vld [vmem:[#allocation4 + $0x38] sm:$0xff] }
 0xf41   :  { %4981 = vmatpush1.msra.mxu0 %v6022_v3  ;;  %5052 = vmatpush1.msra.mxu1 %v6023_v41  ;;  %v6078_v3 = vld [vmem:[#allocation4 + $0x20] sm:$0xff]  ;;  %v6079_v41 = vld [vmem:[#allocation4 + $0x30] sm:$0xff] }
 0xf42   :  { %4982 = vmatprep.subr.mxu0 %v6024_v57  ;;  %5053 = vmatprep.subr.mxu1 %v6025_v2  ;;  %v6080_v57 = vld [vmem:[#allocation4 + $0x8] sm:$0xff]  ;;  %v6081_v2 = vld [vmem:[#allocation4 + $0x18] sm:$0xff] }
 0xf43   :  { %4983 = vmatpush1.msra.mxu0 %v6026_v51  ;;  %5054 = vmatpush1.msra.mxu1 %v6027_v16  ;;  %v6082_v51 = vld [vmem:[#allocation4] sm:$0xff]  ;;  %v6083_v16 = vld [vmem:[#allocation4 + $0x10] sm:$0xff] }
 0xf44   :  { %4984 = vmatprep.subr.mxu0 %v6028_v62  ;;  %5055 = vmatprep.subr.mxu1 %v6029_v32  ;;  %v6084_v62 = vld [vmem:[%s10933_s2 + $0x1e8] sm:$0xff]  ;;  %v6085_v32 = vld [vmem:[%s10933_s2 + $0x1f8] sm:$0xff] }
 0xf45   :  { %4985 = vmatpush1.msra.mxu0 %v6030_v28  ;;  %5056 = vmatpush1.msra.mxu1 %v6031_v38 }
 0xf46   :  { %4986 = vmatprep.subr.mxu0 %v6032_v25  ;;  %5057 = vmatprep.subr.mxu1 %v6033_v33 }
 0xf47   :  { %4987 = vmatpush1.msra.mxu0 %v6034_v35  ;;  %5058 = vmatpush1.msra.mxu1 %v6035_v63 }
 0xf48   :  { %4988 = vmatprep.subr.mxu0 %v6036_v14  ;;  %5059 = vmatprep.subr.mxu1 %v6037_v4 }
 0xf49   :  { %4989 = vmatpush1.msra.mxu0 %v6038_v43  ;;  %5060 = vmatpush1.msra.mxu1 %v6039_v47 }
 0xf4a   :  { %4990 = vmatprep.subr.mxu0 %v6040_v6  ;;  %5061 = vmatprep.subr.mxu1 %v6041_v15 }
 0xf4b   :  { %4991 = vmatpush1.msra.mxu0 %v6042_v49  ;;  %5062 = vmatpush1.msra.mxu1 %v6043_v46 }
 0xf4c   :  { %4992 = vmatprep.subr.mxu0 %v6044_v0  ;;  %5063 = vmatprep.subr.mxu1 %v6045_v27 }
 0xf4d   :  { %4993 = vmatpush1.msra.mxu0 %v6046_v5  ;;  %5064 = vmatpush1.msra.mxu1 %v6047_v60 }
 0xf4e   :  { %4994 = vmatprep.subr.mxu0 %v6048_v39  ;;  %5065 = vmatprep.subr.mxu1 %v6049_v7 }
 0xf4f   :  { %4995 = vmatpush1.msra.mxu0 %v6050_v55  ;;  %5066 = vmatpush1.msra.mxu1 %v6051_v12 }
 0xf50   :  { %4996 = vmatprep.subr.mxu0 %v6052_v22  ;;  %5067 = vmatprep.subr.mxu1 %v6053_v24 }
 0xf51   :  { %4997 = vmatpush1.msra.mxu0 %v6054_v58  ;;  %5068 = vmatpush1.msra.mxu1 %v6055_v45 }
 0xf52   :  { %4998 = vmatprep.subr.mxu0 %v6056_v48  ;;  %5069 = vmatprep.subr.mxu1 %v6057_v19  ;;  %v4973_v48 = vpop.permute.xlu0 %4972 }
 0xf53   :  { %4999 = vmatpush1.msra.mxu0 %v6058_v42  ;;  %5070 = vmatpush1.msra.mxu1 %v6059_v26  ;;  %vm4974_vm14 = vcmp.eq.s32.totalorder %v4973_v48, 1  ;;  %v6133_v48 = vld [vmem:[%s10933_s2 + $0x78] sm:$0xff] }
 0xf54   :  { %5000 = vmatprep.subr.mxu0 %v6060_v59  ;;  %5071 = vmatprep.subr.mxu1 %v6061_v21 }
 0xf55   :  { %5001 = vmatpush1.msra.mxu0 %v6062_v29  ;;  %5072 = vmatpush1.msra.mxu1 %v6063_v23 }
 0xf56   :  { %5002 = vmatprep.subr.mxu0 %v6064_v17  ;;  %5073 = vmatprep.subr.mxu1 %v6065_v50 }
 0xf57   :  { %5003 = vmatpush1.msra.mxu0 %v6066_v36  ;;  %5074 = vmatpush1.msra.mxu1 %v6067_v18  ;;  %v6086_v18 = vld [vmem:[%s10933_s2 + $0x1e0] sm:$0xff] }
 0xf58   :  { %5004 = vmatprep.subr.mxu0 %v6068_v34  ;;  %5075 = vmatprep.subr.mxu1 %v6069_v37  ;;  %v6088_v34 = vld [vmem:[%s10933_s2 + $0x1c8] sm:$0xff]  ;;  %v6090_v37 = vld [vmem:[%s10933_s2 + $0x1c0] sm:$0xff] }
 0xf59   :  { %5005 = vmatpush1.msra.mxu0 %v6070_v52  ;;  %5076 = vmatpush1.msra.mxu1 %v6071_v13  ;;  %v6091_v52 = vld [vmem:[%s10933_s2 + $0x1d0] sm:$0xff]  ;;  %v6092_v13 = vld [vmem:[%s10933_s2 + $0x1a8] sm:$0xff] }
 0xf5a   :  { %5006 = vmatprep.subr.mxu0 %v6072_v10  ;;  %5077 = vmatprep.subr.mxu1 %v6073_v1  ;;  %v6093_v10 = vld [vmem:[%s10933_s2 + $0x1b8] sm:$0xff]  ;;  %v6094_v1 = vld [vmem:[%s10933_s2 + $0x1a0] sm:$0xff] }
 0xf5b   :  { %5007 = vmatpush1.msra.mxu0 %v6074_v61  ;;  %5078 = vmatpush1.msra.mxu1 %v6075_v31  ;;  %v6095_v61 = vld [vmem:[%s10933_s2 + $0x1b0] sm:$0xff]  ;;  %v6096_v31 = vld [vmem:[%s10933_s2 + $0x188] sm:$0xff] }
 0xf5c   :  { %5008 = vmatprep.subr.mxu0 %v6076_v9  ;;  %5079 = vmatprep.subr.mxu1 %v6077_v44  ;;  %v6097_v9 = vld [vmem:[%s10933_s2 + $0x198] sm:$0xff]  ;;  %v6098_v44 = vld [vmem:[%s10933_s2 + $0x180] sm:$0xff] }
 0xf5d   :  { %5009 = vmatpush1.msra.mxu0 %v6078_v3  ;;  %5080 = vmatpush1.msra.mxu1 %v6079_v41  ;;  %v6099_v3 = vld [vmem:[%s10933_s2 + $0x190] sm:$0xff]  ;;  %v6100_v41 = vld [vmem:[%s10933_s2 + $0x168] sm:$0xff] }
 0xf5e   :  { %5010 = vmatprep.subr.mxu0 %v6080_v57  ;;  %5081 = vmatprep.subr.mxu1 %v6081_v2  ;;  %v6101_v57 = vld [vmem:[%s10933_s2 + $0x178] sm:$0xff]  ;;  %v6102_v2 = vld [vmem:[%s10933_s2 + $0x160] sm:$0xff] }
 0xf5f   :  { %5011 = vmatpush1.msra.mxu0 %v6082_v51  ;;  %5082 = vmatpush1.msra.mxu1 %v6083_v16  ;;  %v6103_v51 = vld [vmem:[%s10933_s2 + $0x170] sm:$0xff]  ;;  %v6104_v16 = vld [vmem:[%s10933_s2 + $0x148] sm:$0xff] }
 0xf60   :  { %5044 = vmatprep.mubr.f32.mxu0 %v12719_v11  ;;  %5115 = vmatprep.mubr.f32.mxu1 %v12719_v11 }
 0xf61   :  { %5122 = vmatprep.subr.mxu0 %v6084_v62  ;;  %5193 = vmatprep.subr.mxu1 %v6085_v32  ;;  %v6105_v62 = vld [vmem:[%s10933_s2 + $0x158] sm:$0xff]  ;;  %v6106_v32 = vld [vmem:[%s10933_s2 + $0x140] sm:$0xff] }
 0xfde   :  { %v4727_v28 = vpop.f32.mrf.mxu0  ;;  %v4798_v38 = vpop.f32.mrf.mxu1 }
 0xfe0   :  { %v4729_v25 = vpop.f32.mrf.mxu0  ;;  %v4800_v33 = vpop.f32.mrf.mxu1 }
 0xfff   :  { %v4869_v35 = vpop.f32.mrf.mxu0  ;;  %v4940_v14 = vpop.f32.mrf.mxu1 }
0x1000   :  { %v4870_v63 = vadd.f32 %v4869_v35, %v4727_v28  ;;  %v4941_v15 = vadd.f32 %v4940_v14, %v4798_v38  ;;  %v6107_v28 = vld [vmem:[%s10933_s2 + $0x150] sm:$0xff]  ;;  %v6108_v38 = vld [vmem:[%s10933_s2 + $0x128] sm:$0xff]  ;;  %v6113_v14 = vld [vmem:[%s10933_s2 + $0x118] sm:$0xff] }
0x1001   :  { %v4871_v4 = vpop.f32.mrf.mxu0  ;;  %v4942_v0 = vpop.f32.mrf.mxu1  ;;  %v6111_v35 = vld [vmem:[%s10933_s2 + $0x130] sm:$0xff] }
0x1002   :  { %v4945_v43 = vadd.f32 %v4870_v63, %v6890_v54  ;;  %v4872_v47 = vadd.f32 %v4871_v4, %v4729_v25  ;;  %v4947_v27 = vadd.f32 %v4941_v15, %v6895_v40  ;;  %v4943_v5 = vadd.f32 %v4942_v0, %v4800_v33  ;;  %v6109_v25 = vld [vmem:[%s10933_s2 + $0x138] sm:$0xff]  ;;  %v6110_v33 = vld [vmem:[%s10933_s2 + $0x120] sm:$0xff]  ;;  %v6112_v63 = vld [vmem:[%s10933_s2 + $0x108] sm:$0xff] }
0x1003   :  { %v6114_v4 = vld [vmem:[%s10933_s2 + $0x100] sm:$0xff]  ;;  %v6121_v0 = vld [vmem:[%s10933_s2 + $0xd8] sm:$0xff] }
0x1004   :  { %v4949_v6 = vmul.f32 0.5, %v4945_v43  ;;  %v4946_v49 = vadd.f32 %v4872_v47, %v11964_v20  ;;  %v4948_v60 = vadd.f32 %v4943_v5, %v6899_v53  ;;  %v6115_v43 = vld [vmem:[%s10933_s2 + $0x110] sm:$0xff]  ;;  %v6116_v47 = vld [vmem:[%s10933_s2 + $0xe8] sm:$0xff]  ;;  %v6118_v15 = vld [vmem:[%s10933_s2 + $0xe0] sm:$0xff] }
0x1005   :  { %v6123_v5 = vld [vmem:[%s10933_s2 + $0xd0] sm:$0xff] }
0x1006   :  { %5488 = vtanh.f32 %v4949_v6  ;;  %v4953_v46 = vmul.f32 0.5, %v4946_v49  ;;  %v4958_v39 = vmul.f32 0.5, %v4948_v60  ;;  %v6117_v6 = vld [vmem:[%s10933_s2 + $0xf8] sm:$0xff]  ;;  %v6119_v49 = vld [vmem:[%s10933_s2 + $0xf0] sm:$0xff]  ;;  %v6124_v60 = vld [vmem:[%s10933_s2 + $0xa8] sm:$0xff] }
0x1008   :  { %5490 = vtanh.f32 %v4953_v46  ;;  %v6120_v46 = vld [vmem:[%s10933_s2 + $0xc8] sm:$0xff] }
0x1009   :  { %5492 = vtanh.f32 %v4947_v27  ;;  %v6122_v27 = vld [vmem:[%s10933_s2 + $0xc0] sm:$0xff] }
0x100a   :  { %5494 = vtanh.f32 %v4958_v39  ;;  %v6125_v39 = vld [vmem:[%s10933_s2 + $0xb8] sm:$0xff] }
0x1013   :  { %v5489_v7 = vpop.eup %5488 }
0x1014   :  { %v4951_v55 = vmul.f32 0.5, %v5489_v7  ;;  %v6126_v7 = vld [vmem:[%s10933_s2 + $0xa0] sm:$0xff] }
0x1015   :  { %v5491_v12 = vpop.eup %5490 }
0x1016   :  { %v4952_v22 = vadd.f32 0.5, %v4951_v55  ;;  %v4955_v24 = vmul.f32 0.5, %v5491_v12  ;;  %v5493_v45 = vpop.eup %5492  ;;  %v6127_v55 = vld [vmem:[%s10933_s2 + $0xb0] sm:$0xff]  ;;  %v6128_v12 = vld [vmem:[%s10933_s2 + $0x88] sm:$0xff] }
0x1017   :  { %v5495_v21 = vpop.eup %5494 }
0x1018   :  { %v4956_v58 = vadd.f32 0.5, %v4955_v24  ;;  %v4963_v42 = vmul.f32 %v5493_v45, %v4952_v22  ;;  %v4960_v29 = vmul.f32 0.5, %v5495_v21  ;;  %v6129_v22 = vld [vmem:[%s10933_s2 + $0x98] sm:$0xff]  ;;  %v6130_v24 = vld [vmem:[%s10933_s2 + $0x80] sm:$0xff]  ;;  %v6132_v45 = vld [vmem:[%s10933_s2 + $0x68] sm:$0xff] }
0x1019   :  { %v6137_v21 = vld [vmem:[%s10933_s2 + $0x58] sm:$0xff] }
0x101a   :  { %v4962_v19 = vmul.f32 %v4956_v58, %v10635_v56  ;;  %v4961_v23 = vadd.f32 0.5, %v4960_v29  ;;  %v6131_v58 = vld [vmem:[%s10933_s2 + $0x90] sm:$0xff]  ;;  %v6138_v29 = vld [vmem:[%s10933_s2 + $0x40] sm:$0xff] }
0x101c   :  { %v4964_v26 = vadd.f32 %v4963_v42, %v4962_v19  ;;  %v6134_v19 = vld [vmem:[%s10933_s2 + $0x60] sm:$0xff]  ;;  %v6135_v42 = vld [vmem:[%s10933_s2 + $0x70] sm:$0xff] }
0x101e   :  { %5496 = vtanh.f32 %v4964_v26  ;;  %v10726_v59 = vsel %vm4974_vm14, %v4964_v26, %v10635_v56  ;;  %v6087_v56 = vld [vmem:[%s10933_s2 + $0x1f0] sm:$0xff]  ;;  %v6136_v26 = vld [vmem:[%s10933_s2 + $0x48] sm:$0xff] }
0x102b   :  { %v5497_v17 = vpop.eup %5496 }
0x102c   :  { %v4966_v50 = vmul.f32 %v5497_v17, %v4961_v23  ;;  %v6139_v23 = vld [vmem:[%s10933_s2 + $0x50] sm:$0xff]  ;;  %v6140_v17 = vld [vmem:[%s10933_s2 + $0x28] sm:$0xff] }
0x102e   :  { %v10729_v36 = vsel %vm4974_vm14, %v4966_v50, %v10638_v30  ;;  %v6089_v30 = vld [vmem:[%s10933_s2 + $0x1d8] sm:$0xff] }
0x102f   :  { %5045 = vmatmul.mubr.f32.vlgmr.msra.gmra.mxu0 %v10729_v36  ;;  %5116 = vmatmul.mubr.f32.vlgmr.msra.gmra.mxu1 %v10729_v36  ;;  %v6141_v50 = vld [vmem:[%s10933_s2 + $0x38] sm:$0xff] }
0x1030   :  { %5123 = vmatpush1.msra.mxu0 %v6086_v18  ;;  %5194 = vmatpush1.msra.mxu1 %v6087_v56  ;;  %v6142_v18 = vld [vmem:[%s10933_s2 + $0x20] sm:$0xff]  ;;  %v6143_v56 = vld [vmem:[%s10933_s2 + $0x30] sm:$0xff] }
0x1031   :  { %5124 = vmatprep.subr.mxu0 %v6088_v34  ;;  %5195 = vmatprep.subr.mxu1 %v6089_v30  ;;  %v4979_v34 = vunpack.c.h.bf16 %v10697_v8  ;;  %v6144_v30 = vld [vmem:[%s10933_s2 + $0x8] sm:$0xff]  ;;  %v6147_v8 = vld [vmem:[%s10933_s2 + $0x10] sm:$0xff] }
0x1032   :  { %5125 = vmatpush1.msra.mxu0 %v6090_v37  ;;  %5196 = vmatpush1.msra.mxu1 %v6091_v52  ;;  %v6145_v37 = vld [vmem:[%s10933_s2 + $0x18] sm:$0xff]  ;;  %v6146_v52 = vld [vmem:[%s10933_s2] sm:$0xff] }
0x1033   :  { %5126 = vmatprep.subr.mxu0 %v6092_v13  ;;  %5197 = vmatprep.subr.mxu1 %v6093_v10 }
0x1034   :  { %5127 = vmatpush1.msra.mxu0 %v6094_v1  ;;  %5198 = vmatpush1.msra.mxu1 %v6095_v61 }
0x1035   :  { %5128 = vmatprep.subr.mxu0 %v6096_v31  ;;  %5199 = vmatprep.subr.mxu1 %v6097_v9 }
0x1036   :  { %5129 = vmatpush1.msra.mxu0 %v6098_v44  ;;  %5200 = vmatpush1.msra.mxu1 %v6099_v3 }
0x1037   :  { %5130 = vmatprep.subr.mxu0 %v6100_v41  ;;  %5201 = vmatprep.subr.mxu1 %v6101_v57 }
0x1038   :  { %5131 = vmatpush1.msra.mxu0 %v6102_v2  ;;  %5202 = vmatpush1.msra.mxu1 %v6103_v51 }
0x1039   :  { %5132 = vmatprep.subr.mxu0 %v6104_v16  ;;  %5203 = vmatprep.subr.mxu1 %v6105_v62 }
0x103a   :  { %5133 = vmatpush1.msra.mxu0 %v6106_v32  ;;  %5204 = vmatpush1.msra.mxu1 %v6107_v28 }
0x103b   :  { %5134 = vmatprep.subr.mxu0 %v6108_v38  ;;  %5205 = vmatprep.subr.mxu1 %v6109_v25 }
0x103c   :  { %5135 = vmatpush1.msra.mxu0 %v6110_v33  ;;  %5206 = vmatpush1.msra.mxu1 %v6111_v35 }
0x103d   :  { %5136 = vmatprep.subr.mxu0 %v6112_v63  ;;  %5207 = vmatprep.subr.mxu1 %v6113_v14 }
0x103e   :  { %5137 = vmatpush1.msra.mxu0 %v6114_v4  ;;  %5208 = vmatpush1.msra.mxu1 %v6115_v43 }
0x103f   :  { %5138 = vmatprep.subr.mxu0 %v6116_v47  ;;  %5209 = vmatprep.subr.mxu1 %v6117_v6 }
0x1040   :  { %5139 = vmatpush1.msra.mxu0 %v6118_v15  ;;  %5210 = vmatpush1.msra.mxu1 %v6119_v49  ;;  %v5292_v49 = vpop.permute.xlu1 %5291 }
0x1041   :  { %5140 = vmatprep.subr.mxu0 %v6120_v46  ;;  %5211 = vmatprep.subr.mxu1 %v6121_v0  ;;  %vm5293_vm15 = vcmp.eq.s32.totalorder %v5292_v49, 1 }
0x1042   :  { %5141 = vmatpush1.msra.mxu0 %v6122_v27  ;;  %5212 = vmatpush1.msra.mxu1 %v6123_v5 }
0x1043   :  { %5142 = vmatprep.subr.mxu0 %v6124_v60  ;;  %5213 = vmatprep.subr.mxu1 %v6125_v39 }
0x1044   :  { %5143 = vmatpush1.msra.mxu0 %v6126_v7  ;;  %5214 = vmatpush1.msra.mxu1 %v6127_v55 }
0x1045   :  { %5144 = vmatprep.subr.mxu0 %v6128_v12  ;;  %5215 = vmatprep.subr.mxu1 %v6129_v22 }
0x1046   :  { %5145 = vmatpush1.msra.mxu0 %v6130_v24  ;;  %5216 = vmatpush1.msra.mxu1 %v6131_v58 }
0x1047   :  { %5146 = vmatprep.subr.mxu0 %v6132_v45  ;;  %5217 = vmatprep.subr.mxu1 %v6133_v48 }
0x1048   :  { %5147 = vmatpush1.msra.mxu0 %v6134_v19  ;;  %5218 = vmatpush1.msra.mxu1 %v6135_v42 }
0x1049   :  { %5148 = vmatprep.subr.mxu0 %v6136_v26  ;;  %5219 = vmatprep.subr.mxu1 %v6137_v21 }
0x104a   :  { %5149 = vmatpush1.msra.mxu0 %v6138_v29  ;;  %5220 = vmatpush1.msra.mxu1 %v6139_v23 }
0x104b   :  { %5150 = vmatprep.subr.mxu0 %v6140_v17  ;;  %5221 = vmatprep.subr.mxu1 %v6141_v50 }
0x104c   :  { %5151 = vmatpush1.msra.mxu0 %v6142_v18  ;;  %5222 = vmatpush1.msra.mxu1 %v6143_v56 }
0x104d   :  { %5152 = vmatprep.subr.mxu0 %v6144_v30  ;;  %5223 = vmatprep.subr.mxu1 %v6145_v37 }
0x104e   :  { %5153 = vmatpush1.msra.mxu0 %v6146_v52  ;;  %5186 = vmatprep.mubr.f32.mxu0 %v12719_v11 }
0x104f   :  { %5224 = vmatpush1.msra.mxu1 %v6147_v8  ;;  %5257 = vmatprep.mubr.f32.mxu1 %v12719_v11 }
0x1050   :  { %5187 = vmatmul.mubr.f32.vlgmr.msra.gmra.mxu0 %v4979_v34  ;;  %5258 = vmatmul.mubr.f32.vlgmr.msra.gmra.mxu1 %v4979_v34 }
0x10ef   :  { %v5046_v13 = vpop.f32.mrf.mxu0  ;;  %v5117_v10 = vpop.f32.mrf.mxu1 }
0x10f1   :  { %v5048_v1 = vpop.f32.mrf.mxu0  ;;  %v5119_v61 = vpop.f32.mrf.mxu1 }
0x1110   :  { %v5188_v31 = vpop.f32.mrf.mxu0  ;;  %v5259_v44 = vpop.f32.mrf.mxu1 }
0x1111   :  { %v5189_v9 = vadd.f32 %v5188_v31, %v5046_v13  ;;  %v5260_v51 = vadd.f32 %v5259_v44, %v5117_v10 }
0x1112   :  { %v5190_v3 = vpop.f32.mrf.mxu0  ;;  %v5261_v11 = vpop.f32.mrf.mxu1 }
0x1113   :  { %v5264_v41 = vadd.f32 %v5189_v9, %v6890_v54  ;;  %v5191_v57 = vadd.f32 %v5190_v3, %v5048_v1  ;;  %v5266_v32 = vadd.f32 %v5260_v51, %v6895_v40  ;;  %v5262_v28 = vadd.f32 %v5261_v11, %v5119_v61 }
0x1115   :  { %v5268_v2 = vmul.f32 0.5, %v5264_v41  ;;  %v5265_v16 = vadd.f32 %v5191_v57, %v11964_v20  ;;  %v5267_v38 = vadd.f32 %v5262_v28, %v6899_v53 }
0x1117   :  { %5498 = vtanh.f32 %v5268_v2  ;;  %v5272_v62 = vmul.f32 0.5, %v5265_v16  ;;  %v5277_v25 = vmul.f32 0.5, %v5267_v38 }
0x1119   :  { %5500 = vtanh.f32 %v5272_v62 }
0x111a   :  { %5502 = vtanh.f32 %v5266_v32 }
0x111b   :  { %5504 = vtanh.f32 %v5277_v25 }
0x1124   :  { %v5499_v33 = vpop.eup %5498 }
0x1125   :  { %v5270_v35 = vmul.f32 0.5, %v5499_v33 }
0x1126   :  { %v5501_v63 = vpop.eup %5500 }
0x1127   :  { %v5271_v54 = vadd.f32 0.5, %v5270_v35  ;;  %v5274_v14 = vmul.f32 0.5, %v5501_v63  ;;  %v5503_v43 = vpop.eup %5502 }
0x1128   :  { %v5505_v40 = vpop.eup %5504 }
0x1129   :  { %v5275_v4 = vadd.f32 0.5, %v5274_v14  ;;  %v5282_v47 = vmul.f32 %v5503_v43, %v5271_v54  ;;  %v5279_v15 = vmul.f32 0.5, %v5505_v40 }
0x112b   :  { %v5281_v20 = vmul.f32 %v5275_v4, %v10726_v59  ;;  %v5280_v46 = vadd.f32 0.5, %v5279_v15 }
0x112d   :  { %v5283_v6 = vadd.f32 %v5282_v47, %v5281_v20 }
0x112f   :  { %5506 = vtanh.f32 %v5283_v6 }
0x113c   :  { %v5507_v0 = vpop.eup %5506 }
0x113d   :  { %v5285_v53 = vmul.f32 %v5507_v0, %v5280_v46 }
0x113f   :  { %v5294_v27 = vsel %vm5293_vm15, %v5285_v53, %v10729_v36 }
0x1140   :  { %5302 = vst [vmem:[%s10936_s5] sm:$0xff] %v5294_v27 }
0x1141   :  { %5307 = vsyncpa [#allocation5], 1 }

</bundles_post_ra>
